<compile_context>
chip_gen: v7x
topology: tpu7x:2x2x1
jax: 0.10.0
libtpu: 0.0.40
codegen_flags: <defaults>
</compile_context>

<pallas_src>
import functools

import jax
import jax.numpy as jnp
import numpy as np
from jax import lax
from jax.experimental import pallas as pl
from jax.experimental.pallas import tpu as pltpu

EPS = 1e-5  # InstanceNorm3d default eps


# ----------------------------- fused Pallas kernel -----------------------------

def _attention_gate_kernel(
    us_ref, ds_ref, mask_ref, mp_ref,
    wq_ref, gq_ref, bq_ref,
    wkv_ref, gkv_ref, bkv_ref,
    wg_ref, bg_ref,
    w1_ref, g1_ref, b1_ref,
    w2_ref, g2_ref, b2_ref,
    wsc_ref, bsc_ref,
    o_ref,
    *, rp_pad, center, offsets, n_valid, afz):
  """Whole AttentionGate forward for one sample, channels-major (C, Rp_pad)."""
  mask = mask_ref[...]                       # (1, rp_pad): 1.0 on interior voxels
  inv = 1.0 / float(n_valid)

  def conv3(x, w_ref):
    """3x3x3 'SAME' conv as ONE matmul (Cout, 27*Cin) @ (27*Cin, rp_pad).

    x is (Cin, rp_pad) f32 with zero ring/tail columns.  The im2col slab is
    built in VMEM from 27 lane-shifted slices of the zero-extended input; the
    MXU sees bf16 operands with f32 accumulation.
    """
    cin = x.shape[0]
    xb = x.astype(jnp.bfloat16)
    zeros = jnp.zeros((cin, center), jnp.bfloat16)
    xe = jnp.concatenate([zeros, xb, zeros], axis=1)            # (Cin, rp_pad+2*center)
    slab = jnp.concatenate(
        [xe[:, off:off + rp_pad] for off in offsets], axis=0)   # (27*Cin, rp_pad)
    w = w_ref[...].astype(jnp.bfloat16)                         # (Cout, 27*Cin)
    return jnp.dot(w, slab, preferred_element_type=jnp.float32)

  def inorm(acc, g_ref, b_ref):
    """Masked InstanceNorm3d(affine=True) with one-pass (sum, sumsq) stats."""
    am = acc * mask
    s1 = jnp.sum(am, axis=-1, keepdims=True)
    s2 = jnp.sum(am * acc, axis=-1, keepdims=True)
    mean = s1 * inv
    var = jnp.maximum(s2 * inv - mean * mean, 0.0)
    return (acc - mean) * lax.rsqrt(var + EPS) * g_ref[...] + b_ref[...]

  # 1) trilinear upsample (align_corners=True) straight into the padded-flat
  #    layout; MP's ring/tail columns are zero, so `ups` is already a valid
  #    zero-padded conv input.
  ups = jnp.dot(us_ref[0], mp_ref[...], preferred_element_type=jnp.float32)   # (ufz, rp_pad)

  # 2) q = IN(conv_q(upsampled))
  q = inorm(conv3(ups, wq_ref), gq_ref, bq_ref)                               # (afz, rp_pad)

  # 3) merged k/v conv over ds (row-packed weights & affines -> one matmul)
  kv = inorm(conv3(ds_ref[0], wkv_ref), gkv_ref, bkv_ref)                     # (afz+ufz, rp_pad)
  k = kv[:afz, :]
  v = kv[afz:, :]

  # 4) gate + combine: relu(v * sigmoid(Wg_wide @ relu(q+k) + bg) + ups)
  #    Wg_wide row c is the 1x1 gate weight of attention head (c % ahz).
  s = jnp.maximum(q + k, 0.0)
  gate = jax.nn.sigmoid(
      jnp.dot(wg_ref[...], s, preferred_element_type=jnp.float32) + bg_ref[...])
  combined = jnp.maximum(v * gate + ups, 0.0) * mask                          # (ufz, rp_pad)

  # 5) ConvBuildingBlock, first half: c1 = relu(IN(conv1(combined)))
  c1 = jnp.maximum(inorm(conv3(combined, w1_ref), g1_ref, b1_ref), 0.0) * mask   # (ofz, rp_pad)

  # 6) out = relu(IN(conv2(c1)) + shortcut_1x1(combined)); ring rows masked to 0
  y2 = inorm(conv3(c1, w2_ref), g2_ref, b2_ref)
  sc = jnp.dot(wsc_ref[...], combined, preferred_element_type=jnp.float32) + bsc_ref[...]
  o_ref[0] = (jnp.maximum(y2 + sc, 0.0) * mask).astype(o_ref.dtype)


# ------------------------------- glue / wrapper -------------------------------

def _axis_interp_matrix(out_size, in_size):
  """1-D linear interpolation matrix, align_corners=True (PyTorch semantics)."""
  m = np.zeros((out_size, in_size), np.float32)
  if out_size == 1:
    m[0, 0] = 1.0
    return m
  scale = (in_size - 1) / (out_size - 1)
  for i in range(out_size):
    s = i * scale
    j0 = min(int(np.floor(s)), in_size - 1)
    j1 = min(j0 + 1, in_size - 1)
    f = s - j0
    m[i, j0] += 1.0 - f
    m[i, j1] += f
  return m


def attention_gate_forward(us, ds, params, *, ahz):
  """us: (N, ufz, Du, Hu, Wu), ds: (N, dfz, D, H, W)  (PyTorch NCDHW layout)."""
  N, ufz, Du, Hu, Wu = us.shape
  _, dfz, D, H, W = ds.shape
  afz = params['wq'].shape[-1]
  ofz = params['w1'].shape[-1]

  Dp, Hp, Wp = D + 2, H + 2, W + 2
  Rp = Dp * Hp * Wp                          # padded-flat spatial length
  rp_pad = ((Rp + 127) // 128) * 128         # lane-dense padding
  Ru = Du * Hu * Wu
  center = Hp * Wp + Wp + 1                  # flat offset of tap (1,1,1)
  n_valid = D * H * W
  offsets = tuple(kd * Hp * Wp + kh * Wp + kw
                  for kd in range(3) for kh in range(3) for kw in range(3))

  # interior-voxel mask over the padded-flat (lane) axis
  mask_np = np.zeros((Dp, Hp, Wp), np.float32)
  mask_np[1:-1, 1:-1, 1:-1] = 1.0
  mask_flat = np.zeros((1, rp_pad), np.float32)
  mask_flat[0, :Rp] = mask_np.reshape(-1)
  mask = jnp.asarray(mask_flat)

  # dense trilinear interpolation matrix scattered into the padded-flat layout:
  # ups_P = us_cm @ MP  (ring/tail columns of MP are zero).
  # TODO(synk): use the separable per-axis form for large volumes.
  m_full = np.kron(_axis_interp_matrix(D, Du),
                   np.kron(_axis_interp_matrix(H, Hu), _axis_interp_matrix(W, Wu)))
  pidx = np.arange(Rp).reshape(Dp, Hp, Wp)[1:-1, 1:-1, 1:-1].reshape(-1)
  mp_np = np.zeros((Ru, rp_pad), np.float32)
  mp_np[:, pidx] = m_full.T
  mp = jnp.asarray(mp_np)

  # channels-major inputs (NCDHW already has channels before spatial)
  us_cm = us.reshape(N, ufz, Ru)
  ds_cm = jnp.pad(ds, ((0, 0), (0, 0), (1, 1), (1, 1), (1, 1))).reshape(N, dfz, Rp)
  ds_cm = jnp.pad(ds_cm, ((0, 0), (0, 0), (0, rp_pad - Rp)))

  # channels-major weights: (27, Cin, Cout) -> (Cout, 27*Cin), row-major taps
  def cm3(w27):
    cin, cout = w27.shape[1], w27.shape[2]
    return jnp.transpose(w27, (2, 0, 1)).reshape(cout, 27 * cin)

  wq = cm3(params['wq'])
  wkv = jnp.concatenate([cm3(params['wk']), cm3(params['wv'])], axis=0)
  w1 = cm3(params['w1'])
  w2 = cm3(params['w2'])
  gq, bq = params['gq'].reshape(-1, 1), params['bq'].reshape(-1, 1)
  gkv = jnp.concatenate([params['gk'].reshape(-1, 1), params['gv'].reshape(-1, 1)], axis=0)
  bkv = jnp.concatenate([params['bk'].reshape(-1, 1), params['bv'].reshape(-1, 1)], axis=0)
  g1, b1 = params['g1'].reshape(-1, 1), params['b1'].reshape(-1, 1)
  g2, b2 = params['g2'].reshape(-1, 1), params['b2'].reshape(-1, 1)
  # gate 1x1 weight pre-widened: output row c uses attention head (c % ahz)
  wg_wide = jnp.tile(params['wg'], (1, ufz // ahz)).T            # (ufz, afz)
  bg_wide = jnp.tile(params['bg'], (1, ufz // ahz)).reshape(-1, 1)
  wsc = params['wsc'].T                                           # (ofz, ufz)
  bsc = params['bsc'].reshape(-1, 1)

  kernel = functools.partial(
      _attention_gate_kernel, rp_pad=rp_pad, center=center, offsets=offsets,
      n_valid=n_valid, afz=afz)

  const2 = lambda n: (0, 0)
  out_p = pl.pallas_call(
      kernel,
      out_shape=jax.ShapeDtypeStruct((N, ofz, rp_pad), jnp.float32),
      grid_spec=pltpu.PrefetchScalarGridSpec(
          num_scalar_prefetch=0,
          grid=(N,),
          in_specs=[
              pl.BlockSpec((1, ufz, Ru), lambda n: (n, 0, 0)),
              pl.BlockSpec((1, dfz, rp_pad), lambda n: (n, 0, 0)),
              pl.BlockSpec((1, rp_pad), const2),
              pl.BlockSpec((Ru, rp_pad), const2),
              pl.BlockSpec((afz, 27 * ufz), const2),
              pl.BlockSpec((afz, 1), const2),
              pl.BlockSpec((afz, 1), const2),
              pl.BlockSpec((afz + ufz, 27 * dfz), const2),
              pl.BlockSpec((afz + ufz, 1), const2),
              pl.BlockSpec((afz + ufz, 1), const2),
              pl.BlockSpec((ufz, afz), const2),
              pl.BlockSpec((ufz, 1), const2),
              pl.BlockSpec((ofz, 27 * ufz), const2),
              pl.BlockSpec((ofz, 1), const2),
              pl.BlockSpec((ofz, 1), const2),
              pl.BlockSpec((ofz, 27 * ofz), const2),
              pl.BlockSpec((ofz, 1), const2),
              pl.BlockSpec((ofz, 1), const2),
              pl.BlockSpec((ofz, ufz), const2),
              pl.BlockSpec((ofz, 1), const2),
          ],
          out_specs=pl.BlockSpec((1, ofz, rp_pad), lambda n: (n, 0, 0)),
      ),
      compiler_params=pltpu.CompilerParams(dimension_semantics=("parallel",)),
  )(us_cm, ds_cm, mask, mp, wq, gq, bq, wkv, gkv, bkv, wg_wide, bg_wide,
    w1, g1, b1, w2, g2, b2, wsc, bsc)

  out = out_p[:, :, :Rp].reshape(N, ofz, Dp, Hp, Wp)[:, :, 1:-1, 1:-1, 1:-1]
  return out                                                   # NCDHW


# -------------------------------- parameters --------------------------------

def init_params(key, dfz, ufz, ofz, afz, ahz):
  keys = jax.random.split(key, 14)

  def conv3_w(k, cin, cout):  # torch (Cout,Cin,3,3,3) -> (27, Cin, Cout)
    w = jax.random.normal(k, (cout, cin, 3, 3, 3), jnp.float32) * 0.1
    return jnp.transpose(w, (2, 3, 4, 1, 0)).reshape(27, cin, cout)

  def conv1_w(k, cin, cout):  # (Cout,Cin,1,1,1) -> (Cin, Cout)
    w = jax.random.normal(k, (cout, cin, 1, 1, 1), jnp.float32) * 0.1
    return jnp.transpose(w, (2, 3, 4, 1, 0)).reshape(cin, cout)

  def in_affine(k, c):
    g = 1.0 + 0.1 * jax.random.normal(k, (1, c), jnp.float32)
    b = 0.1 * jax.random.normal(jax.random.fold_in(k, 1), (1, c), jnp.float32)
    return g, b

  p = {}
  p['wq'] = conv3_w(keys[0], ufz, afz); p['gq'], p['bq'] = in_affine(keys[1], afz)
  p['wk'] = conv3_w(keys[2], dfz, afz); p['gk'], p['bk'] = in_affine(keys[3], afz)
  p['wv'] = conv3_w(keys[4], dfz, ufz); p['gv'], p['bv'] = in_affine(keys[5], ufz)
  p['wg'] = conv1_w(keys[6], afz, ahz)
  p['bg'] = 0.1 * jax.random.normal(keys[7], (1, ahz), jnp.float32)
  p['w1'] = conv3_w(keys[8], ufz, ofz); p['g1'], p['b1'] = in_affine(keys[9], ofz)
  p['w2'] = conv3_w(keys[10], ofz, ofz); p['g2'], p['b2'] = in_affine(keys[11], ofz)
  p['wsc'] = conv1_w(keys[12], ufz, ofz)  # shortcut 1x1 (ufz != ofz)
  p['bsc'] = 0.1 * jax.random.normal(keys[13], (1, ofz), jnp.float32)
  return p


# --------------------------- pure-JAX reference ---------------------------

def _conv3_ref(x, w27, cin):
  w = w27.reshape(3, 3, 3, cin, -1)
  return lax.conv_general_dilated(
      x, w, (1, 1, 1), 'SAME',
      dimension_numbers=('NDHWC', 'DHWIO', 'NDHWC'),
      precision=lax.Precision.HIGHEST)


def _inorm_ref(x, g, b):
  mean = jnp.mean(x, axis=(1, 2, 3), keepdims=True)
  var = jnp.mean((x - mean) ** 2, axis=(1, 2, 3), keepdims=True)
  return (x - mean) * lax.rsqrt(var + EPS) * g.reshape(1, 1, 1, 1, -1) + b.reshape(1, 1, 1, 1, -1)


def reference_forward(us, ds, params, *, ahz):
  N, ufz, Du, Hu, Wu = us.shape
  _, dfz, D, H, W = ds.shape
  us_c = jnp.transpose(us, (0, 2, 3, 4, 1))
  ds_c = jnp.transpose(ds, (0, 2, 3, 4, 1))
  mi = jnp.asarray(
      np.kron(_axis_interp_matrix(D, Du),
              np.kron(_axis_interp_matrix(H, Hu), _axis_interp_matrix(W, Wu))))
  ups = jnp.einsum('os,nsc->noc', mi, us_c.reshape(N, Du * Hu * Wu, ufz),
                   precision=lax.Precision.HIGHEST).reshape(N, D, H, W, ufz)
  q = _inorm_ref(_conv3_ref(ups, params['wq'], ufz), params['gq'], params['bq'])
  k = _inorm_ref(_conv3_ref(ds_c, params['wk'], dfz), params['gk'], params['bk'])
  v = _inorm_ref(_conv3_ref(ds_c, params['wv'], dfz), params['gv'], params['bv'])
  gate = jax.nn.sigmoid(
      jnp.einsum('ndhwc,ce->ndhwe', jnp.maximum(q + k, 0.0), params['wg'],
                 precision=lax.Precision.HIGHEST) + params['bg'].reshape(1, 1, 1, 1, -1))
  gate_full = jnp.concatenate([gate] * (ufz // ahz), axis=-1)
  comb = jnp.maximum(v * gate_full + ups, 0.0)
  c1 = jnp.maximum(_inorm_ref(_conv3_ref(comb, params['w1'], ufz),
                              params['g1'], params['b1']), 0.0)
  c2 = _inorm_ref(_conv3_ref(c1, params['w2'], c1.shape[-1]), params['g2'], params['b2'])
  sc = jnp.einsum('ndhwc,ce->ndhwe', comb, params['wsc'],
                  precision=lax.Precision.HIGHEST) + params['bsc'].reshape(1, 1, 1, 1, -1)
  out = jnp.maximum(c2 + sc, 0.0)
  return jnp.transpose(out, (0, 4, 1, 2, 3))


# ----------------------------------- main ----------------------------------

if __name__ == "__main__":
  key = jax.random.PRNGKey(0)
  k_us, k_ds, k_p = jax.random.split(key, 3)

  # small config: down_features=8, up_features=8, out_features=16,
  #               attention_features=16, attention_heads=4; N=4 so a v7x
  #               megacore gets 2 grid steps per TensorCore.
  N, dfz, ufz, ofz, afz, ahz = 4, 8, 8, 16, 16, 4
  D = H = W = 8       # `ds` spatial size
  Du = Hu = Wu = 4    # `us` spatial size (upsampled inside)

  us = jax.random.normal(k_us, (N, ufz, Du, Hu, Wu), jnp.float32)
  ds = jax.random.normal(k_ds, (N, dfz, D, H, W), jnp.float32)
  params = init_params(k_p, dfz, ufz, ofz, afz, ahz)

  fwd = jax.jit(functools.partial(attention_gate_forward, ahz=ahz))
  out = jax.block_until_ready(fwd(us, ds, params))
  assert out.shape == (N, ofz, D, H, W)

  ref = reference_forward(us, ds, params, ahz=ahz)
  # conv operands are fed to the MXU in bf16 (f32 accumulation / IN math)
  np.testing.assert_allclose(np.asarray(out), np.asarray(ref), rtol=5e-2, atol=5e-2)

  print("KERNEL_OK")
</pallas_src>

<mosaic_0001>
module attributes {stable_mosaic.version = 11 : i64} {
  func.func @_attention_gate_kernel(%arg0: i32, %arg1: memref<1x8x64xf32, #tpu.memory_space<vmem>>, %arg2: memref<1x8x1024xf32, #tpu.memory_space<vmem>>, %arg3: memref<1x1024xf32, #tpu.memory_space<vmem>>, %arg4: memref<64x1024xf32, #tpu.memory_space<vmem>>, %arg5: memref<16x216xf32, #tpu.memory_space<vmem>>, %arg6: memref<16x1xf32, #tpu.memory_space<vmem>>, %arg7: memref<16x1xf32, #tpu.memory_space<vmem>>, %arg8: memref<24x216xf32, #tpu.memory_space<vmem>>, %arg9: memref<24x1xf32, #tpu.memory_space<vmem>>, %arg10: memref<24x1xf32, #tpu.memory_space<vmem>>, %arg11: memref<8x16xf32, #tpu.memory_space<vmem>>, %arg12: memref<8x1xf32, #tpu.memory_space<vmem>>, %arg13: memref<16x216xf32, #tpu.memory_space<vmem>>, %arg14: memref<16x1xf32, #tpu.memory_space<vmem>>, %arg15: memref<16x1xf32, #tpu.memory_space<vmem>>, %arg16: memref<16x432xf32, #tpu.memory_space<vmem>>, %arg17: memref<16x1xf32, #tpu.memory_space<vmem>>, %arg18: memref<16x1xf32, #tpu.memory_space<vmem>>, %arg19: memref<16x8xf32, #tpu.memory_space<vmem>>, %arg20: memref<16x1xf32, #tpu.memory_space<vmem>>, %arg21: memref<1x16x1024xf32, #tpu.memory_space<vmem>>) attributes {dimension_semantics = [#tpu.dimension_semantics<parallel>], iteration_bounds = array<i64: 4>, scalar_prefetch = 0 : i64, scratch_operands = 0 : i64, tpu.core_type = #tpu.core_type<tc>, window_params = [{transform_indices = @transform_0, window_bounds = array<i64: 1, 8, 64>}, {transform_indices = @transform_1, window_bounds = array<i64: 1, 8, 1024>}, {pipeline_mode = #tpu.pipeline_mode<synchronous>, transform_indices = @transform_2, window_bounds = array<i64: 1, 1024>}, {pipeline_mode = #tpu.pipeline_mode<synchronous>, transform_indices = @transform_3, window_bounds = array<i64: 64, 1024>}, {pipeline_mode = #tpu.pipeline_mode<synchronous>, transform_indices = @transform_4, window_bounds = array<i64: 16, 216>}, {pipeline_mode = #tpu.pipeline_mode<synchronous>, transform_indices = @transform_5, window_bounds = array<i64: 16, 1>}, {pipeline_mode = #tpu.pipeline_mode<synchronous>, transform_indices = @transform_6, window_bounds = array<i64: 16, 1>}, {pipeline_mode = #tpu.pipeline_mode<synchronous>, transform_indices = @transform_7, window_bounds = array<i64: 24, 216>}, {pipeline_mode = #tpu.pipeline_mode<synchronous>, transform_indices = @transform_8, window_bounds = array<i64: 24, 1>}, {pipeline_mode = #tpu.pipeline_mode<synchronous>, transform_indices = @transform_9, window_bounds = array<i64: 24, 1>}, {pipeline_mode = #tpu.pipeline_mode<synchronous>, transform_indices = @transform_10, window_bounds = array<i64: 8, 16>}, {pipeline_mode = #tpu.pipeline_mode<synchronous>, transform_indices = @transform_11, window_bounds = array<i64: 8, 1>}, {pipeline_mode = #tpu.pipeline_mode<synchronous>, transform_indices = @transform_12, window_bounds = array<i64: 16, 216>}, {pipeline_mode = #tpu.pipeline_mode<synchronous>, transform_indices = @transform_13, window_bounds = array<i64: 16, 1>}, {pipeline_mode = #tpu.pipeline_mode<synchronous>, transform_indices = @transform_14, window_bounds = array<i64: 16, 1>}, {pipeline_mode = #tpu.pipeline_mode<synchronous>, transform_indices = @transform_15, window_bounds = array<i64: 16, 432>}, {pipeline_mode = #tpu.pipeline_mode<synchronous>, transform_indices = @transform_16, window_bounds = array<i64: 16, 1>}, {pipeline_mode = #tpu.pipeline_mode<synchronous>, transform_indices = @transform_17, window_bounds = array<i64: 16, 1>}, {pipeline_mode = #tpu.pipeline_mode<synchronous>, transform_indices = @transform_18, window_bounds = array<i64: 16, 8>}, {pipeline_mode = #tpu.pipeline_mode<synchronous>, transform_indices = @transform_19, window_bounds = array<i64: 16, 1>}, {transform_indices = @transform_20, window_bounds = array<i64: 1, 16, 1024>}]} {
    %c0 = arith.constant 0 : index
    %c0_0 = arith.constant 0 : index
    %0 = vector.load %arg3[%c0, %c0_0] : memref<1x1024xf32, #tpu.memory_space<vmem>>, vector<1x1024xf32>
    %c0_1 = arith.constant 0 : index
    %c0_2 = arith.constant 0 : index
    %c0_3 = arith.constant 0 : index
    %1 = vector.load %arg1[%c0_1, %c0_2, %c0_3] : memref<1x8x64xf32, #tpu.memory_space<vmem>>, vector<1x8x64xf32>
    %2 = vector.shape_cast %1 : vector<1x8x64xf32> to vector<8x64xf32>
    %c0_4 = arith.constant 0 : index
    %c0_5 = arith.constant 0 : index
    %3 = vector.load %arg4[%c0_4, %c0_5] : memref<64x1024xf32, #tpu.memory_space<vmem>>, vector<64x1024xf32>
    %cst = arith.constant dense<0.000000e+00> : vector<8x1024xf32>
    %4 = tpu.matmul %2, %3, %cst {dimension_numbers = #tpu.dot_dimension_numbers<[1], [0], [0], [1], [0, 0, 1, 1], [], []>} : vector<8x64xf32>, vector<64x1024xf32>, vector<8x1024xf32> -> vector<8x1024xf32>
    %5 = arith.truncf %4 : vector<8x1024xf32> to vector<8x1024xbf16>
    %cst_6 = arith.constant 0.000000e+00 : bf16
    %6 = vector.broadcast %cst_6 : bf16 to vector<8x111xbf16>
    %7 = tpu.concatenate %6, %5, %6 in 1 : vector<8x111xbf16>, vector<8x1024xbf16>, vector<8x111xbf16> -> vector<8x1246xbf16>
    %8 = vector.extract_strided_slice %7 {offsets = [0, 0], sizes = [8, 1024], strides = [1, 1]} : vector<8x1246xbf16> to vector<8x1024xbf16>
    %9 = vector.extract_strided_slice %7 {offsets = [0, 1], sizes = [8, 1024], strides = [1, 1]} : vector<8x1246xbf16> to vector<8x1024xbf16>
    %10 = vector.extract_strided_slice %7 {offsets = [0, 2], sizes = [8, 1024], strides = [1, 1]} : vector<8x1246xbf16> to vector<8x1024xbf16>
    %11 = vector.extract_strided_slice %7 {offsets = [0, 10], sizes = [8, 1024], strides = [1, 1]} : vector<8x1246xbf16> to vector<8x1024xbf16>
    %12 = vector.extract_strided_slice %7 {offsets = [0, 11], sizes = [8, 1024], strides = [1, 1]} : vector<8x1246xbf16> to vector<8x1024xbf16>
    %13 = vector.extract_strided_slice %7 {offsets = [0, 12], sizes = [8, 1024], strides = [1, 1]} : vector<8x1246xbf16> to vector<8x1024xbf16>
    %14 = vector.extract_strided_slice %7 {offsets = [0, 20], sizes = [8, 1024], strides = [1, 1]} : vector<8x1246xbf16> to vector<8x1024xbf16>
    %15 = vector.extract_strided_slice %7 {offsets = [0, 21], sizes = [8, 1024], strides = [1, 1]} : vector<8x1246xbf16> to vector<8x1024xbf16>
    %16 = vector.extract_strided_slice %7 {offsets = [0, 22], sizes = [8, 1024], strides = [1, 1]} : vector<8x1246xbf16> to vector<8x1024xbf16>
    %17 = vector.extract_strided_slice %7 {offsets = [0, 100], sizes = [8, 1024], strides = [1, 1]} : vector<8x1246xbf16> to vector<8x1024xbf16>
    %18 = vector.extract_strided_slice %7 {offsets = [0, 101], sizes = [8, 1024], strides = [1, 1]} : vector<8x1246xbf16> to vector<8x1024xbf16>
    %19 = vector.extract_strided_slice %7 {offsets = [0, 102], sizes = [8, 1024], strides = [1, 1]} : vector<8x1246xbf16> to vector<8x1024xbf16>
    %20 = vector.extract_strided_slice %7 {offsets = [0, 110], sizes = [8, 1024], strides = [1, 1]} : vector<8x1246xbf16> to vector<8x1024xbf16>
    %21 = vector.extract_strided_slice %7 {offsets = [0, 111], sizes = [8, 1024], strides = [1, 1]} : vector<8x1246xbf16> to vector<8x1024xbf16>
    %22 = vector.extract_strided_slice %7 {offsets = [0, 112], sizes = [8, 1024], strides = [1, 1]} : vector<8x1246xbf16> to vector<8x1024xbf16>
    %23 = vector.extract_strided_slice %7 {offsets = [0, 120], sizes = [8, 1024], strides = [1, 1]} : vector<8x1246xbf16> to vector<8x1024xbf16>
    %24 = vector.extract_strided_slice %7 {offsets = [0, 121], sizes = [8, 1024], strides = [1, 1]} : vector<8x1246xbf16> to vector<8x1024xbf16>
    %25 = vector.extract_strided_slice %7 {offsets = [0, 122], sizes = [8, 1024], strides = [1, 1]} : vector<8x1246xbf16> to vector<8x1024xbf16>
    %26 = vector.extract_strided_slice %7 {offsets = [0, 200], sizes = [8, 1024], strides = [1, 1]} : vector<8x1246xbf16> to vector<8x1024xbf16>
    %27 = vector.extract_strided_slice %7 {offsets = [0, 201], sizes = [8, 1024], strides = [1, 1]} : vector<8x1246xbf16> to vector<8x1024xbf16>
    %28 = vector.extract_strided_slice %7 {offsets = [0, 202], sizes = [8, 1024], strides = [1, 1]} : vector<8x1246xbf16> to vector<8x1024xbf16>
    %29 = vector.extract_strided_slice %7 {offsets = [0, 210], sizes = [8, 1024], strides = [1, 1]} : vector<8x1246xbf16> to vector<8x1024xbf16>
    %30 = vector.extract_strided_slice %7 {offsets = [0, 211], sizes = [8, 1024], strides = [1, 1]} : vector<8x1246xbf16> to vector<8x1024xbf16>
    %31 = vector.extract_strided_slice %7 {offsets = [0, 212], sizes = [8, 1024], strides = [1, 1]} : vector<8x1246xbf16> to vector<8x1024xbf16>
    %32 = vector.extract_strided_slice %7 {offsets = [0, 220], sizes = [8, 1024], strides = [1, 1]} : vector<8x1246xbf16> to vector<8x1024xbf16>
    %33 = vector.extract_strided_slice %7 {offsets = [0, 221], sizes = [8, 1024], strides = [1, 1]} : vector<8x1246xbf16> to vector<8x1024xbf16>
    %34 = vector.extract_strided_slice %7 {offsets = [0, 222], sizes = [8, 1024], strides = [1, 1]} : vector<8x1246xbf16> to vector<8x1024xbf16>
    %35 = tpu.concatenate %8, %9, %10, %11, %12, %13, %14, %15, %16, %17, %18, %19, %20, %21, %22, %23 in 0 : vector<8x1024xbf16>, vector<8x1024xbf16>, vector<8x1024xbf16>, vector<8x1024xbf16>, vector<8x1024xbf16>, vector<8x1024xbf16>, vector<8x1024xbf16>, vector<8x1024xbf16>, vector<8x1024xbf16>, vector<8x1024xbf16>, vector<8x1024xbf16>, vector<8x1024xbf16>, vector<8x1024xbf16>, vector<8x1024xbf16>, vector<8x1024xbf16>, vector<8x1024xbf16> -> vector<128x1024xbf16>
    %36 = tpu.concatenate %24, %25, %26, %27, %28, %29, %30, %31, %32, %33, %34 in 0 : vector<8x1024xbf16>, vector<8x1024xbf16>, vector<8x1024xbf16>, vector<8x1024xbf16>, vector<8x1024xbf16>, vector<8x1024xbf16>, vector<8x1024xbf16>, vector<8x1024xbf16>, vector<8x1024xbf16>, vector<8x1024xbf16>, vector<8x1024xbf16> -> vector<88x1024xbf16>
    %37 = tpu.concatenate %35, %36 in 0 : vector<128x1024xbf16>, vector<88x1024xbf16> -> vector<216x1024xbf16>
    %c0_7 = arith.constant 0 : index
    %c0_8 = arith.constant 0 : index
    %38 = vector.load %arg5[%c0_7, %c0_8] : memref<16x216xf32, #tpu.memory_space<vmem>>, vector<16x216xf32>
    %39 = arith.truncf %38 : vector<16x216xf32> to vector<16x216xbf16>
    %cst_9 = arith.constant dense<0.000000e+00> : vector<16x1024xf32>
    %40 = tpu.matmul %39, %37, %cst_9 {dimension_numbers = #tpu.dot_dimension_numbers<[1], [0], [0], [1], [0, 0, 1, 1], [], []>} : vector<16x216xbf16>, vector<216x1024xbf16>, vector<16x1024xf32> -> vector<16x1024xf32>
    %41 = vector.broadcast %0 : vector<1x1024xf32> to vector<16x1024xf32>
    %42 = arith.mulf %40, %41 : vector<16x1024xf32>
    %cst_10 = arith.constant dense<0.000000e+00> : vector<16xf32>
    %43 = vector.multi_reduction <add>, %42, %cst_10 [1] : vector<16x1024xf32> to vector<16xf32>
    %44 = vector.shape_cast %43 : vector<16xf32> to vector<16x1xf32>
    %45 = arith.mulf %42, %40 : vector<16x1024xf32>
    %cst_11 = arith.constant dense<0.000000e+00> : vector<16xf32>
    %46 = vector.multi_reduction <add>, %45, %cst_11 [1] : vector<16x1024xf32> to vector<16xf32>
    %47 = vector.shape_cast %46 : vector<16xf32> to vector<16x1xf32>
    %cst_12 = arith.constant 0.001953125 : f32
    %48 = vector.broadcast %cst_12 : f32 to vector<16x1xf32>
    %49 = arith.mulf %44, %48 : vector<16x1xf32>
    %cst_13 = arith.constant 0.001953125 : f32
    %50 = vector.broadcast %cst_13 : f32 to vector<16x1xf32>
    %51 = arith.mulf %47, %50 : vector<16x1xf32>
    %52 = arith.mulf %49, %49 : vector<16x1xf32>
    %53 = arith.subf %51, %52 : vector<16x1xf32>
    %cst_14 = arith.constant 0.000000e+00 : f32
    %54 = vector.broadcast %cst_14 : f32 to vector<16x1xf32>
    %55 = arith.maximumf %53, %54 : vector<16x1xf32>
    %56 = vector.broadcast %49 : vector<16x1xf32> to vector<16x1024xf32>
    %57 = arith.subf %40, %56 : vector<16x1024xf32>
    %cst_15 = arith.constant 9.99999974E-6 : f32
    %58 = vector.broadcast %cst_15 : f32 to vector<16x1xf32>
    %59 = arith.addf %55, %58 : vector<16x1xf32>
    %60 = math.rsqrt %59 : vector<16x1xf32>
    %61 = vector.broadcast %60 : vector<16x1xf32> to vector<16x1024xf32>
    %62 = arith.mulf %57, %61 : vector<16x1024xf32>
    %c0_16 = arith.constant 0 : index
    %c0_17 = arith.constant 0 : index
    %63 = vector.load %arg6[%c0_16, %c0_17] : memref<16x1xf32, #tpu.memory_space<vmem>>, vector<16x1xf32>
    %64 = vector.broadcast %63 : vector<16x1xf32> to vector<16x1024xf32>
    %65 = arith.mulf %62, %64 : vector<16x1024xf32>
    %c0_18 = arith.constant 0 : index
    %c0_19 = arith.constant 0 : index
    %66 = vector.load %arg7[%c0_18, %c0_19] : memref<16x1xf32, #tpu.memory_space<vmem>>, vector<16x1xf32>
    %67 = vector.broadcast %66 : vector<16x1xf32> to vector<16x1024xf32>
    %68 = arith.addf %65, %67 : vector<16x1024xf32>
    %c0_20 = arith.constant 0 : index
    %c0_21 = arith.constant 0 : index
    %c0_22 = arith.constant 0 : index
    %69 = vector.load %arg2[%c0_20, %c0_21, %c0_22] : memref<1x8x1024xf32, #tpu.memory_space<vmem>>, vector<1x8x1024xf32>
    %70 = vector.shape_cast %69 : vector<1x8x1024xf32> to vector<8x1024xf32>
    %71 = arith.truncf %70 : vector<8x1024xf32> to vector<8x1024xbf16>
    %cst_23 = arith.constant 0.000000e+00 : bf16
    %72 = vector.broadcast %cst_23 : bf16 to vector<8x111xbf16>
    %73 = tpu.concatenate %72, %71, %72 in 1 : vector<8x111xbf16>, vector<8x1024xbf16>, vector<8x111xbf16> -> vector<8x1246xbf16>
    %74 = vector.extract_strided_slice %73 {offsets = [0, 0], sizes = [8, 1024], strides = [1, 1]} : vector<8x1246xbf16> to vector<8x1024xbf16>
    %75 = vector.extract_strided_slice %73 {offsets = [0, 1], sizes = [8, 1024], strides = [1, 1]} : vector<8x1246xbf16> to vector<8x1024xbf16>
    %76 = vector.extract_strided_slice %73 {offsets = [0, 2], sizes = [8, 1024], strides = [1, 1]} : vector<8x1246xbf16> to vector<8x1024xbf16>
    %77 = vector.extract_strided_slice %73 {offsets = [0, 10], sizes = [8, 1024], strides = [1, 1]} : vector<8x1246xbf16> to vector<8x1024xbf16>
    %78 = vector.extract_strided_slice %73 {offsets = [0, 11], sizes = [8, 1024], strides = [1, 1]} : vector<8x1246xbf16> to vector<8x1024xbf16>
    %79 = vector.extract_strided_slice %73 {offsets = [0, 12], sizes = [8, 1024], strides = [1, 1]} : vector<8x1246xbf16> to vector<8x1024xbf16>
    %80 = vector.extract_strided_slice %73 {offsets = [0, 20], sizes = [8, 1024], strides = [1, 1]} : vector<8x1246xbf16> to vector<8x1024xbf16>
    %81 = vector.extract_strided_slice %73 {offsets = [0, 21], sizes = [8, 1024], strides = [1, 1]} : vector<8x1246xbf16> to vector<8x1024xbf16>
    %82 = vector.extract_strided_slice %73 {offsets = [0, 22], sizes = [8, 1024], strides = [1, 1]} : vector<8x1246xbf16> to vector<8x1024xbf16>
    %83 = vector.extract_strided_slice %73 {offsets = [0, 100], sizes = [8, 1024], strides = [1, 1]} : vector<8x1246xbf16> to vector<8x1024xbf16>
    %84 = vector.extract_strided_slice %73 {offsets = [0, 101], sizes = [8, 1024], strides = [1, 1]} : vector<8x1246xbf16> to vector<8x1024xbf16>
    %85 = vector.extract_strided_slice %73 {offsets = [0, 102], sizes = [8, 1024], strides = [1, 1]} : vector<8x1246xbf16> to vector<8x1024xbf16>
    %86 = vector.extract_strided_slice %73 {offsets = [0, 110], sizes = [8, 1024], strides = [1, 1]} : vector<8x1246xbf16> to vector<8x1024xbf16>
    %87 = vector.extract_strided_slice %73 {offsets = [0, 111], sizes = [8, 1024], strides = [1, 1]} : vector<8x1246xbf16> to vector<8x1024xbf16>
    %88 = vector.extract_strided_slice %73 {offsets = [0, 112], sizes = [8, 1024], strides = [1, 1]} : vector<8x1246xbf16> to vector<8x1024xbf16>
    %89 = vector.extract_strided_slice %73 {offsets = [0, 120], sizes = [8, 1024], strides = [1, 1]} : vector<8x1246xbf16> to vector<8x1024xbf16>
    %90 = vector.extract_strided_slice %73 {offsets = [0, 121], sizes = [8, 1024], strides = [1, 1]} : vector<8x1246xbf16> to vector<8x1024xbf16>
    %91 = vector.extract_strided_slice %73 {offsets = [0, 122], sizes = [8, 1024], strides = [1, 1]} : vector<8x1246xbf16> to vector<8x1024xbf16>
    %92 = vector.extract_strided_slice %73 {offsets = [0, 200], sizes = [8, 1024], strides = [1, 1]} : vector<8x1246xbf16> to vector<8x1024xbf16>
    %93 = vector.extract_strided_slice %73 {offsets = [0, 201], sizes = [8, 1024], strides = [1, 1]} : vector<8x1246xbf16> to vector<8x1024xbf16>
    %94 = vector.extract_strided_slice %73 {offsets = [0, 202], sizes = [8, 1024], strides = [1, 1]} : vector<8x1246xbf16> to vector<8x1024xbf16>
    %95 = vector.extract_strided_slice %73 {offsets = [0, 210], sizes = [8, 1024], strides = [1, 1]} : vector<8x1246xbf16> to vector<8x1024xbf16>
    %96 = vector.extract_strided_slice %73 {offsets = [0, 211], sizes = [8, 1024], strides = [1, 1]} : vector<8x1246xbf16> to vector<8x1024xbf16>
    %97 = vector.extract_strided_slice %73 {offsets = [0, 212], sizes = [8, 1024], strides = [1, 1]} : vector<8x1246xbf16> to vector<8x1024xbf16>
    %98 = vector.extract_strided_slice %73 {offsets = [0, 220], sizes = [8, 1024], strides = [1, 1]} : vector<8x1246xbf16> to vector<8x1024xbf16>
    %99 = vector.extract_strided_slice %73 {offsets = [0, 221], sizes = [8, 1024], strides = [1, 1]} : vector<8x1246xbf16> to vector<8x1024xbf16>
    %100 = vector.extract_strided_slice %73 {offsets = [0, 222], sizes = [8, 1024], strides = [1, 1]} : vector<8x1246xbf16> to vector<8x1024xbf16>
    %101 = tpu.concatenate %74, %75, %76, %77, %78, %79, %80, %81, %82, %83, %84, %85, %86, %87, %88, %89 in 0 : vector<8x1024xbf16>, vector<8x1024xbf16>, vector<8x1024xbf16>, vector<8x1024xbf16>, vector<8x1024xbf16>, vector<8x1024xbf16>, vector<8x1024xbf16>, vector<8x1024xbf16>, vector<8x1024xbf16>, vector<8x1024xbf16>, vector<8x1024xbf16>, vector<8x1024xbf16>, vector<8x1024xbf16>, vector<8x1024xbf16>, vector<8x1024xbf16>, vector<8x1024xbf16> -> vector<128x1024xbf16>
    %102 = tpu.concatenate %90, %91, %92, %93, %94, %95, %96, %97, %98, %99, %100 in 0 : vector<8x1024xbf16>, vector<8x1024xbf16>, vector<8x1024xbf16>, vector<8x1024xbf16>, vector<8x1024xbf16>, vector<8x1024xbf16>, vector<8x1024xbf16>, vector<8x1024xbf16>, vector<8x1024xbf16>, vector<8x1024xbf16>, vector<8x1024xbf16> -> vector<88x1024xbf16>
    %103 = tpu.concatenate %101, %102 in 0 : vector<128x1024xbf16>, vector<88x1024xbf16> -> vector<216x1024xbf16>
    %c0_24 = arith.constant 0 : index
    %c0_25 = arith.constant 0 : index
    %104 = vector.load %arg8[%c0_24, %c0_25] : memref<24x216xf32, #tpu.memory_space<vmem>>, vector<24x216xf32>
    %105 = arith.truncf %104 : vector<24x216xf32> to vector<24x216xbf16>
    %cst_26 = arith.constant dense<0.000000e+00> : vector<24x1024xf32>
    %106 = tpu.matmul %105, %103, %cst_26 {dimension_numbers = #tpu.dot_dimension_numbers<[1], [0], [0], [1], [0, 0, 1, 1], [], []>} : vector<24x216xbf16>, vector<216x1024xbf16>, vector<24x1024xf32> -> vector<24x1024xf32>
    %107 = vector.broadcast %0 : vector<1x1024xf32> to vector<24x1024xf32>
    %108 = arith.mulf %106, %107 : vector<24x1024xf32>
    %cst_27 = arith.constant dense<0.000000e+00> : vector<24xf32>
    %109 = vector.multi_reduction <add>, %108, %cst_27 [1] : vector<24x1024xf32> to vector<24xf32>
    %110 = vector.shape_cast %109 : vector<24xf32> to vector<24x1xf32>
    %111 = arith.mulf %108, %106 : vector<24x1024xf32>
    %cst_28 = arith.constant dense<0.000000e+00> : vector<24xf32>
    %112 = vector.multi_reduction <add>, %111, %cst_28 [1] : vector<24x1024xf32> to vector<24xf32>
    %113 = vector.shape_cast %112 : vector<24xf32> to vector<24x1xf32>
    %cst_29 = arith.constant 0.001953125 : f32
    %114 = vector.broadcast %cst_29 : f32 to vector<24x1xf32>
    %115 = arith.mulf %110, %114 : vector<24x1xf32>
    %cst_30 = arith.constant 0.001953125 : f32
    %116 = vector.broadcast %cst_30 : f32 to vector<24x1xf32>
    %117 = arith.mulf %113, %116 : vector<24x1xf32>
    %118 = arith.mulf %115, %115 : vector<24x1xf32>
    %119 = arith.subf %117, %118 : vector<24x1xf32>
    %cst_31 = arith.constant 0.000000e+00 : f32
    %120 = vector.broadcast %cst_31 : f32 to vector<24x1xf32>
    %121 = arith.maximumf %119, %120 : vector<24x1xf32>
    %122 = vector.broadcast %115 : vector<24x1xf32> to vector<24x1024xf32>
    %123 = arith.subf %106, %122 : vector<24x1024xf32>
    %cst_32 = arith.constant 9.99999974E-6 : f32
    %124 = vector.broadcast %cst_32 : f32 to vector<24x1xf32>
    %125 = arith.addf %121, %124 : vector<24x1xf32>
    %126 = math.rsqrt %125 : vector<24x1xf32>
    %127 = vector.broadcast %126 : vector<24x1xf32> to vector<24x1024xf32>
    %128 = arith.mulf %123, %127 : vector<24x1024xf32>
    %c0_33 = arith.constant 0 : index
    %c0_34 = arith.constant 0 : index
    %129 = vector.load %arg9[%c0_33, %c0_34] : memref<24x1xf32, #tpu.memory_space<vmem>>, vector<24x1xf32>
    %130 = vector.broadcast %129 : vector<24x1xf32> to vector<24x1024xf32>
    %131 = arith.mulf %128, %130 : vector<24x1024xf32>
    %c0_35 = arith.constant 0 : index
    %c0_36 = arith.constant 0 : index
    %132 = vector.load %arg10[%c0_35, %c0_36] : memref<24x1xf32, #tpu.memory_space<vmem>>, vector<24x1xf32>
    %133 = vector.broadcast %132 : vector<24x1xf32> to vector<24x1024xf32>
    %134 = arith.addf %131, %133 : vector<24x1024xf32>
    %135 = vector.extract_strided_slice %134 {offsets = [0, 0], sizes = [16, 1024], strides = [1, 1]} : vector<24x1024xf32> to vector<16x1024xf32>
    %136 = vector.extract_strided_slice %134 {offsets = [16, 0], sizes = [8, 1024], strides = [1, 1]} : vector<24x1024xf32> to vector<8x1024xf32>
    %137 = arith.addf %68, %135 : vector<16x1024xf32>
    %cst_37 = arith.constant 0.000000e+00 : f32
    %138 = vector.broadcast %cst_37 : f32 to vector<16x1024xf32>
    %139 = arith.maximumf %137, %138 : vector<16x1024xf32>
    %c0_38 = arith.constant 0 : index
    %c0_39 = arith.constant 0 : index
    %140 = vector.load %arg11[%c0_38, %c0_39] : memref<8x16xf32, #tpu.memory_space<vmem>>, vector<8x16xf32>
    %cst_40 = arith.constant dense<0.000000e+00> : vector<8x1024xf32>
    %141 = tpu.matmul %140, %139, %cst_40 {dimension_numbers = #tpu.dot_dimension_numbers<[1], [0], [0], [1], [0, 0, 1, 1], [], []>} : vector<8x16xf32>, vector<16x1024xf32>, vector<8x1024xf32> -> vector<8x1024xf32>
    %c0_41 = arith.constant 0 : index
    %c0_42 = arith.constant 0 : index
    %142 = vector.load %arg12[%c0_41, %c0_42] : memref<8x1xf32, #tpu.memory_space<vmem>>, vector<8x1xf32>
    %143 = vector.broadcast %142 : vector<8x1xf32> to vector<8x1024xf32>
    %144 = arith.addf %141, %143 : vector<8x1024xf32>
    %145 = arith.negf %144 : vector<8x1024xf32>
    %146 = math.exp %145 : vector<8x1024xf32>
    %cst_43 = arith.constant 1.000000e+00 : f32
    %147 = vector.broadcast %cst_43 : f32 to vector<8x1024xf32>
    %148 = arith.addf %147, %146 : vector<8x1024xf32>
    %149 = arith.divf %147, %148 : vector<8x1024xf32>
    %150 = arith.mulf %136, %149 : vector<8x1024xf32>
    %151 = arith.addf %150, %4 : vector<8x1024xf32>
    %cst_44 = arith.constant 0.000000e+00 : f32
    %152 = vector.broadcast %cst_44 : f32 to vector<8x1024xf32>
    %153 = arith.maximumf %151, %152 : vector<8x1024xf32>
    %154 = vector.broadcast %0 : vector<1x1024xf32> to vector<8x1024xf32>
    %155 = arith.mulf %153, %154 : vector<8x1024xf32>
    %156 = arith.truncf %155 : vector<8x1024xf32> to vector<8x1024xbf16>
    %cst_45 = arith.constant 0.000000e+00 : bf16
    %157 = vector.broadcast %cst_45 : bf16 to vector<8x111xbf16>
    %158 = tpu.concatenate %157, %156, %157 in 1 : vector<8x111xbf16>, vector<8x1024xbf16>, vector<8x111xbf16> -> vector<8x1246xbf16>
    %159 = vector.extract_strided_slice %158 {offsets = [0, 0], sizes = [8, 1024], strides = [1, 1]} : vector<8x1246xbf16> to vector<8x1024xbf16>
    %160 = vector.extract_strided_slice %158 {offsets = [0, 1], sizes = [8, 1024], strides = [1, 1]} : vector<8x1246xbf16> to vector<8x1024xbf16>
    %161 = vector.extract_strided_slice %158 {offsets = [0, 2], sizes = [8, 1024], strides = [1, 1]} : vector<8x1246xbf16> to vector<8x1024xbf16>
    %162 = vector.extract_strided_slice %158 {offsets = [0, 10], sizes = [8, 1024], strides = [1, 1]} : vector<8x1246xbf16> to vector<8x1024xbf16>
    %163 = vector.extract_strided_slice %158 {offsets = [0, 11], sizes = [8, 1024], strides = [1, 1]} : vector<8x1246xbf16> to vector<8x1024xbf16>
    %164 = vector.extract_strided_slice %158 {offsets = [0, 12], sizes = [8, 1024], strides = [1, 1]} : vector<8x1246xbf16> to vector<8x1024xbf16>
    %165 = vector.extract_strided_slice %158 {offsets = [0, 20], sizes = [8, 1024], strides = [1, 1]} : vector<8x1246xbf16> to vector<8x1024xbf16>
    %166 = vector.extract_strided_slice %158 {offsets = [0, 21], sizes = [8, 1024], strides = [1, 1]} : vector<8x1246xbf16> to vector<8x1024xbf16>
    %167 = vector.extract_strided_slice %158 {offsets = [0, 22], sizes = [8, 1024], strides = [1, 1]} : vector<8x1246xbf16> to vector<8x1024xbf16>
    %168 = vector.extract_strided_slice %158 {offsets = [0, 100], sizes = [8, 1024], strides = [1, 1]} : vector<8x1246xbf16> to vector<8x1024xbf16>
    %169 = vector.extract_strided_slice %158 {offsets = [0, 101], sizes = [8, 1024], strides = [1, 1]} : vector<8x1246xbf16> to vector<8x1024xbf16>
    %170 = vector.extract_strided_slice %158 {offsets = [0, 102], sizes = [8, 1024], strides = [1, 1]} : vector<8x1246xbf16> to vector<8x1024xbf16>
    %171 = vector.extract_strided_slice %158 {offsets = [0, 110], sizes = [8, 1024], strides = [1, 1]} : vector<8x1246xbf16> to vector<8x1024xbf16>
    %172 = vector.extract_strided_slice %158 {offsets = [0, 111], sizes = [8, 1024], strides = [1, 1]} : vector<8x1246xbf16> to vector<8x1024xbf16>
    %173 = vector.extract_strided_slice %158 {offsets = [0, 112], sizes = [8, 1024], strides = [1, 1]} : vector<8x1246xbf16> to vector<8x1024xbf16>
    %174 = vector.extract_strided_slice %158 {offsets = [0, 120], sizes = [8, 1024], strides = [1, 1]} : vector<8x1246xbf16> to vector<8x1024xbf16>
    %175 = vector.extract_strided_slice %158 {offsets = [0, 121], sizes = [8, 1024], strides = [1, 1]} : vector<8x1246xbf16> to vector<8x1024xbf16>
    %176 = vector.extract_strided_slice %158 {offsets = [0, 122], sizes = [8, 1024], strides = [1, 1]} : vector<8x1246xbf16> to vector<8x1024xbf16>
    %177 = vector.extract_strided_slice %158 {offsets = [0, 200], sizes = [8, 1024], strides = [1, 1]} : vector<8x1246xbf16> to vector<8x1024xbf16>
    %178 = vector.extract_strided_slice %158 {offsets = [0, 201], sizes = [8, 1024], strides = [1, 1]} : vector<8x1246xbf16> to vector<8x1024xbf16>
    %179 = vector.extract_strided_slice %158 {offsets = [0, 202], sizes = [8, 1024], strides = [1, 1]} : vector<8x1246xbf16> to vector<8x1024xbf16>
    %180 = vector.extract_strided_slice %158 {offsets = [0, 210], sizes = [8, 1024], strides = [1, 1]} : vector<8x1246xbf16> to vector<8x1024xbf16>
    %181 = vector.extract_strided_slice %158 {offsets = [0, 211], sizes = [8, 1024], strides = [1, 1]} : vector<8x1246xbf16> to vector<8x1024xbf16>
    %182 = vector.extract_strided_slice %158 {offsets = [0, 212], sizes = [8, 1024], strides = [1, 1]} : vector<8x1246xbf16> to vector<8x1024xbf16>
    %183 = vector.extract_strided_slice %158 {offsets = [0, 220], sizes = [8, 1024], strides = [1, 1]} : vector<8x1246xbf16> to vector<8x1024xbf16>
    %184 = vector.extract_strided_slice %158 {offsets = [0, 221], sizes = [8, 1024], strides = [1, 1]} : vector<8x1246xbf16> to vector<8x1024xbf16>
    %185 = vector.extract_strided_slice %158 {offsets = [0, 222], sizes = [8, 1024], strides = [1, 1]} : vector<8x1246xbf16> to vector<8x1024xbf16>
    %186 = tpu.concatenate %159, %160, %161, %162, %163, %164, %165, %166, %167, %168, %169, %170, %171, %172, %173, %174 in 0 : vector<8x1024xbf16>, vector<8x1024xbf16>, vector<8x1024xbf16>, vector<8x1024xbf16>, vector<8x1024xbf16>, vector<8x1024xbf16>, vector<8x1024xbf16>, vector<8x1024xbf16>, vector<8x1024xbf16>, vector<8x1024xbf16>, vector<8x1024xbf16>, vector<8x1024xbf16>, vector<8x1024xbf16>, vector<8x1024xbf16>, vector<8x1024xbf16>, vector<8x1024xbf16> -> vector<128x1024xbf16>
    %187 = tpu.concatenate %175, %176, %177, %178, %179, %180, %181, %182, %183, %184, %185 in 0 : vector<8x1024xbf16>, vector<8x1024xbf16>, vector<8x1024xbf16>, vector<8x1024xbf16>, vector<8x1024xbf16>, vector<8x1024xbf16>, vector<8x1024xbf16>, vector<8x1024xbf16>, vector<8x1024xbf16>, vector<8x1024xbf16>, vector<8x1024xbf16> -> vector<88x1024xbf16>
    %188 = tpu.concatenate %186, %187 in 0 : vector<128x1024xbf16>, vector<88x1024xbf16> -> vector<216x1024xbf16>
    %c0_46 = arith.constant 0 : index
    %c0_47 = arith.constant 0 : index
    %189 = vector.load %arg13[%c0_46, %c0_47] : memref<16x216xf32, #tpu.memory_space<vmem>>, vector<16x216xf32>
    %190 = arith.truncf %189 : vector<16x216xf32> to vector<16x216xbf16>
    %cst_48 = arith.constant dense<0.000000e+00> : vector<16x1024xf32>
    %191 = tpu.matmul %190, %188, %cst_48 {dimension_numbers = #tpu.dot_dimension_numbers<[1], [0], [0], [1], [0, 0, 1, 1], [], []>} : vector<16x216xbf16>, vector<216x1024xbf16>, vector<16x1024xf32> -> vector<16x1024xf32>
    %192 = vector.broadcast %0 : vector<1x1024xf32> to vector<16x1024xf32>
    %193 = arith.mulf %191, %192 : vector<16x1024xf32>
    %cst_49 = arith.constant dense<0.000000e+00> : vector<16xf32>
    %194 = vector.multi_reduction <add>, %193, %cst_49 [1] : vector<16x1024xf32> to vector<16xf32>
    %195 = vector.shape_cast %194 : vector<16xf32> to vector<16x1xf32>
    %196 = arith.mulf %193, %191 : vector<16x1024xf32>
    %cst_50 = arith.constant dense<0.000000e+00> : vector<16xf32>
    %197 = vector.multi_reduction <add>, %196, %cst_50 [1] : vector<16x1024xf32> to vector<16xf32>
    %198 = vector.shape_cast %197 : vector<16xf32> to vector<16x1xf32>
    %cst_51 = arith.constant 0.001953125 : f32
    %199 = vector.broadcast %cst_51 : f32 to vector<16x1xf32>
    %200 = arith.mulf %195, %199 : vector<16x1xf32>
    %cst_52 = arith.constant 0.001953125 : f32
    %201 = vector.broadcast %cst_52 : f32 to vector<16x1xf32>
    %202 = arith.mulf %198, %201 : vector<16x1xf32>
    %203 = arith.mulf %200, %200 : vector<16x1xf32>
    %204 = arith.subf %202, %203 : vector<16x1xf32>
    %cst_53 = arith.constant 0.000000e+00 : f32
    %205 = vector.broadcast %cst_53 : f32 to vector<16x1xf32>
    %206 = arith.maximumf %204, %205 : vector<16x1xf32>
    %207 = vector.broadcast %200 : vector<16x1xf32> to vector<16x1024xf32>
    %208 = arith.subf %191, %207 : vector<16x1024xf32>
    %cst_54 = arith.constant 9.99999974E-6 : f32
    %209 = vector.broadcast %cst_54 : f32 to vector<16x1xf32>
    %210 = arith.addf %206, %209 : vector<16x1xf32>
    %211 = math.rsqrt %210 : vector<16x1xf32>
    %212 = vector.broadcast %211 : vector<16x1xf32> to vector<16x1024xf32>
    %213 = arith.mulf %208, %212 : vector<16x1024xf32>
    %c0_55 = arith.constant 0 : index
    %c0_56 = arith.constant 0 : index
    %214 = vector.load %arg14[%c0_55, %c0_56] : memref<16x1xf32, #tpu.memory_space<vmem>>, vector<16x1xf32>
    %215 = vector.broadcast %214 : vector<16x1xf32> to vector<16x1024xf32>
    %216 = arith.mulf %213, %215 : vector<16x1024xf32>
    %c0_57 = arith.constant 0 : index
    %c0_58 = arith.constant 0 : index
    %217 = vector.load %arg15[%c0_57, %c0_58] : memref<16x1xf32, #tpu.memory_space<vmem>>, vector<16x1xf32>
    %218 = vector.broadcast %217 : vector<16x1xf32> to vector<16x1024xf32>
    %219 = arith.addf %216, %218 : vector<16x1024xf32>
    %cst_59 = arith.constant 0.000000e+00 : f32
    %220 = vector.broadcast %cst_59 : f32 to vector<16x1024xf32>
    %221 = arith.maximumf %219, %220 : vector<16x1024xf32>
    %222 = vector.broadcast %0 : vector<1x1024xf32> to vector<16x1024xf32>
    %223 = arith.mulf %221, %222 : vector<16x1024xf32>
    %224 = arith.truncf %223 : vector<16x1024xf32> to vector<16x1024xbf16>
    %cst_60 = arith.constant 0.000000e+00 : bf16
    %225 = vector.broadcast %cst_60 : bf16 to vector<16x111xbf16>
    %226 = tpu.concatenate %225, %224, %225 in 1 : vector<16x111xbf16>, vector<16x1024xbf16>, vector<16x111xbf16> -> vector<16x1246xbf16>
    %227 = vector.extract_strided_slice %226 {offsets = [0, 0], sizes = [16, 1024], strides = [1, 1]} : vector<16x1246xbf16> to vector<16x1024xbf16>
    %228 = vector.extract_strided_slice %226 {offsets = [0, 1], sizes = [16, 1024], strides = [1, 1]} : vector<16x1246xbf16> to vector<16x1024xbf16>
    %229 = vector.extract_strided_slice %226 {offsets = [0, 2], sizes = [16, 1024], strides = [1, 1]} : vector<16x1246xbf16> to vector<16x1024xbf16>
    %230 = vector.extract_strided_slice %226 {offsets = [0, 10], sizes = [16, 1024], strides = [1, 1]} : vector<16x1246xbf16> to vector<16x1024xbf16>
    %231 = vector.extract_strided_slice %226 {offsets = [0, 11], sizes = [16, 1024], strides = [1, 1]} : vector<16x1246xbf16> to vector<16x1024xbf16>
    %232 = vector.extract_strided_slice %226 {offsets = [0, 12], sizes = [16, 1024], strides = [1, 1]} : vector<16x1246xbf16> to vector<16x1024xbf16>
    %233 = vector.extract_strided_slice %226 {offsets = [0, 20], sizes = [16, 1024], strides = [1, 1]} : vector<16x1246xbf16> to vector<16x1024xbf16>
    %234 = vector.extract_strided_slice %226 {offsets = [0, 21], sizes = [16, 1024], strides = [1, 1]} : vector<16x1246xbf16> to vector<16x1024xbf16>
    %235 = vector.extract_strided_slice %226 {offsets = [0, 22], sizes = [16, 1024], strides = [1, 1]} : vector<16x1246xbf16> to vector<16x1024xbf16>
    %236 = vector.extract_strided_slice %226 {offsets = [0, 100], sizes = [16, 1024], strides = [1, 1]} : vector<16x1246xbf16> to vector<16x1024xbf16>
    %237 = vector.extract_strided_slice %226 {offsets = [0, 101], sizes = [16, 1024], strides = [1, 1]} : vector<16x1246xbf16> to vector<16x1024xbf16>
    %238 = vector.extract_strided_slice %226 {offsets = [0, 102], sizes = [16, 1024], strides = [1, 1]} : vector<16x1246xbf16> to vector<16x1024xbf16>
    %239 = vector.extract_strided_slice %226 {offsets = [0, 110], sizes = [16, 1024], strides = [1, 1]} : vector<16x1246xbf16> to vector<16x1024xbf16>
    %240 = vector.extract_strided_slice %226 {offsets = [0, 111], sizes = [16, 1024], strides = [1, 1]} : vector<16x1246xbf16> to vector<16x1024xbf16>
    %241 = vector.extract_strided_slice %226 {offsets = [0, 112], sizes = [16, 1024], strides = [1, 1]} : vector<16x1246xbf16> to vector<16x1024xbf16>
    %242 = vector.extract_strided_slice %226 {offsets = [0, 120], sizes = [16, 1024], strides = [1, 1]} : vector<16x1246xbf16> to vector<16x1024xbf16>
    %243 = vector.extract_strided_slice %226 {offsets = [0, 121], sizes = [16, 1024], strides = [1, 1]} : vector<16x1246xbf16> to vector<16x1024xbf16>
    %244 = vector.extract_strided_slice %226 {offsets = [0, 122], sizes = [16, 1024], strides = [1, 1]} : vector<16x1246xbf16> to vector<16x1024xbf16>
    %245 = vector.extract_strided_slice %226 {offsets = [0, 200], sizes = [16, 1024], strides = [1, 1]} : vector<16x1246xbf16> to vector<16x1024xbf16>
    %246 = vector.extract_strided_slice %226 {offsets = [0, 201], sizes = [16, 1024], strides = [1, 1]} : vector<16x1246xbf16> to vector<16x1024xbf16>
    %247 = vector.extract_strided_slice %226 {offsets = [0, 202], sizes = [16, 1024], strides = [1, 1]} : vector<16x1246xbf16> to vector<16x1024xbf16>
    %248 = vector.extract_strided_slice %226 {offsets = [0, 210], sizes = [16, 1024], strides = [1, 1]} : vector<16x1246xbf16> to vector<16x1024xbf16>
    %249 = vector.extract_strided_slice %226 {offsets = [0, 211], sizes = [16, 1024], strides = [1, 1]} : vector<16x1246xbf16> to vector<16x1024xbf16>
    %250 = vector.extract_strided_slice %226 {offsets = [0, 212], sizes = [16, 1024], strides = [1, 1]} : vector<16x1246xbf16> to vector<16x1024xbf16>
    %251 = vector.extract_strided_slice %226 {offsets = [0, 220], sizes = [16, 1024], strides = [1, 1]} : vector<16x1246xbf16> to vector<16x1024xbf16>
    %252 = vector.extract_strided_slice %226 {offsets = [0, 221], sizes = [16, 1024], strides = [1, 1]} : vector<16x1246xbf16> to vector<16x1024xbf16>
    %253 = vector.extract_strided_slice %226 {offsets = [0, 222], sizes = [16, 1024], strides = [1, 1]} : vector<16x1246xbf16> to vector<16x1024xbf16>
    %254 = tpu.concatenate %227, %228, %229, %230, %231, %232, %233, %234, %235, %236, %237, %238, %239, %240, %241, %242 in 0 : vector<16x1024xbf16>, vector<16x1024xbf16>, vector<16x1024xbf16>, vector<16x1024xbf16>, vector<16x1024xbf16>, vector<16x1024xbf16>, vector<16x1024xbf16>, vector<16x1024xbf16>, vector<16x1024xbf16>, vector<16x1024xbf16>, vector<16x1024xbf16>, vector<16x1024xbf16>, vector<16x1024xbf16>, vector<16x1024xbf16>, vector<16x1024xbf16>, vector<16x1024xbf16> -> vector<256x1024xbf16>
    %255 = tpu.concatenate %243, %244, %245, %246, %247, %248, %249, %250, %251, %252, %253 in 0 : vector<16x1024xbf16>, vector<16x1024xbf16>, vector<16x1024xbf16>, vector<16x1024xbf16>, vector<16x1024xbf16>, vector<16x1024xbf16>, vector<16x1024xbf16>, vector<16x1024xbf16>, vector<16x1024xbf16>, vector<16x1024xbf16>, vector<16x1024xbf16> -> vector<176x1024xbf16>
    %256 = tpu.concatenate %254, %255 in 0 : vector<256x1024xbf16>, vector<176x1024xbf16> -> vector<432x1024xbf16>
    %c0_61 = arith.constant 0 : index
    %c0_62 = arith.constant 0 : index
    %257 = vector.load %arg16[%c0_61, %c0_62] : memref<16x432xf32, #tpu.memory_space<vmem>>, vector<16x432xf32>
    %258 = arith.truncf %257 : vector<16x432xf32> to vector<16x432xbf16>
    %cst_63 = arith.constant dense<0.000000e+00> : vector<16x1024xf32>
    %259 = tpu.matmul %258, %256, %cst_63 {dimension_numbers = #tpu.dot_dimension_numbers<[1], [0], [0], [1], [0, 0, 1, 1], [], []>} : vector<16x432xbf16>, vector<432x1024xbf16>, vector<16x1024xf32> -> vector<16x1024xf32>
    %260 = vector.broadcast %0 : vector<1x1024xf32> to vector<16x1024xf32>
    %261 = arith.mulf %259, %260 : vector<16x1024xf32>
    %cst_64 = arith.constant dense<0.000000e+00> : vector<16xf32>
    %262 = vector.multi_reduction <add>, %261, %cst_64 [1] : vector<16x1024xf32> to vector<16xf32>
    %263 = vector.shape_cast %262 : vector<16xf32> to vector<16x1xf32>
    %264 = arith.mulf %261, %259 : vector<16x1024xf32>
    %cst_65 = arith.constant dense<0.000000e+00> : vector<16xf32>
    %265 = vector.multi_reduction <add>, %264, %cst_65 [1] : vector<16x1024xf32> to vector<16xf32>
    %266 = vector.shape_cast %265 : vector<16xf32> to vector<16x1xf32>
    %cst_66 = arith.constant 0.001953125 : f32
    %267 = vector.broadcast %cst_66 : f32 to vector<16x1xf32>
    %268 = arith.mulf %263, %267 : vector<16x1xf32>
    %cst_67 = arith.constant 0.001953125 : f32
    %269 = vector.broadcast %cst_67 : f32 to vector<16x1xf32>
    %270 = arith.mulf %266, %269 : vector<16x1xf32>
    %271 = arith.mulf %268, %268 : vector<16x1xf32>
    %272 = arith.subf %270, %271 : vector<16x1xf32>
    %cst_68 = arith.constant 0.000000e+00 : f32
    %273 = vector.broadcast %cst_68 : f32 to vector<16x1xf32>
    %274 = arith.maximumf %272, %273 : vector<16x1xf32>
    %275 = vector.broadcast %268 : vector<16x1xf32> to vector<16x1024xf32>
    %276 = arith.subf %259, %275 : vector<16x1024xf32>
    %cst_69 = arith.constant 9.99999974E-6 : f32
    %277 = vector.broadcast %cst_69 : f32 to vector<16x1xf32>
    %278 = arith.addf %274, %277 : vector<16x1xf32>
    %279 = math.rsqrt %278 : vector<16x1xf32>
    %280 = vector.broadcast %279 : vector<16x1xf32> to vector<16x1024xf32>
    %281 = arith.mulf %276, %280 : vector<16x1024xf32>
    %c0_70 = arith.constant 0 : index
    %c0_71 = arith.constant 0 : index
    %282 = vector.load %arg17[%c0_70, %c0_71] : memref<16x1xf32, #tpu.memory_space<vmem>>, vector<16x1xf32>
    %283 = vector.broadcast %282 : vector<16x1xf32> to vector<16x1024xf32>
    %284 = arith.mulf %281, %283 : vector<16x1024xf32>
    %c0_72 = arith.constant 0 : index
    %c0_73 = arith.constant 0 : index
    %285 = vector.load %arg18[%c0_72, %c0_73] : memref<16x1xf32, #tpu.memory_space<vmem>>, vector<16x1xf32>
    %286 = vector.broadcast %285 : vector<16x1xf32> to vector<16x1024xf32>
    %287 = arith.addf %284, %286 : vector<16x1024xf32>
    %c0_74 = arith.constant 0 : index
    %c0_75 = arith.constant 0 : index
    %288 = vector.load %arg19[%c0_74, %c0_75] : memref<16x8xf32, #tpu.memory_space<vmem>>, vector<16x8xf32>
    %cst_76 = arith.constant dense<0.000000e+00> : vector<16x1024xf32>
    %289 = tpu.matmul %288, %155, %cst_76 {dimension_numbers = #tpu.dot_dimension_numbers<[1], [0], [0], [1], [0, 0, 1, 1], [], []>} : vector<16x8xf32>, vector<8x1024xf32>, vector<16x1024xf32> -> vector<16x1024xf32>
    %c0_77 = arith.constant 0 : index
    %c0_78 = arith.constant 0 : index
    %290 = vector.load %arg20[%c0_77, %c0_78] : memref<16x1xf32, #tpu.memory_space<vmem>>, vector<16x1xf32>
    %291 = vector.broadcast %290 : vector<16x1xf32> to vector<16x1024xf32>
    %292 = arith.addf %289, %291 : vector<16x1024xf32>
    %293 = arith.addf %287, %292 : vector<16x1024xf32>
    %cst_79 = arith.constant 0.000000e+00 : f32
    %294 = vector.broadcast %cst_79 : f32 to vector<16x1024xf32>
    %295 = arith.maximumf %293, %294 : vector<16x1024xf32>
    %296 = vector.broadcast %0 : vector<1x1024xf32> to vector<16x1024xf32>
    %297 = arith.mulf %295, %296 : vector<16x1024xf32>
    %c0_80 = arith.constant 0 : index
    %c0_81 = arith.constant 0 : index
    %c0_82 = arith.constant 0 : index
    %298 = vector.load %arg21[%c0_80, %c0_81, %c0_82] : memref<1x16x1024xf32, #tpu.memory_space<vmem>>, vector<1x16x1024xf32>
    %299 = vector.shape_cast %298 : vector<1x16x1024xf32> to vector<16x1024xf32>
    %300 = vector.shape_cast %297 : vector<16x1024xf32> to vector<1x16x1024xf32>
    tpu.vector_store %arg21[%c0_80, %c0_81, %c0_82], %300 {strides = array<i32>} : memref<1x16x1024xf32, #tpu.memory_space<vmem>>, vector<1x16x1024xf32>,
    return
  }
  func.func @transform_0(%arg0: i32) -> (i32, i32, i32) {
    %c0_i32 = arith.constant 0 : i32
    %c0_i32_0 = arith.constant 0 : i32
    %c0_i32_1 = arith.constant 0 : i32
    return %arg0, %c0_i32, %c0_i32_0 : i32, i32, i32
  }
  func.func @transform_1(%arg0: i32) -> (i32, i32, i32) {
    %c0_i32 = arith.constant 0 : i32
    %c0_i32_0 = arith.constant 0 : i32
    %c0_i32_1 = arith.constant 0 : i32
    return %arg0, %c0_i32, %c0_i32_0 : i32, i32, i32
  }
  func.func @transform_2(%arg0: i32) -> (i32, i32) {
    %c0_i32 = arith.constant 0 : i32
    %c0_i32_0 = arith.constant 0 : i32
    %c0_i32_1 = arith.constant 0 : i32
    return %c0_i32, %c0_i32_0 : i32, i32
  }
  func.func @transform_3(%arg0: i32) -> (i32, i32) {
    %c0_i32 = arith.constant 0 : i32
    %c0_i32_0 = arith.constant 0 : i32
    %c0_i32_1 = arith.constant 0 : i32
    return %c0_i32, %c0_i32_0 : i32, i32
  }
  func.func @transform_4(%arg0: i32) -> (i32, i32) {
    %c0_i32 = arith.constant 0 : i32
    %c0_i32_0 = arith.constant 0 : i32
    %c0_i32_1 = arith.constant 0 : i32
    return %c0_i32, %c0_i32_0 : i32, i32
  }
  func.func @transform_5(%arg0: i32) -> (i32, i32) {
    %c0_i32 = arith.constant 0 : i32
    %c0_i32_0 = arith.constant 0 : i32
    %c0_i32_1 = arith.constant 0 : i32
    return %c0_i32, %c0_i32_0 : i32, i32
  }
  func.func @transform_6(%arg0: i32) -> (i32, i32) {
    %c0_i32 = arith.constant 0 : i32
    %c0_i32_0 = arith.constant 0 : i32
    %c0_i32_1 = arith.constant 0 : i32
    return %c0_i32, %c0_i32_0 : i32, i32
  }
  func.func @transform_7(%arg0: i32) -> (i32, i32) {
    %c0_i32 = arith.constant 0 : i32
    %c0_i32_0 = arith.constant 0 : i32
    %c0_i32_1 = arith.constant 0 : i32
    return %c0_i32, %c0_i32_0 : i32, i32
  }
  func.func @transform_8(%arg0: i32) -> (i32, i32) {
    %c0_i32 = arith.constant 0 : i32
    %c0_i32_0 = arith.constant 0 : i32
    %c0_i32_1 = arith.constant 0 : i32
    return %c0_i32, %c0_i32_0 : i32, i32
  }
  func.func @transform_9(%arg0: i32) -> (i32, i32) {
    %c0_i32 = arith.constant 0 : i32
    %c0_i32_0 = arith.constant 0 : i32
    %c0_i32_1 = arith.constant 0 : i32
    return %c0_i32, %c0_i32_0 : i32, i32
  }
  func.func @transform_10(%arg0: i32) -> (i32, i32) {
    %c0_i32 = arith.constant 0 : i32
    %c0_i32_0 = arith.constant 0 : i32
    %c0_i32_1 = arith.constant 0 : i32
    return %c0_i32, %c0_i32_0 : i32, i32
  }
  func.func @transform_11(%arg0: i32) -> (i32, i32) {
    %c0_i32 = arith.constant 0 : i32
    %c0_i32_0 = arith.constant 0 : i32
    %c0_i32_1 = arith.constant 0 : i32
    return %c0_i32, %c0_i32_0 : i32, i32
  }
  func.func @transform_12(%arg0: i32) -> (i32, i32) {
    %c0_i32 = arith.constant 0 : i32
    %c0_i32_0 = arith.constant 0 : i32
    %c0_i32_1 = arith.constant 0 : i32
    return %c0_i32, %c0_i32_0 : i32, i32
  }
  func.func @transform_13(%arg0: i32) -> (i32, i32) {
    %c0_i32 = arith.constant 0 : i32
    %c0_i32_0 = arith.constant 0 : i32
    %c0_i32_1 = arith.constant 0 : i32
    return %c0_i32, %c0_i32_0 : i32, i32
  }
  func.func @transform_14(%arg0: i32) -> (i32, i32) {
    %c0_i32 = arith.constant 0 : i32
    %c0_i32_0 = arith.constant 0 : i32
    %c0_i32_1 = arith.constant 0 : i32
    return %c0_i32, %c0_i32_0 : i32, i32
  }
  func.func @transform_15(%arg0: i32) -> (i32, i32) {
    %c0_i32 = arith.constant 0 : i32
    %c0_i32_0 = arith.constant 0 : i32
    %c0_i32_1 = arith.constant 0 : i32
    return %c0_i32, %c0_i32_0 : i32, i32
  }
  func.func @transform_16(%arg0: i32) -> (i32, i32) {
    %c0_i32 = arith.constant 0 : i32
    %c0_i32_0 = arith.constant 0 : i32
    %c0_i32_1 = arith.constant 0 : i32
    return %c0_i32, %c0_i32_0 : i32, i32
  }
  func.func @transform_17(%arg0: i32) -> (i32, i32) {
    %c0_i32 = arith.constant 0 : i32
    %c0_i32_0 = arith.constant 0 : i32
    %c0_i32_1 = arith.constant 0 : i32
    return %c0_i32, %c0_i32_0 : i32, i32
  }
  func.func @transform_18(%arg0: i32) -> (i32, i32) {
    %c0_i32 = arith.constant 0 : i32
    %c0_i32_0 = arith.constant 0 : i32
    %c0_i32_1 = arith.constant 0 : i32
    return %c0_i32, %c0_i32_0 : i32, i32
  }
  func.func @transform_19(%arg0: i32) -> (i32, i32) {
    %c0_i32 = arith.constant 0 : i32
    %c0_i32_0 = arith.constant 0 : i32
    %c0_i32_1 = arith.constant 0 : i32
    return %c0_i32, %c0_i32_0 : i32, i32
  }
  func.func @transform_20(%arg0: i32) -> (i32, i32, i32) {
    %c0_i32 = arith.constant 0 : i32
    %c0_i32_0 = arith.constant 0 : i32
    %c0_i32_1 = arith.constant 0 : i32
    return %arg0, %c0_i32, %c0_i32_0 : i32, i32, i32
  }
}

</mosaic_0001>

<bundles_post_ra>
// kernel: attention_gate_forward.1
= control target key start
LH: loop header
LB: loop body
LE: loop exit
PB: predicated region body
PF: predicated region fallthrough
CT: control target
= control target key end

     0   :  { %s16901_s0 = inlined_call_operand.vmem [shape: f32[4,8,64], index: 0, kind: input, shape index: {}]   ;;  %s16902_s1 = inlined_call_operand.vmem [shape: f32[4,8,1024], index: 1, kind: input, shape index: {}]   ;;  %s16903_s2 = inlined_call_operand.vmem [shape: f32[1,1024], index: 2, kind: input, shape index: {}]   ;;  %s16904_s3 = inlined_call_operand.vmem [shape: f32[64,1024], index: 3, kind: input, shape index: {}]   ;;  %s16905_s4 = inlined_call_operand.vmem [shape: f32[16,216], index: 4, kind: input, shape index: {}]   ;;  %s16906_s5 = inlined_call_operand.vmem [shape: f32[16,1], index: 5, kind: input, shape index: {}]   ;;  %s16907_s6 = inlined_call_operand.vmem [shape: f32[16,1], index: 6, kind: input, shape index: {}]   ;;  %s16908_s7 = inlined_call_operand.vmem [shape: f32[24,216], index: 7, kind: input, shape index: {}]   ;;  %s16909_s8 = inlined_call_operand.vmem [shape: f32[24,1], index: 8, kind: input, shape index: {}]   ;;  %s16910_s9 = inlined_call_operand.vmem [shape: f32[24,1], index: 9, kind: input, shape index: {}]   ;;  %s16911_s10 = inlined_call_operand.vmem [shape: f32[8,16], index: 10, kind: input, shape index: {}]   ;;  %s16912_s11 = inlined_call_operand.vmem [shape: f32[8,1], index: 11, kind: input, shape index: {}]   ;;  %s16913_s12 = inlined_call_operand.vmem [shape: f32[16,216], index: 12, kind: input, shape index: {}]   ;;  %s16914_s13 = inlined_call_operand.vmem [shape: f32[16,1], index: 13, kind: input, shape index: {}]   ;;  %s16915_s14 = inlined_call_operand.vmem [shape: f32[16,1], index: 14, kind: input, shape index: {}]   ;;  %s16916_s15 = inlined_call_operand.vmem [shape: f32[16,432], index: 15, kind: input, shape index: {}]   ;;  %s16917_s16 = inlined_call_operand.vmem [shape: f32[16,1], index: 16, kind: input, shape index: {}]   ;;  %s16918_s17 = inlined_call_operand.vmem [shape: f32[16,1], index: 17, kind: input, shape index: {}]   ;;  %s16919_s18 = inlined_call_operand.vmem [shape: f32[16,8], index: 18, kind: input, shape index: {}]   ;;  %s16920_s19 = inlined_call_operand.vmem [shape: f32[16,1], index: 19, kind: input, shape index: {}]   ;;  %s16921_s20 = inlined_call_operand.vmem [shape: f32[4,16,1024], index: 20, kind: output, shape index: {}]  }
   0x1   :  { %17350 = sst [smem:[#allocation98_spill]] %s16901_s0 }
   0x2   :  { %17351 = sst [smem:[#allocation99_spill]] %s16902_s1  ;;  %s8924_s1 = smov 0  }
   0x3   :  { %17352 = sst [smem:[#allocation100_spill]] %s16903_s2 }
   0x4   :  { %17353 = sst [smem:[#allocation101_spill]] %s16904_s3 }
   0x5   :  { %17354 = sst [smem:[#allocation102_spill]] %s16905_s4 }
   0x6   :  { %17355 = sst [smem:[#allocation103_spill]] %s16906_s5 }
   0x7   :  { %17356 = sst [smem:[#allocation104_spill]] %s16907_s6 }
   0x8   :  { %17357 = sst [smem:[#allocation105_spill]] %s16908_s7 }
   0x9   :  { %17358 = sst [smem:[#allocation106_spill]] %s16909_s8 }
   0xa   :  { %17359 = sst [smem:[#allocation107_spill]] %s16910_s9 }
   0xb   :  { %17360 = sst [smem:[#allocation108_spill]] %s16911_s10 }
   0xc   :  { %17361 = sst [smem:[#allocation109_spill]] %s16912_s11 }
   0xd   :  { %17362 = sst [smem:[#allocation110_spill]] %s16913_s12 }
   0xe   :  { %17363 = sst [smem:[#allocation111_spill]] %s16914_s13 }
   0xf   :  { %17364 = sst [smem:[#allocation112_spill]] %s16915_s14 }
  0x10   :  { %17365 = sst [smem:[#allocation113_spill]] %s16916_s15 }
  0x11   :  { %17366 = sst [smem:[#allocation114_spill]] %s16917_s16 }
  0x12   :  { %17367 = sst [smem:[#allocation115_spill]] %s16918_s17 }
  0x13   :  { %17368 = sst [smem:[#allocation116_spill]] %s16919_s18 }
  0x14   :  { %17369 = sst [smem:[#allocation117_spill]] %s16920_s19 }
  0x15   :  { %17370 = sst [smem:[#allocation118_spill]] %s16921_s20 }
  0x16 LB: > { %17371 = sst [smem:[#allocation2_spill]] %s8791_s1  ;;  %s8531_s22 = sadd.s32 4294967295, %s8791_s1   ;;  %s8791_s1 = sphi %s8924_s1, %s30_s1  }
  0x17   : > { %p8535_p0 = scmp.ge.s32.totalorder %s8791_s1, 1  ;;  %p571_p1 = scmp.lt.s32.totalorder %s8791_s1, 5 }
  0x19   : > { %p572_p2 = pnand %p8535_p0, %p571_p1 }
  0x1b   : > { %575 = sbr.rel (%p572_p2) target bundleno = 4520 (0x11a8), region = 100 }
  0x22   : > { %s17372_s2 = sld [smem:[#allocation101_spill]]  ;;  %v16955_v7 = vmov 0.0   ;;  %p8953_p3 = scmp.lt.s32.totalorder %s8531_s22, 3  ;;  %v16959_v13 = vmov 0   ;;  %vm714_vm0 = vcmask 523264   ;;  %vm17002_vm1 = vcmask 908288  }
  0x23   : > { %782 = vmatprep.mubr.f32.mxu0 %v16955_v7  ;;  %853 = vmatprep.mubr.f32.mxu1 %v16955_v7  ;;  %s17375_s3 = sld [smem:[#allocation98_spill]]  ;;  %s17376_s27 = sld [smem:[#allocation99_spill]]  ;;  %vm1077_vm2 = vcmask 1039360   ;;  %vm1464_vm3 = vcmask 1043456   ;;  %vm1131_vm4 = vcmask 965632   ;;  %vm1104_vm5 = vcmask 1031168  }
  0x24   : > { %8734 = vset.pattern.permute.xlu1 %v16959_v13  ;;  %8733 = vset.pattern.permute.xlu0 %v16959_v13  ;;  %s18546_s22 = smov (!%p8953_p3, %s8531_s22), 3  ;;  %s16925_s24 = smov 111   ;;  %vm17123_vm6 = vcmask 949248   ;;  %vm17124_vm7 = vcmask 957440   ;;  %vm17070_vm8 = vcmask 875520   ;;  %vm17063_vm9 = vcmask 883712  }
  0x25   : > { %17374 = sst [smem:[#allocation3_spill]] %s18546_s22  ;;  %s8536_s0 = sshll.u32 %s18546_s22, 3  ;;  %vm17060_vm10 = vcmask 867328   ;;  %vm1293_vm11 = vcmask 228352   ;;  %vm17072_vm12 = vcmask 220160   ;;  %vm17056_vm13 = vcmask 211968  }
  0x26   : > { %s16929_s30 = smov 49   ;;  %s16953_s23 = smov 48   ;;  %vm17048_vm14 = vcmask 146432   ;;  %vm17052_vm15 = vcmask 138240  }
  0x27   : > { %s16939_s21 = smov 16   ;;  %s16990_s25 = smov 117  }
  0x28   : > { %v651_v0 = vld [vmem:[%s17372_s2 + $0x8] sm:$0xff]  ;;  %v650_v2 = vld [vmem:[%s17372_s2] sm:$0xff]  ;;  %v653_v10 = vld [vmem:[%s17372_s2 + $0x18] sm:$0xff]  ;;  %s16941_s1 = smov 108   ;;  %s16933_s4 = smov 18  }
  0x29   : > { %v659_v1 = vld [vmem:[%s17372_s2 + $0x48] sm:$0xff]  ;;  %v658_v4 = vld [vmem:[%s17372_s2 + $0x40] sm:$0xff]  ;;  %v661_v11 = vld [vmem:[%s17372_s2 + $0x58] sm:$0xff]  ;;  %s636_s26 = scalar_lea.vmem %s17375_s3, %s8536_s0  ;;  %s8601_s0 = sshll.u32 %s18546_s22, 6 }
  0x2a   : > { %v8603_v3 = vpack.c.bf16 %v659_v1, %v651_v0  ;;  %v667_v5 = vld [vmem:[%s17372_s2 + $0x88] sm:$0xff]  ;;  %v8605_v8 = vpack.c.bf16 %v658_v4, %v650_v2  ;;  %v666_v12 = vld [vmem:[%s17372_s2 + $0x80] sm:$0xff]  ;;  %v8619_v14 = vpack.c.bf16 %v661_v11, %v653_v10  ;;  %v652_v16 = vld [vmem:[%s17372_s2 + $0x10] sm:$0xff]  ;;  %s9093_s28 = scalar_lea.vmem %s17376_s27, %s8601_s0  ;;  %s16992_s0 = smov 126  }
  0x2b   : > { %v675_v6 = vld [vmem:[%s17372_s2 + $0xc8] sm:$0xff]  ;;  %v674_v15 = vld [vmem:[%s17372_s2 + $0xc0] sm:$0xff]  ;;  %v660_v17 = vld [vmem:[%s17372_s2 + $0x50] sm:$0xff]  ;;  %s16937_s3 = smov 106   ;;  %s16935_s27 = smov 27  }
  0x2c   : > { %v8607_v9 = vpack.c.bf16 %v675_v6, %v667_v5  ;;  %8604 = vmatprep.subr.bf16.mxu0 %v8603_v3  ;;  %v8609_v18 = vpack.c.bf16 %v674_v15, %v666_v12  ;;  %v8621_v19 = vpack.c.bf16 %v660_v17, %v652_v16  ;;  %v683_v20 = vld [vmem:[%s17372_s2 + $0x108] sm:$0xff]  ;;  %v669_v22 = vld [vmem:[%s17372_s2 + $0x98] sm:$0xff]  ;;  %8620 = vmatprep.subr.bf16.mxu1 %v8619_v14  ;;  %v682_v25 = vld [vmem:[%s17372_s2 + $0x100] sm:$0xff]  ;;  %s16927_s29 = smov 47   ;;  %s17420_s20 = smov 17  }
  0x2d   : > { %8606 = vmatpush1.bf16.msra.mxu0 %v8605_v8  ;;  %v691_v21 = vld [vmem:[%s17372_s2 + $0x148] sm:$0xff]  ;;  %v677_v24 = vld [vmem:[%s17372_s2 + $0xd8] sm:$0xff]  ;;  %v690_v26 = vld [vmem:[%s17372_s2 + $0x140] sm:$0xff]  ;;  %s17423_s22 = smov 127   ;;  %s17424_s19 = smov 48  }
  0x2e   : > { %8608 = vmatprep.subr.bf16.mxu0 %v8607_v9  ;;  %v8611_v23 = vpack.c.bf16 %v691_v21, %v683_v20  ;;  %8622 = vmatpush1.bf16.msra.mxu1 %v8621_v19  ;;  %v8623_v27 = vpack.c.bf16 %v677_v24, %v669_v22  ;;  %v668_v28 = vld [vmem:[%s17372_s2 + $0x90] sm:$0xff]  ;;  %v699_v30 = vld [vmem:[%s17372_s2 + $0x188] sm:$0xff]  ;;  %v685_v33 = vld [vmem:[%s17372_s2 + $0x118] sm:$0xff]  ;;  %v8613_v35 = vpack.c.bf16 %v690_v26, %v682_v25  ;;  %s17427_s18 = smov 39   ;;  %s17428_s17 = smov 118  }
  0x2f   : > { %v676_v29 = vld [vmem:[%s17372_s2 + $0xd0] sm:$0xff]  ;;  %v707_v32 = vld [vmem:[%s17372_s2 + $0x1c8] sm:$0xff]  ;;  %v693_v34 = vld [vmem:[%s17372_s2 + $0x158] sm:$0xff]  ;;  %s17429_s16 = smov 37   ;;  %s17431_s15 = smov 8  }
  0x30   : > { %v8625_v31 = vpack.c.bf16 %v676_v29, %v668_v28  ;;  %8624 = vmatprep.subr.bf16.mxu1 %v8623_v27  ;;  %v8627_v36 = vpack.c.bf16 %v693_v34, %v685_v33  ;;  %v698_v37 = vld [vmem:[%s17372_s2 + $0x180] sm:$0xff]  ;;  %v684_v38 = vld [vmem:[%s17372_s2 + $0x110] sm:$0xff]  ;;  %v8615_v39 = vpack.c.bf16 %v707_v32, %v699_v30  ;;  %v701_v42 = vld [vmem:[%s17372_s2 + $0x198] sm:$0xff]  ;;  %s17473_s14 = smov 111   ;;  %s17633_s10 = smov 126  }
  0x31   : > { %8610 = vmatpush1.bf16.msra.mxu0 %v8609_v18  ;;  %v706_v40 = vld [vmem:[%s17372_s2 + $0x1c0] sm:$0xff]  ;;  %v692_v41 = vld [vmem:[%s17372_s2 + $0x150] sm:$0xff]  ;;  %v709_v44 = vld [vmem:[%s17372_s2 + $0x1d8] sm:$0xff]  ;;  %s17645_s11 = smov 117   ;;  %s17724_s7 = sld [smem:[#allocation105_spill]] }
  0x32   : > { %8612 = vmatprep.subr.bf16.mxu0 %v8611_v23  ;;  %8626 = vmatpush1.bf16.msra.mxu1 %v8625_v31  ;;  %v8629_v43 = vpack.c.bf16 %v692_v41, %v684_v38  ;;  %v655_v45 = vld [vmem:[%s17372_s2 + $0x28] sm:$0xff]  ;;  %v8631_v47 = vpack.c.bf16 %v709_v44, %v701_v42  ;;  %v700_v48 = vld [vmem:[%s17372_s2 + $0x190] sm:$0xff]  ;;  %v8617_v50 = vpack.c.bf16 %v706_v40, %v698_v37  ;;  %v654_v52 = vld [vmem:[%s17372_s2 + $0x20] sm:$0xff]  ;;  %s17741_s12 = sld [smem:[#allocation100_spill]]  ;;  %s17879_s5 = sld [smem:[#allocation103_spill]] }
  0x33   : > { %v663_v46 = vld [vmem:[%s17372_s2 + $0x68] sm:$0xff]  ;;  %8628 = vmatprep.subr.bf16.mxu1 %v8627_v36  ;;  %v708_v49 = vld [vmem:[%s17372_s2 + $0x1d0] sm:$0xff]  ;;  %v662_v53 = vld [vmem:[%s17372_s2 + $0x60] sm:$0xff]  ;;  %s17880_s8 = sld [smem:[#allocation106_spill]]  ;;  %s17881_s6 = sld [smem:[#allocation104_spill]] }
  0x34   : > { %v8635_v51 = vpack.c.bf16 %v663_v46, %v655_v45  ;;  %v8633_v54 = vpack.c.bf16 %v708_v49, %v700_v48  ;;  %v671_v55 = vld [vmem:[%s17372_s2 + $0xa8] sm:$0xff]  ;;  %v9067_v57 = vld [vmem:[%s636_s26] sm:$0xff]  ;;  %v8637_v59 = vpack.c.bf16 %v662_v53, %v654_v52  ;;  %v657_v61 = vld [vmem:[%s17372_s2 + $0x38] sm:$0xff]  ;;  %v9177_v49 = vrot.slane %v16959_v13, 4  ;;  %s16931_s26 = smov 38   ;;  %s17882_s9 = sld [smem:[#allocation107_spill]] }
  0x35   : > { %8614 = vmatpush1.bf16.msra.mxu0 %v8613_v35  ;;  %v679_v56 = vld [vmem:[%s17372_s2 + $0xe8] sm:$0xff]  ;;  %v670_v58 = vld [vmem:[%s17372_s2 + $0xa0] sm:$0xff]  ;;  %v665_v62 = vld [vmem:[%s17372_s2 + $0x78] sm:$0xff]  ;;  %s17956_s13 = smov 39  }
  0x36   : > { %8616 = vmatprep.subr.bf16.mxu0 %v8615_v39  ;;  %8630 = vmatpush1.bf16.msra.mxu1 %v8629_v43  ;;  %v678_v60 = vld [vmem:[%s17372_s2 + $0xe0] sm:$0xff]  ;;  %v8639_v63 = vpack.c.bf16 %v679_v56, %v671_v55  ;;  %v8651_v0 = vpack.c.bf16 %v665_v62, %v657_v61  ;;  %v656_v1 = vld [vmem:[%s17372_s2 + $0x30] sm:$0xff]  ;;  %v673_v3 = vld [vmem:[%s17372_s2 + $0xb8] sm:$0xff] }
  0x37   : > { %8632 = vmatprep.subr.bf16.mxu1 %v8631_v47  ;;  %v664_v2 = vld [vmem:[%s17372_s2 + $0x70] sm:$0xff]  ;;  %v687_v4 = vld [vmem:[%s17372_s2 + $0x128] sm:$0xff]  ;;  %v681_v8 = vld [vmem:[%s17372_s2 + $0xf8] sm:$0xff]  ;;  %v8641_v14 = vpack.c.bf16 %v678_v60, %v670_v58 }
  0x38   : > { %v695_v5 = vld [vmem:[%s17372_s2 + $0x168] sm:$0xff]  ;;  %v8653_v6 = vpack.c.bf16 %v664_v2, %v656_v1  ;;  %v686_v9 = vld [vmem:[%s17372_s2 + $0x120] sm:$0xff]  ;;  %v8655_v10 = vpack.c.bf16 %v681_v8, %v673_v3  ;;  %v672_v11 = vld [vmem:[%s17372_s2 + $0xb0] sm:$0xff] }
  0x39   : > { %8618 = vmatpush1.bf16.msra.mxu0 %v8617_v50  ;;  %v680_v12 = vld [vmem:[%s17372_s2 + $0xf0] sm:$0xff]  ;;  %v694_v15 = vld [vmem:[%s17372_s2 + $0x160] sm:$0xff]  ;;  %v689_v16 = vld [vmem:[%s17372_s2 + $0x138] sm:$0xff]  ;;  %v8643_v18 = vpack.c.bf16 %v695_v5, %v687_v4 }
  0x3a   : > { %8636 = vmatprep.subr.bf16.mxu0 %v8635_v51  ;;  %8634 = vmatpush1.bf16.msra.mxu1 %v8633_v54  ;;  %v697_v17 = vld [vmem:[%s17372_s2 + $0x178] sm:$0xff]  ;;  %v703_v19 = vld [vmem:[%s17372_s2 + $0x1a8] sm:$0xff]  ;;  %v8657_v22 = vpack.c.bf16 %v680_v12, %v672_v11  ;;  %v2679_v24 = vld [vmem:[%s9093_s28] sm:$0xff]  ;;  %v8645_v31 = vpack.c.bf16 %v694_v15, %v686_v9 }
  0x3b   : > { %8652 = vmatprep.subr.bf16.mxu1 %v8651_v0  ;;  %v711_v20 = vld [vmem:[%s17372_s2 + $0x1e8] sm:$0xff]  ;;  %v2682_v25 = vld [vmem:[%s9093_s28 + $0x18] sm:$0xff]  ;;  %v2681_v26 = vld [vmem:[%s9093_s28 + $0x10] sm:$0xff]  ;;  %v8659_v27 = vpack.c.bf16 %v697_v17, %v689_v16  ;;  %v2687_v30 = vpack.c.bf16 %v2679_v24, %v2679_v24 }
  0x3c   : > { %8541 = vmatmul.mubr.msk.f32.vlgmr.msra.gmra.mrb[0].mxu0 %vm714_vm0, %v9067_v57  ;;  %v2680_v21 = vld [vmem:[%s9093_s28 + $0x8] sm:$0xff]  ;;  %v688_v28 = vld [vmem:[%s17372_s2 + $0x130] sm:$0xff]  ;;  %v705_v32 = vld [vmem:[%s17372_s2 + $0x1b8] sm:$0xff]  ;;  %v2690_v34 = vpack.c.bf16 %v2682_v25, %v2682_v25  ;;  %v8647_v35 = vpack.c.bf16 %v711_v20, %v703_v19  ;;  %v2689_v38 = vpack.c.bf16 %v2681_v26, %v2681_v26 }
  0x3d   : > { %8638 = vmatpush1.bf16.msra.mxu0 %v8637_v59  ;;  %924 = vmatprep.mubr.f32.mxu0 %v16955_v7  ;;  %v2688_v23 = vpack.c.bf16 %v2680_v21, %v2680_v21  ;;  %v696_v29 = vld [vmem:[%s17372_s2 + $0x170] sm:$0xff]  ;;  %v713_v33 = vld [vmem:[%s17372_s2 + $0x1f8] sm:$0xff]  ;;  %v702_v36 = vld [vmem:[%s17372_s2 + $0x1a0] sm:$0xff] }
  0x3e   : > { %8542 = vmatmul.mubr.msk.f32.vlgmr.msra.gmra.mrb[0].mxu1 %vm714_vm0, %v9067_v57  ;;  %8640 = vmatprep.subr.bf16.mxu0 %v8639_v63  ;;  %v710_v37 = vld [vmem:[%s17372_s2 + $0x1e0] sm:$0xff]  ;;  %v2684_v39 = vld [vmem:[%s9093_s28 + $0x28] sm:$0xff]  ;;  %v8661_v40 = vpack.c.bf16 %v696_v29, %v688_v28  ;;  %v8663_v42 = vpack.c.bf16 %v713_v33, %v705_v32  ;;  %v704_v43 = vld [vmem:[%s17372_s2 + $0x1b0] sm:$0xff] }
  0x3f   : > { %8654 = vmatpush1.bf16.msra.mxu1 %v8653_v6  ;;  %995 = vmatprep.mubr.f32.mxu1 %v16955_v7  ;;  %v2683_v41 = vld [vmem:[%s9093_s28 + $0x20] sm:$0xff]  ;;  %v712_v44 = vld [vmem:[%s17372_s2 + $0x1f0] sm:$0xff]  ;;  %v8649_v45 = vpack.c.bf16 %v710_v37, %v702_v36  ;;  %v2692_v46 = vpack.c.bf16 %v2684_v39, %v2684_v39  ;;  %s17417_s2 = smov 26  }
  0x40   : > { %8656 = vmatprep.subr.bf16.mxu1 %v8655_v10  ;;  %2705 = vrot.lane.b32.xlu1 %v2688_v23, %s16925_s24  ;;  %v2691_v47 = vpack.c.bf16 %v2683_v41, %v2683_v41  ;;  %v8665_v48 = vpack.c.bf16 %v712_v44, %v704_v43 }
  0x41   : > { %8642 = vmatpush1.bf16.msra.mxu0 %v8641_v14  ;;  %2703 = vrot.lane.b32.xlu0 %v2687_v30, %s16925_s24 }
  0x42   : > { %8644 = vmatprep.subr.bf16.mxu0 %v8643_v18 }
  0x43   : > { %8658 = vmatpush1.bf16.msra.mxu1 %v8657_v22 }
  0x44   : > { %8660 = vmatprep.subr.bf16.mxu1 %v8659_v27  ;;  %2709 = vrot.lane.b32.xlu1 %v2690_v34, %s16925_s24 }
  0x45   : > { %8646 = vmatpush1.bf16.msra.mxu0 %v8645_v31  ;;  %2707 = vrot.lane.b32.xlu0 %v2689_v38, %s16925_s24 }
  0x46   : > { %8648 = vmatprep.subr.bf16.mxu0 %v8647_v35 }
  0x47   : > { %8662 = vmatpush1.bf16.msra.mxu1 %v8661_v40 }
  0x48   : > { %8664 = vmatprep.subr.bf16.mxu1 %v8663_v42  ;;  %2713 = vrot.lane.b32.xlu1 %v2692_v46, %s16925_s24 }
  0x49   : > { %8650 = vmatpush1.bf16.msra.mxu0 %v8649_v45  ;;  %2711 = vrot.lane.b32.xlu0 %v2691_v47, %s16925_s24 }
  0x4b   : > { %8666 = vmatpush1.bf16.msra.mxu1 %v8665_v48 }
  0x4c   : > { %8543 = vmatmul.mubr.msk.f32.vlgmr.msra.gmra.mrb[2].mxu0 %vm714_vm0, %v9067_v57 }
  0x4d   : > { %1737 = vrot.lane.b32.xlu0 %v16959_v13, %s16929_s30 }
  0x4e   : > { %8544 = vmatmul.mubr.msk.f32.vlgmr.msra.gmra.mrb[2].mxu1 %vm714_vm0, %v9067_v57  ;;  %vm17049_vm0 = vcmask 130048  }
  0x51   : > { %1765 = vrot.lane.b32.xlu0 %v9177_v49, %s16953_s23 }
  0xb2   : > { %v9227_v5 = vpop.permute.xlu1 %2705 }
  0xb3   : > { %v9221_v2 = vpop.permute.xlu0 %2703 }
  0xb6   : > { %v9231_v8 = vpop.permute.xlu1 %2709 }
  0xb7   : > { %v9223_v3 = vpop.permute.xlu0 %2707  ;;  %17387 = vst [vmem:[#allocation14_spill] sm:$0xff] %v9231_v8 }
  0xba   : > { %v9235_v10 = vpop.permute.xlu1 %2713 }
  0xbb   : > { %v9225_v4 = vpop.permute.xlu0 %2711  ;;  %17389 = vst [vmem:[#allocation16_spill] sm:$0xff] %v9235_v10 }
  0xbc   : > { %17385 = vst [vmem:[#allocation12_spill] sm:$0xff] %v9225_v4 }
  0xbf   : > { %v9229_v6 = vpop.permute.xlu0 %1737 }
  0xc0   : > { %17386 = vst [vmem:[#allocation13_spill] sm:$0xff] %v9229_v6 }
  0xc3   : > { %v9233_v9 = vpop.permute.xlu0 %1765 }
  0xc4   : > { %17388 = vst [vmem:[#allocation15_spill] sm:$0xff] %v9233_v9 }
 0x10f   : > { %v9181_v50 = vpop.f32.mrb[0].mxu0 }
 0x110   : > { %17377 = vst [vmem:[#allocation4_spill] sm:$0xff] %v9181_v50  ;;  %v1002_v51 = vpack.c.bf16 %v9181_v50, %v9181_v50  ;;  %v9185_v52 = vpop.f32.mrb[1].mxu0 }
 0x111   : > { %17378 = vst [vmem:[#allocation5_spill] sm:$0xff] %v9185_v52  ;;  %v9187_v53 = vpop.f32.mrb[0].mxu1  ;;  %v1003_v56 = vpack.c.bf16 %v9185_v52, %v9185_v52 }
 0x112   : > { %17379 = vst [vmem:[#allocation6_spill] sm:$0xff] %v9187_v53  ;;  %1018 = vrot.lane.b32.xlu0 %v1002_v51, %s16925_s24  ;;  %v1004_v54 = vpack.c.bf16 %v9187_v53, %v9187_v53  ;;  %v9192_v55 = vpop.f32.mrb[1].mxu1 }
 0x113   : > { %17380 = vst [vmem:[#allocation7_spill] sm:$0xff] %v9192_v55  ;;  %v1005_v57 = vpack.c.bf16 %v9192_v55, %v9192_v55 }
 0x114   : > { %1022 = vrot.lane.b32.xlu1 %v1004_v54, %s16925_s24 }
 0x116   : > { %1020 = vrot.lane.b32.xlu0 %v1003_v56, %s16925_s24 }
 0x118   : > { %1024 = vrot.lane.b32.xlu1 %v1005_v57, %s16925_s24 }
 0x11f   : > { %v9201_v58 = vpop.f32.mrb[2].mxu0 }
 0x120   : > { %17381 = vst [vmem:[#allocation8_spill] sm:$0xff] %v9201_v58  ;;  %v1006_v59 = vpack.c.bf16 %v9201_v58, %v9201_v58  ;;  %v9205_v60 = vpop.f32.mrb[3].mxu0 }
 0x121   : > { %17382 = vst [vmem:[#allocation9_spill] sm:$0xff] %v9205_v60  ;;  %v1007_v61 = vpack.c.bf16 %v9205_v60, %v9205_v60  ;;  %v9209_v62 = vpop.f32.mrb[2].mxu1 }
 0x122   : > { %17383 = vst [vmem:[#allocation10_spill] sm:$0xff] %v9209_v62  ;;  %1026 = vrot.lane.b32.xlu0 %v1006_v59, %s16925_s24  ;;  %v1008_v63 = vpack.c.bf16 %v9209_v62, %v9209_v62  ;;  %v9214_v0 = vpop.f32.mrb[3].mxu1 }
 0x123   : > { %17384 = vst [vmem:[#allocation11_spill] sm:$0xff] %v9214_v0  ;;  %1028 = vrot.lane.b32.xlu1 %v1007_v61, %s16925_s24  ;;  %v1009_v1 = vpack.c.bf16 %v9214_v0, %v9214_v0 }
 0x126   : > { %1030 = vrot.lane.b32.xlu0 %v1008_v63, %s16925_s24 }
 0x127   : > { %1032 = vrot.lane.b32.xlu1 %v1009_v1, %s16925_s24  ;;  %s16962_s24 = smov 29  }
 0x184   : > { %v1019_v11 = vpop.permute.xlu0 %1018 }
 0x185   : > { %v9238_v12 = vsel %vm17002_vm1, 0, %v1019_v11 }
 0x186   : > { %1410 = vrot.lane.b32.xlu0 %v9238_v12, %s16939_s21  ;;  %1086 = vrot.lane.b32.xlu1 %v9238_v12, %s16992_s0  ;;  %v1023_v14 = vpop.permute.xlu1 %1022  ;;  %v1050_v20 = vrot.slane %v9238_v12, 4 }
 0x188   : > { %v1021_v15 = vpop.permute.xlu0 %1020 }
 0x189   : > { %v9245_v16 = vsel %vm17002_vm1, %v1019_v11, %v1021_v15  ;;  %v9274_v19 = vsel %vm17002_vm1, %v1021_v15, %v1023_v14 }
 0x18a   : > { %1088 = vrot.lane.b32.xlu0 %v9245_v16, %s16992_s0  ;;  %1140 = vrot.lane.b32.xlu1 %v9238_v12, %s16990_s25  ;;  %v9251_v17 = vpop.permute.xlu1 %1024  ;;  %v9338_v21 = vrot.slane %v9245_v16, 4  ;;  %v1052_v23 = vrot.slane %v9274_v19, 4 }
 0x18b   : > { %v9255_v18 = vsel %vm17002_vm1, %v1023_v14, %v9251_v17 }
 0x18c   : > { %v9344_v22 = vrot.slane %v9255_v18, 4 }
 0x18e   : > { %1092 = vrot.lane.b32.xlu0 %v9255_v18, %s16992_s0  ;;  %1194 = vrot.lane.b32.xlu1 %v9238_v12, %s16941_s1 }
 0x192   : > { %1142 = vrot.lane.b32.xlu0 %v9245_v16, %s16990_s25  ;;  %1248 = vrot.lane.b32.xlu1 %v9238_v12, %s16937_s3 }
 0x194   : > { %v9361_v25 = vpop.permute.xlu0 %1026 }
 0x195   : > { %v9356_v24 = vpop.permute.xlu1 %1028  ;;  %v9460_v57 = vsel %vm17002_vm1, %v9251_v17, %v9361_v25 }
 0x196   : > { %1146 = vrot.lane.b32.xlu0 %v9255_v18, %s16990_s25  ;;  %1302 = vrot.lane.b32.xlu1 %v9238_v12, %s16935_s27  ;;  %17390 = vst [vmem:[#allocation17_spill] sm:$0xff] %v9460_v57  ;;  %v9481_v11 = vsel %vm17002_vm1, %v9361_v25, %v9356_v24 }
 0x198   : > { %v9368_v27 = vpop.permute.xlu0 %1030 }
 0x199   : > { %v9366_v26 = vpop.permute.xlu1 %1032  ;;  %v9549_v50 = vsel %vm17002_vm1, %v9356_v24, %v9368_v27 }
 0x19a   : > { %1196 = vrot.lane.b32.xlu0 %v9245_v16, %s16941_s1  ;;  %1356 = vrot.lane.b32.xlu1 %v9238_v12, %s16933_s4  ;;  %v9494_v17 = vsel %vm17002_vm1, %v9368_v27, %v9366_v26  ;;  %v9557_v10 = vsel %vm17002_vm1, %v9366_v26, 0  ;;  %vm17050_vm1 = vcmask 64512  }
 0x19e   : > { %1200 = vrot.lane.b32.xlu0 %v9255_v18, %s16941_s1  ;;  %1090 = vrot.lane.b32.xlu1 %v9274_v19, %s16992_s0 }
 0x1a2   : > { %1250 = vrot.lane.b32.xlu0 %v9245_v16, %s16937_s3  ;;  %1144 = vrot.lane.b32.xlu1 %v9274_v19, %s16990_s25 }
 0x1a6   : > { %1254 = vrot.lane.b32.xlu0 %v9255_v18, %s16937_s3  ;;  %1198 = vrot.lane.b32.xlu1 %v9274_v19, %s16941_s1  ;;  %s16957_s1 = smov 17  }
 0x1aa   : > { %1304 = vrot.lane.b32.xlu0 %v9245_v16, %s16935_s27  ;;  %1252 = vrot.lane.b32.xlu1 %v9274_v19, %s16937_s3  ;;  %s16943_s3 = smov 28  }
 0x1ae   : > { %1308 = vrot.lane.b32.xlu0 %v9255_v18, %s16935_s27  ;;  %1306 = vrot.lane.b32.xlu1 %v9274_v19, %s16935_s27  ;;  %s16966_s27 = smov 107  }
 0x1b2   : > { %1358 = vrot.lane.b32.xlu0 %v9245_v16, %s16933_s4  ;;  %1360 = vrot.lane.b32.xlu1 %v9274_v19, %s16933_s4 }
 0x1b6   : > { %1362 = vrot.lane.b32.xlu0 %v9255_v18, %s16933_s4  ;;  %1721 = vrot.lane.b32.xlu1 %v9245_v16, %s16929_s30  ;;  %s16947_s4 = smov 8  }
 0x1ba   : > { %1723 = vrot.lane.b32.xlu0 %v9274_v19, %s16929_s30  ;;  %1725 = vrot.lane.b32.xlu1 %v9255_v18, %s16929_s30  ;;  %s16994_s30 = smov 118  }
 0x1be   : > { %1778 = vrot.lane.b32.xlu0 %v9274_v19, %s16927_s29  ;;  %1776 = vrot.lane.b32.xlu1 %v9245_v16, %s16927_s29 }
 0x1c2   : > { %1832 = vrot.lane.b32.xlu0 %v9274_v19, %s16931_s26  ;;  %1780 = vrot.lane.b32.xlu1 %v9255_v18, %s16927_s29  ;;  %s16996_s29 = smov 127  }
 0x1c6   : > { %1886 = vrot.lane.b32.xlu0 %v9274_v19, %s16962_s24  ;;  %1830 = vrot.lane.b32.xlu1 %v9245_v16, %s16931_s26 }
 0x1ca   : > { %1412 = vrot.lane.b32.xlu0 %v9245_v16, %s16939_s21  ;;  %1834 = vrot.lane.b32.xlu1 %v9255_v18, %s16931_s26  ;;  %s16970_s26 = smov 116  }
 0x1ce   : > { %1416 = vrot.lane.b32.xlu0 %v9255_v18, %s16939_s21  ;;  %1884 = vrot.lane.b32.xlu1 %v9245_v16, %s16962_s24 }
 0x1d2   : > { %1059 = vrot.lane.b32.xlu0 %v1050_v20, %s16996_s29  ;;  %1888 = vrot.lane.b32.xlu1 %v9255_v18, %s16962_s24 }
 0x1d6   : > { %1113 = vrot.lane.b32.xlu0 %v1050_v20, %s16994_s30  ;;  %1414 = vrot.lane.b32.xlu1 %v9274_v19, %s16939_s21  ;;  %s16945_s21 = smov 26  }
 0x1da   : > { %1167 = vrot.lane.b32.xlu0 %v1050_v20, %s16970_s26  ;;  %1437 = vrot.lane.b32.xlu1 %v1050_v20, %s16947_s4 }
 0x1de   : > { %1221 = vrot.lane.b32.xlu0 %v1050_v20, %s16966_s27  ;;  %1061 = vrot.lane.b32.xlu1 %v9338_v21, %s16996_s29 }
 0x1e2   : > { %1275 = vrot.lane.b32.xlu0 %v1050_v20, %s16943_s3  ;;  %1065 = vrot.lane.b32.xlu1 %v9344_v22, %s16996_s29 }
 0x1e6   : > { %1329 = vrot.lane.b32.xlu0 %v1050_v20, %s16945_s21  ;;  %1115 = vrot.lane.b32.xlu1 %v9338_v21, %s16994_s30 }
 0x1ea   : > { %1383 = vrot.lane.b32.xlu0 %v1050_v20, %s16957_s1  ;;  %1119 = vrot.lane.b32.xlu1 %v9344_v22, %s16994_s30 }
 0x1ee   : > { %1063 = vrot.lane.b32.xlu0 %v1052_v23, %s16996_s29  ;;  %1169 = vrot.lane.b32.xlu1 %v9338_v21, %s16970_s26 }
 0x1f2   : > { %1117 = vrot.lane.b32.xlu0 %v1052_v23, %s16994_s30  ;;  %1173 = vrot.lane.b32.xlu1 %v9344_v22, %s16970_s26 }
 0x1f6   : > { %1171 = vrot.lane.b32.xlu0 %v1052_v23, %s16970_s26  ;;  %1223 = vrot.lane.b32.xlu1 %v9338_v21, %s16966_s27  ;;  %s17408_s26 = smov 16  }
 0x1f8   : > { %v9373_v28 = vpop.permute.xlu0 %1410  ;;  %v9375_v29 = vpop.permute.xlu1 %1086 }
 0x1fa   : > { %1225 = vrot.lane.b32.xlu0 %v1052_v23, %s16966_s27  ;;  %1227 = vrot.lane.b32.xlu1 %v9344_v22, %s16966_s27  ;;  %s17407_s27 = smov 38  }
 0x1fc   : > { %v9380_v30 = vpop.permute.xlu0 %1088  ;;  %v9382_v31 = vpop.permute.xlu1 %1140 }
 0x1fe   : > { %1279 = vrot.lane.b32.xlu0 %v1052_v23, %s16943_s3  ;;  %1277 = vrot.lane.b32.xlu1 %v9338_v21, %s16943_s3 }
 0x200   : > { %v9387_v32 = vpop.permute.xlu0 %1092  ;;  %v9389_v33 = vpop.permute.xlu1 %1194 }
 0x202   : > { %1333 = vrot.lane.b32.xlu0 %v1052_v23, %s16945_s21  ;;  %1281 = vrot.lane.b32.xlu1 %v9344_v22, %s16943_s3  ;;  %s16951_s3 = smov 39  }
 0x204   : > { %v9394_v34 = vpop.permute.xlu0 %1142  ;;  %v9396_v35 = vpop.permute.xlu1 %1248 }
 0x206   : > { %1387 = vrot.lane.b32.xlu0 %v1052_v23, %s16957_s1  ;;  %1331 = vrot.lane.b32.xlu1 %v9338_v21, %s16945_s21 }
 0x208   : > { %v9401_v36 = vpop.permute.xlu0 %1146  ;;  %v9403_v37 = vpop.permute.xlu1 %1302 }
 0x20a   : > { %1749 = vrot.lane.b32.xlu0 %v9338_v21, %s16953_s23  ;;  %1335 = vrot.lane.b32.xlu1 %v9344_v22, %s16945_s21  ;;  %s16949_s21 = smov 37  }
 0x20c   : > { %v9409_v38 = vpop.permute.xlu0 %1196  ;;  %v9411_v39 = vpop.permute.xlu1 %1356 }
 0x20e   : > { %1753 = vrot.lane.b32.xlu0 %v9344_v22, %s16953_s23  ;;  %1385 = vrot.lane.b32.xlu1 %v9338_v21, %s16957_s1 }
 0x210   : > { %v9417_v40 = vpop.permute.xlu0 %1200  ;;  %v9419_v41 = vpop.permute.xlu1 %1090 }
 0x212   : > { %1803 = vrot.lane.b32.xlu0 %v9338_v21, %s16951_s3  ;;  %1389 = vrot.lane.b32.xlu1 %v9344_v22, %s16957_s1  ;;  %s17403_s1 = smov 49  }
 0x214   : > { %v9425_v42 = vpop.permute.xlu0 %1250  ;;  %v9427_v43 = vpop.permute.xlu1 %1144 }
 0x216   : > { %1807 = vrot.lane.b32.xlu0 %v9344_v22, %s16951_s3  ;;  %1751 = vrot.lane.b32.xlu1 %v1052_v23, %s16953_s23  ;;  %s17401_s23 = smov 18  }
 0x218   : > { %v9432_v44 = vpop.permute.xlu0 %1254  ;;  %v9434_v45 = vpop.permute.xlu1 %1198 }
 0x21a   : > { %1857 = vrot.lane.b32.xlu0 %v9338_v21, %s16949_s21  ;;  %1805 = vrot.lane.b32.xlu1 %v1052_v23, %s16951_s3  ;;  %s17398_s3 = smov 27  }
 0x21c   : > { %v9439_v46 = vpop.permute.xlu0 %1304  ;;  %v9441_v47 = vpop.permute.xlu1 %1252 }
 0x21e   : > { %1861 = vrot.lane.b32.xlu0 %v9344_v22, %s16949_s21  ;;  %1859 = vrot.lane.b32.xlu1 %v1052_v23, %s16949_s21  ;;  %s17395_s21 = smov 106  }
 0x220   : > { %v9446_v48 = vpop.permute.xlu0 %1308  ;;  %v9448_v51 = vpop.permute.xlu1 %1306 }
 0x222   : > { %1439 = vrot.lane.b32.xlu0 %v9338_v21, %s16947_s4  ;;  %1441 = vrot.lane.b32.xlu1 %v1052_v23, %s16947_s4 }
 0x224   : > { %v9453_v54 = vpop.permute.xlu0 %1358  ;;  %v9455_v56 = vpop.permute.xlu1 %1360 }
 0x226   : > { %1443 = vrot.lane.b32.xlu0 %v9344_v22, %s16947_s4  ;;  %1094 = vrot.lane.b32.xlu1 %v9460_v57, %s16992_s0  ;;  %s17393_s4 = smov 108  }
 0x228   : > { %v9466_v59 = vpop.permute.xlu0 %1362  ;;  %v9468_v61 = vpop.permute.xlu1 %1721 }
 0x22a   : > { %1890 = vrot.lane.b32.xlu0 %v9460_v57, %s16962_s24  ;;  %1148 = vrot.lane.b32.xlu1 %v9460_v57, %s16990_s25  ;;  %s17405_s24 = smov 47  }
 0x22c   : > { %v9474_v63 = vpop.permute.xlu0 %1723  ;;  %v9476_v1 = vpop.permute.xlu1 %1725 }
 0x22d   : > { %17391 = vst [vmem:[#allocation18_spill] sm:$0xff] %v9474_v63  ;;  %17392 = vst [vmem:[#allocation19_spill] sm:$0xff] %v9476_v1 }
 0x22e   : > { %1202 = vrot.lane.b32.xlu1 %v9460_v57, %s17393_s4  ;;  %1096 = vrot.lane.b32.xlu0 %v9481_v11, %s16992_s0 }
 0x230   : > { %v9487_v14 = vpop.permute.xlu0 %1778  ;;  %v9489_v15 = vpop.permute.xlu1 %1776 }
 0x231   : > { %17394 = vst [vmem:[#allocation20_spill] sm:$0xff] %v9487_v14 }
 0x232   : > { %1256 = vrot.lane.b32.xlu1 %v9460_v57, %s17395_s21  ;;  %1100 = vrot.lane.b32.xlu0 %v9494_v17, %s16992_s0 }
 0x234   : > { %v9500_v20 = vpop.permute.xlu0 %1832  ;;  %v9502_v21 = vpop.permute.xlu1 %1780 }
 0x235   : > { %17396 = vst [vmem:[#allocation21_spill] sm:$0xff] %v9500_v20  ;;  %17397 = vst [vmem:[#allocation22_spill] sm:$0xff] %v9502_v21 }
 0x236   : > { %1310 = vrot.lane.b32.xlu1 %v9460_v57, %s17398_s3  ;;  %1150 = vrot.lane.b32.xlu0 %v9481_v11, %s16990_s25 }
 0x238   : > { %v9508_v22 = vpop.permute.xlu0 %1886  ;;  %v9510_v23 = vpop.permute.xlu1 %1830 }
 0x239   : > { %17399 = vst [vmem:[#allocation23_spill] sm:$0xff] %v9508_v22  ;;  %17400 = vst [vmem:[#allocation24_spill] sm:$0xff] %v9510_v23 }
 0x23a   : > { %1364 = vrot.lane.b32.xlu1 %v9460_v57, %s17401_s23  ;;  %1154 = vrot.lane.b32.xlu0 %v9494_v17, %s16990_s25 }
 0x23c   : > { %v9516_v25 = vpop.permute.xlu0 %1412  ;;  %v9518_v7 = vpop.permute.xlu1 %1834 }
 0x23d   : > { %17402 = vst [vmem:[#allocation25_spill] sm:$0xff] %v9518_v7 }
 0x23e   : > { %1727 = vrot.lane.b32.xlu1 %v9460_v57, %s17403_s1  ;;  %1204 = vrot.lane.b32.xlu0 %v9481_v11, %s17393_s4 }
 0x240   : > { %v9524_v13 = vpop.permute.xlu0 %1416  ;;  %v9526_v0 = vpop.permute.xlu1 %1884 }
 0x241   : > { %17404 = vst [vmem:[#allocation26_spill] sm:$0xff] %v9526_v0 }
 0x242   : > { %1782 = vrot.lane.b32.xlu1 %v9460_v57, %s17405_s24  ;;  %1208 = vrot.lane.b32.xlu0 %v9494_v17, %s17393_s4 }
 0x244   : > { %v1060_v60 = vpop.permute.xlu0 %1059  ;;  %v9532_v62 = vpop.permute.xlu1 %1888 }
 0x245   : > { %17406 = vst [vmem:[#allocation27_spill] sm:$0xff] %v9532_v62 }
 0x246   : > { %1258 = vrot.lane.b32.xlu0 %v9481_v11, %s17395_s21  ;;  %1836 = vrot.lane.b32.xlu1 %v9460_v57, %s17407_s27 }
 0x248   : > { %v1114_v58 = vpop.permute.xlu0 %1113  ;;  %v9538_v55 = vpop.permute.xlu1 %1414 }
 0x24a   : > { %1262 = vrot.lane.b32.xlu0 %v9494_v17, %s17395_s21  ;;  %1418 = vrot.lane.b32.xlu1 %v9460_v57, %s17408_s26 }
 0x24c   : > { %v1168_v52 = vpop.permute.xlu0 %1167  ;;  %v9544_v53 = vpop.permute.xlu1 %1437 }
 0x24e   : > { %1312 = vrot.lane.b32.xlu0 %v9481_v11, %s17398_s3  ;;  %1098 = vrot.lane.b32.xlu1 %v9549_v50, %s16992_s0 }
 0x250   : > { %v1222_v6 = vpop.permute.xlu0 %1221  ;;  %v1062_v9 = vpop.permute.xlu1 %1061 }
 0x251   : > { %v1078_v62 = vsel %vm1077_vm2, %v1060_v60, %v1062_v9 }
 0x252   : > { %1316 = vrot.lane.b32.xlu0 %v9494_v17, %s17398_s3  ;;  %1102 = vrot.lane.b32.xlu1 %v9557_v10, %s16992_s0  ;;  %v9601_v60 = vsel %vm1464_vm3, %v9238_v12, %v1078_v62  ;;  %v1105_v62 = vsel %vm1104_vm5, %v9375_v29, %v9380_v30  ;;  %v1160_v29 = vsel %vm17124_vm7, %v9394_v34, %v9427_v43  ;;  %s17413_s0 = smov 107  }
 0x253   : > { %17409 = vst [vmem:[#allocation28_spill] sm:$0xff] %v9601_v60 }
 0x254   : > { %v9563_v24 = vpop.permute.xlu0 %1275  ;;  %v9565_v27 = vpop.permute.xlu1 %1065 }
 0x256   : > { %1366 = vrot.lane.b32.xlu0 %v9481_v11, %s17401_s23  ;;  %1152 = vrot.lane.b32.xlu1 %v9549_v50, %s16990_s25 }
 0x258   : > { %v9571_v4 = vpop.permute.xlu0 %1329  ;;  %v1116_v26 = vpop.permute.xlu1 %1115 }
 0x259   : > { %v1132_v0 = vsel %vm1131_vm4, %v1114_v58, %v1116_v26 }
 0x25a   : > { %1370 = vrot.lane.b32.xlu0 %v9494_v17, %s17401_s23  ;;  %1156 = vrot.lane.b32.xlu1 %v9557_v10, %s16990_s25  ;;  %v1498_v12 = vsel %vm1464_vm3, %v1105_v62, %v1132_v0  ;;  %s17412_s25 = smov 116  }
 0x25c   : > { %v9577_v8 = vpop.permute.xlu0 %1383  ;;  %v9579_v22 = vpop.permute.xlu1 %1119 }
 0x25e   : > { %1729 = vrot.lane.b32.xlu0 %v9481_v11, %s17403_s1  ;;  %1206 = vrot.lane.b32.xlu1 %v9549_v50, %s17393_s4 }
 0x260   : > { %v9586_v21 = vpop.permute.xlu0 %1063  ;;  %v1170_v20 = vpop.permute.xlu1 %1169 }
 0x261   : > { %v1079_v7 = vsel %vm1077_vm2, %v1062_v9, %v9586_v21  ;;  %v1186_v1 = vsel %vm17123_vm6, %v1168_v52, %v1170_v20 }
 0x262   : > { %1784 = vrot.lane.b32.xlu0 %v9481_v11, %s17405_s24  ;;  %1210 = vrot.lane.b32.xlu1 %v9557_v10, %s17393_s4  ;;  %v9596_v14 = vsel %vm1464_vm3, %v9245_v16, %v1079_v7  ;;  %v1106_v7 = vsel %vm1104_vm5, %v9380_v30, %v9419_v41 }
 0x263   : > { %2296 = vmatprep.subr.bf16.mxu0 %v9596_v14 }
 0x264   : > { %v9604_v9 = vpop.permute.xlu0 %1117  ;;  %2297 = vmatpush1.bf16.msra.mxu0 %v9601_v60  ;;  %v9607_v63 = vpop.permute.xlu1 %1173 }
 0x265   : > { %v1133_v16 = vsel %vm1131_vm4, %v1116_v26, %v9604_v9 }
 0x266   : > { %1838 = vrot.lane.b32.xlu0 %v9481_v11, %s17407_s27  ;;  %1260 = vrot.lane.b32.xlu1 %v9549_v50, %s17395_s21  ;;  %v1502_v58 = vsel %vm1464_vm3, %v1106_v7, %v1133_v16  ;;  %v1159_v7 = vsel %vm17124_vm7, %v9382_v31, %v9394_v34  ;;  %v1214_v31 = vsel %vm17063_vm9, %v9409_v38, %v9434_v45 }
 0x267   : > { %2298 = vmatprep.subr.bf16.mxu0 %v1502_v58  ;;  %v1530_v0 = vsel %vm1464_vm3, %v1159_v7, %v1186_v1  ;;  %v1213_v58 = vsel %vm17063_vm9, %v9389_v33, %v9409_v38  ;;  %v1267_v38 = vsel %vm17060_vm10, %v9396_v35, %v9425_v42 }
 0x268   : > { %v9624_v60 = vpop.permute.xlu0 %1171  ;;  %2299 = vmatpush1.bf16.msra.mxu0 %v1498_v12  ;;  %v1224_v26 = vpop.permute.xlu1 %1223  ;;  %v9660_v12 = vrot.slane %v9460_v57, 4  ;;  %v1429_v57 = vsel %vm17049_vm0, %v9373_v28, %v9516_v25 }
 0x269   : > { %v1187_v30 = vsel %vm17123_vm6, %v1170_v20, %v9624_v60  ;;  %v1240_v16 = vsel %vm17070_vm8, %v1222_v6, %v1224_v26 }
 0x26a   : > { %1731 = vrot.lane.b32.xlu0 %v9549_v50, %s17403_s1  ;;  %1264 = vrot.lane.b32.xlu1 %v9557_v10, %s17395_s21  ;;  %v1534_v52 = vsel %vm1464_vm3, %v1160_v29, %v1187_v30  ;;  %v1562_v1 = vsel %vm1464_vm3, %v1213_v58, %v1240_v16  ;;  %v1268_v29 = vsel %vm17060_vm10, %v9425_v42, %v9441_v47 }
 0x26b   : > { %2300 = vmatprep.subr.bf16.mxu0 %v1534_v52 }
 0x26c   : > { %v9641_v20 = vpop.permute.xlu0 %1225  ;;  %2301 = vmatpush1.bf16.msra.mxu0 %v1530_v0  ;;  %v9643_v62 = vpop.permute.xlu1 %1227 }
 0x26d   : > { %v1241_v34 = vsel %vm17070_vm8, %v1224_v26, %v9641_v20 }
 0x26e   : > { %1788 = vrot.lane.b32.xlu0 %v9494_v17, %s17405_s24  ;;  %1314 = vrot.lane.b32.xlu1 %v9549_v50, %s17398_s3  ;;  %v1566_v6 = vsel %vm1464_vm3, %v1214_v31, %v1241_v34  ;;  %v9700_v31 = vsel %vm17072_vm12, %v9439_v46, %v9448_v51 }
 0x26f   : > { %2302 = vmatprep.subr.bf16.mxu0 %v1566_v6  ;;  %v1321_v6 = vsel %vm17072_vm12, %v9403_v37, %v9439_v46 }
 0x270   : > { %v9662_v26 = vpop.permute.xlu0 %1279  ;;  %2303 = vmatpush1.bf16.msra.mxu0 %v1562_v1  ;;  %v9664_v33 = vpop.permute.xlu1 %1277 }
 0x271   : > { %17410 = vst [vmem:[#allocation29_spill] sm:$0xff] %v9664_v33  ;;  %v9675_v30 = vsel %vm1293_vm11, %v9664_v33, %v9662_v26  ;;  %v1294_v7 = vsel %vm1293_vm11, %v9563_v24, %v9664_v33 }
 0x272   : > { %17411 = vst [vmem:[#allocation30_spill] sm:$0xff] %v9675_v30  ;;  %1067 = vrot.lane.b32.xlu0 %v9660_v12, %s16996_s29  ;;  %1318 = vrot.lane.b32.xlu1 %v9557_v10, %s17398_s3  ;;  %v1598_v35 = vsel %vm1464_vm3, %v1268_v29, %v9675_v30  ;;  %v1594_v42 = vsel %vm1464_vm3, %v1267_v38, %v1294_v7  ;;  %s17416_s29 = smov 28  }
 0x273   : > { %2304 = vmatprep.subr.bf16.mxu0 %v1598_v35  ;;  %v1375_v35 = vsel %vm17048_vm14, %v9411_v39, %v9453_v54  ;;  %v1430_v30 = vsel %vm17049_vm0, %v9516_v25, %v9538_v55 }
 0x274   : > { %v9687_v52 = vpop.permute.xlu0 %1333  ;;  %2305 = vmatpush1.bf16.msra.mxu0 %v1594_v42  ;;  %v9689_v0 = vpop.permute.xlu1 %1281  ;;  %v1376_v42 = vsel %vm17048_vm14, %v9453_v54, %v9455_v56 }
 0x276   : > { %1121 = vrot.lane.b32.xlu0 %v9660_v12, %s16994_s30  ;;  %1368 = vrot.lane.b32.xlu1 %v9549_v50, %s17401_s23  ;;  %s17414_s30 = smov 29  }
 0x278   : > { %v9695_v24 = vpop.permute.xlu0 %1387  ;;  %v1332_v16 = vpop.permute.xlu1 %1331 }
 0x279   : > { %v1348_v34 = vsel %vm17056_vm13, %v9571_v4, %v1332_v16  ;;  %v1349_v58 = vsel %vm17056_vm13, %v1332_v16, %v9687_v52 }
 0x27a   : > { %1175 = vrot.lane.b32.xlu0 %v9660_v12, %s17412_s25  ;;  %1372 = vrot.lane.b32.xlu1 %v9557_v10, %s17401_s23  ;;  %v1630_v1 = vsel %vm1464_vm3, %v9700_v31, %v1349_v58  ;;  %v1626_v38 = vsel %vm1464_vm3, %v1321_v6, %v1348_v34 }
 0x27b   : > { %2306 = vmatprep.subr.bf16.mxu0 %v1630_v1 }
 0x27c   : > { %v9716_v4 = vpop.permute.xlu0 %1749  ;;  %2307 = vmatpush1.bf16.msra.mxu0 %v1626_v38  ;;  %v9718_v29 = vpop.permute.xlu1 %1335  ;;  %v9759_v38 = vrot.slane %v9549_v50, 4 }
 0x27e   : > { %1229 = vrot.lane.b32.xlu0 %v9660_v12, %s17413_s0  ;;  %1892 = vrot.lane.b32.xlu1 %v9481_v11, %s17414_s30 }
 0x280   : > { %v9724_v37 = vpop.permute.xlu0 %1753  ;;  %v1386_v7 = vpop.permute.xlu1 %1385 }
 0x281   : > { %17415 = vst [vmem:[#allocation31_spill] sm:$0xff] %v9724_v37  ;;  %v1402_v16 = vsel %vm17052_vm15, %v9577_v8, %v1386_v7  ;;  %v1403_v34 = vsel %vm17052_vm15, %v1386_v7, %v9695_v24 }
 0x282   : > { %1283 = vrot.lane.b32.xlu0 %v9660_v12, %s17416_s29  ;;  %1733 = vrot.lane.b32.xlu1 %v9494_v17, %s17403_s1  ;;  %v1662_v58 = vsel %vm1464_vm3, %v1376_v42, %v1403_v34  ;;  %v1658_v39 = vsel %vm1464_vm3, %v1375_v35, %v1402_v16  ;;  %v9770_v42 = vrot.slane %v9557_v10, 4 }
 0x283   : > { %2308 = vmatprep.subr.bf16.mxu0 %v1662_v58 }
 0x284   : > { %v9742_v6 = vpop.permute.xlu0 %1803  ;;  %2309 = vmatpush1.bf16.msra.mxu0 %v1658_v39  ;;  %v9744_v54 = vpop.permute.xlu1 %1389 }
 0x286   : > { %1337 = vrot.lane.b32.xlu0 %v9660_v12, %s17417_s2  ;;  %1735 = vrot.lane.b32.xlu1 %v9557_v10, %s17403_s1 }
 0x288   : > { %v9750_v8 = vpop.permute.xlu0 %1807  ;;  %v9752_v1 = vpop.permute.xlu1 %1751 }
 0x289   : > { %17418 = vst [vmem:[#allocation32_spill] sm:$0xff] %v9750_v8  ;;  %17419 = vst [vmem:[#allocation33_spill] sm:$0xff] %v9752_v1 }
 0x28a   : > { %1391 = vrot.lane.b32.xlu0 %v9660_v12, %s17420_s20  ;;  %1786 = vrot.lane.b32.xlu1 %v9549_v50, %s17405_s24 }
 0x28c   : > { %v9761_v7 = vpop.permute.xlu0 %1857  ;;  %v9763_v35 = vpop.permute.xlu1 %1805 }
 0x28d   : > { %17421 = vst [vmem:[#allocation34_spill] sm:$0xff] %v9761_v7  ;;  %17422 = vst [vmem:[#allocation35_spill] sm:$0xff] %v9763_v35 }
 0x28e   : > { %1071 = vrot.lane.b32.xlu0 %v9759_v38, %s17423_s22  ;;  %1755 = vrot.lane.b32.xlu1 %v9660_v12, %s17424_s19 }
 0x290   : > { %v9772_v16 = vpop.permute.xlu0 %1861  ;;  %v9774_v34 = vpop.permute.xlu1 %1859 }
 0x291   : > { %17425 = vst [vmem:[#allocation36_spill] sm:$0xff] %v9772_v16  ;;  %17426 = vst [vmem:[#allocation37_spill] sm:$0xff] %v9774_v34 }
 0x292   : > { %1075 = vrot.lane.b32.xlu0 %v9770_v42, %s17423_s22  ;;  %1809 = vrot.lane.b32.xlu1 %v9660_v12, %s17427_s18 }
 0x294   : > { %v1440_v58 = vpop.permute.xlu0 %1439  ;;  %v9780_v39 = vpop.permute.xlu1 %1441 }
 0x295   : > { %v1456_v8 = vsel %vm17050_vm1, %v9544_v53, %v1440_v58  ;;  %v1457_v34 = vsel %vm17050_vm1, %v1440_v58, %v9780_v39  ;;  %v9807_v53 = vrot.slane %v9481_v11, 4 }
 0x296   : > { %1125 = vrot.lane.b32.xlu0 %v9759_v38, %s17428_s17  ;;  %1863 = vrot.lane.b32.xlu1 %v9660_v12, %s17429_s16  ;;  %v1694_v16 = vsel %vm1464_vm3, %v1430_v30, %v1457_v34  ;;  %v1690_v28 = vsel %vm1464_vm3, %v1429_v57, %v1456_v8  ;;  %v9818_v57 = vrot.slane %v9494_v17, 4 }
 0x297   : > { %2310 = vmatprep.subr.bf16.mxu0 %v1694_v16 }
 0x298   : > { %v9798_v35 = vpop.permute.xlu0 %1443  ;;  %2311 = vmatpush1.bf16.msra.mxu0 %v1690_v28  ;;  %v9800_v25 = vpop.permute.xlu1 %1094 }
 0x299   : > { %17430 = vst [vmem:[#allocation38_spill] sm:$0xff] %v9800_v25 }
 0x29a   : > { %1129 = vrot.lane.b32.xlu0 %v9770_v42, %s17428_s17  ;;  %1445 = vrot.lane.b32.xlu1 %v9660_v12, %s17431_s15 }
 0x29c   : > { %v9809_v58 = vpop.permute.xlu0 %1890  ;;  %v9811_v30 = vpop.permute.xlu1 %1148 }
 0x29d   : > { %17432 = vst [vmem:[#allocation39_spill] sm:$0xff] %v9809_v58 }
 0x29e   : > { %1179 = vrot.lane.b32.xlu0 %v9759_v38, %s17412_s25  ;;  %1069 = vrot.lane.b32.xlu1 %v9807_v53, %s17423_s22 }
 0x2a0   : > { %v9820_v8 = vpop.permute.xlu0 %1096  ;;  %v9822_v16 = vpop.permute.xlu1 %1202 }
 0x2a1   : > { %17433 = vst [vmem:[#allocation40_spill] sm:$0xff] %v9820_v8  ;;  %17434 = vst [vmem:[#allocation41_spill] sm:$0xff] %v9822_v16 }
 0x2a2   : > { %1183 = vrot.lane.b32.xlu0 %v9770_v42, %s17412_s25  ;;  %1073 = vrot.lane.b32.xlu1 %v9818_v57, %s17423_s22 }
 0x2a4   : > { %v9828_v12 = vpop.permute.xlu0 %1100  ;;  %v9830_v34 = vpop.permute.xlu1 %1256 }
 0x2a5   : > { %17435 = vst [vmem:[#allocation42_spill] sm:$0xff] %v9828_v12  ;;  %17436 = vst [vmem:[#allocation43_spill] sm:$0xff] %v9830_v34 }
 0x2a6   : > { %1233 = vrot.lane.b32.xlu0 %v9759_v38, %s17413_s0  ;;  %1123 = vrot.lane.b32.xlu1 %v9807_v53, %s17428_s17 }
 0x2a8   : > { %v9836_v28 = vpop.permute.xlu0 %1150  ;;  %v9838_v8 = vpop.permute.xlu1 %1310 }
 0x2a9   : > { %17437 = vst [vmem:[#allocation44_spill] sm:$0xff] %v9836_v28 }
 0x2aa   : > { %1237 = vrot.lane.b32.xlu0 %v9770_v42, %s17413_s0  ;;  %1127 = vrot.lane.b32.xlu1 %v9818_v57, %s17428_s17 }
 0x2ac   : > { %v9844_v58 = vpop.permute.xlu0 %1154  ;;  %v9846_v12 = vpop.permute.xlu1 %1364 }
 0x2ad   : > { %17438 = vst [vmem:[#allocation45_spill] sm:$0xff] %v9844_v58  ;;  %17439 = vst [vmem:[#allocation46_spill] sm:$0xff] %v9846_v12 }
 0x2ae   : > { %1287 = vrot.lane.b32.xlu0 %v9759_v38, %s17416_s29  ;;  %1177 = vrot.lane.b32.xlu1 %v9807_v53, %s17412_s25 }
 0x2b0   : > { %v9852_v33 = vpop.permute.xlu0 %1204  ;;  %v9854_v28 = vpop.permute.xlu1 %1727 }
 0x2b1   : > { %17440 = vst [vmem:[#allocation47_spill] sm:$0xff] %v9852_v33  ;;  %17441 = vst [vmem:[#allocation48_spill] sm:$0xff] %v9854_v28 }
 0x2b2   : > { %1291 = vrot.lane.b32.xlu0 %v9770_v42, %s17416_s29  ;;  %1181 = vrot.lane.b32.xlu1 %v9818_v57, %s17412_s25 }
 0x2b4   : > { %v9860_v1 = vpop.permute.xlu0 %1208  ;;  %v9862_v58 = vpop.permute.xlu1 %1782 }
 0x2b5   : > { %17442 = vst [vmem:[#allocation49_spill] sm:$0xff] %v9860_v1  ;;  %17443 = vst [vmem:[#allocation50_spill] sm:$0xff] %v9862_v58 }
 0x2b6   : > { %1341 = vrot.lane.b32.xlu0 %v9759_v38, %s17417_s2  ;;  %1231 = vrot.lane.b32.xlu1 %v9807_v53, %s17413_s0 }
 0x2b8   : > { %v9868_v37 = vpop.permute.xlu0 %1258  ;;  %v9870_v33 = vpop.permute.xlu1 %1836 }
 0x2b9   : > { %17444 = vst [vmem:[#allocation51_spill] sm:$0xff] %v9868_v37  ;;  %17445 = vst [vmem:[#allocation52_spill] sm:$0xff] %v9870_v33 }
 0x2ba   : > { %1345 = vrot.lane.b32.xlu0 %v9770_v42, %s17417_s2  ;;  %1235 = vrot.lane.b32.xlu1 %v9818_v57, %s17413_s0 }
 0x2bc   : > { %v9876_v28 = vpop.permute.xlu0 %1262  ;;  %v9878_v1 = vpop.permute.xlu1 %1418 }
 0x2bd   : > { %17446 = vst [vmem:[#allocation53_spill] sm:$0xff] %v9876_v28  ;;  %17447 = vst [vmem:[#allocation54_spill] sm:$0xff] %v9878_v1 }
 0x2be   : > { %1395 = vrot.lane.b32.xlu0 %v9759_v38, %s17420_s20  ;;  %1285 = vrot.lane.b32.xlu1 %v9807_v53, %s17416_s29 }
 0x2c0   : > { %v9884_v58 = vpop.permute.xlu0 %1312  ;;  %v9886_v37 = vpop.permute.xlu1 %1098 }
 0x2c1   : > { %17448 = vst [vmem:[#allocation55_spill] sm:$0xff] %v9884_v58  ;;  %17449 = vst [vmem:[#allocation56_spill] sm:$0xff] %v9886_v37 }
 0x2c2   : > { %1399 = vrot.lane.b32.xlu0 %v9770_v42, %s17420_s20  ;;  %1289 = vrot.lane.b32.xlu1 %v9818_v57, %s17416_s29 }
 0x2c4   : > { %v9892_v33 = vpop.permute.xlu0 %1316  ;;  %v9894_v28 = vpop.permute.xlu1 %1102 }
 0x2c5   : > { %17450 = vst [vmem:[#allocation57_spill] sm:$0xff] %v9892_v33  ;;  %17451 = vst [vmem:[#allocation58_spill] sm:$0xff] %v9894_v28 }
 0x2c6   : > { %1757 = vrot.lane.b32.xlu0 %v9807_v53, %s17424_s19  ;;  %1339 = vrot.lane.b32.xlu1 %v9807_v53, %s17417_s2 }
 0x2c8   : > { %v9900_v23 = vpop.permute.xlu0 %1366  ;;  %v9902_v58 = vpop.permute.xlu1 %1152 }
 0x2c9   : > { %17452 = vst [vmem:[#allocation59_spill] sm:$0xff] %v9900_v23  ;;  %17453 = vst [vmem:[#allocation60_spill] sm:$0xff] %v9902_v58 }
 0x2ca   : > { %1811 = vrot.lane.b32.xlu0 %v9807_v53, %s17427_s18  ;;  %1343 = vrot.lane.b32.xlu1 %v9818_v57, %s17417_s2 }
 0x2cc   : > { %v9908_v37 = vpop.permute.xlu0 %1370  ;;  %v9910_v33 = vpop.permute.xlu1 %1156 }
 0x2cd   : > { %17454 = vst [vmem:[#allocation61_spill] sm:$0xff] %v9908_v37  ;;  %17455 = vst [vmem:[#allocation62_spill] sm:$0xff] %v9910_v33 }
 0x2ce   : > { %1865 = vrot.lane.b32.xlu0 %v9807_v53, %s17429_s16  ;;  %1393 = vrot.lane.b32.xlu1 %v9807_v53, %s17420_s20 }
 0x2d0   : > { %v9916_v28 = vpop.permute.xlu0 %1729  ;;  %v9918_v23 = vpop.permute.xlu1 %1206 }
 0x2d1   : > { %17456 = vst [vmem:[#allocation63_spill] sm:$0xff] %v9916_v28  ;;  %17457 = vst [vmem:[#allocation64_spill] sm:$0xff] %v9918_v23 }
 0x2d2   : > { %1759 = vrot.lane.b32.xlu0 %v9759_v38, %s17424_s19  ;;  %1397 = vrot.lane.b32.xlu1 %v9818_v57, %s17420_s20 }
 0x2d4   : > { %v9924_v58 = vpop.permute.xlu0 %1784  ;;  %v9926_v37 = vpop.permute.xlu1 %1210 }
 0x2d5   : > { %17458 = vst [vmem:[#allocation65_spill] sm:$0xff] %v9924_v58  ;;  %17459 = vst [vmem:[#allocation66_spill] sm:$0xff] %v9926_v37 }
 0x2d6   : > { %1815 = vrot.lane.b32.xlu0 %v9818_v57, %s17427_s18  ;;  %1761 = vrot.lane.b32.xlu1 %v9818_v57, %s17424_s19 }
 0x2d8   : > { %v9932_v33 = vpop.permute.xlu0 %1838  ;;  %v9934_v28 = vpop.permute.xlu1 %1260 }
 0x2d9   : > { %17460 = vst [vmem:[#allocation67_spill] sm:$0xff] %v9932_v33  ;;  %17461 = vst [vmem:[#allocation68_spill] sm:$0xff] %v9934_v28  ;;  %v17466_v28 = vmov 0  }
 0x2da   : > { %1790 = vrot.lane.b32.xlu0 %v9557_v10, %s17405_s24  ;;  %1763 = vrot.lane.b32.xlu1 %v9770_v42, %s17424_s19 }
 0x2dc   : > { %v9940_v23 = vpop.permute.xlu0 %1731  ;;  %v9942_v58 = vpop.permute.xlu1 %1264 }
 0x2dd   : > { %17462 = vst [vmem:[#allocation69_spill] sm:$0xff] %v9940_v23  ;;  %17463 = vst [vmem:[#allocation70_spill] sm:$0xff] %v9942_v58  ;;  %v1080_v58 = vsel %vm1077_vm2, %v9586_v21, %v9565_v27 }
 0x2de   : > { %1817 = vrot.lane.b32.xlu0 %v9770_v42, %s17427_s18  ;;  %1813 = vrot.lane.b32.xlu1 %v9759_v38, %s17427_s18  ;;  %v9977_v21 = vsel %vm1464_vm3, %v9274_v19, %v1080_v58  ;;  %v1107_v19 = vsel %vm1104_vm5, %v9419_v41, %v9387_v32 }
 0x2e0   : > { %v9948_v37 = vpop.permute.xlu0 %1788  ;;  %v9950_v33 = vpop.permute.xlu1 %1314 }
 0x2e1   : > { %17464 = vst [vmem:[#allocation71_spill] sm:$0xff] %v9948_v37  ;;  %17465 = vst [vmem:[#allocation72_spill] sm:$0xff] %v9950_v33 }
 0x2e2   : > { %1840 = vrot.lane.b32.xlu0 %v9549_v50, %s17407_s27  ;;  %1792 = vrot.lane.b32.xlu1 %v17466_v28, %s17405_s24 }
 0x2e4   : > { %v9959_v23 = vpop.permute.xlu0 %1067  ;;  %v9961_v7 = vpop.permute.xlu1 %1318 }
 0x2e5   : > { %17467 = vst [vmem:[#allocation73_spill] sm:$0xff] %v9959_v23  ;;  %17468 = vst [vmem:[#allocation74_spill] sm:$0xff] %v9961_v7  ;;  %v1081_v37 = vsel %vm1077_vm2, %v9565_v27, %v9959_v23  ;;  %v1134_v27 = vsel %vm1131_vm4, %v9604_v9, %v9579_v22 }
 0x2e6   : > { %1867 = vrot.lane.b32.xlu0 %v9759_v38, %s17429_s16  ;;  %1819 = vrot.lane.b32.xlu1 %v9177_v49, %s17427_s18  ;;  %v9972_v33 = vsel %vm1464_vm3, %v9255_v18, %v1081_v37  ;;  %v1108_v18 = vsel %vm1104_vm5, %v9387_v32, %v9800_v25  ;;  %v1506_v58 = vsel %vm1464_vm3, %v1107_v19, %v1134_v27 }
 0x2e7   : > { %2339 = vmatprep.subr.bf16.mxu1 %v9972_v33  ;;  %v1162_v32 = vsel %vm17124_vm7, %v9401_v36, %v9811_v30  ;;  %v1161_v27 = vsel %vm17124_vm7, %v9427_v43, %v9401_v36  ;;  %v1216_v36 = vsel %vm17063_vm9, %v9417_v40, %v9822_v16 }
 0x2e8   : > { %v9982_v7 = vpop.permute.xlu0 %1121  ;;  %2340 = vmatpush1.bf16.msra.mxu1 %v9977_v21  ;;  %v9985_v23 = vpop.permute.xlu1 %1368 }
 0x2e9   : > { %17469 = vst [vmem:[#allocation75_spill] sm:$0xff] %v9985_v23  ;;  %v1135_v37 = vsel %vm1131_vm4, %v9579_v22, %v9982_v7  ;;  %v1188_v23 = vsel %vm17123_vm6, %v9624_v60, %v9607_v63 }
 0x2ea   : > { %1846 = vrot.lane.b32.xlu0 %v17466_v28, %s17407_s27  ;;  %1842 = vrot.lane.b32.xlu1 %v9494_v17, %s17407_s27  ;;  %v1510_v9 = vsel %vm1464_vm3, %v1108_v18, %v1135_v37  ;;  %v1538_v18 = vsel %vm1464_vm3, %v1161_v27, %v1188_v23  ;;  %v1242_v37 = vsel %vm17070_vm8, %v9641_v20, %v9643_v62 }
 0x2eb   : > { %2341 = vmatprep.subr.bf16.mxu1 %v1510_v9  ;;  %v1215_v23 = vsel %vm17063_vm9, %v9434_v45, %v9417_v40  ;;  %v1270_v45 = vsel %vm17060_vm10, %v9432_v44, %v9830_v34  ;;  %vm1902_vm9 = vcmask 236544   ;;  %v17500_v34 = vld [vmem:[#allocation27_spill] sm:$0xff] }
 0x2ec   : > { %v10005_v22 = vpop.permute.xlu0 %1175  ;;  %2342 = vmatpush1.bf16.msra.mxu1 %v1506_v58  ;;  %v10007_v25 = vpop.permute.xlu1 %1372  ;;  %v1570_v9 = vsel %vm1464_vm3, %v1215_v23, %v1242_v37 }
 0x2ed   : > { %17470 = vst [vmem:[#allocation76_spill] sm:$0xff] %v10007_v25  ;;  %v1189_v41 = vsel %vm17123_vm6, %v9607_v63, %v10005_v22 }
 0x2ee   : > { %1873 = vrot.lane.b32.xlu0 %v9177_v49, %s17429_s16  ;;  %1869 = vrot.lane.b32.xlu1 %v9818_v57, %s17429_s16  ;;  %v1542_v60 = vsel %vm1464_vm3, %v1162_v32, %v1189_v41  ;;  %v1269_v41 = vsel %vm17060_vm10, %v9441_v47, %v9432_v44  ;;  %v10085_v47 = vsel %vm17072_vm12, %v9446_v48, %v9838_v8  ;;  %vm1848_vm10 = vcmask 310272  }
 0x2ef   : > { %2343 = vmatprep.subr.bf16.mxu1 %v1542_v60  ;;  %v2685_v60 = vld [vmem:[%s9093_s28 + $0x30] sm:$0xff] }
 0x2f0   : > { %v10027_v63 = vpop.permute.xlu0 %1229  ;;  %2344 = vmatpush1.bf16.msra.mxu1 %v1538_v18  ;;  %v10029_v19 = vpop.permute.xlu1 %1892 }
 0x2f1   : > { %v1243_v43 = vsel %vm17070_vm8, %v9643_v62, %v10027_v63  ;;  %v10049_v62 = vsel %vm1293_vm11, %v9662_v26, %v9689_v0  ;;  %vm17104_vm8 = vcmask 719872  }
 0x2f2   : > { %1896 = vrot.lane.b32.xlu0 %v9494_v17, %s17414_s30  ;;  %1844 = vrot.lane.b32.xlu1 %v9557_v10, %s17407_s27  ;;  %v1574_v20 = vsel %vm1464_vm3, %v1216_v36, %v1243_v43  ;;  %v1602_v27 = vsel %vm1464_vm3, %v1269_v41, %v10049_v62  ;;  %v1323_v36 = vsel %vm17072_vm12, %v9448_v51, %v9446_v48  ;;  %v2686_v41 = vld [vmem:[%s9093_s28 + $0x38] sm:$0xff]  ;;  %s17181_s28 = smov 7  }
 0x2f3   : > { %2345 = vmatprep.subr.bf16.mxu1 %v1574_v20  ;;  %v2693_v43 = vpack.c.bf16 %v2685_v60, %v2685_v60 }
 0x2f4   : > { %v10051_v58 = vpop.permute.xlu0 %1283  ;;  %2346 = vmatpush1.bf16.msra.mxu1 %v1570_v9  ;;  %v10053_v40 = vpop.permute.xlu1 %1733  ;;  %v1377_v9 = vsel %vm17048_vm14, %v9455_v56, %v9466_v59  ;;  %v2694_v56 = vpack.c.bf16 %v2686_v41, %v2686_v41 }
 0x2f5   : > { %v10061_v32 = vsel %vm1293_vm11, %v9689_v0, %v10051_v58  ;;  %v1350_v0 = vsel %vm17056_vm13, %v9687_v52, %v9718_v29 }
 0x2f6   : > { %1898 = vrot.lane.b32.xlu0 %v9557_v10, %s17414_s30  ;;  %1871 = vrot.lane.b32.xlu1 %v9770_v42, %s17429_s16  ;;  %v1606_v26 = vsel %vm1464_vm3, %v1270_v45, %v10061_v32  ;;  %v1634_v23 = vsel %vm1464_vm3, %v1323_v36, %v1350_v0 }
 0x2f7   : > { %2347 = vmatprep.subr.bf16.mxu1 %v1606_v26 }
 0x2f8   : > { %v10078_v18 = vpop.permute.xlu0 %1337  ;;  %2348 = vmatpush1.bf16.msra.mxu1 %v1602_v27  ;;  %v10080_v44 = vpop.permute.xlu1 %1735 }
 0x2f9   : > { %17471 = vst [vmem:[#allocation77_spill] sm:$0xff] %v10078_v18  ;;  %v1351_v37 = vsel %vm17056_vm13, %v9718_v29, %v10078_v18  ;;  %v1404_v29 = vsel %vm17052_vm15, %v9695_v24, %v9744_v54  ;;  %vm1875_vm13 = vcmask 302080   ;;  %v17494_v18 = vld [vmem:[#allocation37_spill] sm:$0xff] }
 0x2fa   : > { %1911 = vrot.lane.b32.xlu0 %v9177_v49, %s17416_s29  ;;  %1894 = vrot.lane.b32.xlu1 %v9549_v50, %s17414_s30  ;;  %v1638_v52 = vsel %vm1464_vm3, %v10085_v47, %v1351_v37  ;;  %v1378_v49 = vsel %vm17048_vm14, %v9466_v59, %v9846_v12  ;;  %v1666_v45 = vsel %vm1464_vm3, %v1377_v9, %v1404_v29  ;;  %vm17474_vm14 = vcmask 908288  }
 0x2fb   : > { %2349 = vmatprep.subr.bf16.mxu1 %v1638_v52  ;;  %v10137_v60 = vsel %vm17474_vm14, %v9221_v2, %v9227_v5  ;;  %v10163_v29 = vsel %vm17474_vm14, %v9227_v5, %v9223_v3  ;;  %vm1767_vm14 = vcmask 392192  }
 0x2fc   : > { %v10103_v20 = vpop.permute.xlu0 %1391  ;;  %2350 = vmatpush1.bf16.msra.mxu1 %v1634_v23  ;;  %v10105_v48 = vpop.permute.xlu1 %1786  ;;  %v10143_v0 = vrot.slane %v10137_v60, 4 }
 0x2fd   : > { %17472 = vst [vmem:[#allocation78_spill] sm:$0xff] %v10103_v20  ;;  %v1405_v51 = vsel %vm17052_vm15, %v9744_v54, %v10103_v20  ;;  %vm17099_vm15 = vcmask 384000  }
 0x2fe   : > { %2715 = vrot.lane.b32.xlu0 %v2693_v43, %s17473_s14  ;;  %1900 = vrot.lane.b32.xlu1 %v17466_v28, %s17414_s30  ;;  %v1670_v24 = vsel %vm1464_vm3, %v1378_v49, %v1405_v51  ;;  %v1458_v43 = vsel %vm17050_vm1, %v9780_v39, %v9798_v35  ;;  %v1432_v49 = vsel %vm17049_vm0, %v9524_v13, %v9878_v1 }
 0x2ff   : > { %2351 = vmatprep.subr.bf16.mxu1 %v1670_v24  ;;  %v1431_v39 = vsel %vm17049_vm0, %v9538_v55, %v9524_v13  ;;  %v10181_v24 = vrot.slane %v10163_v29, 4  ;;  %vm17101_vm0 = vcmask 400384  }
 0x300   : > { %v10122_v26 = vpop.permute.xlu0 %1071  ;;  %2352 = vmatpush1.bf16.msra.mxu1 %v1666_v45  ;;  %v10124_v27 = vpop.permute.xlu1 %1755  ;;  %v1698_v9 = vsel %vm1464_vm3, %v1431_v39, %v1458_v43  ;;  %v17482_v39 = vld [vmem:[#allocation31_spill] sm:$0xff] }
 0x302   : > { %1420 = vrot.lane.b32.xlu0 %v9481_v11, %s17408_s26  ;;  %1914 = vrot.lane.b32.xlu1 %v17466_v28, %s17398_s3 }
 0x304   : > { %v10130_v59 = vpop.permute.xlu0 %1075  ;;  %v10132_v54 = vpop.permute.xlu1 %1809 }
 0x306   : > { %1447 = vrot.lane.b32.xlu0 %v9807_v53, %s17431_s15  ;;  %2717 = vrot.lane.b32.xlu1 %v2694_v56, %s17473_s14  ;;  %s17505_s14 = sld [smem:[#allocation102_spill]] }
 0x308   : > { %v10145_v37 = vpop.permute.xlu0 %1125  ;;  %v10147_v52 = vpop.permute.xlu1 %1863 }
 0x30a   : > { %2743 = vrot.lane.b32.xlu0 %v10143_v0, %s17423_s22  ;;  %1422 = vrot.lane.b32.xlu1 %v9549_v50, %s17408_s26 }
 0x30c   : > { %v10156_v53 = vpop.permute.xlu0 %1129  ;;  %v10158_v23 = vpop.permute.xlu1 %1445 }
 0x30d   : > { %17475 = vst [vmem:[#allocation79_spill] sm:$0xff] %v10156_v53  ;;  %17476 = vst [vmem:[#allocation80_spill] sm:$0xff] %v10158_v23  ;;  %v1459_v51 = vsel %vm17050_vm1, %v9798_v35, %v10158_v23  ;;  %vm17100_vm1 = vcmask 318464   ;;  %v17488_v53 = vld [vmem:[#allocation26_spill] sm:$0xff]  ;;  %v17489_v23 = vld [vmem:[#allocation35_spill] sm:$0xff] }
 0x30e   : > { %2155 = vrot.lane.b32.xlu0 %v9439_v46, %s17181_s28  ;;  %1449 = vrot.lane.b32.xlu1 %v9759_v38, %s17431_s15  ;;  %v1702_v5 = vsel %vm1464_vm3, %v1432_v49, %v1459_v51  ;;  %v1948_v46 = vsel %vm1464_vm3, %v9489_v15, %v9742_v6  ;;  %v17481_v49 = vld [vmem:[#allocation24_spill] sm:$0xff] }
 0x30f   : > { %2353 = vmatprep.subr.bf16.mxu1 %v1702_v5  ;;  %v17483_v5 = vld [vmem:[#allocation33_spill] sm:$0xff] }
 0x310   : > { %v10183_v35 = vpop.permute.xlu0 %1179  ;;  %2354 = vmatpush1.bf16.msra.mxu1 %v1698_v9  ;;  %v10185_v45 = vpop.permute.xlu1 %1069  ;;  %v1769_v9 = vsel %vm1767_vm14, %v17483_v5, %v17482_v39 }
 0x312   : > { %2159 = vrot.lane.b32.xlu0 %v1323_v36, %s17181_s28  ;;  %2745 = vrot.lane.b32.xlu1 %v10181_v24, %s17423_s22  ;;  %v1921_v36 = vsel %vm1464_vm3, %v9468_v61, %v9716_v4 }
 0x314   : > { %v10190_v13 = vpop.permute.xlu0 %1183  ;;  %v10192_v55 = vpop.permute.xlu1 %1073 }
 0x315   : > { %17477 = vst [vmem:[#allocation81_spill] sm:$0xff] %v10190_v13 }
 0x316   : > { %2101 = vrot.lane.b32.xlu0 %v1948_v46, %s17181_s28  ;;  %2157 = vrot.lane.b32.xlu1 %v9700_v31, %s17181_s28  ;;  %v17480_v31 = vld [vmem:[#allocation34_spill] sm:$0xff]  ;;  %v17484_v46 = vld [vmem:[#allocation28_spill] sm:$0xff] }
 0x317   : > { %v1975_v51 = vsel %vm1464_vm3, %v17481_v49, %v17480_v31 }
 0x318   : > { %v10200_v38 = vpop.permute.xlu0 %1233  ;;  %v10202_v41 = vpop.permute.xlu1 %1123 }
 0x31a   : > { %2067 = vrot.lane.b32.xlu0 %v9596_v14, %s17181_s28  ;;  %2083 = vrot.lane.b32.xlu1 %v1921_v36, %s17181_s28  ;;  %v17485_v14 = vld [vmem:[#allocation19_spill] sm:$0xff]  ;;  %v17486_v36 = vld [vmem:[#allocation18_spill] sm:$0xff] }
 0x31b   : > { %v1741_v28 = vsel %vm17101_vm0, %v17486_v36, %v17485_v14 }
 0x31c   : > { %v10210_v56 = vpop.permute.xlu0 %1237  ;;  %v10212_v43 = vpop.permute.xlu1 %1127  ;;  %v1927_v13 = vsel %vm1464_vm3, %v1741_v28, %v1769_v9 }
 0x31d   : > { %17478 = vst [vmem:[#allocation82_spill] sm:$0xff] %v10210_v56  ;;  %17479 = vst [vmem:[#allocation83_spill] sm:$0xff] %v10212_v43  ;;  %v17487_v43 = vld [vmem:[#allocation29_spill] sm:$0xff] }
 0x31e   : > { %2065 = vrot.lane.b32.xlu0 %v17484_v46, %s17181_s28  ;;  %2119 = vrot.lane.b32.xlu1 %v1975_v51, %s17181_s28  ;;  %v2002_v1 = vsel %vm1464_vm3, %v17488_v53, %v17487_v43  ;;  %v1822_v51 = vsel %vm17100_vm1, %v9742_v6, %v17489_v23  ;;  %v17490_v46 = vld [vmem:[#allocation20_spill] sm:$0xff]  ;;  %v1768_v43 = vsel %vm1767_vm14, %v9716_v4, %v17483_v5 }
 0x31f   : > { %v1795_v12 = vsel %vm17099_vm15, %v9489_v15, %v17490_v46  ;;  %v17493_v6 = vld [vmem:[#allocation36_spill] sm:$0xff]  ;;  %v1740_v15 = vsel %vm17101_vm0, %v9468_v61, %v17486_v36  ;;  %v17499_v61 = vld [vmem:[#allocation22_spill] sm:$0xff] }
 0x320   : > { %v10226_v25 = vpop.permute.xlu0 %1287  ;;  %v10228_v56 = vpop.permute.xlu1 %1177  ;;  %v1951_v9 = vsel %vm1464_vm3, %v1795_v12, %v1822_v51  ;;  %v17496_v12 = vld [vmem:[#allocation21_spill] sm:$0xff]  ;;  %v1796_v36 = vsel %vm17099_vm15, %v17490_v46, %v17499_v61 }
 0x321   : > { %v1849_v46 = vsel %vm1848_vm10, %v17481_v49, %v17496_v12  ;;  %v1770_v49 = vsel %vm1767_vm14, %v17482_v39, %v10124_v27 }
 0x322   : > { %2087 = vrot.lane.b32.xlu0 %v1927_v13, %s17181_s28  ;;  %2137 = vrot.lane.b32.xlu1 %v2002_v1, %s17181_s28  ;;  %v1877_v13 = vsel %vm1875_vm13, %v17494_v18, %v17493_v6  ;;  %v17495_v1 = vld [vmem:[#allocation25_spill] sm:$0xff] }
 0x323   : > { %v1850_v51 = vsel %vm1848_vm10, %v17496_v12, %v17495_v1 }
 0x324   : > { %v10242_v20 = vpop.permute.xlu0 %1291  ;;  %v10244_v28 = vpop.permute.xlu1 %1181  ;;  %v1981_v5 = vsel %vm1464_vm3, %v1850_v51, %v1877_v13  ;;  %v1876_v51 = vsel %vm1875_vm13, %v17480_v31, %v17494_v18 }
 0x325   : > { %17491 = vst [vmem:[#allocation34_spill] sm:$0xff] %v10242_v20  ;;  %17492 = vst [vmem:[#allocation24_spill] sm:$0xff] %v10244_v28  ;;  %v17498_v20 = vld [vmem:[#allocation32_spill] sm:$0xff]  ;;  %v1978_v18 = vsel %vm1464_vm3, %v1849_v46, %v1876_v51  ;;  %v17510_v46 = vld [vmem:[#allocation39_spill] sm:$0xff] }
 0x326   : > { %2103 = vrot.lane.b32.xlu0 %v1951_v9, %s17181_s28  ;;  %2069 = vrot.lane.b32.xlu1 %v9977_v21, %s17181_s28  ;;  %v1924_v9 = vsel %vm1464_vm3, %v1740_v15, %v1768_v43  ;;  %v1823_v21 = vsel %vm17100_vm1, %v17489_v23, %v17498_v20 }
 0x327   : > { %v1954_v15 = vsel %vm1464_vm3, %v1796_v36, %v1823_v21  ;;  %v17506_v21 = vld [vmem:[#allocation48_spill] sm:$0xff] }
 0x328   : > { %v10262_v28 = vpop.permute.xlu0 %1341  ;;  %v10264_v4 = vpop.permute.xlu1 %1231  ;;  %v1742_v36 = vsel %vm17101_vm0, %v17485_v14, %v17506_v21 }
 0x329   : > { %17497 = vst [vmem:[#allocation31_spill] sm:$0xff] %v10262_v28  ;;  %v17501_v28 = vld [vmem:[#allocation23_spill] sm:$0xff]  ;;  %v1930_v51 = vsel %vm1464_vm3, %v1742_v36, %v1770_v49  ;;  %v17513_v49 = vld [vmem:[#allocation73_spill] sm:$0xff] }
 0x32a   : > { %2123 = vrot.lane.b32.xlu0 %v1981_v5, %s17181_s28  ;;  %2085 = vrot.lane.b32.xlu1 %v1924_v9, %s17181_s28  ;;  %v1904_v16 = vsel %vm1902_vm9, %v17501_v28, %v17500_v34  ;;  %v1903_v12 = vsel %vm1902_vm9, %v17488_v53, %v17501_v28  ;;  %v1905_v53 = vsel %vm1902_vm9, %v17500_v34, %v17510_v46 }
 0x32b   : > { %v2006_v23 = vsel %vm1464_vm3, %v1904_v16, %v10049_v62  ;;  %v2263_v16 = vld [vmem:[%s17505_s14 + $0x8] sm:$0xff]  ;;  %v2265_v62 = vld [vmem:[%s17505_s14 + $0x18] sm:$0xff] }
 0x32c   : > { %v10279_v13 = vpop.permute.xlu0 %1345  ;;  %v10281_v43 = vpop.permute.xlu1 %1235  ;;  %v10305_v31 = vpack.c.bf16 %v2265_v62, %v2263_v16  ;;  %v17511_v16 = vld [vmem:[#allocation55_spill] sm:$0xff] }
 0x32d   : > { %17502 = vst [vmem:[#allocation33_spill] sm:$0xff] %v10279_v13  ;;  %17503 = vst [vmem:[#allocation28_spill] sm:$0xff] %v10281_v43  ;;  %v10342_v62 = vsel %vm17072_vm12, %v9838_v8, %v17511_v16  ;;  %vm17523_vm12 = vcmask 908288   ;;  %v17531_v13 = vld [vmem:[#allocation16_spill] sm:$0xff] }
 0x32e   : > { %2141 = vrot.lane.b32.xlu0 %v2006_v23, %s17181_s28  ;;  %2105 = vrot.lane.b32.xlu1 %v1954_v15, %s17181_s28  ;;  %17512 = vst [vmem:[#allocation26_spill] sm:$0xff] %v10342_v62 }
 0x32f   : > { %8546 = vmatprep.mubr.msk.bf16.mxu0 %vm17104_vm8, %v10305_v31  ;;  %8548 = vmatprep.mubr.msk.bf16.mxu1 %vm17104_vm8, %v10305_v31 }
 0x330   : > { %v10294_v5 = vpop.permute.xlu0 %1395  ;;  %v10296_v9 = vpop.permute.xlu1 %1285 }
 0x331   : > { %17504 = vst [vmem:[#allocation19_spill] sm:$0xff] %v10294_v5 }
 0x332   : > { %2161 = vrot.lane.b32.xlu0 %v10085_v47, %s17181_s28  ;;  %2121 = vrot.lane.b32.xlu1 %v1978_v18, %s17181_s28  ;;  %v17509_v47 = vld [vmem:[#allocation30_spill] sm:$0xff]  ;;  %v2008_v18 = vsel %vm1464_vm3, %v1905_v53, %v10061_v32  ;;  %v1824_v32 = vsel %vm17100_vm1, %v17498_v20, %v10132_v54 }
 0x333   : > { %v2004_v15 = vsel %vm1464_vm3, %v1903_v12, %v17509_v47  ;;  %v1082_v12 = vsel %vm1077_vm2, %v17513_v49, %v10185_v45  ;;  %v17515_v47 = vld [vmem:[#allocation17_spill] sm:$0xff] }
 0x334   : > { %v10323_v39 = vpop.permute.xlu0 %1399  ;;  %v10325_v23 = vpop.permute.xlu1 %1289  ;;  %v10358_v8 = vsel %vm1464_vm3, %v17515_v47, %v1082_v12 }
 0x335   : > { %17507 = vst [vmem:[#allocation18_spill] sm:$0xff] %v10323_v39  ;;  %17508 = vst [vmem:[#allocation29_spill] sm:$0xff] %v10325_v23 }
 0x336   : > { %2139 = vrot.lane.b32.xlu1 %v2004_v15, %s17181_s28  ;;  %2089 = vrot.lane.b32.xlu0 %v1930_v51, %s17181_s28  ;;  %v17516_v51 = vld [vmem:[#allocation50_spill] sm:$0xff] }
 0x337   : > { %v1797_v53 = vsel %vm17099_vm15, %v17499_v61, %v17516_v51 }
 0x338   : > { %v10335_v28 = vpop.permute.xlu0 %1757  ;;  %v10337_v14 = vpop.permute.xlu1 %1339 }
 0x33a   : > { %2163 = vrot.lane.b32.xlu1 %v10342_v62, %s17181_s28  ;;  %2143 = vrot.lane.b32.xlu0 %v2008_v18, %s17181_s28  ;;  %v17517_v18 = vld [vmem:[#allocation65_spill] sm:$0xff] }
 0x33b   : > { %v1798_v49 = vsel %vm17099_vm15, %v17516_v51, %v17517_v18  ;;  %v17519_v51 = vld [vmem:[#allocation52_spill] sm:$0xff] }
 0x33c   : > { %v10352_v34 = vpop.permute.xlu0 %1811  ;;  %v10354_v36 = vpop.permute.xlu1 %1343  ;;  %v1851_v39 = vsel %vm1848_vm10, %v17495_v1, %v17519_v51  ;;  %v1771_v1 = vsel %vm1767_vm14, %v10124_v27, %v10335_v28  ;;  %v10426_v27 = vsel %vm1293_vm11, %v10051_v58, %v10296_v9 }
 0x33d   : > { %17514 = vst [vmem:[#allocation35_spill] sm:$0xff] %v10354_v36  ;;  %v1825_v15 = vsel %vm17100_vm1, %v10132_v54, %v10352_v34  ;;  %v1957_v54 = vsel %vm1464_vm3, %v1797_v53, %v1824_v32  ;;  %v17520_v36 = vld [vmem:[#allocation67_spill] sm:$0xff] }
 0x33e   : > { %2071 = vrot.lane.b32.xlu1 %v9972_v33, %s17181_s28  ;;  %2073 = vrot.lane.b32.xlu0 %v10358_v8, %s17181_s28  ;;  %v1960_v47 = vsel %vm1464_vm3, %v1798_v49, %v1825_v15  ;;  %v1878_v33 = vsel %vm1875_vm13, %v17493_v6, %v10147_v52  ;;  %v1852_v32 = vsel %vm1848_vm10, %v17519_v51, %v17520_v36  ;;  %v17522_v6 = vld [vmem:[#allocation14_spill] sm:$0xff]  ;;  %v17524_v51 = vld [vmem:[#allocation63_spill] sm:$0xff] }
 0x33f   : > { %v1984_v49 = vsel %vm1464_vm3, %v1851_v39, %v1878_v33 }
 0x340   : > { %v10376_v12 = vpop.permute.xlu0 %1865  ;;  %v10378_v20 = vpop.permute.xlu1 %1393 }
 0x341   : > { %17518 = vst [vmem:[#allocation20_spill] sm:$0xff] %v10378_v20  ;;  %v1879_v61 = vsel %vm1875_vm13, %v10147_v52, %v10376_v12  ;;  %v10403_v52 = vsel %vm17523_vm12, %v9223_v3, %v17522_v6  ;;  %v1743_v3 = vsel %vm17101_vm0, %v17506_v21, %v17524_v51  ;;  %v1906_v21 = vsel %vm1902_vm9, %v17510_v46, %v10029_v19 }
 0x342   : > { %2107 = vrot.lane.b32.xlu1 %v1957_v54, %s17181_s28  ;;  %2109 = vrot.lane.b32.xlu0 %v1960_v47, %s17181_s28  ;;  %v1987_v54 = vsel %vm1464_vm3, %v1852_v32, %v1879_v61  ;;  %v10413_v47 = vrot.slane %v10403_v52, 4  ;;  %v1933_v33 = vsel %vm1464_vm3, %v1743_v3, %v1771_v1  ;;  %v2010_v58 = vsel %vm1464_vm3, %v1906_v21, %v10426_v27  ;;  %v17528_v21 = vld [vmem:[#allocation12_spill] sm:$0xff] }
 0x343   : > { %v10499_v43 = vsel %vm17523_vm12, %v17528_v21, %v17531_v13 }
 0x344   : > { %v10396_v15 = vpop.permute.xlu0 %1759  ;;  %v10398_v53 = vpop.permute.xlu1 %1397  ;;  %17532 = vst [vmem:[#allocation27_spill] sm:$0xff] %v10499_v43 }
 0x345   : > { %17521 = vst [vmem:[#allocation36_spill] sm:$0xff] %v10398_v53 }
 0x346   : > { %2125 = vrot.lane.b32.xlu1 %v1984_v49, %s17181_s28  ;;  %2127 = vrot.lane.b32.xlu0 %v1987_v54, %s17181_s28  ;;  %v10440_v49 = vsel %vm17523_vm12, 0, %v9221_v2  ;;  %v1083_v2 = vsel %vm1077_vm2, %v10185_v45, %v10122_v26 }
 0x347   : > { %17525 = vst [vmem:[#allocation37_spill] sm:$0xff] %v10440_v49  ;;  %v10448_v54 = vrot.slane %v10440_v49, 4  ;;  %v10472_v49 = vsel %vm1464_vm3, %v9481_v11, %v1083_v2 }
 0x348   : > { %v10418_v53 = vpop.permute.xlu0 %1815  ;;  %v10420_v39 = vpop.permute.xlu1 %1761 }
 0x349   : > { %17526 = vst [vmem:[#allocation25_spill] sm:$0xff] %v10448_v54 }
 0x34a   : > { %2091 = vrot.lane.b32.xlu1 %v1933_v33, %s17181_s28  ;;  %2747 = vrot.lane.b32.xlu0 %v10413_v47, %s17423_s22 }
 0x34c   : > { %v10434_v61 = vpop.permute.xlu0 %1790  ;;  %v10436_v32 = vpop.permute.xlu1 %1763 }
 0x34e   : > { %1424 = vrot.lane.b32.xlu0 %v9494_v17, %s17408_s26  ;;  %2145 = vrot.lane.b32.xlu1 %v2010_v58, %s17181_s28  ;;  %v10468_v58 = vsel %vm17523_vm12, %v17522_v6, %v17528_v21  ;;  %v1084_v6 = vsel %vm1077_vm2, %v10122_v26, %v10192_v55  ;;  %vm2173_vm12 = vcmask 56320  }
 0x34f   : > { %v10503_v62 = vsel %vm1464_vm3, %v9549_v50, %v1084_v6  ;;  %v1085_v6 = vsel %vm1077_vm2, %v10192_v55, %v10130_v59  ;;  %v17539_v55 = vld [vmem:[#allocation69_spill] sm:$0xff] }
 0x350   : > { %v10450_v46 = vpop.permute.xlu0 %1817  ;;  %v10452_v1 = vpop.permute.xlu1 %1813  ;;  %17533 = vst [vmem:[#allocation23_spill] sm:$0xff] %v10503_v62  ;;  %v10537_v20 = vsel %vm1464_vm3, %v9494_v17, %v1085_v6 }
 0x351   : > { %17538 = vst [vmem:[#allocation73_spill] sm:$0xff] %v10537_v20 }
 0x352   : > { %1451 = vrot.lane.b32.xlu0 %v9818_v57, %s17431_s15  ;;  %2741 = vrot.lane.b32.xlu1 %v10448_v54, %s17423_s22  ;;  %v10479_v57 = vrot.slane %v10468_v58, 4 }
 0x354   : > { %v10461_v3 = vpop.permute.xlu0 %1840  ;;  %v10463_v33 = vpop.permute.xlu1 %1792 }
 0x355   : > { %17527 = vst [vmem:[#allocation21_spill] sm:$0xff] %v10463_v33 }
 0x356   : > { %2075 = vrot.lane.b32.xlu0 %v10472_v49, %s17181_s28  ;;  %1426 = vrot.lane.b32.xlu1 %v9557_v10, %s17408_s26 }
 0x358   : > { %v10481_v45 = vpop.permute.xlu0 %1867  ;;  %v10483_v54 = vpop.permute.xlu1 %1819 }
 0x359   : > { %17529 = vst [vmem:[#allocation32_spill] sm:$0xff] %v10483_v54 }
 0x35a   : > { %2749 = vrot.lane.b32.xlu0 %v10479_v57, %s17423_s22  ;;  %1453 = vrot.lane.b32.xlu1 %v9770_v42, %s17431_s15  ;;  %v10510_v42 = vrot.slane %v10499_v43, 4 }
 0x35c   : > { %v10492_v11 = vpop.permute.xlu0 %1846  ;;  %v10494_v2 = vpop.permute.xlu1 %1842  ;;  %17534 = vst [vmem:[#allocation48_spill] sm:$0xff] %v10510_v42 }
 0x35d   : > { %17530 = vst [vmem:[#allocation22_spill] sm:$0xff] %v10492_v11 }
 0x35e   : > { %3386 = vrot.lane.b32.xlu0 %v10137_v60, %s17403_s1  ;;  %2077 = vrot.lane.b32.xlu1 %v10503_v62, %s17181_s28 }
 0x360   : > { %v10512_v26 = vpop.permute.xlu0 %1873  ;;  %v10514_v23 = vpop.permute.xlu1 %1869 }
 0x361   : > { %17535 = vst [vmem:[#allocation30_spill] sm:$0xff] %v10512_v26 }
 0x362   : > { %3390 = vrot.lane.b32.xlu0 %v10403_v52, %s17403_s1  ;;  %2751 = vrot.lane.b32.xlu1 %v10510_v42, %s17423_s22 }
 0x364   : > { %v10520_v50 = vpop.permute.xlu0 %1896  ;;  %v10522_v21 = vpop.permute.xlu1 %1844 }
 0x365   : > { %17536 = vst [vmem:[#allocation39_spill] sm:$0xff] %v10520_v50  ;;  %v1772_v50 = vsel %vm1767_vm14, %v10335_v28, %v10396_v15 }
 0x366   : > { %3412 = vrot.lane.b32.xlu0 %v10181_v24, %s17424_s19  ;;  %3388 = vrot.lane.b32.xlu1 %v10163_v29, %s17403_s1 }
 0x368   : > { %v10531_v13 = vpop.permute.xlu0 %1898  ;;  %v10533_v62 = vpop.permute.xlu1 %1871 }
 0x369   : > { %17537 = vst [vmem:[#allocation55_spill] sm:$0xff] %v10531_v13  ;;  %v1744_v13 = vsel %vm17101_vm0, %v17524_v51, %v17539_v55  ;;  %v1773_v51 = vsel %vm1767_vm14, %v10396_v15, %v10420_v39 }
 0x36a   : > { %2079 = vrot.lane.b32.xlu0 %v10537_v20, %s17181_s28  ;;  %3410 = vrot.lane.b32.xlu1 %v10143_v0, %s17424_s19  ;;  %v1936_v17 = vsel %vm1464_vm3, %v1744_v13, %v1772_v50  ;;  %v1918_v20 = vsel %vm1464_vm3, %v9557_v10, %v10130_v59  ;;  %v1745_v13 = vsel %vm17101_vm0, %v17539_v55, %v10053_v40 }
 0x36c   : > { %v10549_v5 = vpop.permute.xlu0 %1911  ;;  %v10551_v11 = vpop.permute.xlu1 %1894 }
 0x36d   : > { %17540 = vst [vmem:[#allocation17_spill] sm:$0xff] %v10549_v5  ;;  %v1799_v5 = vsel %vm17099_vm15, %v17517_v18, %v10105_v48 }
 0x36e   : > { %2093 = vrot.lane.b32.xlu0 %v1936_v17, %s17181_s28  ;;  %3414 = vrot.lane.b32.xlu1 %v10413_v47, %s17424_s19 }
 0x370   : > { %v10557_v28 = vpop.permute.xlu0 %2715  ;;  %v10559_v6 = vpop.permute.xlu1 %1900 }
 0x371   : > { %17541 = vst [vmem:[#allocation50_spill] sm:$0xff] %v10557_v28  ;;  %17542 = vst [vmem:[#allocation65_spill] sm:$0xff] %v10559_v6  ;;  %v1939_v28 = vsel %vm1464_vm3, %v1745_v13, %v1773_v51  ;;  %v1774_v51 = vsel %vm1767_vm14, %v10420_v39, %v10436_v32  ;;  %v1746_v13 = vsel %vm17101_vm0, %v10053_v40, %v10080_v44 }
 0x372   : > { %3392 = vrot.lane.b32.xlu0 %v10468_v58, %s17403_s1  ;;  %2081 = vrot.lane.b32.xlu1 %v1918_v20, %s17181_s28  ;;  %v1826_v39 = vsel %vm17100_vm1, %v10352_v34, %v10452_v1  ;;  %v17552_v34 = vld [vmem:[#allocation13_spill] sm:$0xff] }
 0x374   : > { %v10573_v50 = vpop.permute.xlu0 %1420  ;;  %v10575_v17 = vpop.permute.xlu1 %1914 }
 0x375   : > { %17543 = vst [vmem:[#allocation52_spill] sm:$0xff] %v10573_v50  ;;  %17544 = vst [vmem:[#allocation67_spill] sm:$0xff] %v10575_v17  ;;  %v1942_v17 = vsel %vm1464_vm3, %v1746_v13, %v1774_v51  ;;  %v17551_v50 = vld [vmem:[#allocation15_spill] sm:$0xff] }
 0x376   : > { %3416 = vrot.lane.b32.xlu0 %v10479_v57, %s17424_s19  ;;  %2095 = vrot.lane.b32.xlu1 %v1939_v28, %s17181_s28  ;;  %v1775_v51 = vsel %vm1767_vm14, %v10436_v32, %v17551_v50  ;;  %v17553_v32 = vld [vmem:[#allocation71_spill] sm:$0xff] }
 0x378   : > { %v10581_v10 = vpop.permute.xlu0 %1447  ;;  %v10583_v59 = vpop.permute.xlu1 %2717 }
 0x379   : > { %17545 = vst [vmem:[#allocation14_spill] sm:$0xff] %v10581_v10  ;;  %17546 = vst [vmem:[#allocation63_spill] sm:$0xff] %v10583_v59 }
 0x37a   : > { %3434 = vrot.lane.b32.xlu0 %v10137_v60, %s17405_s24  ;;  %3394 = vrot.lane.b32.xlu1 %v10499_v43, %s17403_s1 }
 0x37c   : > { %v10589_v20 = vpop.permute.xlu0 %2743  ;;  %v10591_v15 = vpop.permute.xlu1 %1422 }
 0x37d   : > { %17547 = vst [vmem:[#allocation12_spill] sm:$0xff] %v10589_v20  ;;  %17548 = vst [vmem:[#allocation69_spill] sm:$0xff] %v10591_v15 }
 0x37e   : > { %3438 = vrot.lane.b32.xlu0 %v10403_v52, %s17405_s24  ;;  %3418 = vrot.lane.b32.xlu1 %v10510_v42, %s17424_s19 }
 0x380   : > { %v10597_v55 = vpop.permute.xlu0 %2155  ;;  %v10599_v28 = vpop.permute.xlu1 %1449 }
 0x381   : > { %17549 = vst [vmem:[#allocation84_spill] sm:$0xff] %v10599_v28  ;;  %v1828_v28 = vsel %vm17100_vm1, %v10418_v53, %v10450_v46 }
 0x382   : > { %3460 = vrot.lane.b32.xlu0 %v10181_v24, %s17427_s18  ;;  %3436 = vrot.lane.b32.xlu1 %v10163_v29, %s17405_s24 }
 0x384   : > { %v10611_v20 = vpop.permute.xlu0 %2159  ;;  %v10613_v59 = vpop.permute.xlu1 %2745 }
 0x385   : > { %17550 = vst [vmem:[#allocation85_spill] sm:$0xff] %v10613_v59  ;;  %v1963_v59 = vsel %vm1464_vm3, %v1799_v5, %v1826_v39  ;;  %v1827_v5 = vsel %vm17100_vm1, %v10452_v1, %v10418_v53 }
 0x386   : > { %3458 = vrot.lane.b32.xlu1 %v10143_v0, %s17427_s18  ;;  %2097 = vrot.lane.b32.xlu0 %v1942_v17, %s17181_s28  ;;  %v1747_v17 = vsel %vm17101_vm0, %v10080_v44, %v17552_v34  ;;  %vm17573_vm0 = vcmask 211968  }
 0x387   : > { %v1945_v15 = vsel %vm1464_vm3, %v1747_v17, %v1775_v51 }
 0x388   : > { %v2102_v40 = vpop.permute.xlu0 %2101  ;;  %v10625_v6 = vpop.permute.xlu1 %2157 }
 0x38a   : > { %3462 = vrot.lane.b32.xlu1 %v10413_v47, %s17427_s18  ;;  %2111 = vrot.lane.b32.xlu0 %v1963_v59, %s17181_s28  ;;  %v1800_v59 = vsel %vm17099_vm15, %v10105_v48, %v17553_v32 }
 0x38b   : > { %v1966_v44 = vsel %vm1464_vm3, %v1800_v59, %v1827_v5 }
 0x38c   : > { %v2068_v13 = vpop.permute.xlu0 %2067  ;;  %v2084_v18 = vpop.permute.xlu1 %2083 }
 0x38e   : > { %2099 = vrot.lane.b32.xlu1 %v1945_v15, %s17181_s28  ;;  %3440 = vrot.lane.b32.xlu0 %v10468_v58, %s17405_s24 }
 0x390   : > { %v2066_v39 = vpop.permute.xlu0 %2065  ;;  %v2120_v50 = vpop.permute.xlu1 %2119 }
 0x391   : > { %v2174_v5 = vsel %vm2173_vm12, %v2066_v39, %v2068_v13 }
 0x392   : > { %2113 = vrot.lane.b32.xlu1 %v1966_v44, %s17181_s28  ;;  %3464 = vrot.lane.b32.xlu0 %v10479_v57, %s17427_s18 }
 0x394   : > { %v10651_v51 = vpop.permute.xlu0 %2087  ;;  %v2138_v1 = vpop.permute.xlu1 %2137 }
 0x396   : > { %3442 = vrot.lane.b32.xlu1 %v10499_v43, %s17405_s24  ;;  %3482 = vrot.lane.b32.xlu0 %v10137_v60, %s17407_s27 }
 0x398   : > { %v2104_v48 = vpop.permute.xlu0 %2103  ;;  %v10657_v15 = vpop.permute.xlu1 %2069 }
 0x399   : > { %v2175_v17 = vsel %vm2173_vm12, %v2068_v13, %v10657_v15  ;;  %v1801_v13 = vsel %vm17099_vm15, %v17553_v32, %v10434_v61 }
 0x39a   : > { %3466 = vrot.lane.b32.xlu1 %v10510_v42, %s17427_s18  ;;  %3486 = vrot.lane.b32.xlu0 %v10403_v52, %s17407_s27 }
 0x39b   : > { %2312 = vmatprep.subr.bf16.mxu0 %v2175_v17 }
 0x39c   : > { %2313 = vmatpush1.bf16.msra.mxu0 %v2174_v5  ;;  %v10666_v59 = vpop.permute.xlu0 %2123  ;;  %v2086_v44 = vpop.permute.xlu1 %2085  ;;  %v1880_v5 = vsel %vm1875_vm13, %v10376_v12, %v10481_v45 }
 0x39d   : > { %v2183_v34 = vsel %vm2173_vm12, %v2086_v44, %v10651_v51  ;;  %v2182_v10 = vsel %vm2173_vm12, %v2084_v18, %v2086_v44  ;;  %v1969_v18 = vsel %vm1464_vm3, %v1801_v13, %v1828_v28 }
 0x39e   : > { %3484 = vrot.lane.b32.xlu1 %v10163_v29, %s17407_s27  ;;  %3508 = vrot.lane.b32.xlu0 %v10181_v24, %s17429_s16 }
 0x39f   : > { %2314 = vmatprep.subr.bf16.mxu0 %v2183_v34  ;;  %v1853_v34 = vsel %vm1848_vm10, %v17520_v36, %v10461_v3  ;;  %v1829_v36 = vsel %vm17100_vm1, %v10450_v46, %v10483_v54  ;;  %v1881_v46 = vsel %vm1875_vm13, %v10481_v45, %v10514_v23  ;;  %v2215_v45 = vsel %vm2173_vm12, %v10625_v6, %v10611_v20 }
 0x3a0   : > { %2315 = vmatpush1.bf16.msra.mxu0 %v2182_v10  ;;  %v10681_v39 = vpop.permute.xlu0 %2141  ;;  %v10683_v17 = vpop.permute.xlu1 %2105  ;;  %v2190_v10 = vsel %vm2173_vm12, %v2102_v40, %v2104_v48  ;;  %v1990_v44 = vsel %vm1464_vm3, %v1853_v34, %v1880_v5  ;;  %vm17562_vm1 = vcmask 883712  }
 0x3a1   : > { %v2191_v53 = vsel %vm2173_vm12, %v2104_v48, %v10683_v17 }
 0x3a2   : > { %3506 = vrot.lane.b32.xlu1 %v10143_v0, %s17429_s16  ;;  %2115 = vrot.lane.b32.xlu0 %v1969_v18, %s17181_s28  ;;  %v1802_v18 = vsel %vm17099_vm15, %v10434_v61, %v10463_v33  ;;  %v1854_v61 = vsel %vm1848_vm10, %v10461_v3, %v10494_v2  ;;  %v2264_v3 = vld [vmem:[%s17505_s14 + $0x10] sm:$0xff]  ;;  %vm17559_vm15 = vcmask 875520  }
 0x3a3   : > { %2316 = vmatprep.subr.bf16.mxu0 %v2191_v53 }
 0x3a4   : > { %2317 = vmatpush1.bf16.msra.mxu0 %v2190_v10  ;;  %v10698_v28 = vpop.permute.xlu0 %2161  ;;  %v2122_v32 = vpop.permute.xlu1 %2121  ;;  %v2214_v10 = vsel %vm2173_vm12, %v10597_v55, %v10625_v6  ;;  %v1993_v55 = vsel %vm1464_vm3, %v1854_v61, %v1881_v46 }
 0x3a5   : > { %v2199_v12 = vsel %vm2173_vm12, %v2122_v32, %v10666_v59  ;;  %v2198_v13 = vsel %vm2173_vm12, %v2120_v50, %v2122_v32  ;;  %v1972_v50 = vsel %vm1464_vm3, %v1802_v18, %v1829_v36  ;;  %v2262_v32 = vld [vmem:[%s17505_s14] sm:$0xff]  ;;  %v2273_v6 = vsel %vm1464_vm3, %v2214_v10, 0  ;;  %s17957_s14 = smov 37  }
 0x3a6   : > { %2129 = vrot.lane.b32.xlu0 %v1990_v44, %s17181_s28  ;;  %3510 = vrot.lane.b32.xlu1 %v10413_v47, %s17429_s16  ;;  %v10750_v44 = vpack.c.bf16 %v2264_v3, %v2262_v32  ;;  %v1137_v36 = vsel %vm1131_vm4, %v10202_v41, %v10145_v37  ;;  %v1191_v10 = vsel %vm17123_vm6, %v10228_v56, %v10183_v35 }
 0x3a7   : > { %2318 = vmatprep.subr.bf16.mxu0 %v2199_v12 }
 0x3a8   : > { %2319 = vmatpush1.bf16.msra.mxu0 %v2198_v13  ;;  %v10710_v40 = vpop.permute.xlu0 %2089  ;;  %v2140_v48 = vpop.permute.xlu1 %2139 }
 0x3a9   : > { %v2207_v53 = vsel %vm2173_vm12, %v2140_v48, %v10681_v39  ;;  %v2206_v5 = vsel %vm2173_vm12, %v2138_v1, %v2140_v48 }
 0x3aa   : > { %2951 = vrot.lane.b32.xlu0 %v10143_v0, %s17416_s29  ;;  %2117 = vrot.lane.b32.xlu1 %v1972_v50, %s17181_s28  ;;  %v17554_v50 = vld [vmem:[#allocation56_spill] sm:$0xff] }
 0x3ab   : > { %2320 = vmatprep.subr.bf16.mxu0 %v2207_v53  ;;  %v17555_v53 = vld [vmem:[#allocation40_spill] sm:$0xff] }
 0x3ac   : > { %2321 = vmatpush1.bf16.msra.mxu0 %v2206_v5  ;;  %v10731_v1 = vpop.permute.xlu0 %2143  ;;  %v10736_v34 = vpop.permute.xlu1 %2163  ;;  %v1110_v5 = vsel %vm1104_vm5, %v17555_v53, %v17554_v50 }
 0x3ad   : > { %8545 = vmatprep.subr.msk.bf16.mxu0 %vm1464_vm3, %v2215_v45  ;;  %v1518_v46 = vsel %vm1464_vm3, %v1110_v5, %v1137_v36  ;;  %v17556_v45 = vld [vmem:[#allocation38_spill] sm:$0xff] }
 0x3ae   : > { %2955 = vrot.lane.b32.xlu0 %v10413_v47, %s17416_s29  ;;  %2131 = vrot.lane.b32.xlu1 %v1993_v55, %s17181_s28  ;;  %v1190_v55 = vsel %vm17123_vm6, %v10005_v22, %v10228_v56  ;;  %v17560_v22 = vld [vmem:[#allocation64_spill] sm:$0xff]  ;;  %v17561_v56 = vld [vmem:[#allocation47_spill] sm:$0xff] }
 0x3af   : > { %v1218_v5 = vsel %vm17562_vm1, %v17561_v56, %v17560_v22 }
 0x3b0   : > { %2323 = vmatpush1.bf16.msra.mxu0 %v2273_v6  ;;  %v10752_v12 = vpop.permute.xlu0 %2073  ;;  %v2072_v13 = vpop.permute.xlu1 %2071 }
 0x3b1   : > { %2382 = vmatprep.subr.bf16.mxu0 %v10472_v49  ;;  %v2177_v48 = vsel %vm2173_vm12, %v2072_v13, %v10752_v12  ;;  %v2176_v18 = vsel %vm2173_vm12, %v10657_v15, %v2072_v13  ;;  %v1136_v49 = vsel %vm1131_vm4, %v9982_v7, %v10202_v41  ;;  %v1109_v7 = vsel %vm1104_vm5, %v17556_v45, %v17555_v53  ;;  %v17557_v41 = vld [vmem:[#allocation60_spill] sm:$0xff] }
 0x3b2   : > { %3490 = vrot.lane.b32.xlu0 %v10499_v43, %s17407_s27  ;;  %2953 = vrot.lane.b32.xlu1 %v10181_v24, %s17416_s29  ;;  %v1514_v3 = vsel %vm1464_vm3, %v1109_v7, %v1136_v49  ;;  %v1882_v53 = vsel %vm1875_vm13, %v10514_v23, %v10533_v62  ;;  %v1855_v23 = vsel %vm1848_vm10, %v10494_v2, %v10522_v21 }
 0x3b3   : > { %2355 = vmatprep.subr.bf16.mxu1 %v2177_v48  ;;  %2329 = vmatmul.mubr.bf16.vlgmr.msra.gmra.mrb[4].mxu0 %v10750_v44  ;;  %v1245_v48 = vsel %vm17559_vm15, %v10264_v4, %v10200_v38  ;;  %v1299_v7 = vsel %vm1293_vm11, %v10296_v9, %v10226_v25  ;;  %v17564_v9 = vld [vmem:[#allocation68_spill] sm:$0xff] }
 0x3b4   : > { %2356 = vmatpush1.bf16.msra.mxu1 %v2176_v18  ;;  %2383 = vmatpush1.bf16.msra.mxu0 %v10358_v8  ;;  %v10774_v15 = vpop.permute.xlu0 %2109  ;;  %v2108_v61 = vpop.permute.xlu1 %2107  ;;  %v17558_v8 = vld [vmem:[#allocation44_spill] sm:$0xff] }
 0x3b5   : > { %2384 = vmatprep.subr.bf16.mxu0 %v1518_v46  ;;  %8550 = vmatprep.mubr.msk.bf16.mxu0 %vm17104_vm8, %v10305_v31  ;;  %v1164_v32 = vsel %vm17124_vm7, %v17558_v8, %v17557_v41  ;;  %v1163_v18 = vsel %vm17124_vm7, %v9811_v30, %v17558_v8  ;;  %v1244_v30 = vsel %vm17559_vm15, %v10027_v63, %v10264_v4  ;;  %v17563_v4 = vld [vmem:[#allocation41_spill] sm:$0xff]  ;;  %vm17566_vm15 = vcmask 867328  }
 0x3b6   : > { %3514 = vrot.lane.b32.xlu0 %v10510_v42, %s17429_s16  ;;  %3488 = vrot.lane.b32.xlu1 %v10468_v58, %s17407_s27  ;;  %v1550_v13 = vsel %vm1464_vm3, %v1164_v32, %v1191_v10  ;;  %v1546_v49 = vsel %vm1464_vm3, %v1163_v18, %v1190_v55  ;;  %v1582_v10 = vsel %vm1464_vm3, %v1218_v5, %v1245_v48  ;;  %v17567_v5 = vld [vmem:[#allocation31_spill] sm:$0xff] }
 0x3b7   : > { %v1996_v8 = vsel %vm1464_vm3, %v1855_v23, %v1882_v53  ;;  %v1217_v2 = vsel %vm17562_vm1, %v17563_v4, %v17561_v56  ;;  %v1907_v32 = vsel %vm1902_vm9, %v10029_v19, %v10551_v11  ;;  %v2193_v19 = vsel %vm2173_vm12, %v2108_v61, %v10774_v15 }
 0x3b8   : > { %2385 = vmatpush1.bf16.msra.mxu0 %v1514_v3  ;;  %v10796_v6 = vpop.permute.xlu0 %2127  ;;  %v2126_v36 = vpop.permute.xlu1 %2125  ;;  %v17565_v3 = vld [vmem:[#allocation51_spill] sm:$0xff]  ;;  %v1578_v48 = vsel %vm1464_vm3, %v1217_v2, %v1244_v30  ;;  %vm17568_vm1 = vcmask 211968   ;;  %v1883_v23 = vsel %vm1875_vm13, %v10533_v62, %v10512_v26  ;;  %v2192_v4 = vsel %vm2173_vm12, %v10683_v17, %v2108_v61  ;;  %v17574_v2 = vld [vmem:[#allocation22_spill] sm:$0xff]  ;;  %v17576_v61 = vld [vmem:[#allocation20_spill] sm:$0xff] }
 0x3b9   : > { %2386 = vmatprep.subr.bf16.mxu0 %v1550_v13  ;;  %v1272_v55 = vsel %vm17566_vm15, %v17565_v3, %v17564_v9  ;;  %v2184_v13 = vsel %vm2173_vm12, %v10651_v51, %v10710_v40  ;;  %v2012_v51 = vsel %vm1464_vm3, %v1907_v32, %v1299_v7  ;;  %v1856_v32 = vsel %vm1848_vm10, %v10522_v21, %v17574_v2  ;;  %v17575_v17 = vld [vmem:[#allocation19_spill] sm:$0xff]  ;;  %v17607_v26 = vld [vmem:[#allocation81_spill] sm:$0xff]  ;;  %v17608_v2 = vld [vmem:[#allocation24_spill] sm:$0xff] }
 0x3ba   : > { %3532 = vrot.lane.b32.xlu0 %v10163_v29, %s17414_s30  ;;  %3512 = vrot.lane.b32.xlu1 %v10479_v57, %s17429_s16  ;;  %v1614_v53 = vsel %vm1464_vm3, %v1272_v55, %v1299_v7  ;;  %v17572_v7 = vld [vmem:[#allocation77_spill] sm:$0xff]  ;;  %v1999_v21 = vsel %vm1464_vm3, %v1856_v32, %v1883_v23  ;;  %v17583_v23 = vld [vmem:[#allocation26_spill] sm:$0xff] }
 0x3bc   : > { %2387 = vmatpush1.bf16.msra.mxu0 %v1546_v49  ;;  %v10822_v46 = vpop.permute.xlu0 %2747  ;;  %v10825_v45 = vpop.permute.xlu1 %2091  ;;  %v1353_v49 = vsel %vm17568_vm1, %v10337_v14, %v17567_v5  ;;  %vm17571_vm1 = vcmask 220160  }
 0x3bd   : > { %2388 = vmatprep.subr.bf16.mxu0 %v1582_v10  ;;  %v2185_v63 = vsel %vm2173_vm12, %v10710_v40, %v10825_v45  ;;  %v17569_v40 = vld [vmem:[#allocation43_spill] sm:$0xff]  ;;  %v17570_v10 = vld [vmem:[#allocation72_spill] sm:$0xff] }
 0x3be   : > { %2133 = vrot.lane.b32.xlu0 %v1996_v8, %s17181_s28  ;;  %3530 = vrot.lane.b32.xlu1 %v10137_v60, %s17414_s30  ;;  %v1271_v30 = vsel %vm17566_vm15, %v17569_v40, %v17565_v3  ;;  %v10873_v8 = vsel %vm17571_vm1, %v17511_v16, %v17570_v10  ;;  %v2201_v16 = vsel %vm2173_vm12, %v2126_v36, %v10796_v6  ;;  %vm17581_vm15 = vcmask 146432  }
 0x3bf   : > { %2357 = vmatprep.subr.bf16.mxu1 %v2185_v63  ;;  %v1352_v63 = vsel %vm17573_vm0, %v17572_v7, %v10337_v14  ;;  %v1610_v62 = vsel %vm1464_vm3, %v1271_v30, %v10426_v27  ;;  %v1646_v14 = vsel %vm1464_vm3, %v10873_v8, %v1353_v49  ;;  %vm17577_vm0 = vcmask 138240   ;;  %v17584_v7 = vld [vmem:[#allocation78_spill] sm:$0xff] }
 0x3c0   : > { %2358 = vmatpush1.bf16.msra.mxu1 %v2184_v13  ;;  %2389 = vmatpush1.bf16.msra.mxu0 %v1578_v48  ;;  %v10850_v18 = vpop.permute.xlu0 %1424  ;;  %v10855_v56 = vpop.permute.xlu1 %2145  ;;  %v1407_v27 = vsel %vm17577_vm0, %v17576_v61, %v17575_v17  ;;  %v17578_v13 = vld [vmem:[#allocation39_spill] sm:$0xff]  ;;  %v2200_v30 = vsel %vm2173_vm12, %v10666_v59, %v2126_v36  ;;  %vm17585_vm1 = vmmov %vm17577_vm0  ;;  %v17587_v59 = vld [vmem:[#allocation14_spill] sm:$0xff]  ;;  %vm17588_vm0 = vcmask 64512  }
 0x3c1   : > { %2359 = vmatprep.subr.bf16.mxu1 %v2193_v19  ;;  %2390 = vmatprep.subr.bf16.mxu0 %v1614_v53  ;;  %v1908_v48 = vsel %vm1902_vm9, %v10551_v11, %v17578_v13  ;;  %v17579_v19 = vld [vmem:[#allocation75_spill] sm:$0xff]  ;;  %v1642_v11 = vsel %vm1464_vm3, %v17583_v23, %v1352_v63  ;;  %v2209_v32 = vsel %vm2173_vm12, %v10731_v1, %v10855_v56  ;;  %v17593_v23 = vld [vmem:[#allocation52_spill] sm:$0xff] }
 0x3c2   : > { %2147 = vrot.lane.b32.xlu0 %v2012_v51, %s17181_s28  ;;  %3534 = vrot.lane.b32.xlu1 %v10403_v52, %s17414_s30  ;;  %v17580_v53 = vld [vmem:[#allocation59_spill] sm:$0xff]  ;;  %v17582_v51 = vld [vmem:[#allocation29_spill] sm:$0xff] }
 0x3c3   : > { %v1380_v49 = vsel %vm17581_vm15, %v17580_v53, %v17579_v19  ;;  %v10909_v40 = vsel %vm1293_vm11, %v10226_v25, %v17582_v51 }
 0x3c4   : > { %2360 = vmatpush1.bf16.msra.mxu1 %v2192_v4  ;;  %2391 = vmatpush1.bf16.msra.mxu0 %v1610_v62  ;;  %v10885_v3 = vpop.permute.xlu0 %1451  ;;  %v10891_v55 = vpop.permute.xlu1 %2741  ;;  %v1406_v4 = vsel %vm17585_vm1, %v17584_v7, %v17576_v61  ;;  %v1678_v25 = vsel %vm1464_vm3, %v1380_v49, %v1407_v27  ;;  %v2014_v63 = vsel %vm1464_vm3, %v1908_v48, %v10909_v40  ;;  %v17589_v61 = vld [vmem:[#allocation46_spill] sm:$0xff]  ;;  %v17590_v27 = vld [vmem:[#allocation80_spill] sm:$0xff]  ;;  %vm17591_vm1 = vmmov %vm17588_vm0 }
 0x3c5   : > { %2361 = vmatprep.subr.bf16.mxu1 %v2201_v16  ;;  %2392 = vmatprep.subr.bf16.mxu0 %v1646_v14  ;;  %v17586_v14 = vld [vmem:[#allocation84_spill] sm:$0xff]  ;;  %v1460_v49 = vsel %vm17591_vm1, %v17590_v27, %v17587_v59  ;;  %v2208_v48 = vsel %vm2173_vm12, %v10681_v39, %v10731_v1  ;;  %v17595_v39 = vld [vmem:[#allocation54_spill] sm:$0xff]  ;;  %vm17613_vm1 = vcmask 875520  }
 0x3c6   : > { %2957 = vrot.lane.b32.xlu0 %v10479_v57, %s17416_s29  ;;  %2135 = vrot.lane.b32.xlu1 %v1999_v21, %s17181_s28  ;;  %v1461_v36 = vsel %vm17588_vm0, %v17587_v59, %v17586_v14  ;;  %v1379_v21 = vsel %vm17581_vm15, %v17589_v61, %v17580_v53  ;;  %vm17594_vm0 = vcmask 130048   ;;  %v2216_v53 = vsel %vm2173_vm12, %v10611_v20, %v10698_v28  ;;  %v17597_v61 = vld [vmem:[#allocation79_spill] sm:$0xff] }
 0x3c7   : > { %v1674_v7 = vsel %vm1464_vm3, %v1379_v21, %v1406_v4  ;;  %vm17596_vm15 = vmmov %vm17594_vm0  ;;  %v2279_v20 = vsel %vm1464_vm3, %v2216_v53, 0  ;;  %v17598_v21 = vld [vmem:[#allocation83_spill] sm:$0xff]  ;;  %v17602_v53 = vld [vmem:[#allocation58_spill] sm:$0xff] }
 0x3c8   : > { %2362 = vmatpush1.bf16.msra.mxu1 %v2200_v30  ;;  %2393 = vmatpush1.bf16.msra.mxu0 %v1642_v11  ;;  %v2076_v62 = vpop.permute.xlu0 %2075  ;;  %v10922_v16 = vpop.permute.xlu1 %1426  ;;  %v17592_v30 = vld [vmem:[#allocation69_spill] sm:$0xff]  ;;  %v1433_v1 = vsel %vm17596_vm15, %v17595_v39, %v17593_v23  ;;  %v1139_v27 = vsel %vm1131_vm4, %v17598_v21, %v17597_v61  ;;  %vm17618_vm15 = vcmask 883712  }
 0x3c9   : > { %2363 = vmatprep.subr.bf16.mxu1 %v2209_v32  ;;  %2394 = vmatprep.subr.bf16.mxu0 %v1678_v25  ;;  %v1434_v11 = vsel %vm17594_vm0, %v17593_v23, %v17592_v30  ;;  %v2217_v25 = vsel %vm2173_vm12, %v10698_v28, %v10736_v34  ;;  %v1706_v28 = vsel %vm1464_vm3, %v1433_v1, %v1460_v49  ;;  %v17599_v23 = vld [vmem:[#allocation73_spill] sm:$0xff]  ;;  %vm17615_vm0 = vcmask 220160  }
 0x3ca   : > { %3536 = vrot.lane.b32.xlu0 %v10468_v58, %s17414_s30  ;;  %2149 = vrot.lane.b32.xlu1 %v2014_v63, %s17181_s28  ;;  %v1710_v59 = vsel %vm1464_vm3, %v1434_v11, %v1461_v36  ;;  %v17600_v49 = vld [vmem:[#allocation65_spill] sm:$0xff]  ;;  %v2178_v39 = vsel %vm2173_vm12, %v10752_v12, %v2076_v62  ;;  %v1138_v1 = vsel %vm1131_vm4, %v10145_v37, %v17598_v21 }
 0x3cb   : > { %v1193_v12 = vsel %vm17123_vm6, %v17608_v2, %v17607_v26  ;;  %v17609_v26 = vld [vmem:[#allocation62_spill] sm:$0xff] }
 0x3cc   : > { %2364 = vmatpush1.bf16.msra.mxu1 %v2208_v48  ;;  %2395 = vmatpush1.bf16.msra.mxu0 %v1674_v7  ;;  %v10948_v32 = vpop.permute.xlu0 %2749  ;;  %v10954_v63 = vpop.permute.xlu1 %1453  ;;  %v17601_v48 = vld [vmem:[#allocation55_spill] sm:$0xff] }
 0x3cd   : > { %8547 = vmatprep.subr.msk.bf16.mxu1 %vm1464_vm3, %v2217_v25  ;;  %2396 = vmatprep.subr.bf16.mxu0 %v1710_v59  ;;  %v1910_v7 = vsel %vm1902_vm9, %v17601_v48, %v17600_v49  ;;  %v17603_v25 = vld [vmem:[#allocation42_spill] sm:$0xff]  ;;  %v1909_v21 = vsel %vm1902_vm9, %v17578_v13, %v17601_v48 }
 0x3ce   : > { %2977 = vrot.lane.b32.xlu0 %v10137_v60, %s17398_s3  ;;  %2959 = vrot.lane.b32.xlu1 %v10510_v42, %s17416_s29  ;;  %v1112_v59 = vsel %vm1104_vm5, %v17603_v25, %v17602_v53  ;;  %v17605_v53 = vld [vmem:[#allocation17_spill] sm:$0xff] }
 0x3cf   : > { %v1526_v61 = vsel %vm1464_vm3, %v1112_v59, %v1139_v27  ;;  %v17610_v27 = vld [vmem:[#allocation45_spill] sm:$0xff]  ;;  %v17611_v59 = vld [vmem:[#allocation82_spill] sm:$0xff] }
 0x3d0   : > { %2366 = vmatpush1.bf16.msra.mxu1 %v2279_v20  ;;  %2397 = vmatpush1.bf16.msra.mxu0 %v1706_v28  ;;  %v10966_v4 = vpop.permute.xlu0 %3386  ;;  %v10968_v36 = vpop.permute.xlu1 %2077  ;;  %v17604_v20 = vld [vmem:[#allocation23_spill] sm:$0xff] }
 0x3d1   : > { %2425 = vmatprep.subr.bf16.mxu1 %v17599_v23  ;;  %v2179_v11 = vsel %vm2173_vm12, %v2076_v62, %v10968_v36  ;;  %v1111_v62 = vsel %vm1104_vm5, %v17554_v50, %v17603_v25 }
 0x3d2   : > { %2981 = vrot.lane.b32.xlu0 %v10403_v52, %s17398_s3  ;;  %3538 = vrot.lane.b32.xlu1 %v10499_v43, %s17414_s30 }
 0x3d3   : > { %2398 = vmatprep.subr.bf16.mxu0 %v2179_v11  ;;  %2372 = vmatmul.mubr.bf16.vlgmr.msra.gmra.mrb[4].mxu1 %v10750_v44  ;;  %v17606_v11 = vld [vmem:[#allocation34_spill] sm:$0xff] }
 0x3d4   : > { %2399 = vmatpush1.bf16.msra.mxu0 %v2178_v39  ;;  %2426 = vmatpush1.bf16.msra.mxu1 %v17604_v20  ;;  %v10993_v28 = vpop.permute.xlu0 %3390  ;;  %v10996_v23 = vpop.permute.xlu1 %2751  ;;  %v1913_v49 = vsel %vm1293_vm11, %v17606_v11, %v17605_v53  ;;  %v1301_v50 = vsel %vm1293_vm11, %v17582_v51, %v17606_v11  ;;  %v17612_v39 = vld [vmem:[#allocation28_spill] sm:$0xff]  ;;  %v1165_v51 = vsel %vm17124_vm7, %v17557_v41, %v17610_v27  ;;  %v17617_v11 = vld [vmem:[#allocation49_spill] sm:$0xff] }
 0x3d5   : > { %2427 = vmatprep.subr.bf16.mxu1 %v1526_v61  ;;  %v2019_v37 = vsel %vm1464_vm3, %v1910_v7, %v1913_v49  ;;  %8552 = vmatprep.mubr.msk.bf16.mxu1 %vm17104_vm8, %v10305_v31  ;;  %v1166_v49 = vsel %vm17124_vm7, %v17610_v27, %v17609_v26  ;;  %v1522_v7 = vsel %vm1464_vm3, %v1111_v62, %v1138_v1  ;;  %v17614_v1 = vld [vmem:[#allocation57_spill] sm:$0xff]  ;;  %v17616_v61 = vld [vmem:[#allocation66_spill] sm:$0xff] }
 0x3d6   : > { %2153 = vrot.lane.b32.xlu0 %v2019_v37, %s17181_s28  ;;  %2979 = vrot.lane.b32.xlu1 %v10163_v29, %s17398_s3  ;;  %v1192_v31 = vsel %vm17123_vm6, %v10183_v35, %v17608_v2  ;;  %v1558_v48 = vsel %vm1464_vm3, %v1166_v49, %v1193_v12  ;;  %v1247_v20 = vsel %vm17613_vm1, %v17612_v39, %v17611_v59  ;;  %v17620_v27 = vld [vmem:[#allocation70_spill] sm:$0xff] }
 0x3d7   : > { %v1327_v35 = vsel %vm17615_vm0, %v17570_v10, %v17614_v1  ;;  %v2016_v2 = vsel %vm1464_vm3, %v1909_v21, %v1301_v50  ;;  %v1220_v12 = vsel %vm17618_vm15, %v17617_v11, %v17616_v61  ;;  %v1554_v37 = vsel %vm1464_vm3, %v1165_v51, %v1192_v31  ;;  %vm17619_vm0 = vmmov %vm17618_vm15  ;;  %v17627_v51 = vld [vmem:[#allocation74_spill] sm:$0xff] }
 0x3d8   : > { %2428 = vmatpush1.bf16.msra.mxu1 %v1522_v7  ;;  %v11026_v13 = vpop.permute.xlu0 %3412  ;;  %v11029_v25 = vpop.permute.xlu1 %3388  ;;  %v1246_v10 = vsel %vm17613_vm1, %v10200_v38, %v17612_v39  ;;  %v1590_v21 = vsel %vm1464_vm3, %v1220_v12, %v1247_v20  ;;  %v1219_v26 = vsel %vm17619_vm0, %v17560_v22, %v17617_v11  ;;  %v17621_v38 = vld [vmem:[#allocation53_spill] sm:$0xff]  ;;  %vm17622_vm15 = vcmask 867328   ;;  %v17624_v22 = vld [vmem:[#allocation35_spill] sm:$0xff] }
 0x3d9   : > { %2429 = vmatprep.subr.bf16.mxu1 %v1558_v48  ;;  %v1274_v49 = vsel %vm17622_vm15, %v17621_v38, %v17620_v27  ;;  %v1586_v7 = vsel %vm1464_vm3, %v1219_v26, %v1246_v10  ;;  %v17623_v39 = vld [vmem:[#allocation33_spill] sm:$0xff]  ;;  %vm17625_vm1 = vcmask 211968   ;;  %vm17628_vm0 = vcmask 220160   ;;  %v17631_v26 = vld [vmem:[#allocation36_spill] sm:$0xff] }
 0x3da   : > { %2167 = vrot.lane.b32.xlu0 %v1327_v35, %s17181_s28  ;;  %2151 = vrot.lane.b32.xlu1 %v2016_v2, %s17181_s28  ;;  %v1622_v48 = vsel %vm1464_vm3, %v1274_v49, %v1301_v50  ;;  %v1355_v20 = vsel %vm17625_vm1, %v17624_v22, %v17623_v39  ;;  %v17626_v2 = vld [vmem:[#allocation67_spill] sm:$0xff]  ;;  %v1273_v61 = vsel %vm17622_vm15, %v17564_v9, %v17621_v38  ;;  %vm17629_vm8 = vmmov %vm17628_vm0 }
 0x3db   : > { %v1328_v50 = vsel %vm17629_vm8, %v17614_v1, %v17627_v51  ;;  %v1618_v11 = vsel %vm1464_vm3, %v1273_v61, %v10909_v40  ;;  %v1354_v12 = vsel %vm17625_vm1, %v17567_v5, %v17624_v22  ;;  %v17634_v40 = vld [vmem:[#allocation76_spill] sm:$0xff]  ;;  %v17635_v1 = vld [vmem:[#allocation61_spill] sm:$0xff]  ;;  %vm17636_vm8 = vcmask 146432  }
 0x3dc   : > { %2430 = vmatpush1.bf16.msra.mxu1 %v1554_v37  ;;  %v11050_v62 = vpop.permute.xlu0 %2079  ;;  %v11053_v41 = vpop.permute.xlu1 %3410  ;;  %v1654_v9 = vsel %vm1464_vm3, %v1328_v50, %v1355_v20  ;;  %v1382_v5 = vsel %vm17636_vm8, %v17635_v1, %v17634_v40  ;;  %v1650_v38 = vsel %vm1464_vm3, %v1327_v35, %v1354_v12  ;;  %vm17638_vm1 = vcmask 64512  }
 0x3dd   : > { %2431 = vmatprep.subr.bf16.mxu1 %v1590_v21  ;;  %v17630_v21 = vld [vmem:[#allocation18_spill] sm:$0xff]  ;;  %v1463_v22 = vsel %vm17638_vm1, %v10885_v3, %v10954_v63 }
 0x3de   : > { %2985 = vrot.lane.b32.xlu0 %v10499_v43, %s17398_s3  ;;  %2165 = vrot.lane.b32.xlu1 %v10873_v8, %s17181_s28  ;;  %v1916_v8 = vsel %vm17628_vm0, %v17627_v51, %v17626_v2  ;;  %vm17632_vm0 = vcmask 138240  }
 0x3df   : > { %v1409_v27 = vsel %vm17632_vm0, %v17631_v26, %v17630_v21  ;;  %vm17637_vm15 = vmmov %vm17632_vm0 }
 0x3e0   : > { %2432 = vmatpush1.bf16.msra.mxu1 %v1586_v7  ;;  %v2094_v31 = vpop.permute.xlu0 %2093  ;;  %v11067_v59 = vpop.permute.xlu1 %3414  ;;  %v1408_v49 = vsel %vm17637_vm15, %v17575_v17, %v17631_v26  ;;  %vm17639_vm0 = vmmov %vm17636_vm8  ;;  %vm17640_vm8 = vcmask 130048  }
 0x3e1   : > { %2433 = vmatprep.subr.bf16.mxu1 %v1622_v48  ;;  %v1686_v48 = vsel %vm1464_vm3, %v1382_v5, %v1409_v27  ;;  %v1381_v35 = vsel %vm17639_vm0, %v17579_v19, %v17635_v1  ;;  %v1436_v17 = vsel %vm17640_vm8, %v10850_v18, %v10922_v16  ;;  %v2186_v63 = vsel %vm2173_vm12, %v10825_v45, %v2094_v31  ;;  %vm17641_vm15 = vmmov %vm17638_vm1  ;;  %v17643_v45 = vld [vmem:[#allocation25_spill] sm:$0xff] }
 0x3e2   : > { %2171 = vrot.lane.b32.xlu0 %v1916_v8, %s17181_s28  ;;  %2983 = vrot.lane.b32.xlu1 %v10468_v58, %s17398_s3  ;;  %v1682_v51 = vsel %vm1464_vm3, %v1381_v35, %v1408_v49  ;;  %v1462_v19 = vsel %vm17641_vm15, %v17586_v14, %v10885_v3  ;;  %v1718_v61 = vsel %vm1464_vm3, %v1436_v17, %v1463_v22  ;;  %vm17642_vm1 = vmmov %vm17640_vm8  ;;  %vm17658_vm0 = vcmask 908288  }
 0x3e3   : > { %v1435_v16 = vsel %vm17642_vm1, %v17592_v30, %v10850_v18  ;;  %v17644_v18 = vld [vmem:[#allocation37_spill] sm:$0xff]  ;;  %v2180_v30 = vsel %vm2173_vm12, %v10968_v36, %v11050_v62  ;;  %vm17662_vm8 = vmmov %vm17658_vm0  ;;  %vm17668_vm1 = vcmask 400384  }
 0x3e4   : > { %2434 = vmatpush1.bf16.msra.mxu1 %v1618_v11  ;;  %v11089_v37 = vpop.permute.xlu0 %3392  ;;  %v2082_v10 = vpop.permute.xlu1 %2081  ;;  %v1714_v3 = vsel %vm1464_vm3, %v1435_v16, %v1462_v19  ;;  %vm17664_vm15 = vmmov %vm17658_vm0 }
 0x3e5   : > { %2435 = vmatprep.subr.bf16.mxu1 %v1654_v9 }
 0x3e6   : > { %2771 = vrot.lane.b32.xlu0 %v10163_v29, %s17633_s10  ;;  %2169 = vrot.lane.b32.xlu1 %v1328_v50, %s17181_s28 }
 0x3e8   : > { %2436 = vmatpush1.bf16.msra.mxu1 %v1650_v38  ;;  %v11105_v7 = vpop.permute.xlu0 %3416  ;;  %v2096_v39 = vpop.permute.xlu1 %2095 }
 0x3e9   : > { %2437 = vmatprep.subr.bf16.mxu1 %v1686_v48  ;;  %v2187_v20 = vsel %vm2173_vm12, %v2094_v31, %v2096_v39  ;;  %v2181_v31 = vsel %vm2173_vm12, %v11050_v62, %v2082_v10 }
 0x3ea   : > { %2797 = vrot.lane.b32.xlu0 %v10181_v24, %s17428_s17  ;;  %2769 = vrot.lane.b32.xlu1 %v10137_v60, %s17633_s10 }
 0x3eb   : > { %2400 = vmatprep.subr.bf16.mxu0 %v2187_v20 }
 0x3ec   : > { %2401 = vmatpush1.bf16.msra.mxu0 %v2186_v63  ;;  %2438 = vmatpush1.bf16.msra.mxu1 %v1682_v51  ;;  %v11128_v8 = vpop.permute.xlu0 %3434  ;;  %v11131_v50 = vpop.permute.xlu1 %3394 }
 0x3ed   : > { %2439 = vmatprep.subr.bf16.mxu1 %v1718_v61 }
 0x3ee   : > { %2793 = vrot.lane.b32.xlu0 %v17643_v45, %s17428_s17  ;;  %2795 = vrot.lane.b32.xlu1 %v10143_v0, %s17428_s17 }
 0x3f0   : > { %2440 = vmatpush1.bf16.msra.mxu1 %v1714_v3  ;;  %v11141_v14 = vpop.permute.xlu0 %3438  ;;  %v11145_v11 = vpop.permute.xlu1 %3418 }
 0x3f1   : > { %2441 = vmatprep.subr.bf16.mxu1 %v2181_v31 }
 0x3f2   : > { %2775 = vrot.lane.b32.xlu0 %v10468_v58, %s17633_s10  ;;  %2767 = vrot.lane.b32.xlu1 %v17644_v18, %s17633_s10 }
 0x3f4   : > { %2442 = vmatpush1.bf16.msra.mxu1 %v2180_v30  ;;  %v11154_v12 = vpop.permute.xlu0 %3460  ;;  %v11156_v9 = vpop.permute.xlu1 %3436 }
 0x3f6   : > { %2801 = vrot.lane.b32.xlu0 %v10479_v57, %s17428_s17  ;;  %2773 = vrot.lane.b32.xlu1 %v10403_v52, %s17633_s10 }
 0x3f8   : > { %v2098_v10 = vpop.permute.xlu0 %2097  ;;  %v11162_v21 = vpop.permute.xlu1 %3458 }
 0x3f9   : > { %v2188_v1 = vsel %vm2173_vm12, %v2096_v39, %v2098_v10 }
 0x3fa   : > { %2823 = vrot.lane.b32.xlu0 %v10163_v29, %s17645_s11  ;;  %2799 = vrot.lane.b32.xlu1 %v10413_v47, %s17428_s17 }
 0x3fc   : > { %v2112_v36 = vpop.permute.xlu0 %2111  ;;  %v11168_v62 = vpop.permute.xlu1 %3462 }
 0x3fd   : > { %v2194_v48 = vsel %vm2173_vm12, %v10774_v15, %v2112_v36 }
 0x3fe   : > { %2849 = vrot.lane.b32.xlu0 %v10181_v24, %s17412_s25  ;;  %2821 = vrot.lane.b32.xlu1 %v10137_v60, %s17645_s11 }
 0x400   : > { %v11174_v26 = vpop.permute.xlu0 %3440  ;;  %v2100_v27 = vpop.permute.xlu1 %2099 }
 0x401   : > { %v2189_v40 = vsel %vm2173_vm12, %v2098_v10, %v2100_v27 }
 0x402   : > { %2845 = vrot.lane.b32.xlu0 %v17643_v45, %s17412_s25  ;;  %2847 = vrot.lane.b32.xlu1 %v10143_v0, %s17412_s25 }
 0x403   : > { %2443 = vmatprep.subr.bf16.mxu1 %v2189_v40 }
 0x404   : > { %2444 = vmatpush1.bf16.msra.mxu1 %v2188_v1  ;;  %v11182_v5 = vpop.permute.xlu0 %3464  ;;  %v2114_v38 = vpop.permute.xlu1 %2113 }
 0x405   : > { %v2195_v49 = vsel %vm2173_vm12, %v2112_v36, %v2114_v38 }
 0x406   : > { %2827 = vrot.lane.b32.xlu0 %v10468_v58, %s17645_s11  ;;  %2819 = vrot.lane.b32.xlu1 %v17644_v18, %s17645_s11 }
 0x407   : > { %2402 = vmatprep.subr.bf16.mxu0 %v2195_v49 }
 0x408   : > { %2403 = vmatpush1.bf16.msra.mxu0 %v2194_v48  ;;  %v11191_v22 = vpop.permute.xlu0 %3482  ;;  %v11193_v39 = vpop.permute.xlu1 %3442 }
 0x40a   : > { %2853 = vrot.lane.b32.xlu0 %v10479_v57, %s17412_s25  ;;  %2825 = vrot.lane.b32.xlu1 %v10403_v52, %s17645_s11 }
 0x40c   : > { %v11199_v20 = vpop.permute.xlu0 %3486  ;;  %v11201_v35 = vpop.permute.xlu1 %3466 }
 0x40e   : > { %2875 = vrot.lane.b32.xlu0 %v10163_v29, %s17393_s4  ;;  %2851 = vrot.lane.b32.xlu1 %v10413_v47, %s17412_s25 }
 0x410   : > { %v11207_v15 = vpop.permute.xlu0 %3508  ;;  %v11209_v17 = vpop.permute.xlu1 %3484 }
 0x412   : > { %2901 = vrot.lane.b32.xlu0 %v10181_v24, %s17413_s0  ;;  %2873 = vrot.lane.b32.xlu1 %v10137_v60, %s17393_s4 }
 0x414   : > { %v2116_v63 = vpop.permute.xlu0 %2115  ;;  %v11215_v51 = vpop.permute.xlu1 %3506 }
 0x415   : > { %v2196_v30 = vsel %vm2173_vm12, %v2114_v38, %v2116_v63 }
 0x416   : > { %2897 = vrot.lane.b32.xlu0 %v17643_v45, %s17413_s0  ;;  %2899 = vrot.lane.b32.xlu1 %v10143_v0, %s17413_s0 }
 0x418   : > { %v2130_v19 = vpop.permute.xlu0 %2129  ;;  %v11221_v61 = vpop.permute.xlu1 %3510 }
 0x419   : > { %v2202_v40 = vsel %vm2173_vm12, %v10796_v6, %v2130_v19 }
 0x41a   : > { %2879 = vrot.lane.b32.xlu0 %v10468_v58, %s17393_s4  ;;  %2871 = vrot.lane.b32.xlu1 %v17644_v18, %s17393_s4 }
 0x41c   : > { %v11227_v16 = vpop.permute.xlu0 %2951  ;;  %v2118_v3 = vpop.permute.xlu1 %2117 }
 0x41d   : > { %v2197_v31 = vsel %vm2173_vm12, %v2116_v63, %v2118_v3 }
 0x41e   : > { %2905 = vrot.lane.b32.xlu0 %v10479_v57, %s17413_s0  ;;  %2877 = vrot.lane.b32.xlu1 %v10403_v52, %s17393_s4 }
 0x41f   : > { %2445 = vmatprep.subr.bf16.mxu1 %v2197_v31 }
 0x420   : > { %2446 = vmatpush1.bf16.msra.mxu1 %v2196_v30  ;;  %v11235_v10 = vpop.permute.xlu0 %2955  ;;  %v2132_v36 = vpop.permute.xlu1 %2131 }
 0x421   : > { %v2203_v27 = vsel %vm2173_vm12, %v2130_v19, %v2132_v36 }
 0x422   : > { %2927 = vrot.lane.b32.xlu0 %v10163_v29, %s17395_s21  ;;  %2903 = vrot.lane.b32.xlu1 %v10413_v47, %s17413_s0 }
 0x423   : > { %2404 = vmatprep.subr.bf16.mxu0 %v2203_v27 }
 0x424   : > { %2405 = vmatpush1.bf16.msra.mxu0 %v2202_v40  ;;  %v11244_v1 = vpop.permute.xlu0 %3490  ;;  %v11246_v38 = vpop.permute.xlu1 %2953 }
 0x425   : > { %17646 = vst [vmem:[#allocation71_spill] sm:$0xff] %v11244_v1  ;;  %v17657_v1 = vld [vmem:[#allocation50_spill] sm:$0xff] }
 0x426   : > { %2949 = vrot.lane.b32.xlu0 %v17643_v45, %s17416_s29  ;;  %2925 = vrot.lane.b32.xlu1 %v10137_v60, %s17395_s21 }
 0x428   : > { %v11252_v49 = vpop.permute.xlu0 %3514  ;;  %v11254_v48 = vpop.permute.xlu1 %3488 }
 0x429   : > { %17647 = vst [vmem:[#allocation56_spill] sm:$0xff] %v11252_v49  ;;  %17648 = vst [vmem:[#allocation40_spill] sm:$0xff] %v11254_v48  ;;  %v17661_v48 = vld [vmem:[#allocation16_spill] sm:$0xff] }
 0x42a   : > { %2931 = vrot.lane.b32.xlu0 %v10468_v58, %s17395_s21  ;;  %2923 = vrot.lane.b32.xlu1 %v17644_v18, %s17395_s21 }
 0x42c   : > { %v11260_v6 = vpop.permute.xlu0 %3532  ;;  %v11262_v63 = vpop.permute.xlu1 %3512 }
 0x42d   : > { %17649 = vst [vmem:[#allocation38_spill] sm:$0xff] %v11260_v6 }
 0x42e   : > { %3005 = vrot.lane.b32.xlu0 %v10181_v24, %s17417_s2  ;;  %2929 = vrot.lane.b32.xlu1 %v10403_v52, %s17395_s21 }
 0x430   : > { %v2134_v19 = vpop.permute.xlu0 %2133  ;;  %v11268_v3 = vpop.permute.xlu1 %3530 }
 0x431   : > { %17650 = vst [vmem:[#allocation60_spill] sm:$0xff] %v11268_v3  ;;  %v2204_v53 = vsel %vm2173_vm12, %v2132_v36, %v2134_v19  ;;  %v17659_v3 = vld [vmem:[#allocation85_spill] sm:$0xff] }
 0x432   : > { %3001 = vrot.lane.b32.xlu0 %v17643_v45, %s17417_s2  ;;  %3003 = vrot.lane.b32.xlu1 %v10143_v0, %s17417_s2 }
 0x434   : > { %v2148_v31 = vpop.permute.xlu0 %2147  ;;  %v11274_v30 = vpop.permute.xlu1 %3534 }
 0x435   : > { %17651 = vst [vmem:[#allocation44_spill] sm:$0xff] %v11274_v30  ;;  %v17656_v30 = vld [vmem:[#allocation63_spill] sm:$0xff] }
 0x436   : > { %3009 = vrot.lane.b32.xlu0 %v10479_v57, %s17417_s2  ;;  %2975 = vrot.lane.b32.xlu1 %v17644_v18, %s17398_s3  ;;  %v11330_v49 = vsel %vm17658_vm0, %v17657_v1, %v17656_v30  ;;  %vm17669_vm0 = vmmov %vm17668_vm1 }
 0x438   : > { %v11280_v27 = vpop.permute.xlu0 %2957  ;;  %v2136_v40 = vpop.permute.xlu1 %2135 }
 0x439   : > { %v2205_v2 = vsel %vm2173_vm12, %v2134_v19, %v2136_v40  ;;  %v2210_v40 = vsel %vm2173_vm12, %v10855_v56, %v2148_v31 }
 0x43a   : > { %3031 = vrot.lane.b32.xlu0 %v10163_v29, %s17401_s23  ;;  %3007 = vrot.lane.b32.xlu1 %v10413_v47, %s17417_s2 }
 0x43b   : > { %2447 = vmatprep.subr.bf16.mxu1 %v2205_v2 }
 0x43c   : > { %2448 = vmatpush1.bf16.msra.mxu1 %v2204_v53  ;;  %v11288_v33 = vpop.permute.xlu0 %3536  ;;  %v2150_v54 = vpop.permute.xlu1 %2149 }
 0x43d   : > { %17652 = vst [vmem:[#allocation64_spill] sm:$0xff] %v11288_v33  ;;  %v2211_v42 = vsel %vm2173_vm12, %v2148_v31, %v2150_v54 }
 0x43e   : > { %3057 = vrot.lane.b32.xlu0 %v10181_v24, %s17420_s20  ;;  %3029 = vrot.lane.b32.xlu1 %v10137_v60, %s17401_s23 }
 0x43f   : > { %2406 = vmatprep.subr.bf16.mxu0 %v2211_v42 }
 0x440   : > { %2407 = vmatpush1.bf16.msra.mxu0 %v2210_v40  ;;  %v11297_v2 = vpop.permute.xlu0 %2977  ;;  %v11299_v36 = vpop.permute.xlu1 %2959 }
 0x441   : > { %17653 = vst [vmem:[#allocation47_spill] sm:$0xff] %v11299_v36 }
 0x442   : > { %3053 = vrot.lane.b32.xlu0 %v17643_v45, %s17420_s20  ;;  %3055 = vrot.lane.b32.xlu1 %v10143_v0, %s17420_s20 }
 0x444   : > { %v11305_v53 = vpop.permute.xlu0 %2981  ;;  %v11307_v19 = vpop.permute.xlu1 %3538 }
 0x445   : > { %17654 = vst [vmem:[#allocation41_spill] sm:$0xff] %v11307_v19 }
 0x446   : > { %3035 = vrot.lane.b32.xlu0 %v10468_v58, %s17401_s23  ;;  %3027 = vrot.lane.b32.xlu1 %v17644_v18, %s17401_s23 }
 0x448   : > { %v2154_v42 = vpop.permute.xlu0 %2153  ;;  %v11313_v56 = vpop.permute.xlu1 %2979 }
 0x44a   : > { %3061 = vrot.lane.b32.xlu0 %v10479_v57, %s17420_s20  ;;  %3033 = vrot.lane.b32.xlu1 %v10403_v52, %s17401_s23 }
 0x44c   : > { %v2168_v31 = vpop.permute.xlu0 %2167  ;;  %v2152_v40 = vpop.permute.xlu1 %2151 }
 0x44d   : > { %v2213_v43 = vsel %vm2173_vm12, %v2152_v40, %v2154_v42  ;;  %v2212_v36 = vsel %vm2173_vm12, %v2150_v54, %v2152_v40  ;;  %v17660_v42 = vld [vmem:[#allocation12_spill] sm:$0xff] }
 0x44e   : > { %3083 = vrot.lane.b32.xlu0 %v10163_v29, %s17408_s26  ;;  %3059 = vrot.lane.b32.xlu1 %v10413_v47, %s17420_s20  ;;  %v2760_v54 = vsel %vm1077_vm2, %v17660_v42, %v17659_v3 }
 0x44f   : > { %2449 = vmatprep.subr.bf16.mxu1 %v2213_v43 }
 0x450   : > { %2450 = vmatpush1.bf16.msra.mxu1 %v2212_v36  ;;  %v11325_v33 = vpop.permute.xlu0 %2985  ;;  %v2166_v19 = vpop.permute.xlu1 %2165  ;;  %v11345_v36 = vrot.slane %v11330_v49, 4 }
 0x451   : > { %17655 = vst [vmem:[#allocation68_spill] sm:$0xff] %v11325_v33  ;;  %v2218_v40 = vsel %vm2173_vm12, %v10736_v34, %v2166_v19  ;;  %v2219_v6 = vsel %vm2173_vm12, %v2166_v19, %v2168_v31  ;;  %v2759_v33 = vsel %vm1077_vm2, %v10891_v55, %v17660_v42  ;;  %v3136_v19 = vsel %vm1464_vm3, %v10137_v60, %v2760_v54 }
 0x452   : > { %3109 = vrot.lane.b32.xlu0 %v10181_v24, %s17431_s15  ;;  %3081 = vrot.lane.b32.xlu1 %v10137_v60, %s17408_s26  ;;  %v2285_v43 = vsel %vm1464_vm3, %v2218_v40, 0  ;;  %v11357_v40 = vsel %vm17662_vm8, %v17661_v48, %v17657_v1  ;;  %v3132_v55 = vsel %vm1464_vm3, %v17644_v18, %v2759_v33  ;;  %v2762_v1 = vsel %vm1077_vm2, %v10822_v46, %v10948_v32 }
 0x453   : > { %8549 = vmatprep.subr.msk.bf16.mxu0 %vm1464_vm3, %v2219_v6  ;;  %v11367_v60 = vrot.slane %v11357_v40, 4  ;;  %v2761_v33 = vsel %vm1077_vm2, %v17659_v3, %v10822_v46  ;;  %vm17670_vm8 = vcmask 883712  }
 0x454   : > { %2409 = vmatpush1.bf16.msra.mxu0 %v2285_v43  ;;  %v2172_v34 = vpop.permute.xlu0 %2171  ;;  %v11352_v24 = vpop.permute.xlu1 %2983  ;;  %v3140_v46 = vsel %vm1464_vm3, %v10163_v29, %v2761_v33  ;;  %v11406_v29 = vsel %vm17664_vm15, %v17656_v30, 0  ;;  %vm17671_vm15 = vcmask 875520  }
 0x455   : > { %3940 = vmatprep.subr.bf16.mxu0 %v3136_v19 }
 0x456   : > { %2755 = vrot.lane.b32.xlu0 %v11345_v36, %s17423_s22  ;;  %3107 = vrot.lane.b32.xlu1 %v10143_v0, %s17431_s15 }
 0x457   : > { %2415 = vmatmul.mubr.bf16.vlgmr.msra.gmra.mrb[8].mxu0 %v10750_v44 }
 0x458   : > { %3941 = vmatpush1.bf16.msra.mxu0 %v3132_v55  ;;  %v2772_v6 = vpop.permute.xlu0 %2771  ;;  %v2170_v42 = vpop.permute.xlu1 %2169 }
 0x459   : > { %v2220_v48 = vsel %vm2173_vm12, %v2168_v31, %v2170_v42  ;;  %v2221_v54 = vsel %vm2173_vm12, %v2170_v42, %v2172_v34  ;;  %v11385_v31 = vsel %vm1464_vm3, %v10403_v52, %v2762_v1 }
 0x45a   : > { %3105 = vrot.lane.b32.xlu0 %v17643_v45, %s17431_s15  ;;  %2753 = vrot.lane.b32.xlu1 %v11367_v60, %s17423_s22  ;;  %v2291_v0 = vsel %vm1464_vm3, %v2220_v48, 0 }
 0x45b   : > { %8551 = vmatprep.subr.msk.bf16.mxu1 %vm1464_vm3, %v2221_v54 }
 0x45c   : > { %2452 = vmatpush1.bf16.msra.mxu1 %v2291_v0  ;;  %v2798_v43 = vpop.permute.xlu0 %2797  ;;  %v2770_v34 = vpop.permute.xlu1 %2769 }
 0x45d   : > { %3991 = vmatprep.subr.bf16.mxu1 %v11385_v31  ;;  %v2786_v42 = vsel %vm1104_vm5, %v2770_v34, %v2772_v6 }
 0x45e   : > { %3087 = vrot.lane.b32.xlu0 %v10468_v58, %s17408_s26  ;;  %3079 = vrot.lane.b32.xlu1 %v17644_v18, %s17408_s26 }
 0x45f   : > { %2458 = vmatmul.mubr.bf16.vlgmr.msra.gmra.mrb[8].mxu1 %v10750_v44 }
 0x460   : > { %3992 = vmatpush1.bf16.msra.mxu1 %v3140_v46  ;;  %v2794_v45 = vpop.permute.xlu0 %2793  ;;  %v2796_v3 = vpop.permute.xlu1 %2795 }
 0x461   : > { %v2812_v1 = vsel %vm1131_vm4, %v2796_v3, %v2798_v43  ;;  %v2811_v54 = vsel %vm1131_vm4, %v2794_v45, %v2796_v3 }
 0x462   : > { %3113 = vrot.lane.b32.xlu0 %v10479_v57, %s17431_s15  ;;  %3085 = vrot.lane.b32.xlu1 %v10403_v52, %s17408_s26  ;;  %v3168_v18 = vsel %vm1464_vm3, %v2786_v42, %v2812_v1  ;;  %v11416_v57 = vrot.slane %v11406_v29, 4 }
 0x463   : > { %3942 = vmatprep.subr.bf16.mxu0 %v3168_v18 }
 0x464   : > { %v11402_v44 = vpop.permute.xlu0 %2775  ;;  %v2768_v48 = vpop.permute.xlu1 %2767 }
 0x465   : > { %17663 = vst [vmem:[#allocation51_spill] sm:$0xff] %v11402_v44  ;;  %v2785_v0 = vsel %vm1104_vm5, %v2768_v48, %v2770_v34 }
 0x466   : > { %3396 = vrot.lane.b32.xlu0 %v11357_v40, %s17403_s1  ;;  %3111 = vrot.lane.b32.xlu1 %v10413_v47, %s17431_s15  ;;  %v3164_v52 = vsel %vm1464_vm3, %v2785_v0, %v2811_v54 }
 0x467   : > { %3943 = vmatpush1.bf16.msra.mxu0 %v3164_v52 }
 0x468   : > { %v11418_v33 = vpop.permute.xlu0 %2801  ;;  %v2774_v30 = vpop.permute.xlu1 %2773 }
 0x469   : > { %17665 = vst [vmem:[#allocation31_spill] sm:$0xff] %v11418_v33  ;;  %v2787_v3 = vsel %vm1104_vm5, %v2772_v6, %v2774_v30  ;;  %v2788_v47 = vsel %vm1104_vm5, %v2774_v30, %v11402_v44 }
 0x46a   : > { %3420 = vrot.lane.b32.xlu0 %v11367_v60, %s17424_s19  ;;  %2757 = vrot.lane.b32.xlu1 %v11416_v57, %s17423_s22  ;;  %s17955_s22 = smov 48  }
 0x46c   : > { %v2824_v34 = vpop.permute.xlu0 %2823  ;;  %v2800_v45 = vpop.permute.xlu1 %2799 }
 0x46d   : > { %v2813_v42 = vsel %vm1131_vm4, %v2798_v43, %v2800_v45  ;;  %v2814_v1 = vsel %vm1131_vm4, %v2800_v45, %v11418_v33 }
 0x46e   : > { %3706 = vrot.lane.b32.xlu0 %v3136_v19, %s17181_s28  ;;  %3398 = vrot.lane.b32.xlu1 %v11330_v49, %s17403_s1  ;;  %v3176_v18 = vsel %vm1464_vm3, %v2788_v47, %v2814_v1  ;;  %v3172_v48 = vsel %vm1464_vm3, %v2787_v3, %v2813_v42 }
 0x46f   : > { %3993 = vmatprep.subr.bf16.mxu1 %v3176_v18  ;;  %v2763_v18 = vsel %vm1077_vm2, %v10948_v32, %v10996_v23 }
 0x470   : > { %v2850_v54 = vpop.permute.xlu0 %2849  ;;  %3994 = vmatpush1.bf16.msra.mxu1 %v3172_v48  ;;  %v2822_v6 = vpop.permute.xlu1 %2821 }
 0x471   : > { %v2838_v19 = vsel %vm17124_vm7, %v2822_v6, %v2824_v34 }
 0x472   : > { %3704 = vrot.lane.b32.xlu0 %v3132_v55, %s17181_s28  ;;  %3422 = vrot.lane.b32.xlu1 %v11345_v36, %s17424_s19 }
 0x474   : > { %v2846_v43 = vpop.permute.xlu0 %2845  ;;  %v2848_v0 = vpop.permute.xlu1 %2847 }
 0x475   : > { %v2864_v52 = vsel %vm17123_vm6, %v2848_v0, %v2850_v54  ;;  %v2863_v3 = vsel %vm17123_vm6, %v2846_v43, %v2848_v0  ;;  %v11464_v43 = vsel %vm1464_vm3, %v10468_v58, %v2763_v18 }
 0x476   : > { %3424 = vrot.lane.b32.xlu0 %v11416_v57, %s17424_s19  ;;  %3708 = vrot.lane.b32.xlu1 %v3140_v46, %s17181_s28  ;;  %v3200_v30 = vsel %vm1464_vm3, %v2838_v19, %v2864_v52  ;;  %s17883_s19 = sld [smem:[#allocation109_spill]] }
 0x477   : > { %3944 = vmatprep.subr.bf16.mxu0 %v3200_v30  ;;  %v3427_v30 = vsel %vm1767_vm14, %v11026_v13, %v11067_v59 }
 0x478   : > { %v11444_v45 = vpop.permute.xlu0 %2827  ;;  %v2820_v55 = vpop.permute.xlu1 %2819 }
 0x479   : > { %17666 = vst [vmem:[#allocation43_spill] sm:$0xff] %v11444_v45  ;;  %v2837_v47 = vsel %vm17124_vm7, %v2820_v55, %v2822_v6 }
 0x47a   : > { %3446 = vrot.lane.b32.xlu0 %v11330_v49, %s17405_s24  ;;  %3400 = vrot.lane.b32.xlu1 %v11406_v29, %s17403_s1  ;;  %v3196_v42 = vsel %vm1464_vm3, %v2837_v47, %v2863_v3 }
 0x47b   : > { %3945 = vmatpush1.bf16.msra.mxu0 %v3196_v42  ;;  %v3426_v42 = vsel %vm1767_vm14, %v11053_v41, %v11026_v13 }
 0x47c   : > { %v11453_v46 = vpop.permute.xlu0 %2853  ;;  %v2826_v1 = vpop.permute.xlu1 %2825 }
 0x47d   : > { %17667 = vst [vmem:[#allocation72_spill] sm:$0xff] %v11453_v46  ;;  %v2839_v0 = vsel %vm17124_vm7, %v2824_v34, %v2826_v1  ;;  %v2840_v19 = vsel %vm17124_vm7, %v2826_v1, %v11444_v45  ;;  %v3402_v1 = vsel %vm17669_vm0, %v10966_v4, %v11029_v25  ;;  %vm17674_vm0 = vmmov %vm17670_vm8  ;;  %vm17681_vm7 = vcmask 318464  }
 0x47e   : > { %3470 = vrot.lane.b32.xlu0 %v11345_v36, %s17427_s18  ;;  %3444 = vrot.lane.b32.xlu1 %v11357_v40, %s17405_s24 }
 0x480   : > { %v2876_v48 = vpop.permute.xlu0 %2875  ;;  %v2852_v6 = vpop.permute.xlu1 %2851 }
 0x481   : > { %v2865_v52 = vsel %vm17123_vm6, %v2850_v54, %v2852_v6  ;;  %v2866_v32 = vsel %vm17123_vm6, %v2852_v6, %v11453_v46  ;;  %v3403_v54 = vsel %vm17668_vm1, %v11029_v25, %v10993_v28  ;;  %vm17673_vm1 = vmmov %vm17671_vm15 }
 0x482   : > { %3712 = vrot.lane.b32.xlu0 %v11464_v43, %s17181_s28  ;;  %3468 = vrot.lane.b32.xlu1 %v11367_v60, %s17427_s18  ;;  %v3208_v58 = vsel %vm1464_vm3, %v2840_v19, %v2866_v32  ;;  %v3204_v34 = vsel %vm1464_vm3, %v2839_v0, %v2865_v52  ;;  %v3566_v47 = vsel %vm1464_vm3, %v3403_v54, %v3427_v30 }
 0x483   : > { %3995 = vmatprep.subr.bf16.mxu1 %v3208_v58  ;;  %v3563_v52 = vsel %vm1464_vm3, %v3402_v1, %v3426_v42  ;;  %v3560_v58 = vsel %vm1464_vm3, %v10966_v4, %v11053_v41  ;;  %v3428_v42 = vsel %vm1767_vm14, %v11067_v59, %v11105_v7 }
 0x484   : > { %v2902_v55 = vpop.permute.xlu0 %2901  ;;  %3996 = vmatpush1.bf16.msra.mxu1 %v3204_v34  ;;  %v2874_v3 = vpop.permute.xlu1 %2873 }
 0x485   : > { %v2890_v0 = vsel %vm17670_vm8, %v2874_v3, %v2876_v48  ;;  %vm17676_vm8 = vcmask 400384  }
 0x486   : > { %3726 = vrot.lane.b32.xlu0 %v3566_v47, %s17181_s28  ;;  %3710 = vrot.lane.b32.xlu1 %v11385_v31, %s17181_s28  ;;  %v3404_v4 = vsel %vm17676_vm8, %v10993_v28, %v11089_v37  ;;  %vm17682_vm8 = vcmask 384000  }
 0x487   : > { %v3569_v1 = vsel %vm1464_vm3, %v3404_v4, %v3428_v42 }
 0x488   : > { %v2898_v18 = vpop.permute.xlu0 %2897  ;;  %v2900_v6 = vpop.permute.xlu1 %2899 }
 0x489   : > { %v2916_v19 = vsel %vm17671_vm15, %v2900_v6, %v2902_v55  ;;  %v2915_v25 = vsel %vm17673_vm1, %v2898_v18, %v2900_v6  ;;  %vm17677_vm15 = vmmov %vm17674_vm0 }
 0x48a   : > { %3448 = vrot.lane.b32.xlu0 %v11406_v29, %s17405_s24  ;;  %3724 = vrot.lane.b32.xlu1 %v3563_v52, %s17181_s28  ;;  %v3232_v13 = vsel %vm1464_vm3, %v2890_v0, %v2916_v19  ;;  %vm17678_vm1 = vmmov %vm17674_vm0  ;;  %v3474_v19 = vsel %vm17681_vm7, %v11162_v21, %v11154_v12  ;;  %vm17684_vm7 = vcmask 400384  }
 0x48b   : > { %3946 = vmatprep.subr.bf16.mxu0 %v3232_v13 }
 0x48c   : > { %v11501_v31 = vpop.permute.xlu0 %2879  ;;  %v2872_v32 = vpop.permute.xlu1 %2871 }
 0x48d   : > { %17672 = vst [vmem:[#allocation77_spill] sm:$0xff] %v11501_v31  ;;  %v2889_v30 = vsel %vm17674_vm0, %v2872_v32, %v2874_v3  ;;  %vm17679_vm0 = vcmask 875520   ;;  %v3429_v32 = vsel %vm1767_vm14, %v11105_v7, %v11145_v11  ;;  %v3405_v7 = vsel %vm17684_vm7, %v11089_v37, %v11131_v50 }
 0x48e   : > { %3492 = vrot.lane.b32.xlu0 %v11357_v40, %s17407_s27  ;;  %3722 = vrot.lane.b32.xlu1 %v3560_v58, %s17181_s28  ;;  %v3228_v34 = vsel %vm1464_vm3, %v2889_v30, %v2915_v25  ;;  %vm17680_vm6 = vmmov %vm17679_vm0  ;;  %v11548_v25 = vsel %vm1293_vm11, %v11227_v16, %v11246_v38  ;;  %v3572_v4 = vsel %vm1464_vm3, %v3405_v7, %v3429_v32  ;;  %vm17691_vm7 = vcmask 220160  }
 0x48f   : > { %3947 = vmatpush1.bf16.msra.mxu0 %v3228_v34 }
 0x490   : > { %v11512_v54 = vpop.permute.xlu0 %2905  ;;  %v2878_v47 = vpop.permute.xlu1 %2877 }
 0x491   : > { %17675 = vst [vmem:[#allocation19_spill] sm:$0xff] %v11512_v54  ;;  %v2891_v18 = vsel %vm17677_vm15, %v2876_v48, %v2878_v47  ;;  %v2892_v6 = vsel %vm17678_vm1, %v2878_v47, %v11501_v31  ;;  %vm17686_vm15 = vcmask 318464  }
 0x492   : > { %3516 = vrot.lane.b32.xlu0 %v11367_v60, %s17429_s16  ;;  %3472 = vrot.lane.b32.xlu1 %v11416_v57, %s17427_s18  ;;  %s17933_s18 = smov 111  }
 0x494   : > { %v2928_v41 = vpop.permute.xlu0 %2927  ;;  %v2904_v3 = vpop.permute.xlu1 %2903 }
 0x495   : > { %v2917_v59 = vsel %vm17679_vm0, %v2902_v55, %v2904_v3  ;;  %v2918_v0 = vsel %vm17680_vm6, %v2904_v3, %v11512_v54  ;;  %v3450_v55 = vsel %vm17682_vm8, %v11128_v8, %v11156_v9  ;;  %vm17683_vm6 = vcmask 867328   ;;  %vm17688_vm0 = vmmov %vm17682_vm8 }
 0x496   : > { %3728 = vrot.lane.b32.xlu0 %v3569_v1, %s17181_s28  ;;  %3494 = vrot.lane.b32.xlu1 %v11330_v49, %s17407_s27  ;;  %v3240_v28 = vsel %vm1464_vm3, %v2892_v6, %v2918_v0  ;;  %v3236_v48 = vsel %vm1464_vm3, %v2891_v18, %v2917_v59  ;;  %v3590_v58 = vsel %vm1464_vm3, %v3450_v55, %v3474_v19  ;;  %vm17687_vm1 = vmmov %vm17683_vm6 }
 0x497   : > { %3997 = vmatprep.subr.bf16.mxu1 %v3240_v28  ;;  %v3475_v3 = vsel %vm17686_vm15, %v11154_v12, %v11168_v62  ;;  %v3587_v6 = vsel %vm1464_vm3, %v11128_v8, %v11162_v21  ;;  %v3451_v59 = vsel %vm17688_vm0, %v11156_v9, %v11141_v14  ;;  %v11582_v28 = vsel %vm1293_vm11, %v11246_v38, %v11235_v10  ;;  %vm17689_vm8 = vmmov %vm17687_vm1 }
 0x498   : > { %v2950_v52 = vpop.permute.xlu0 %2949  ;;  %3998 = vmatpush1.bf16.msra.mxu1 %v3236_v48  ;;  %v2926_v13 = vpop.permute.xlu1 %2925  ;;  %v3593_v19 = vsel %vm1464_vm3, %v3451_v59, %v3475_v3  ;;  %v11587_v8 = vsel %vm1293_vm11, %v11235_v10, %v11280_v27  ;;  %vm17692_vm15 = vcmask 211968  }
 0x499   : > { %v2942_v30 = vsel %vm17683_vm6, %v2926_v13, %v2928_v41  ;;  %v2967_v1 = vsel %vm1293_vm11, %v2950_v52, %v11227_v16  ;;  %vm17690_vm6 = vmmov %vm17687_vm1 }
 0x49a   : > { %3742 = vrot.lane.b32.xlu0 %v3590_v58, %s17181_s28  ;;  %3518 = vrot.lane.b32.xlu1 %v11345_v36, %s17429_s16  ;;  %v3264_v34 = vsel %vm1464_vm3, %v2942_v30, %v11548_v25  ;;  %vm17695_vm0 = vmmov %vm17692_vm15 }
 0x49b   : > { %3948 = vmatprep.subr.bf16.mxu0 %v3264_v34 }
 0x49c   : > { %v11560_v47 = vpop.permute.xlu0 %2931  ;;  %v2924_v42 = vpop.permute.xlu1 %2923 }
 0x49d   : > { %17685 = vst [vmem:[#allocation20_spill] sm:$0xff] %v11560_v47  ;;  %v2941_v18 = vsel %vm17687_vm1, %v2924_v42, %v2926_v13  ;;  %vm17694_vm1 = vcmask 318464  }
 0x49e   : > { %3740 = vrot.lane.b32.xlu0 %v3587_v6, %s17181_s28  ;;  %3730 = vrot.lane.b32.xlu1 %v3572_v4, %s17181_s28  ;;  %v3260_v37 = vsel %vm1464_vm3, %v2941_v18, %v2967_v1  ;;  %v3477_v58 = vsel %vm17694_vm1, %v11182_v5, %v11201_v35 }
 0x49f   : > { %3949 = vmatpush1.bf16.msra.mxu0 %v3260_v37 }
 0x4a0   : > { %v3006_v12 = vpop.permute.xlu0 %3005  ;;  %v2930_v0 = vpop.permute.xlu1 %2929 }
 0x4a1   : > { %v2943_v21 = vsel %vm17689_vm8, %v2928_v41, %v2930_v0  ;;  %v2944_v9 = vsel %vm17690_vm6, %v2930_v0, %v11560_v47  ;;  %v11602_v41 = vsel %vm17691_vm7, %v11297_v2, %v11313_v56  ;;  %vm17696_vm8 = vmmov %vm17691_vm7  ;;  %vm17697_vm6 = vcmask 384000  }
 0x4a2   : > { %2963 = vrot.lane.b32.xlu0 %v11345_v36, %s17416_s29  ;;  %3744 = vrot.lane.b32.xlu1 %v3593_v19, %s17181_s28  ;;  %v3272_v48 = vsel %vm1464_vm3, %v2944_v9, %v11587_v8  ;;  %v3268_v38 = vsel %vm1464_vm3, %v2943_v21, %v11582_v28  ;;  %v3453_v4 = vsel %vm17697_vm6, %v11174_v26, %v11193_v39  ;;  %vm17698_vm7 = vmmov %vm17694_vm1 }
 0x4a3   : > { %3999 = vmatprep.subr.bf16.mxu1 %v3272_v48  ;;  %v3476_v3 = vsel %vm17698_vm7, %v11168_v62, %v11182_v5  ;;  %v3599_v6 = vsel %vm1464_vm3, %v3453_v4, %v3477_v58  ;;  %vm17700_vm1 = vmmov %vm17696_vm8  ;;  %v3523_v62 = vsel %vm1875_vm13, %v11207_v15, %v11221_v61  ;;  %vm17702_vm7 = vcmask 146432  }
 0x4a4   : > { %v3002_v55 = vpop.permute.xlu0 %3001  ;;  %4000 = vmatpush1.bf16.msra.mxu1 %v3268_v38  ;;  %v3004_v10 = vpop.permute.xlu1 %3003  ;;  %v11639_v59 = vsel %vm17700_vm1, %v11305_v53, %v11352_v24 }
 0x4a5   : > { %v3020_v52 = vsel %vm17692_vm15, %v3004_v10, %v3006_v12  ;;  %v3019_v34 = vsel %vm17695_vm0, %v3002_v55, %v3004_v10  ;;  %vm17699_vm15 = vmmov %vm17696_vm8  ;;  %v3522_v55 = vsel %vm1875_vm13, %v11215_v51, %v11207_v15  ;;  %v3524_v15 = vsel %vm1875_vm13, %v11221_v61, %v11262_v63 }
 0x4a6   : > { %3520 = vrot.lane.b32.xlu0 %v11416_v57, %s17429_s16  ;;  %2961 = vrot.lane.b32.xlu1 %v11367_v60, %s17416_s29  ;;  %v3296_v13 = vsel %vm1464_vm3, %v11602_v41, %v3020_v52  ;;  %v11634_v37 = vsel %vm17699_vm15, %v11313_v56, %v11305_v53  ;;  %v3452_v56 = vsel %vm17697_vm6, %v11141_v14, %v11174_v26  ;;  %vm17703_vm15 = vcmask 138240   ;;  %s18045_s16 = smov 7  }
 0x4a7   : > { %3950 = vmatprep.subr.bf16.mxu0 %v3296_v13  ;;  %v3596_v38 = vsel %vm1464_vm3, %v3452_v56, %v3476_v3  ;;  %v3498_v14 = vsel %vm1848_vm10, %v11191_v22, %v11209_v17  ;;  %vm17706_vm1 = vmmov %vm17703_vm15 }
 0x4a8   : > { %v11611_v32 = vpop.permute.xlu0 %3009  ;;  %v2976_v30 = vpop.permute.xlu1 %2975 }
 0x4a9   : > { %17693 = vst [vmem:[#allocation39_spill] sm:$0xff] %v11611_v32  ;;  %v2993_v7 = vsel %vm17696_vm8, %v2976_v30, %v11297_v2  ;;  %vm17701_vm8 = vmmov %vm17695_vm0  ;;  %v3617_v30 = vsel %vm1464_vm3, %v3498_v14, %v3522_v55 }
 0x4aa   : > { %3542 = vrot.lane.b32.xlu0 %v11330_v49, %s17414_s30  ;;  %3496 = vrot.lane.b32.xlu1 %v11406_v29, %s17407_s27  ;;  %v3292_v42 = vsel %vm1464_vm3, %v2993_v7, %v3019_v34 }
 0x4ab   : > { %3951 = vmatpush1.bf16.msra.mxu0 %v3292_v42 }
 0x4ac   : > { %v3032_v1 = vpop.permute.xlu0 %3031  ;;  %v3008_v18 = vpop.permute.xlu1 %3007 }
 0x4ad   : > { %v3021_v0 = vsel %vm17695_vm0, %v3006_v12, %v3008_v18  ;;  %v3022_v19 = vsel %vm17701_vm8, %v3008_v18, %v11611_v32  ;;  %v3499_v12 = vsel %vm1848_vm10, %v11209_v17, %v11199_v20  ;;  %v17704_v17 = vld [vmem:[#allocation40_spill] sm:$0xff]  ;;  %vm17707_vm0 = vmmov %vm17702_vm7  ;;  %v3614_v18 = vsel %vm1464_vm3, %v11191_v22, %v11215_v51  ;;  %v17712_v51 = vld [vmem:[#allocation71_spill] sm:$0xff] }
 0x4ae   : > { %3748 = vrot.lane.b32.xlu0 %v3599_v6, %s17181_s28  ;;  %3540 = vrot.lane.b32.xlu1 %v11357_v40, %s17414_s30  ;;  %v3304_v5 = vsel %vm1464_vm3, %v11639_v59, %v3022_v19  ;;  %v3300_v53 = vsel %vm1464_vm3, %v11634_v37, %v3021_v0  ;;  %v3620_v48 = vsel %vm1464_vm3, %v3499_v12, %v3523_v62  ;;  %v17708_v6 = vld [vmem:[#allocation38_spill] sm:$0xff]  ;;  %v17709_v0 = vld [vmem:[#allocation60_spill] sm:$0xff]  ;;  %vm17713_vm8 = vmmov %vm17707_vm0 }
 0x4af   : > { %4001 = vmatprep.subr.bf16.mxu1 %v3304_v5  ;;  %v3500_v34 = vsel %vm1848_vm10, %v11199_v20, %v17704_v17  ;;  %v3546_v19 = vsel %vm1902_vm9, %v17709_v0, %v17708_v6  ;;  %v3501_v12 = vsel %vm1848_vm10, %v17704_v17, %v17712_v51  ;;  %vm17714_vm6 = vmmov %vm17707_vm0  ;;  %v17719_v17 = vld [vmem:[#allocation64_spill] sm:$0xff] }
 0x4b0   : > { %v3058_v21 = vpop.permute.xlu0 %3057  ;;  %4002 = vmatpush1.bf16.msra.mxu1 %v3300_v53  ;;  %v3030_v9 = vpop.permute.xlu1 %3029  ;;  %v3623_v61 = vsel %vm1464_vm3, %v3500_v34, %v3524_v15  ;;  %v17711_v53 = vld [vmem:[#allocation56_spill] sm:$0xff]  ;;  %v3643_v22 = vsel %vm1464_vm3, %v3546_v19, %v11548_v25 }
 0x4b1   : > { %v3046_v52 = vsel %vm17702_vm7, %v3030_v9, %v3032_v1  ;;  %v3525_v56 = vsel %vm1875_vm13, %v11262_v63, %v17711_v53  ;;  %vm17715_vm7 = vmmov %vm17706_vm1 }
 0x4b2   : > { %3762 = vrot.lane.b32.xlu0 %v3620_v48, %s17181_s28  ;;  %3746 = vrot.lane.b32.xlu1 %v3596_v38, %s17181_s28  ;;  %v3626_v38 = vsel %vm1464_vm3, %v3501_v12, %v3525_v56 }
 0x4b4   : > { %v3054_v26 = vpop.permute.xlu0 %3053  ;;  %v3056_v10 = vpop.permute.xlu1 %3055 }
 0x4b5   : > { %v3072_v13 = vsel %vm17703_vm15, %v3056_v10, %v3058_v21  ;;  %v3071_v4 = vsel %vm17706_vm1, %v3054_v26, %v3056_v10  ;;  %vm17716_vm15 = vmmov %vm17706_vm1  ;;  %v17717_v26 = vld [vmem:[#allocation44_spill] sm:$0xff]  ;;  %vm17722_vm1 = vcmask 130048  }
 0x4b6   : > { %2965 = vrot.lane.b32.xlu0 %v11416_v57, %s17416_s29  ;;  %3760 = vrot.lane.b32.xlu1 %v3617_v30, %s17181_s28  ;;  %v3328_v58 = vsel %vm1464_vm3, %v3046_v52, %v3072_v13  ;;  %v3547_v10 = vsel %vm1902_vm9, %v17708_v6, %v17717_v26  ;;  %v3641_v30 = vsel %vm1464_vm3, %v17709_v0, %v11227_v16 }
 0x4b7   : > { %3952 = vmatprep.subr.bf16.mxu0 %v3328_v58  ;;  %v3645_v15 = vsel %vm1464_vm3, %v3547_v10, %v11582_v28  ;;  %v17718_v58 = vld [vmem:[#allocation41_spill] sm:$0xff]  ;;  %v3548_v6 = vsel %vm1902_vm9, %v17717_v26, %v17719_v17 }
 0x4b8   : > { %v11683_v7 = vpop.permute.xlu0 %3035  ;;  %v3028_v42 = vpop.permute.xlu1 %3027  ;;  %v3549_v34 = vsel %vm1902_vm9, %v17719_v17, %v17718_v58  ;;  %v3647_v56 = vsel %vm1464_vm3, %v3548_v6, %v11587_v8 }
 0x4b9   : > { %17705 = vst [vmem:[#allocation75_spill] sm:$0xff] %v11683_v7  ;;  %v3045_v3 = vsel %vm17707_vm0, %v3028_v42, %v3030_v9  ;;  %v17720_v42 = vld [vmem:[#allocation47_spill] sm:$0xff]  ;;  %vm17723_vm0 = vcmask 64512  }
 0x4ba   : > { %3764 = vrot.lane.b32.xlu0 %v3623_v61, %s17181_s28  ;;  %3758 = vrot.lane.b32.xlu1 %v3614_v18, %s17181_s28  ;;  %v3324_v20 = vsel %vm1464_vm3, %v3045_v3, %v3071_v4  ;;  %v11738_v4 = vsel %vm1293_vm11, %v11280_v27, %v17720_v42 }
 0x4bb   : > { %3953 = vmatpush1.bf16.msra.mxu0 %v3324_v20  ;;  %17721 = vst [vmem:[#allocation29_spill] sm:$0xff] %v11738_v4  ;;  %v3649_v18 = vsel %vm1464_vm3, %v3549_v34, %v11738_v4  ;;  %v3901_v20 = vld [vmem:[%s17724_s7 + $0x8] sm:$0xff] }
 0x4bc   : > { %v11697_v62 = vpop.permute.xlu0 %3061  ;;  %v3034_v5 = vpop.permute.xlu1 %3033 }
 0x4bd   : > { %17710 = vst [vmem:[#allocation59_spill] sm:$0xff] %v11697_v62  ;;  %v3047_v55 = vsel %vm17713_vm8, %v3032_v1, %v3034_v5  ;;  %v3048_v63 = vsel %vm17714_vm6, %v3034_v5, %v11683_v7  ;;  %v3903_v5 = vld [vmem:[%s17724_s7 + $0x18] sm:$0xff]  ;;  %vm17726_vm8 = vcmask 719872  }
 0x4be   : > { %3778 = vrot.lane.b32.xlu0 %v3643_v22, %s17181_s28  ;;  %3544 = vrot.lane.b32.xlu1 %v11406_v29, %s17414_s30  ;;  %v11763_v22 = vpack.c.bf16 %v3903_v5, %v3901_v20  ;;  %vm17727_vm6 = vmmov %vm17726_vm8  ;;  %v2469_v20 = vlaneseq }
 0x4c0   : > { %v3084_v9 = vpop.permute.xlu0 %3083  ;;  %v3060_v48 = vpop.permute.xlu1 %3059  ;;  %17725 = vst [vmem:[#allocation26_spill] sm:$0xff] %v11763_v22  ;;  %8554 = vmatprep.mubr.msk.bf16.mxu0 %vm17726_vm8, %v11763_v22  ;;  %8557 = vmatprep.mubr.msk.bf16.mxu1 %vm17727_vm6, %v11763_v22 }
 0x4c1   : > { %v3073_v25 = vsel %vm17715_vm7, %v3058_v21, %v3060_v48  ;;  %v3074_v14 = vsel %vm17716_vm15, %v3060_v48, %v11697_v62  ;;  %vm17729_vm7 = vmmov %vm17723_vm0 }
 0x4c2   : > { %2987 = vrot.lane.b32.xlu0 %v11357_v40, %s17398_s3  ;;  %3766 = vrot.lane.b32.xlu1 %v3626_v38, %s17181_s28  ;;  %v3336_v52 = vsel %vm1464_vm3, %v3048_v63, %v3074_v14  ;;  %v3332_v1 = vsel %vm1464_vm3, %v3047_v55, %v3073_v25  ;;  %vm17730_vm15 = vmmov %vm17722_vm1  ;;  %v17732_v25 = vld [vmem:[#allocation68_spill] sm:$0xff] }
 0x4c3   : > { %4003 = vmatprep.subr.bf16.mxu1 %v3336_v52  ;;  %vm17737_vm6 = vmmov %vm17729_vm7 }
 0x4c4   : > { %v3110_v13 = vpop.permute.xlu0 %3109  ;;  %4004 = vmatpush1.bf16.msra.mxu1 %v3332_v1  ;;  %v3082_v21 = vpop.permute.xlu1 %3081 }
 0x4c5   : > { %v3098_v16 = vsel %vm17722_vm1, %v3082_v21, %v3084_v9  ;;  %vm17733_vm1 = vcmask 220160  }
 0x4c6   : > { %3776 = vrot.lane.b32.xlu0 %v3641_v30, %s17181_s28  ;;  %3780 = vrot.lane.b32.xlu1 %v3645_v15, %s17181_s28  ;;  %v11786_v14 = vsel %vm17733_vm1, %v11352_v24, %v17732_v25 }
 0x4c7   : > { %17734 = vst [vmem:[#allocation14_spill] sm:$0xff] %v11786_v14 }
 0x4c8   : > { %v11740_v3 = vpop.permute.xlu0 %2755  ;;  %v3108_v61 = vpop.permute.xlu1 %3107 }
 0x4c9   : > { %v3124_v28 = vsel %vm17723_vm0, %v3108_v61, %v3110_v13  ;;  %vm17735_vm0 = vmmov %vm17730_vm15 }
 0x4ca   : > { %3784 = vrot.lane.b32.xlu0 %v3649_v18, %s17181_s28  ;;  %2989 = vrot.lane.b32.xlu1 %v11330_v49, %s17398_s3  ;;  %v3360_v27 = vsel %vm1464_vm3, %v3098_v16, %v3124_v28  ;;  %vm17736_vm8 = vmmov %vm17735_vm0 }
 0x4cb   : > { %3954 = vmatprep.subr.bf16.mxu0 %v3360_v27 }
 0x4cc   : > { %v3106_v0 = vpop.permute.xlu0 %3105  ;;  %v11753_v19 = vpop.permute.xlu1 %2753 }
 0x4cd   : > { %v3123_v38 = vsel %vm17729_vm7, %v3106_v0, %v3108_v61  ;;  %vm17738_vm7 = vmmov %vm17737_vm6 }
 0x4ce   : > { %3796 = vrot.lane.b32.xlu0 %v11602_v41, %s17181_s28  ;;  %3782 = vrot.lane.b32.xlu1 %v3647_v56, %s17181_s28 }
 0x4d0   : > { %v11772_v12 = vpop.permute.xlu0 %3087  ;;  %v3080_v48 = vpop.permute.xlu1 %3079 }
 0x4d1   : > { %17728 = vst [vmem:[#allocation78_spill] sm:$0xff] %v11772_v12  ;;  %v3097_v8 = vsel %vm17730_vm15, %v3080_v48, %v3082_v21  ;;  %v11846_v48 = vshrl.u32 %v2469_v20, 7  ;;  %vm17772_vm15 = vcmask 400384  }
 0x4d2   : > { %2991 = vrot.lane.b32.xlu0 %v11406_v29, %s17398_s3  ;;  %3794 = vrot.lane.b32.xlu1 %v11297_v2, %s17181_s28  ;;  %v3356_v41 = vsel %vm1464_vm3, %v3097_v8, %v3123_v38  ;;  %v11851_v38 = vld [vmem:[%s17741_s12] sm:$0xff]  ;;  %v11853_v8 = vpop.f32.mrb[4].mxu0  ;;  %vm17774_vm1 = vmmov %vm17772_vm15  ;;  %s17907_s12 = sld [smem:[#allocation108_spill]] }
 0x4d3   : > { %3955 = vmatpush1.bf16.msra.mxu0 %v3356_v41  ;;  %17742 = vst [vmem:[#allocation46_spill] sm:$0xff] %v11853_v8  ;;  %v11855_v41 = vpop.f32.mrb[4].mxu1  ;;  %v2483_v20 = vsub.s32 3, %v11846_v48 }
 0x4d4   : > { %v11781_v55 = vpop.permute.xlu0 %3113  ;;  %v3086_v63 = vpop.permute.xlu1 %3085  ;;  %17743 = vst [vmem:[#allocation80_spill] sm:$0xff] %v11855_v41 }
 0x4d5   : > { %17731 = vst [vmem:[#allocation84_spill] sm:$0xff] %v11781_v55  ;;  %v3099_v10 = vsel %vm17735_vm0, %v3084_v9, %v3086_v63  ;;  %v3100_v52 = vsel %vm17736_vm8, %v3086_v63, %v11772_v12  ;;  %v2471_v63 = vsub.s32 0, %v11846_v48  ;;  %v11908_v47 = vrot.slane %v11851_v38, %v2483_v20  ;;  %vm17775_vm0 = vmmov %vm17774_vm1 }
 0x4d6   : > { %3802 = vrot.lane.b32.xlu0 %v11786_v14, %s17181_s28  ;;  %3798 = vrot.lane.b32.xlu1 %v11634_v37, %s17181_s28  ;;  %vm17777_vm8 = vmmov %vm17775_vm0 }
 0x4d7   : > { %17754 = vst [vmem:[#allocation34_spill] sm:$0xff] %v11908_v47 }
 0x4d8   : > { %v11792_v26 = vpop.permute.xlu0 %3396  ;;  %v3112_v2 = vpop.permute.xlu1 %3111 }
 0x4d9   : > { %v3125_v1 = vsel %vm17737_vm6, %v3110_v13, %v3112_v2  ;;  %v3126_v24 = vsel %vm17738_vm7, %v3112_v2, %v11781_v55  ;;  %v17739_v13 = vld [vmem:[#allocation27_spill] sm:$0xff]  ;;  %v11862_v2 = vpop.f32.mrb[5].mxu0  ;;  %vm17778_vm6 = vcmask 318464   ;;  %vm17779_vm7 = vcmask 384000  }
 0x4da   : > { %2779 = vrot.lane.b32.xlu0 %v11357_v40, %s17633_s10  ;;  %3800 = vrot.lane.b32.xlu1 %v11639_v59, %s17181_s28  ;;  %v3368_v37 = vsel %vm1464_vm3, %v3100_v52, %v3126_v24  ;;  %v3364_v21 = vsel %vm1464_vm3, %v3099_v10, %v3125_v1  ;;  %v17740_v59 = vld [vmem:[#allocation48_spill] sm:$0xff]  ;;  %17744 = vst [vmem:[#allocation69_spill] sm:$0xff] %v11862_v2  ;;  %v2475_v10 = vsub.s32 1, %v11846_v48  ;;  %v2479_v52 = vsub.s32 2, %v11846_v48  ;;  %v11866_v1 = vpop.f32.mrb[6].mxu0 }
 0x4db   : > { %4005 = vmatprep.subr.bf16.mxu1 %v3368_v37  ;;  %17745 = vst [vmem:[#allocation52_spill] sm:$0xff] %v11866_v1 }
 0x4dc   : > { %v11806_v9 = vpop.permute.xlu0 %3420  ;;  %4006 = vmatpush1.bf16.msra.mxu1 %v3364_v21  ;;  %v11808_v30 = vpop.permute.xlu1 %2757  ;;  %v11873_v21 = vrot.slane %v11851_v38, %v2471_v63 }
 0x4de   : > { %2805 = vrot.lane.b32.xlu0 %v11367_v60, %s17428_s17  ;;  %2777 = vrot.lane.b32.xlu1 %v17739_v13, %s17633_s10  ;;  %17747 = vst [vmem:[#allocation79_spill] sm:$0xff] %v11873_v21  ;;  %v2509_v63 = vmul.f32 %v11873_v21, %v11853_v8  ;;  %v2517_v55 = vmul.f32 %v11873_v21, %v11866_v1 }
 0x4e0   : > { %v3707_v15 = vpop.permute.xlu0 %3706  ;;  %v11814_v17 = vpop.permute.xlu1 %3398  ;;  %v2543_v4 = vmul.f32 %v2509_v63, %v11853_v8  ;;  %v2551_v20 = vmul.f32 %v2517_v55, %v11866_v1 }
 0x4e2   : > { %2783 = vrot.lane.b32.xlu0 %v11406_v29, %s17633_s10  ;;  %2803 = vrot.lane.b32.xlu1 %v17740_v59, %s17428_s17 }
 0x4e4   : > { %v3705_v34 = vpop.permute.xlu0 %3704  ;;  %v11820_v61 = vpop.permute.xlu1 %3422 }
 0x4e5   : > { %v3812_v6 = vsel %vm2173_vm12, %v3705_v34, %v3707_v15  ;;  %v11879_v34 = vrot.slane %v11851_v38, %v2479_v52 }
 0x4e6   : > { %2809 = vrot.lane.b32.xlu0 %v11416_v57, %s17428_s17  ;;  %2781 = vrot.lane.b32.xlu1 %v11330_v49, %s17633_s10 }
 0x4e7   : > { %17749 = vst [vmem:[#allocation73_spill] sm:$0xff] %v11879_v34  ;;  %v2511_v62 = vmul.f32 %v11879_v34, %v11855_v41 }
 0x4e8   : > { %v11826_v16 = vpop.permute.xlu0 %3424  ;;  %v3709_v28 = vpop.permute.xlu1 %3708 }
 0x4e9   : > { %v3813_v18 = vsel %vm2173_vm12, %v3707_v15, %v3709_v28  ;;  %v11876_v15 = vrot.slane %v11851_v38, %v2475_v10 }
 0x4ea   : > { %2831 = vrot.lane.b32.xlu0 %v11357_v40, %s17645_s11  ;;  %2807 = vrot.lane.b32.xlu1 %v11345_v36, %s17428_s17 }
 0x4eb   : > { %3956 = vmatprep.subr.bf16.mxu0 %v3813_v18  ;;  %17748 = vst [vmem:[#allocation83_spill] sm:$0xff] %v11876_v15  ;;  %v11881_v18 = vpop.f32.mrb[7].mxu0  ;;  %v2510_v52 = vmul.f32 %v11876_v15, %v11862_v2 }
 0x4ec   : > { %3957 = vmatpush1.bf16.msra.mxu0 %v3812_v6  ;;  %v11834_v27 = vpop.permute.xlu0 %3446  ;;  %v11836_v0 = vpop.permute.xlu1 %3400  ;;  %17750 = vst [vmem:[#allocation55_spill] sm:$0xff] %v11881_v18  ;;  %v2518_v12 = vmul.f32 %v11876_v15, %v11881_v18 }
 0x4ed   : > { %v11883_v6 = vpop.f32.mrb[5].mxu1  ;;  %v2525_v31 = vadd.f32 %v2510_v52, %v2509_v63  ;;  %v2544_v46 = vmul.f32 %v2510_v52, %v11862_v2 }
 0x4ee   : > { %2857 = vrot.lane.b32.xlu0 %v11367_v60, %s17412_s25  ;;  %2829 = vrot.lane.b32.xlu1 %v17739_v13, %s17645_s11  ;;  %17751 = vst [vmem:[#allocation58_spill] sm:$0xff] %v11883_v6  ;;  %v11892_v10 = vpop.f32.mrb[6].mxu1  ;;  %v2534_v8 = vadd.f32 %v2518_v12, %v2517_v55  ;;  %v2552_v45 = vmul.f32 %v2518_v12, %v11881_v18 }
 0x4ef   : > { %17752 = vst [vmem:[#allocation42_spill] sm:$0xff] %v11892_v10  ;;  %v11902_v7 = vpop.f32.mrb[7].mxu1  ;;  %v2519_v54 = vmul.f32 %v11879_v34, %v11892_v10  ;;  %v2559_v34 = vadd.f32 %v2544_v46, %v2543_v4  ;;  %v2526_v25 = vadd.f32 %v2525_v31, %v2511_v62 }
 0x4f0   : > { %v11842_v5 = vpop.permute.xlu0 %3470  ;;  %v11844_v56 = vpop.permute.xlu1 %3444  ;;  %17753 = vst [vmem:[#allocation23_spill] sm:$0xff] %v11902_v7  ;;  %v2568_v52 = vadd.f32 %v2552_v45, %v2551_v20  ;;  %v2520_v55 = vmul.f32 %v11908_v47, %v11902_v7 }
 0x4f1   : > { %v2535_v2 = vadd.f32 %v2534_v8, %v2519_v54  ;;  %v2553_v42 = vmul.f32 %v2519_v54, %v11892_v10  ;;  %v2491_v10 = vsub.s32 5, %v11846_v48 }
 0x4f2   : > { %2835 = vrot.lane.b32.xlu0 %v11406_v29, %s17645_s11  ;;  %2855 = vrot.lane.b32.xlu1 %v17740_v59, %s17412_s25  ;;  %v2554_v12 = vmul.f32 %v2520_v55, %v11902_v7 }
 0x4f3   : > { %v2569_v4 = vadd.f32 %v2568_v52, %v2553_v42  ;;  %v11939_v54 = vadd.f32 %v2535_v2, %v2520_v55 }
 0x4f4   : > { %v11868_v24 = vpop.permute.xlu0 %3712  ;;  %v11870_v37 = vpop.permute.xlu1 %3468 }
 0x4f5   : > { %17746 = vst [vmem:[#allocation54_spill] sm:$0xff] %v11868_v24 }
 0x4f6   : > { %2861 = vrot.lane.b32.xlu0 %v11416_v57, %s17412_s25  ;;  %2833 = vrot.lane.b32.xlu1 %v11330_v49, %s17645_s11 }
 0x4f8   : > { %v11904_v14 = vpop.permute.xlu0 %3726  ;;  %v3711_v32 = vpop.permute.xlu1 %3710 }
 0x4f9   : > { %v3815_v21 = vsel %vm2173_vm12, %v3711_v32, %v11868_v24  ;;  %v3814_v15 = vsel %vm2173_vm12, %v3709_v28, %v3711_v32  ;;  %v2545_v24 = vmul.f32 %v2511_v62, %v11855_v41  ;;  %v2512_v32 = vmul.f32 %v11908_v47, %v11883_v6 }
 0x4fa   : > { %2883 = vrot.lane.b32.xlu0 %v11357_v40, %s17393_s4  ;;  %2859 = vrot.lane.b32.xlu1 %v11345_v36, %s17412_s25 }
 0x4fb   : > { %4007 = vmatprep.subr.bf16.mxu1 %v3815_v21  ;;  %v2560_v31 = vadd.f32 %v2559_v34, %v2545_v24  ;;  %v11936_v62 = vadd.f32 %v2526_v25, %v2512_v32  ;;  %v2546_v45 = vmul.f32 %v2512_v32, %v11883_v6  ;;  %v11947_v34 = vadd.f32 %v2569_v4, %v2554_v12 }
 0x4fc   : > { %4008 = vmatpush1.bf16.msra.mxu1 %v3814_v15  ;;  %v11925_v28 = vpop.permute.xlu0 %3448  ;;  %v3725_v63 = vpop.permute.xlu1 %3724  ;;  %v2487_v6 = vsub.s32 4, %v11846_v48 }
 0x4fd   : > { %v3821_v46 = vsel %vm2173_vm12, %v3725_v63, %v11904_v14  ;;  %v11944_v24 = vadd.f32 %v2560_v31, %v2546_v45 }
 0x4fe   : > { %2909 = vrot.lane.b32.xlu0 %v11367_v60, %s17413_s0  ;;  %2881 = vrot.lane.b32.xlu1 %v17739_v13, %s17393_s4 }
 0x4ff   : > { %3958 = vmatprep.subr.bf16.mxu0 %v3821_v46 }
 0x500   : > { %v11942_v8 = vpop.permute.xlu0 %3492  ;;  %v3723_v21 = vpop.permute.xlu1 %3722 }
 0x501   : > { %v3820_v15 = vsel %vm2173_vm12, %v3723_v21, %v3725_v63 }
 0x502   : > { %2887 = vrot.lane.b32.xlu0 %v11406_v29, %s17393_s4  ;;  %2907 = vrot.lane.b32.xlu1 %v17740_v59, %s17413_s0 }
 0x503   : > { %3959 = vmatpush1.bf16.msra.mxu0 %v3820_v15 }
 0x504   : > { %v11953_v42 = vpop.permute.xlu0 %3516  ;;  %v11955_v25 = vpop.permute.xlu1 %3472 }
 0x506   : > { %2913 = vrot.lane.b32.xlu0 %v11416_v57, %s17413_s0  ;;  %2885 = vrot.lane.b32.xlu1 %v11330_v49, %s17393_s4 }
 0x508   : > { %v3729_v2 = vpop.permute.xlu0 %3728  ;;  %v11961_v20 = vpop.permute.xlu1 %3494 }
 0x509   : > { %v3822_v31 = vsel %vm2173_vm12, %v11904_v14, %v3729_v2 }
 0x50a   : > { %2935 = vrot.lane.b32.xlu0 %v11357_v40, %s17395_s21  ;;  %2911 = vrot.lane.b32.xlu1 %v11345_v36, %s17413_s0 }
 0x50c   : > { %v3743_v32 = vpop.permute.xlu0 %3742  ;;  %v11967_v63 = vpop.permute.xlu1 %3518 }
 0x50e   : > { %2939 = vrot.lane.b32.xlu0 %v11406_v29, %s17395_s21  ;;  %2933 = vrot.lane.b32.xlu1 %v17739_v13, %s17395_s21 }
 0x510   : > { %v3741_v52 = vpop.permute.xlu0 %3740  ;;  %v11973_v55 = vpop.permute.xlu1 %3730 }
 0x511   : > { %17755 = vst [vmem:[#allocation81_spill] sm:$0xff] %v11973_v55  ;;  %v3823_v46 = vsel %vm2173_vm12, %v3729_v2, %v11973_v55  ;;  %v3828_v21 = vsel %vm2173_vm12, %v3741_v52, %v3743_v32 }
 0x512   : > { %3013 = vrot.lane.b32.xlu0 %v11367_v60, %s17417_s2  ;;  %2937 = vrot.lane.b32.xlu1 %v11330_v49, %s17395_s21 }
 0x513   : > { %4009 = vmatprep.subr.bf16.mxu1 %v3823_v46 }
 0x514   : > { %4010 = vmatpush1.bf16.msra.mxu1 %v3822_v31  ;;  %v11983_v45 = vpop.permute.xlu0 %2963  ;;  %v3745_v4 = vpop.permute.xlu1 %3744 }
 0x515   : > { %17756 = vst [vmem:[#allocation24_spill] sm:$0xff] %v11983_v45  ;;  %v3829_v12 = vsel %vm2173_vm12, %v3743_v32, %v3745_v4 }
 0x516   : > { %3017 = vrot.lane.b32.xlu0 %v11416_v57, %s17417_s2  ;;  %3011 = vrot.lane.b32.xlu1 %v17740_v59, %s17417_s2 }
 0x517   : > { %3960 = vmatprep.subr.bf16.mxu0 %v3829_v12 }
 0x518   : > { %3961 = vmatpush1.bf16.msra.mxu0 %v3828_v21  ;;  %v11991_v15 = vpop.permute.xlu0 %3520  ;;  %v11993_v46 = vpop.permute.xlu1 %2961 }
 0x519   : > { %17757 = vst [vmem:[#allocation62_spill] sm:$0xff] %v11993_v46 }
 0x51a   : > { %3039 = vrot.lane.b32.xlu0 %v11357_v40, %s17401_s23  ;;  %3015 = vrot.lane.b32.xlu1 %v11345_v36, %s17417_s2 }
 0x51c   : > { %v11999_v14 = vpop.permute.xlu0 %3542  ;;  %v12001_v2 = vpop.permute.xlu1 %3496 }
 0x51d   : > { %17758 = vst [vmem:[#allocation45_spill] sm:$0xff] %v11999_v14 }
 0x51e   : > { %3065 = vrot.lane.b32.xlu0 %v11367_v60, %s17420_s20  ;;  %3037 = vrot.lane.b32.xlu1 %v17739_v13, %s17401_s23 }
 0x520   : > { %v12007_v32 = vpop.permute.xlu0 %3748  ;;  %v12009_v52 = vpop.permute.xlu1 %3540 }
 0x521   : > { %17759 = vst [vmem:[#allocation82_spill] sm:$0xff] %v12007_v32  ;;  %17760 = vst [vmem:[#allocation28_spill] sm:$0xff] %v12009_v52 }
 0x522   : > { %3043 = vrot.lane.b32.xlu0 %v11406_v29, %s17401_s23  ;;  %3063 = vrot.lane.b32.xlu1 %v17740_v59, %s17420_s20 }
 0x524   : > { %v12015_v31 = vpop.permute.xlu0 %3762  ;;  %v3747_v12 = vpop.permute.xlu1 %3746 }
 0x525   : > { %v3831_v21 = vsel %vm2173_vm12, %v3747_v12, %v12007_v32  ;;  %v3830_v41 = vsel %vm2173_vm12, %v3745_v4, %v3747_v12  ;;  %v12031_v4 = vrot.slane %v11851_v38, %v2487_v6 }
 0x526   : > { %3069 = vrot.lane.b32.xlu0 %v11416_v57, %s17420_s20  ;;  %3041 = vrot.lane.b32.xlu1 %v11330_v49, %s17401_s23 }
 0x527   : > { %4011 = vmatprep.subr.bf16.mxu1 %v3831_v21  ;;  %17762 = vst [vmem:[#allocation66_spill] sm:$0xff] %v12031_v4  ;;  %v12040_v21 = vrot.slane %v11851_v38, %v2491_v10 }
 0x528   : > { %4012 = vmatpush1.bf16.msra.mxu1 %v3830_v41  ;;  %v12026_v1 = vpop.permute.xlu0 %2965  ;;  %v3761_v7 = vpop.permute.xlu1 %3760 }
 0x529   : > { %17761 = vst [vmem:[#allocation57_spill] sm:$0xff] %v12026_v1  ;;  %v3837_v18 = vsel %vm2173_vm12, %v3761_v7, %v12015_v31  ;;  %17764 = vst [vmem:[#allocation70_spill] sm:$0xff] %v12040_v21 }
 0x52a   : > { %3091 = vrot.lane.b32.xlu0 %v11357_v40, %s17408_s26  ;;  %3067 = vrot.lane.b32.xlu1 %v11345_v36, %s17420_s20  ;;  %v12037_v12 = vpop.f32.mrb[8].mxu0 }
 0x52b   : > { %17763 = vst [vmem:[#allocation49_spill] sm:$0xff] %v12037_v12  ;;  %3962 = vmatprep.subr.bf16.mxu0 %v3837_v18  ;;  %v2513_v41 = vmul.f32 %v12031_v4, %v12037_v12  ;;  %v12044_v47 = vpop.f32.mrb[9].mxu0  ;;  %v2495_v18 = vsub.s32 6, %v11846_v48 }
 0x52c   : > { %17765 = vst [vmem:[#allocation53_spill] sm:$0xff] %v12044_v47  ;;  %v3765_v32 = vpop.permute.xlu0 %3764  ;;  %v3759_v6 = vpop.permute.xlu1 %3758  ;;  %v2514_v55 = vmul.f32 %v12040_v21, %v12044_v47 }
 0x52d   : > { %v3836_v1 = vsel %vm2173_vm12, %v3759_v6, %v3761_v7  ;;  %v2528_v58 = vadd.f32 %v11936_v62, %v2513_v41  ;;  %v2547_v22 = vmul.f32 %v2513_v41, %v12037_v12  ;;  %v12051_v46 = vpop.f32.mrb[10].mxu0  ;;  %v2499_v62 = vsub.s32 7, %v11846_v48 }
 0x52e   : > { %17766 = vst [vmem:[#allocation33_spill] sm:$0xff] %v12051_v46  ;;  %3117 = vrot.lane.b32.xlu0 %v11367_v60, %s17431_s15  ;;  %3089 = vrot.lane.b32.xlu1 %v17739_v13, %s17408_s26  ;;  %v2548_v10 = vmul.f32 %v2514_v55, %v12044_v47  ;;  %v2521_v45 = vmul.f32 %v12031_v4, %v12051_v46  ;;  %v12061_v7 = vpop.f32.mrb[11].mxu0 }
 0x52f   : > { %17767 = vst [vmem:[#allocation35_spill] sm:$0xff] %v12061_v7  ;;  %3963 = vmatpush1.bf16.msra.mxu0 %v3836_v1  ;;  %v2562_v41 = vadd.f32 %v11944_v24, %v2547_v22  ;;  %v2529_v6 = vadd.f32 %v2528_v58, %v2514_v55  ;;  %v2522_v12 = vmul.f32 %v12040_v21, %v12061_v7 }
 0x530   : > { %v3779_v60 = vpop.permute.xlu0 %3778  ;;  %v12067_v52 = vpop.permute.xlu1 %3544  ;;  %v2537_v14 = vadd.f32 %v11939_v54, %v2521_v45  ;;  %v2555_v47 = vmul.f32 %v2521_v45, %v12051_v46  ;;  %v12073_v44 = vrot.slane %v11851_v38, %v2495_v18  ;;  %v12083_v48 = vrot.slane %v11851_v38, %v2499_v62 }
 0x531   : > { %v2563_v33 = vadd.f32 %v2562_v41, %v2548_v10  ;;  %v2556_v4 = vmul.f32 %v2522_v12, %v12061_v7  ;;  %v3838_v41 = vsel %vm2173_vm12, %v12015_v31, %v3765_v32  ;;  %v2764_v31 = vsel %vm1077_vm2, %v10996_v23, %v11753_v19 }
 0x532   : > { %17768 = vst [vmem:[#allocation74_spill] sm:$0xff] %v12073_v44  ;;  %3095 = vrot.lane.b32.xlu0 %v11406_v29, %s17408_s26  ;;  %3115 = vrot.lane.b32.xlu1 %v17740_v59, %s17431_s15  ;;  %v2571_v58 = vadd.f32 %v11947_v34, %v2555_v47  ;;  %v12080_v22 = vpop.f32.mrb[8].mxu1  ;;  %17770 = vst [vmem:[#allocation36_spill] sm:$0xff] %v12083_v48  ;;  %v2538_v1 = vadd.f32 %v2537_v14, %v2522_v12 }
 0x533   : > { %17769 = vst [vmem:[#allocation18_spill] sm:$0xff] %v12080_v22  ;;  %v2515_v54 = vmul.f32 %v12073_v44, %v12080_v22  ;;  %v12087_v24 = vpop.f32.mrb[9].mxu1  ;;  %v2765_v12 = vsel %vm1077_vm2, %v11753_v19, %v11740_v3  ;;  %v3557_v23 = vsel %vm1464_vm3, %v11406_v29, %v11808_v30  ;;  %v3152_v19 = vsel %vm1464_vm3, %v17739_v13, %v2764_v31 }
 0x534   : > { %17771 = vst [vmem:[#allocation76_spill] sm:$0xff] %v12087_v24  ;;  %v12089_v55 = vpop.permute.xlu0 %2987  ;;  %v12091_v45 = vpop.permute.xlu1 %3766  ;;  %v2572_v18 = vadd.f32 %v2571_v58, %v2556_v4  ;;  %v2516_v59 = vmul.f32 %v12083_v48, %v12087_v24 }
 0x535   : > { %v3839_v47 = vsel %vm2173_vm12, %v3765_v32, %v12091_v45  ;;  %v2530_v34 = vadd.f32 %v2529_v6, %v2515_v54  ;;  %v2549_v38 = vmul.f32 %v2515_v54, %v12080_v22  ;;  %v12098_v14 = vpop.f32.mrb[10].mxu1 }
 0x536   : > { %3121 = vrot.lane.b32.xlu0 %v11416_v57, %s17431_s15  ;;  %3093 = vrot.lane.b32.xlu1 %v11330_v49, %s17408_s26  ;;  %v12108_v4 = vmul.f32 %v2516_v59, %v12087_v24  ;;  %v2523_v10 = vmul.f32 %v12073_v44, %v12098_v14  ;;  %v12112_v62 = vpop.f32.mrb[11].mxu1 }
 0x537   : > { %4013 = vmatprep.subr.bf16.mxu1 %v3839_v47  ;;  %v12116_v6 = vadd.f32 %v2563_v33, %v2549_v38  ;;  %v2524_v57 = vmul.f32 %v12083_v48, %v12112_v62  ;;  %v12120_v58 = vadd.f32 %v2530_v34, %v2516_v59  ;;  %v12126_v47 = vsel %vm1464_vm3, %v11357_v40, %v2765_v12  ;;  %v17773_v38 = vld [vmem:[#allocation13_spill] sm:$0xff] }
 0x538   : > { %4014 = vmatpush1.bf16.msra.mxu1 %v3838_v41  ;;  %v3777_v54 = vpop.permute.xlu0 %3776  ;;  %v3781_v22 = vpop.permute.xlu1 %3780  ;;  %v2539_v24 = vadd.f32 %v2538_v1, %v2523_v10  ;;  %v2557_v46 = vmul.f32 %v2523_v10, %v12098_v14  ;;  %v3430_v34 = vsel %vm1767_vm14, %v11145_v11, %v11806_v9  ;;  %v3409_v12 = vsel %vm17774_vm1, %v11836_v0, %v17773_v38  ;;  %v17776_v10 = vld [vmem:[#allocation15_spill] sm:$0xff]  ;;  %vm17782_vm1 = vmmov %vm17778_vm6 }
 0x539   : > { %v3844_v7 = vsel %vm2173_vm12, %v3777_v54, %v3779_v60  ;;  %v3845_v33 = vsel %vm2173_vm12, %v3779_v60, %v3781_v22  ;;  %v12130_v32 = vmul.f32 %v2524_v57, %v12112_v62  ;;  %v3408_v54 = vsel %vm17777_vm8, %v11814_v17, %v11836_v0  ;;  %v3900_v0 = vld [vmem:[%s17724_s7] sm:$0xff] }
 0x53a   : > { %3716 = vrot.lane.b32.xlu0 %v12126_v47, %s17181_s28  ;;  %3119 = vrot.lane.b32.xlu1 %v11345_v36, %s17431_s15  ;;  %v12139_v1 = vadd.f32 %v2572_v18, %v2557_v46  ;;  %v12141_v59 = vadd.f32 %v2539_v24, %v2524_v57  ;;  %v2766_v36 = vsel %vm1077_vm2, %v11740_v3, %v11808_v30  ;;  %s17953_s15 = smov 8  }
 0x53b   : > { %3964 = vmatprep.subr.bf16.mxu0 %v3845_v33  ;;  %v3431_v46 = vsel %vm1767_vm14, %v11806_v9, %v11820_v61  ;;  %v12166_v18 = vsel %vm1464_vm3, %v11330_v49, %v2766_v36  ;;  %v3406_v49 = vsel %vm17775_vm0, %v11131_v50, %v11792_v26  ;;  %v3479_v50 = vsel %vm17778_vm6, %v11870_v37, %v11842_v5  ;;  %v3902_v36 = vld [vmem:[%s17724_s7 + $0x10] sm:$0xff]  ;;  %vm17783_vm0 = vmmov %vm17779_vm7 }
 0x53c   : > { %3965 = vmatpush1.bf16.msra.mxu0 %v3844_v7  ;;  %v12143_v40 = vpop.permute.xlu0 %3784  ;;  %v12145_v60 = vpop.permute.xlu1 %2989  ;;  %v3407_v7 = vsel %vm17772_vm15, %v11792_v26, %v11814_v17  ;;  %v3575_v57 = vsel %vm1464_vm3, %v3406_v49, %v3430_v34  ;;  %v3432_v26 = vsel %vm1767_vm14, %v11820_v61, %v11826_v16  ;;  %v3455_v33 = vsel %vm17779_vm7, %v11844_v56, %v11834_v27  ;;  %vm17780_vm15 = vmmov %vm17778_vm6  ;;  %v17784_v34 = vld [vmem:[#allocation21_spill] sm:$0xff] }
 0x53d   : > { %v3578_v13 = vsel %vm1464_vm3, %v3407_v7, %v3431_v46  ;;  %v3605_v46 = vsel %vm1464_vm3, %v3455_v33, %v3479_v50  ;;  %v3581_v61 = vsel %vm1464_vm3, %v3408_v54, %v3432_v26  ;;  %v3478_v7 = vsel %vm17780_vm15, %v11201_v35, %v11870_v37  ;;  %vm17785_vm8 = vmmov %vm17783_vm0  ;;  %v3905_v26 = vld [vmem:[%s17724_s7 + $0x28] sm:$0xff]  ;;  %v17788_v33 = vld [vmem:[#allocation22_spill] sm:$0xff] }
 0x53e   : > { %3720 = vrot.lane.b32.xlu0 %v3557_v23, %s17181_s28  ;;  %3714 = vrot.lane.b32.xlu1 %v3152_v19, %s17181_s28  ;;  %v3457_v35 = vsel %vm17785_vm8, %v11925_v28, %v17784_v34  ;;  %vm17786_vm6 = vmmov %vm17782_vm1  ;;  %vm17790_vm15 = vcmask 719872  }
 0x53f   : > { %vm17787_vm7 = vmmov %vm17783_vm0 }
 0x540   : > { %v3797_v29 = vpop.permute.xlu0 %3796  ;;  %v3783_v24 = vpop.permute.xlu1 %3782 }
 0x541   : > { %v3847_v3 = vsel %vm2173_vm12, %v3783_v24, %v12143_v40  ;;  %v3846_v30 = vsel %vm2173_vm12, %v3781_v22, %v3783_v24  ;;  %v3433_v22 = vsel %vm1767_vm14, %v11826_v16, %v17776_v10  ;;  %v17781_v24 = vld [vmem:[#allocation32_spill] sm:$0xff] }
 0x542   : > { %3734 = vrot.lane.b32.xlu0 %v3578_v13, %s17181_s28  ;;  %3718 = vrot.lane.b32.xlu1 %v12166_v18, %s17181_s28  ;;  %v3584_v41 = vsel %vm1464_vm3, %v3409_v12, %v3433_v22  ;;  %v3481_v13 = vsel %vm17782_vm1, %v11955_v25, %v17781_v24  ;;  %vm17791_vm1 = vmmov %vm17790_vm15 }
 0x543   : > { %4015 = vmatprep.subr.bf16.mxu1 %v3847_v3 }
 0x544   : > { %4016 = vmatpush1.bf16.msra.mxu1 %v3846_v30  ;;  %v12186_v11 = vpop.permute.xlu0 %2991  ;;  %v3795_v9 = vpop.permute.xlu1 %3794  ;;  %v12226_v30 = vpack.c.bf16 %v3902_v36, %v3900_v0  ;;  %v3504_v36 = vsel %vm1848_vm10, %v11961_v20, %v12001_v2 }
 0x545   : > { %v3852_v31 = vsel %vm2173_vm12, %v3795_v9, %v3797_v29  ;;  %v3611_v9 = vsel %vm1464_vm3, %v3457_v35, %v3481_v13 }
 0x546   : > { %3738 = vrot.lane.b32.xlu0 %v3584_v41, %s17181_s28  ;;  %3732 = vrot.lane.b32.xlu1 %v3575_v57, %s17181_s28  ;;  %v3917_v3 = vsel %vm1464_vm3, %v3852_v31, 0  ;;  %v3456_v57 = vsel %vm17787_vm7, %v11834_v27, %v11925_v28  ;;  %v3505_v27 = vsel %vm1848_vm10, %v12001_v2, %v17788_v33  ;;  %v3502_v31 = vsel %vm1848_vm10, %v17712_v51, %v11942_v8 }
 0x548   : > { %v12205_v23 = vpop.permute.xlu0 %3802  ;;  %v3799_v17 = vpop.permute.xlu1 %3798 }
 0x549   : > { %v3853_v16 = vsel %vm2173_vm12, %v3797_v29, %v3799_v17  ;;  %v3454_v29 = vsel %vm17783_vm0, %v11193_v39, %v11844_v56  ;;  %v3480_v39 = vsel %vm17786_vm6, %v11842_v5, %v11955_v25  ;;  %v3527_v56 = vsel %vm1875_vm13, %v11953_v42, %v11967_v63  ;;  %vm17799_vm0 = vmmov %vm17791_vm1 }
 0x54a   : > { %3752 = vrot.lane.b32.xlu0 %v3605_v46, %s17181_s28  ;;  %3736 = vrot.lane.b32.xlu1 %v3581_v61, %s17181_s28  ;;  %v3602_v22 = vsel %vm1464_vm3, %v3454_v29, %v3478_v7  ;;  %v3526_v5 = vsel %vm1875_vm13, %v17711_v53, %v11953_v42  ;;  %v3503_v25 = vsel %vm1848_vm10, %v11942_v8, %v11961_v20  ;;  %v17795_v29 = vld [vmem:[#allocation28_spill] sm:$0xff]  ;;  %vm17805_vm8 = vmmov %vm17799_vm0  ;;  %vm17806_vm6 = vcmask 220160  }
 0x54b   : > { %8553 = vmatprep.subr.msk.bf16.mxu0 %vm1464_vm3, %v3853_v16  ;;  %v3608_v53 = vsel %vm1464_vm3, %v3456_v57, %v3480_v39  ;;  %v3632_v28 = vsel %vm1464_vm3, %v3503_v25, %v3527_v56  ;;  %v12271_v42 = vpack.c.bf16 %v3905_v26, %v3905_v26  ;;  %v3629_v51 = vsel %vm1464_vm3, %v3502_v31, %v3526_v5  ;;  %v17792_v16 = vld [vmem:[#allocation51_spill] sm:$0xff]  ;;  %v17798_v57 = vld [vmem:[#allocation26_spill] sm:$0xff]  ;;  %v17800_v5 = vld [vmem:[#allocation41_spill] sm:$0xff] }
 0x54c   : > { %3967 = vmatpush1.bf16.msra.mxu0 %v3917_v3  ;;  %v12234_v37 = vpop.permute.xlu0 %2779  ;;  %v3801_v12 = vpop.permute.xlu1 %3800  ;;  %v17793_v3 = vld [vmem:[#allocation31_spill] sm:$0xff]  ;;  %v3550_v25 = vsel %vm1902_vm9, %v17800_v5, %v17795_v29  ;;  %vm17808_vm7 = vmmov %vm17806_vm6 }
 0x54d   : > { %4042 = vmatprep.subr.bf16.mxu0 %v3152_v19  ;;  %v3854_v49 = vsel %vm2173_vm12, %v3799_v17, %v3801_v12  ;;  %v3855_v41 = vsel %vm2173_vm12, %v3801_v12, %v12205_v23  ;;  %v17789_v17 = vld [vmem:[#allocation30_spill] sm:$0xff] }
 0x54e   : > { %3750 = vrot.lane.b32.xlu1 %v3602_v22, %s17181_s28  ;;  %3756 = vrot.lane.b32.xlu0 %v3611_v9, %s17181_s28  ;;  %v3923_v19 = vsel %vm1464_vm3, %v3854_v49, 0  ;;  %v3528_v22 = vsel %vm1875_vm13, %v11967_v63, %v11991_v15  ;;  %v17796_v9 = vld [vmem:[#allocation24_spill] sm:$0xff] }
 0x54f   : > { %8556 = vmatprep.subr.msk.bf16.mxu1 %vm1464_vm3, %v3855_v41  ;;  %3973 = vmatmul.mubr.bf16.vlgmr.msra.gmra.mrb[12].mxu0 %v12226_v30  ;;  %v17797_v41 = vld [vmem:[#allocation62_spill] sm:$0xff]  ;;  %v3635_v63 = vsel %vm1464_vm3, %v3504_v36, %v3528_v22  ;;  %v17809_v22 = vld [vmem:[#allocation67_spill] sm:$0xff] }
 0x550   : > { %4018 = vmatpush1.bf16.msra.mxu1 %v3923_v19  ;;  %4043 = vmatpush1.bf16.msra.mxu0 %v11464_v43  ;;  %v2806_v54 = vpop.permute.xlu0 %2805  ;;  %v2778_v50 = vpop.permute.xlu1 %2777  ;;  %v3904_v43 = vld [vmem:[%s17724_s7 + $0x20] sm:$0xff]  ;;  %v12318_v39 = vsel %vm1293_vm11, %v17797_v41, %v17796_v9  ;;  %s18167_s7 = sld [smem:[#allocation111_spill]] }
 0x551   : > { %4093 = vmatprep.subr.bf16.mxu1 %v12166_v18  ;;  %v3529_v18 = vsel %vm1875_vm13, %v11991_v15, %v17789_v17  ;;  %8555 = vmatprep.mubr.msk.bf16.mxu0 %vm17790_vm15, %v12271_v42  ;;  %v12287_v0 = vpack.c.bf16 %v3904_v43, %v3904_v43  ;;  %v2789_v7 = vsel %vm1104_vm5, %v17792_v16, %v2778_v50  ;;  %v17804_v43 = vld [vmem:[#allocation57_spill] sm:$0xff]  ;;  %vm17810_vm15 = vmmov %vm17806_vm6 }
 0x552   : > { %3754 = vrot.lane.b32.xlu1 %v3608_v53, %s17181_s28  ;;  %3770 = vrot.lane.b32.xlu0 %v3632_v28, %s17181_s28  ;;  %v3638_v8 = vsel %vm1464_vm3, %v3505_v27, %v3529_v18  ;;  %v2790_v13 = vsel %vm1104_vm5, %v2778_v50, %v12234_v37  ;;  %v17801_v50 = vld [vmem:[#allocation65_spill] sm:$0xff]  ;;  %v17802_v27 = vld [vmem:[#allocation47_spill] sm:$0xff] }
 0x553   : > { %4024 = vmatmul.mubr.bf16.vlgmr.msra.gmra.mrb[12].mxu1 %v12226_v30  ;;  %v3553_v26 = vsel %vm1902_vm9, %v12067_v52, %v17801_v50  ;;  %v12336_v53 = vsel %vm1293_vm11, %v17802_v27, %v17797_v41  ;;  %v17803_v28 = vld [vmem:[#allocation17_spill] sm:$0xff]  ;;  %v17811_v41 = vld [vmem:[#allocation43_spill] sm:$0xff]  ;;  %v12396_v27 = vsel %vm17808_vm7, %v12145_v60, %v12186_v11 }
 0x554   : > { %4094 = vmatpush1.bf16.msra.mxu1 %v12126_v47  ;;  %v2784_v46 = vpop.permute.xlu0 %2783  ;;  %v2804_v61 = vpop.permute.xlu1 %2803  ;;  %8558 = vmatprep.mubr.msk.bf16.mxu1 %vm17791_vm1, %v12271_v42  ;;  %v17794_v47 = vld [vmem:[#allocation45_spill] sm:$0xff]  ;;  %v3554_v31 = vsel %vm1293_vm11, %v17804_v43, %v17803_v28  ;;  %vm17812_vm1 = vcmask 957440  }
 0x555   : > { %v2815_v20 = vsel %vm1131_vm4, %v17793_v3, %v2804_v61  ;;  %v2816_v2 = vsel %vm1131_vm4, %v2804_v61, %v2806_v54  ;;  %v3551_v35 = vsel %vm1902_vm9, %v17795_v29, %v17794_v47  ;;  %v3651_v61 = vsel %vm1464_vm3, %v3550_v25, %v12336_v53 }
 0x556   : > { %3768 = vrot.lane.b32.xlu1 %v3629_v51, %s17181_s28  ;;  %3774 = vrot.lane.b32.xlu0 %v3638_v8, %s17181_s28  ;;  %v3184_v12 = vsel %vm1464_vm3, %v2790_v13, %v2816_v2  ;;  %v3180_v49 = vsel %vm1464_vm3, %v2789_v7, %v2815_v20  ;;  %v3653_v15 = vsel %vm1464_vm3, %v3551_v35, %v12318_v39 }
 0x557   : > { %4044 = vmatprep.subr.bf16.mxu0 %v3184_v12  ;;  %3983 = vmatmul.mubr.bf16.gmra.mrb[16].mxu0 %v12287_v0  ;;  %v3658_v51 = vsel %vm1464_vm3, %v3553_v26, %v3554_v31  ;;  %v3552_v3 = vsel %vm1902_vm9, %v17794_v47, %v12067_v52  ;;  %v12369_v47 = vsel %vm17806_vm6, %v12089_v55, %v12145_v60  ;;  %v17807_v12 = vld [vmem:[#allocation68_spill] sm:$0xff] }
 0x558   : > { %v2810_v56 = vpop.permute.xlu0 %2809  ;;  %4045 = vmatpush1.bf16.msra.mxu0 %v3180_v49  ;;  %v2782_v19 = vpop.permute.xlu1 %2781  ;;  %8560 = vmatprep.mubr.msk.bf16.mxu0 %vm17799_vm0, %v17798_v57  ;;  %v12377_v49 = vsel %vm17808_vm7, %v17807_v12, %v12089_v55  ;;  %vm17813_vm0 = vmmov %vm17812_vm1 }
 0x559   : > { %v2791_v8 = vsel %vm1104_vm5, %v12234_v37, %v2782_v19  ;;  %v2792_v16 = vsel %vm1104_vm5, %v2782_v19, %v2784_v46  ;;  %v12362_v37 = vsel %vm1293_vm11, %v17796_v9, %v17804_v43  ;;  %v3555_v9 = vsel %vm17810_vm15, %v12186_v11, %v17809_v22  ;;  %vm17817_vm15 = vmmov %vm17813_vm0 }
 0x55a   : > { %3772 = vrot.lane.b32.xlu1 %v3635_v63, %s17181_s28  ;;  %3788 = vrot.lane.b32.xlu0 %v3653_v15, %s17181_s28  ;;  %v3655_v52 = vsel %vm1464_vm3, %v3552_v3, %v12362_v37 }
 0x55b   : > { %4034 = vmatmul.mubr.bf16.gmra.mrb[16].mxu1 %v12287_v0 }
 0x55c   : > { %v2832_v18 = vpop.permute.xlu0 %2831  ;;  %v2808_v36 = vpop.permute.xlu1 %2807  ;;  %8563 = vmatprep.mubr.msk.bf16.mxu1 %vm17805_vm8, %v17798_v57  ;;  %v17814_v57 = vld [vmem:[#allocation72_spill] sm:$0xff]  ;;  %vm17815_vm8 = vcmask 949248  }
 0x55d   : > { %v2817_v7 = vsel %vm1131_vm4, %v2806_v54, %v2808_v36  ;;  %v2818_v13 = vsel %vm1131_vm4, %v2808_v36, %v2810_v56  ;;  %vm17816_vm6 = vmmov %vm17815_vm8 }
 0x55e   : > { %3786 = vrot.lane.b32.xlu1 %v3651_v61, %s17181_s28  ;;  %3792 = vrot.lane.b32.xlu0 %v3658_v51, %s17181_s28  ;;  %v3192_v20 = vsel %vm1464_vm3, %v2792_v16, %v2818_v13  ;;  %v3188_v2 = vsel %vm1464_vm3, %v2791_v8, %v2817_v7 }
 0x55f   : > { %4095 = vmatprep.subr.bf16.mxu1 %v3192_v20  ;;  %v17821_v20 = vld [vmem:[#allocation77_spill] sm:$0xff] }
 0x560   : > { %v2858_v54 = vpop.permute.xlu0 %2857  ;;  %4096 = vmatpush1.bf16.msra.mxu1 %v3188_v2  ;;  %v2830_v46 = vpop.permute.xlu1 %2829 }
 0x561   : > { %v2841_v56 = vsel %vm17812_vm1, %v17811_v41, %v2830_v46  ;;  %v2842_v19 = vsel %vm17813_vm0, %v2830_v46, %v2832_v18  ;;  %vm17818_vm1 = vmmov %vm17813_vm0  ;;  %v17824_v46 = vld [vmem:[#allocation19_spill] sm:$0xff] }
 0x562   : > { %3790 = vrot.lane.b32.xlu1 %v3655_v52, %s17181_s28  ;;  %3806 = vrot.lane.b32.xlu0 %v12369_v47, %s17181_s28  ;;  %vm17819_vm0 = vmmov %vm17816_vm6 }
 0x564   : > { %v2836_v29 = vpop.permute.xlu0 %2835  ;;  %v2856_v35 = vpop.permute.xlu1 %2855 }
 0x565   : > { %v2867_v5 = vsel %vm17815_vm8, %v17814_v57, %v2856_v35  ;;  %v2868_v25 = vsel %vm17816_vm6, %v2856_v35, %v2858_v54  ;;  %vm17820_vm8 = vmmov %vm17819_vm0  ;;  %vm17822_vm6 = vcmask 883712  }
 0x566   : > { %3804 = vrot.lane.b32.xlu1 %v12377_v49, %s17181_s28  ;;  %3810 = vrot.lane.b32.xlu0 %v3555_v9, %s17181_s28  ;;  %v3216_v55 = vsel %vm1464_vm3, %v2842_v19, %v2868_v25  ;;  %v3212_v26 = vsel %vm1464_vm3, %v2841_v56, %v2867_v5  ;;  %vm17823_vm7 = vmmov %vm17822_vm6 }
 0x567   : > { %4046 = vmatprep.subr.bf16.mxu0 %v3216_v55 }
 0x568   : > { %v2862_v63 = vpop.permute.xlu0 %2861  ;;  %4047 = vmatpush1.bf16.msra.mxu0 %v3212_v26  ;;  %v2834_v15 = vpop.permute.xlu1 %2833 }
 0x569   : > { %v2843_v36 = vsel %vm17817_vm15, %v2832_v18, %v2834_v15  ;;  %v2844_v61 = vsel %vm17818_vm1, %v2834_v15, %v2836_v29  ;;  %vm17825_vm15 = vcmask 875520  }
 0x56a   : > { %3808 = vrot.lane.b32.xlu1 %v12396_v27, %s17181_s28  ;;  %vm17826_vm1 = vmmov %vm17825_vm15 }
 0x56c   : > { %v2884_v43 = vpop.permute.xlu0 %2883  ;;  %v2860_v31 = vpop.permute.xlu1 %2859 }
 0x56d   : > { %v2869_v51 = vsel %vm17819_vm0, %v2858_v54, %v2860_v31  ;;  %v2870_v8 = vsel %vm17820_vm8, %v2860_v31, %v2862_v63  ;;  %vm17827_vm0 = vmmov %vm17822_vm6  ;;  %v17831_v31 = vld [vmem:[#allocation20_spill] sm:$0xff] }
 0x56e   : > { %v3224_v16 = vsel %vm1464_vm3, %v2844_v61, %v2870_v8  ;;  %v3220_v7 = vsel %vm1464_vm3, %v2843_v36, %v2869_v51  ;;  %vm17828_vm8 = vmmov %vm17827_vm0  ;;  %v17834_v51 = vld [vmem:[#allocation29_spill] sm:$0xff] }
 0x56f   : > { %4097 = vmatprep.subr.bf16.mxu1 %v3224_v16 }
 0x570   : > { %v2910_v60 = vpop.permute.xlu0 %2909  ;;  %4098 = vmatpush1.bf16.msra.mxu1 %v3220_v7  ;;  %v2882_v11 = vpop.permute.xlu1 %2881 }
 0x571   : > { %v2893_v2 = vsel %vm17822_vm6, %v17821_v20, %v2882_v11  ;;  %v2894_v18 = vsel %vm17823_vm7, %v2882_v11, %v2884_v43  ;;  %vm17829_vm6 = vmmov %vm17826_vm1 }
 0x572   : > { %vm17830_vm7 = vmmov %vm17826_vm1 }
 0x574   : > { %v2888_v13 = vpop.permute.xlu0 %2887  ;;  %v2908_v3 = vpop.permute.xlu1 %2907 }
 0x575   : > { %v2919_v54 = vsel %vm17825_vm15, %v17824_v46, %v2908_v3  ;;  %v2920_v52 = vsel %vm17826_vm1, %v2908_v3, %v2910_v60  ;;  %vm17832_vm15 = vcmask 867328  }
 0x576   : > { %v3248_v29 = vsel %vm1464_vm3, %v2894_v18, %v2920_v52  ;;  %v3244_v35 = vsel %vm1464_vm3, %v2893_v2, %v2919_v54  ;;  %vm17833_vm1 = vmmov %vm17832_vm15  ;;  %v17837_v2 = vld [vmem:[#allocation39_spill] sm:$0xff]  ;;  %v17840_v52 = vld [vmem:[#allocation14_spill] sm:$0xff] }
 0x577   : > { %4048 = vmatprep.subr.bf16.mxu0 %v3248_v29 }
 0x578   : > { %v2914_v12 = vpop.permute.xlu0 %2913  ;;  %4049 = vmatpush1.bf16.msra.mxu0 %v3244_v35  ;;  %v2886_v9 = vpop.permute.xlu1 %2885 }
 0x579   : > { %v2895_v19 = vsel %vm17827_vm0, %v2884_v43, %v2886_v9  ;;  %v2896_v57 = vsel %vm17828_vm8, %v2886_v9, %v2888_v13  ;;  %vm17835_vm0 = vmmov %vm17833_vm1 }
 0x57a   : > { %vm17836_vm8 = vmmov %vm17835_vm0 }
 0x57c   : > { %v2936_v41 = vpop.permute.xlu0 %2935  ;;  %v2912_v56 = vpop.permute.xlu1 %2911 }
 0x57d   : > { %v2921_v5 = vsel %vm17829_vm6, %v2910_v60, %v2912_v56  ;;  %v2922_v25 = vsel %vm17830_vm7, %v2912_v56, %v2914_v12  ;;  %vm17838_vm6 = vcmask 211968  }
 0x57e   : > { %v3256_v55 = vsel %vm1464_vm3, %v2896_v57, %v2922_v25  ;;  %v3252_v26 = vsel %vm1464_vm3, %v2895_v19, %v2921_v5  ;;  %vm17839_vm7 = vmmov %vm17838_vm6  ;;  %v17843_v57 = vld [vmem:[#allocation75_spill] sm:$0xff] }
 0x57f   : > { %4099 = vmatprep.subr.bf16.mxu1 %v3256_v55  ;;  %v17846_v55 = vld [vmem:[#allocation59_spill] sm:$0xff] }
 0x580   : > { %v2940_v63 = vpop.permute.xlu0 %2939  ;;  %4100 = vmatpush1.bf16.msra.mxu1 %v3252_v26  ;;  %v2934_v15 = vpop.permute.xlu1 %2933 }
 0x581   : > { %v2945_v36 = vsel %vm17832_vm15, %v17831_v31, %v2934_v15  ;;  %v2946_v61 = vsel %vm17833_vm1, %v2934_v15, %v2936_v41  ;;  %vm17841_vm15 = vmmov %vm17838_vm6  ;;  %v12458_v31 = vadd.f32 %v12116_v6, %v12108_v4 }
 0x582   : > { %v3280_v43 = vsel %vm1464_vm3, %v2946_v61, %v12336_v53  ;;  %v3276_v8 = vsel %vm1464_vm3, %v2945_v36, %v17834_v51  ;;  %vm17842_vm1 = vmmov %vm17838_vm6  ;;  %v12462_v36 = vadd.f32 %v12139_v1, %v12130_v32 }
 0x583   : > { %4050 = vmatprep.subr.bf16.mxu0 %v3280_v43 }
 0x584   : > { %v3014_v16 = vpop.permute.xlu0 %3013  ;;  %4051 = vmatpush1.bf16.msra.mxu0 %v3276_v8  ;;  %v2938_v7 = vpop.permute.xlu1 %2937 }
 0x585   : > { %v2947_v60 = vsel %vm17835_vm0, %v2936_v41, %v2938_v7  ;;  %v2948_v11 = vsel %vm17836_vm8, %v2938_v7, %v2940_v63  ;;  %2541 = vadd.xlane.f32.xlu0 %v12141_v59  ;;  %vm17844_vm0 = vcmask 146432  }
 0x586   : > { %v3288_v13 = vsel %vm1464_vm3, %v2948_v11, %v12362_v37  ;;  %v3284_v3 = vsel %vm1464_vm3, %v2947_v60, %v12318_v39  ;;  %vm17845_vm8 = vmmov %vm17844_vm0 }
 0x587   : > { %4101 = vmatprep.subr.bf16.mxu1 %v3288_v13  ;;  %v17853_v13 = vld [vmem:[#allocation78_spill] sm:$0xff] }
 0x588   : > { %v3018_v53 = vpop.permute.xlu0 %3017  ;;  %4102 = vmatpush1.bf16.msra.mxu1 %v3284_v3  ;;  %v3012_v20 = vpop.permute.xlu1 %3011 }
 0x589   : > { %v3023_v18 = vsel %vm17838_vm6, %v17837_v2, %v3012_v20  ;;  %v3024_v46 = vsel %vm17839_vm7, %v3012_v20, %v3014_v16  ;;  %vm17847_vm6 = vcmask 138240   ;;  %v17856_v20 = vld [vmem:[#allocation84_spill] sm:$0xff] }
 0x58a   : > { %v3312_v54 = vsel %vm1464_vm3, %v12377_v49, %v3024_v46  ;;  %v3308_v59 = vsel %vm1464_vm3, %v17840_v52, %v3023_v18  ;;  %vm17848_vm7 = vmmov %vm17847_vm6 }
 0x58b   : > { %4052 = vmatprep.subr.bf16.mxu0 %v3312_v54 }
 0x58c   : > { %v3040_v37 = vpop.permute.xlu0 %3039  ;;  %4053 = vmatpush1.bf16.msra.mxu0 %v3308_v59  ;;  %v3016_v29 = vpop.permute.xlu1 %3015 }
 0x58d   : > { %v3025_v39 = vsel %vm17841_vm15, %v3014_v16, %v3016_v29  ;;  %v3026_v35 = vsel %vm17842_vm1, %v3016_v29, %v3018_v53  ;;  %vm17849_vm15 = vmmov %vm17844_vm0 }
 0x58e   : > { %2532 = vadd.xlane.f32.xlu1 %v12120_v58  ;;  %v3320_v12 = vsel %vm1464_vm3, %v12396_v27, %v3026_v35  ;;  %v3316_v9 = vsel %vm1464_vm3, %v12369_v47, %v3025_v39  ;;  %vm17850_vm1 = vmmov %vm17844_vm0 }
 0x58f   : > { %4103 = vmatprep.subr.bf16.mxu1 %v3320_v12 }
 0x590   : > { %v3066_v49 = vpop.permute.xlu0 %3065  ;;  %4104 = vmatpush1.bf16.msra.mxu1 %v3316_v9  ;;  %v3038_v41 = vpop.permute.xlu1 %3037 }
 0x591   : > { %v3049_v5 = vsel %vm17844_vm0, %v17843_v57, %v3038_v41  ;;  %v3050_v25 = vsel %vm17845_vm8, %v3038_v41, %v3040_v37  ;;  %vm17851_vm0 = vmmov %vm17847_vm6 }
 0x592   : > { %vm17852_vm8 = vmmov %vm17851_vm0 }
 0x594   : > { %v3044_v56 = vpop.permute.xlu0 %3043  ;;  %v3064_v19 = vpop.permute.xlu1 %3063 }
 0x595   : > { %v3075_v58 = vsel %vm17847_vm6, %v17846_v55, %v3064_v19  ;;  %v3076_v26 = vsel %vm17848_vm7, %v3064_v19, %v3066_v49  ;;  %vm17854_vm6 = vcmask 130048  }
 0x596   : > { %v3344_v27 = vsel %vm1464_vm3, %v3050_v25, %v3076_v26  ;;  %v3340_v47 = vsel %vm1464_vm3, %v3049_v5, %v3075_v58  ;;  %vm17855_vm7 = vmmov %vm17854_vm6  ;;  %v17863_v5 = vld [vmem:[#allocation54_spill] sm:$0xff] }
 0x597   : > { %4054 = vmatprep.subr.bf16.mxu0 %v3344_v27 }
 0x598   : > { %v3070_v63 = vpop.permute.xlu0 %3069  ;;  %4055 = vmatpush1.bf16.msra.mxu0 %v3340_v47  ;;  %v3042_v15 = vpop.permute.xlu1 %3041 }
 0x599   : > { %v3051_v51 = vsel %vm17849_vm15, %v3040_v37, %v3042_v15  ;;  %v3052_v8 = vsel %vm17850_vm1, %v3042_v15, %v3044_v56  ;;  %vm17857_vm15 = vcmask 64512  }
 0x59a   : > { %vm17858_vm1 = vmmov %vm17857_vm15 }
 0x59c   : > { %v3092_v61 = vpop.permute.xlu0 %3091  ;;  %v3068_v43 = vpop.permute.xlu1 %3067 }
 0x59d   : > { %v3077_v16 = vsel %vm17851_vm0, %v3066_v49, %v3068_v43  ;;  %v3078_v7 = vsel %vm17852_vm8, %v3068_v43, %v3070_v63  ;;  %vm17859_vm0 = vmmov %vm17854_vm6 }
 0x59e   : > { %v3352_v60 = vsel %vm1464_vm3, %v3052_v8, %v3078_v7  ;;  %v3348_v11 = vsel %vm1464_vm3, %v3051_v51, %v3077_v16  ;;  %vm17860_vm8 = vmmov %vm17859_vm0 }
 0x59f   : > { %4105 = vmatprep.subr.bf16.mxu1 %v3352_v60 }
 0x5a0   : > { %v3118_v4 = vpop.permute.xlu0 %3117  ;;  %4106 = vmatpush1.bf16.msra.mxu1 %v3348_v11  ;;  %v3090_v6 = vpop.permute.xlu1 %3089 }
 0x5a1   : > { %v3101_v3 = vsel %vm17854_vm6, %v17853_v13, %v3090_v6  ;;  %v3102_v53 = vsel %vm17855_vm7, %v3090_v6, %v3092_v61  ;;  %vm17861_vm6 = vmmov %vm17858_vm1  ;;  %v17865_v6 = vld [vmem:[#allocation82_spill] sm:$0xff] }
 0x5a2   : > { %vm17862_vm7 = vmmov %vm17858_vm1 }
 0x5a4   : > { %v3096_v32 = vpop.permute.xlu0 %3095  ;;  %v3116_v1 = vpop.permute.xlu1 %3115 }
 0x5a5   : > { %v3127_v2 = vsel %vm17857_vm15, %v17856_v20, %v3116_v1  ;;  %v3128_v18 = vsel %vm17858_vm1, %v3116_v1, %v3118_v4  ;;  %vm17866_vm15 = vcmask 719872  }
 0x5a6   : > { %v3376_v46 = vsel %vm1464_vm3, %v3102_v53, %v3128_v18  ;;  %v3372_v54 = vsel %vm1464_vm3, %v3101_v3, %v3127_v2  ;;  %vm17867_vm1 = vmmov %vm17866_vm15 }
 0x5a7   : > { %4056 = vmatprep.subr.bf16.mxu0 %v3376_v46 }
 0x5a8   : > { %v3122_v52 = vpop.permute.xlu0 %3121  ;;  %4057 = vmatpush1.bf16.msra.mxu0 %v3372_v54  ;;  %v3094_v59 = vpop.permute.xlu1 %3093 }
 0x5a9   : > { %v3103_v39 = vsel %vm17859_vm0, %v3092_v61, %v3094_v59  ;;  %v3104_v35 = vsel %vm17860_vm8, %v3094_v59, %v3096_v32  ;;  %v17864_v61 = vld [vmem:[#allocation81_spill] sm:$0xff]  ;;  %vm17912_vm8 = vmmov %vm17859_vm0 }
 0x5ac   : > { %v3717_v37 = vpop.permute.xlu0 %3716  ;;  %v3120_v29 = vpop.permute.xlu1 %3119 }
 0x5ad   : > { %v3129_v12 = vsel %vm17861_vm6, %v3118_v4, %v3120_v29  ;;  %v3130_v9 = vsel %vm17862_vm7, %v3120_v29, %v3122_v52  ;;  %vm17916_vm6 = vmmov %vm17859_vm0 }
 0x5ae   : > { %v3384_v49 = vsel %vm1464_vm3, %v3104_v35, %v3130_v9  ;;  %v3380_v41 = vsel %vm1464_vm3, %v3103_v39, %v3129_v12  ;;  %vm17917_vm7 = vmmov %vm17859_vm0 }
 0x5af   : > { %4107 = vmatprep.subr.bf16.mxu1 %v3384_v49 }
 0x5b0   : > { %v3721_v56 = vpop.permute.xlu0 %3720  ;;  %4108 = vmatpush1.bf16.msra.mxu1 %v3380_v41  ;;  %v3715_v19 = vpop.permute.xlu1 %3714 }
 0x5b1   : > { %v3817_v57 = vsel %vm2173_vm12, %v3715_v19, %v3717_v37  ;;  %v3816_v25 = vsel %vm2173_vm12, %v17863_v5, %v3715_v19 }
 0x5b2   : > { %4058 = vmatprep.subr.bf16.mxu0 %v3817_v57 }
 0x5b3   : > { %4059 = vmatpush1.bf16.msra.mxu0 %v3816_v25 }
 0x5b4   : > { %v3735_v55 = vpop.permute.xlu0 %3734  ;;  %v3719_v58 = vpop.permute.xlu1 %3718 }
 0x5b5   : > { %v3819_v26 = vsel %vm2173_vm12, %v3719_v58, %v3721_v56  ;;  %v3818_v27 = vsel %vm2173_vm12, %v3717_v37, %v3719_v58 }
 0x5b6   : > { %4109 = vmatprep.subr.bf16.mxu1 %v3819_v26 }
 0x5b7   : > { %4110 = vmatpush1.bf16.msra.mxu1 %v3818_v27 }
 0x5b8   : > { %v3739_v47 = vpop.permute.xlu0 %3738  ;;  %v3733_v63 = vpop.permute.xlu1 %3732 }
 0x5b9   : > { %v3825_v15 = vsel %vm2173_vm12, %v3733_v63, %v3735_v55  ;;  %v3824_v43 = vsel %vm2173_vm12, %v17864_v61, %v3733_v63  ;;  %v17870_v61 = vld [vmem:[#allocation83_spill] sm:$0xff] }
 0x5ba   : > { %4060 = vmatprep.subr.bf16.mxu0 %v3825_v15 }
 0x5bb   : > { %4061 = vmatpush1.bf16.msra.mxu0 %v3824_v43 }
 0x5bc   : > { %v3753_v51 = vpop.permute.xlu0 %3752  ;;  %v3737_v8 = vpop.permute.xlu1 %3736 }
 0x5bd   : > { %v3827_v16 = vsel %vm2173_vm12, %v3737_v8, %v3739_v47  ;;  %v3826_v7 = vsel %vm2173_vm12, %v3735_v55, %v3737_v8  ;;  %v17869_v47 = vld [vmem:[#allocation79_spill] sm:$0xff] }
 0x5be   : > { %4111 = vmatprep.subr.bf16.mxu1 %v3827_v16 }
 0x5bf   : > { %4112 = vmatpush1.bf16.msra.mxu1 %v3826_v7 }
 0x5c0   : > { %v3757_v60 = vpop.permute.xlu0 %3756  ;;  %v3751_v11 = vpop.permute.xlu1 %3750 }
 0x5c1   : > { %v3833_v4 = vsel %vm2173_vm12, %v3751_v11, %v3753_v51  ;;  %v3832_v32 = vsel %vm2173_vm12, %v17865_v6, %v3751_v11 }
 0x5c2   : > { %4062 = vmatprep.subr.bf16.mxu0 %v3833_v4  ;;  %v17871_v4 = vld [vmem:[#allocation73_spill] sm:$0xff] }
 0x5c3   : > { %4063 = vmatpush1.bf16.msra.mxu0 %v3832_v32 }
 0x5c4   : > { %v3771_v1 = vpop.permute.xlu0 %3770  ;;  %v3755_v13 = vpop.permute.xlu1 %3754 }
 0x5c5   : > { %v3835_v3 = vsel %vm2173_vm12, %v3755_v13, %v3757_v60  ;;  %v3834_v53 = vsel %vm2173_vm12, %v3753_v51, %v3755_v13 }
 0x5c6   : > { %4113 = vmatprep.subr.bf16.mxu1 %v3835_v3 }
 0x5c7   : > { %4114 = vmatpush1.bf16.msra.mxu1 %v3834_v53  ;;  %v17872_v53 = vld [vmem:[#allocation34_spill] sm:$0xff] }
 0x5c8   : > { %v3775_v20 = vpop.permute.xlu0 %3774  ;;  %v3769_v2 = vpop.permute.xlu1 %3768 }
 0x5c9   : > { %v3841_v18 = vsel %vm2173_vm12, %v3769_v2, %v3771_v1  ;;  %v3840_v46 = vsel %vm2173_vm12, %v12091_v45, %v3769_v2 }
 0x5ca   : > { %4064 = vmatprep.subr.bf16.mxu0 %v3841_v18 }
 0x5cb   : > { %4065 = vmatpush1.bf16.msra.mxu0 %v3840_v46 }
 0x5cc   : > { %v3789_v54 = vpop.permute.xlu0 %3788  ;;  %v3773_v52 = vpop.permute.xlu1 %3772 }
 0x5cd   : > { %v3843_v59 = vsel %vm2173_vm12, %v3773_v52, %v3775_v20  ;;  %v3842_v37 = vsel %vm2173_vm12, %v3771_v1, %v3773_v52 }
 0x5ce   : > { %4115 = vmatprep.subr.bf16.mxu1 %v3843_v59 }
 0x5cf   : > { %4116 = vmatpush1.bf16.msra.mxu1 %v3842_v37 }
 0x5d0   : > { %v3793_v29 = vpop.permute.xlu0 %3792  ;;  %v3787_v39 = vpop.permute.xlu1 %3786 }
 0x5d1   : > { %v3849_v35 = vsel %vm2173_vm12, %v3787_v39, %v3789_v54  ;;  %v3848_v12 = vsel %vm2173_vm12, %v12143_v40, %v3787_v39 }
 0x5d2   : > { %4066 = vmatprep.subr.bf16.mxu0 %v3849_v35 }
 0x5d3   : > { %4067 = vmatpush1.bf16.msra.mxu0 %v3848_v12 }
 0x5d4   : > { %v3791_v45 = vpop.permute.xlu1 %3790  ;;  %v3807_v41 = vpop.permute.xlu0 %3806 }
 0x5d5   : > { %v3851_v9 = vsel %vm2173_vm12, %v3791_v45, %v3793_v29  ;;  %v3850_v49 = vsel %vm2173_vm12, %v3789_v54, %v3791_v45 }
 0x5d6   : > { %4117 = vmatprep.subr.bf16.mxu1 %v3851_v9 }
 0x5d7   : > { %4118 = vmatpush1.bf16.msra.mxu1 %v3850_v49 }
 0x5d8   : > { %v3805_v56 = vpop.permute.xlu1 %3804  ;;  %v3811_v5 = vpop.permute.xlu0 %3810 }
 0x5d9   : > { %v3856_v19 = vsel %vm2173_vm12, %v12205_v23, %v3805_v56  ;;  %v3857_v57 = vsel %vm2173_vm12, %v3805_v56, %v3807_v41  ;;  %v17868_v23 = vmov 0.0  }
 0x5da   : > { %8559 = vmatprep.subr.msk.bf16.mxu0 %vm1464_vm3, %v3857_v57  ;;  %v3929_v40 = vsel %vm1464_vm3, %v3856_v19, 0 }
 0x5db   : > { %4069 = vmatpush1.bf16.msra.mxu0 %v3929_v40 }
 0x5dc   : > { %v3809_v25 = vpop.permute.xlu1 %3808 }
 0x5dd   : > { %v3858_v55 = vsel %vm2173_vm12, %v3807_v41, %v3809_v25  ;;  %v3859_v58 = vsel %vm2173_vm12, %v3809_v25, %v3811_v5 }
 0x5de   : > { %4075 = vmatmul.mubr.bf16.vlgmr.msra.gmra.mrb[20].mxu0 %v12226_v30  ;;  %8562 = vmatprep.subr.msk.bf16.mxu1 %vm1464_vm3, %v3859_v58  ;;  %v3935_v26 = vsel %vm1464_vm3, %v3858_v55, 0 }
 0x5df   : > { %4120 = vmatpush1.bf16.msra.mxu1 %v3935_v26  ;;  %8561 = vmatprep.mubr.msk.bf16.mxu0 %vm17866_vm15, %v12271_v42  ;;  %vm17948_vm15 = vcmask 908288  }
 0x5e2   : > { %4126 = vmatmul.mubr.bf16.vlgmr.msra.gmra.mrb[20].mxu1 %v12226_v30 }
 0x5e3   : > { %8564 = vmatprep.mubr.msk.bf16.mxu1 %vm17867_vm1, %v12271_v42  ;;  %vm17949_vm1 = vmmov %vm17948_vm15 }
 0x5e6   : > { %4085 = vmatmul.mubr.bf16.gmra.mrb[24].mxu0 %v12287_v0 }
 0x5e7   : > { %4506 = vmatprep.mubr.f32.mxu0 %v17868_v23 }
 0x5ea   : > { %4136 = vmatmul.mubr.bf16.gmra.mrb[24].mxu1 %v12287_v0 }
 0x5eb   : > { %4577 = vmatprep.mubr.f32.mxu1 %v17868_v23 }
 0x622   : > { %v12528_v27 = vpop.f32.mrb[12].mxu0 }
 0x623   : > { %v4144_v63 = vmul.f32 %v12528_v27, %v17869_v47  ;;  %v12532_v15 = vpop.f32.mrb[13].mxu0 }
 0x624   : > { %v4145_v30 = vmul.f32 %v12532_v15, %v17870_v61  ;;  %v12536_v43 = vpop.f32.mrb[14].mxu0 }
 0x625   : > { %v4195_v42 = vmul.f32 %v4144_v63, %v12528_v27  ;;  %v4152_v51 = vmul.f32 %v12536_v43, %v17869_v47  ;;  %v12541_v0 = vpop.f32.mrb[15].mxu0 }
 0x626   : > { %v4168_v8 = vadd.f32 %v4145_v30, %v4144_v63  ;;  %v4196_v16 = vmul.f32 %v4145_v30, %v12532_v15  ;;  %v4153_v7 = vmul.f32 %v12541_v0, %v17870_v61  ;;  %v12546_v60 = vpop.f32.mrb[12].mxu1 }
 0x627   : > { %v4203_v11 = vmul.f32 %v4152_v51, %v12536_v43  ;;  %v4146_v6 = vmul.f32 %v12546_v60, %v17871_v4  ;;  %v12551_v32 = vpop.f32.mrb[13].mxu1 }
 0x628   : > { %v4219_v1 = vadd.f32 %v4196_v16, %v4195_v42  ;;  %v4177_v13 = vadd.f32 %v4153_v7, %v4152_v51  ;;  %v4204_v3 = vmul.f32 %v4153_v7, %v12541_v0  ;;  %v4147_v20 = vmul.f32 %v12551_v32, %v17872_v53  ;;  %v12556_v2 = vpop.f32.mrb[14].mxu1 }
 0x629   : > { %v4169_v18 = vadd.f32 %v4168_v8, %v4146_v6  ;;  %v4197_v46 = vmul.f32 %v4146_v6, %v12546_v60  ;;  %v4154_v54 = vmul.f32 %v12556_v2, %v17871_v4  ;;  %v12561_v52 = vpop.f32.mrb[15].mxu1 }
 0x62a   : > { %v4228_v59 = vadd.f32 %v4204_v3, %v4203_v11  ;;  %v4198_v37 = vmul.f32 %v4147_v20, %v12551_v32  ;;  %v4155_v29 = vmul.f32 %v12561_v52, %v17872_v53  ;;  %v12566_v39 = vpop.f32.mrb[16].mxu0 }
 0x62b   : > { %v4220_v35 = vadd.f32 %v4219_v1, %v4197_v46  ;;  %v4170_v12 = vadd.f32 %v4169_v18, %v4147_v20  ;;  %v4178_v45 = vadd.f32 %v4177_v13, %v4154_v54  ;;  %v4205_v9 = vmul.f32 %v4154_v54, %v12556_v2  ;;  %v12569_v49 = vpop.f32.mrb[17].mxu0 }
 0x62c   : > { %v4206_v41 = vmul.f32 %v4155_v29, %v12561_v52  ;;  %v4160_v56 = vmul.f32 %v12566_v39, %v17869_v47  ;;  %v4161_v19 = vmul.f32 %v12569_v49, %v17870_v61  ;;  %v3988_v57 = vpop.f32.mrb[18].mxu0 }
 0x62d   : > { %v4221_v40 = vadd.f32 %v4220_v35, %v4198_v37  ;;  %v4229_v5 = vadd.f32 %v4228_v59, %v4205_v9  ;;  %v4179_v25 = vadd.f32 %v4178_v45, %v4155_v29  ;;  %v3989_v55 = vpop.f32.mrb[19].mxu0  ;;  %v17874_v59 = vld [vmem:[#allocation66_spill] sm:$0xff] }
 0x62e   : > { %v4211_v58 = vmul.f32 %v4160_v56, %v12566_v39  ;;  %v4186_v26 = vadd.f32 %v4161_v19, %v4160_v56  ;;  %v4212_v63 = vmul.f32 %v4161_v19, %v12569_v49  ;;  %v12578_v30 = vpop.f32.mrb[16].mxu1 }
 0x62f   : > { %v4230_v42 = vadd.f32 %v4229_v5, %v4206_v41  ;;  %v4162_v51 = vmul.f32 %v12578_v30, %v17871_v4  ;;  %v12582_v8 = vpop.f32.mrb[17].mxu1 }
 0x630   : > { %17873 = vst [vmem:[#allocation61_spill] sm:$0xff] %v12582_v8  ;;  %v4237_v16 = vadd.f32 %v4212_v63, %v4211_v58  ;;  %v4163_v7 = vmul.f32 %v12582_v8, %v17872_v53  ;;  %v4039_v11 = vpop.f32.mrb[18].mxu1 }
 0x631   : > { %v4187_v6 = vadd.f32 %v4186_v26, %v4162_v51  ;;  %v4213_v1 = vmul.f32 %v4162_v51, %v12578_v30  ;;  %v4040_v13 = vpop.f32.mrb[19].mxu1 }
 0x632   : > { %v4214_v3 = vmul.f32 %v4163_v7, %v12582_v8 }
 0x633   : > { %v4238_v20 = vadd.f32 %v4237_v16, %v4213_v1  ;;  %v4188_v18 = vadd.f32 %v4187_v6, %v4163_v7 }
 0x635   : > { %v4239_v46 = vadd.f32 %v4238_v20, %v4214_v3 }
 0x6b1   : > { %v12588_v54 = vpop.f32.mrb[20].mxu0 }
 0x6b2   : > { %v4148_v37 = vmul.f32 %v12588_v54, %v17874_v59  ;;  %v12592_v29 = vpop.f32.mrb[21].mxu0 }
 0x6b3   : > { %v4149_v35 = vmul.f32 %v12592_v29, %v12040_v21  ;;  %v12596_v45 = vpop.f32.mrb[22].mxu0 }
 0x6b4   : > { %v4171_v9 = vadd.f32 %v4170_v12, %v4148_v37  ;;  %v4199_v41 = vmul.f32 %v4148_v37, %v12588_v54  ;;  %v4156_v56 = vmul.f32 %v12596_v45, %v17874_v59  ;;  %v12601_v19 = vpop.f32.mrb[23].mxu0 }
 0x6b5   : > { %v4200_v57 = vmul.f32 %v4149_v35, %v12592_v29  ;;  %v4157_v5 = vmul.f32 %v12601_v19, %v12040_v21  ;;  %v12606_v55 = vpop.f32.mrb[20].mxu1 }
 0x6b6   : > { %v4222_v58 = vadd.f32 %v4221_v40, %v4199_v41  ;;  %v4172_v26 = vadd.f32 %v4171_v9, %v4149_v35  ;;  %v4180_v63 = vadd.f32 %v4179_v25, %v4156_v56  ;;  %v4207_v51 = vmul.f32 %v4156_v56, %v12596_v45  ;;  %v12609_v12 = vpop.f32.mrb[21].mxu1 }
 0x6b7   : > { %v4208_v16 = vmul.f32 %v4157_v5, %v12601_v19  ;;  %v4150_v7 = vmul.f32 %v12606_v55, %v12073_v44  ;;  %v4151_v11 = vmul.f32 %v12609_v12, %v12083_v48  ;;  %v12616_v6 = vpop.f32.mrb[22].mxu1 }
 0x6b8   : > { %v4223_v1 = vadd.f32 %v4222_v58, %v4200_v57  ;;  %v4231_v13 = vadd.f32 %v4230_v42, %v4207_v51  ;;  %v4181_v3 = vadd.f32 %v4180_v63, %v4157_v5  ;;  %v4158_v40 = vmul.f32 %v12616_v6, %v12073_v44  ;;  %v12620_v25 = vpop.f32.mrb[23].mxu1 }
 0x6b9   : > { %v4173_v20 = vadd.f32 %v4172_v26, %v4150_v7  ;;  %v4201_v37 = vmul.f32 %v4150_v7, %v12606_v55  ;;  %v4202_v35 = vmul.f32 %v4151_v11, %v12609_v12  ;;  %v4159_v9 = vmul.f32 %v12620_v25, %v12083_v48  ;;  %v12626_v41 = vpop.f32.mrb[24].mxu0 }
 0x6ba   : > { %17875 = vst [vmem:[#allocation25_spill] sm:$0xff] %v12626_v41  ;;  %v4232_v56 = vadd.f32 %v4231_v13, %v4208_v16  ;;  %v4182_v50 = vadd.f32 %v4181_v3, %v4158_v40  ;;  %v4209_v42 = vmul.f32 %v4158_v40, %v12616_v6  ;;  %v4164_v57 = vmul.f32 %v12626_v41, %v17874_v59  ;;  %v12631_v5 = vpop.f32.mrb[25].mxu0 }
 0x6bb   : > { %17876 = vst [vmem:[#allocation37_spill] sm:$0xff] %v12631_v5  ;;  %v4224_v58 = vadd.f32 %v4223_v1, %v4201_v37  ;;  %v4210_v26 = vmul.f32 %v4159_v9, %v12620_v25  ;;  %v4165_v63 = vmul.f32 %v12631_v5, %v12040_v21  ;;  %v4174_v51 = vadd.f32 %v4173_v20, %v4151_v11  ;;  %v4090_v7 = vpop.f32.mrb[26].mxu0 }
 0x6bc   : > { %v4233_v28 = vadd.f32 %v4232_v56, %v4209_v42  ;;  %v4189_v33 = vadd.f32 %v4188_v18, %v4164_v57  ;;  %v4215_v16 = vmul.f32 %v4164_v57, %v12626_v41  ;;  %v4183_v13 = vadd.f32 %v4182_v50, %v4159_v9  ;;  %v4091_v3 = vpop.f32.mrb[27].mxu0  ;;  %v4432_v7 = vld [vmem:[%s17883_s19] sm:$0xff]  ;;  %s17954_s19 = smov 127  }
 0x6bd   : > { %v4216_v40 = vmul.f32 %v4165_v63, %v12631_v5  ;;  %4175 = vadd.xlane.f32.xlu0 %v4174_v51  ;;  %v12638_v17 = vpop.f32.mrb[24].mxu1  ;;  %v4225_v34 = vadd.f32 %v4224_v58, %v4202_v35  ;;  %v4358_v51 = vld [vmem:[%s17882_s9 + $0x8] sm:$0xff]  ;;  %v2542_v3 = vpop.xlane.xlu0 %2541 }
 0x6be   : > { %17877 = vst [vmem:[#allocation63_spill] sm:$0xff] %v12638_v17  ;;  %v4240_v1 = vadd.f32 %v4239_v46, %v4215_v16  ;;  %v4190_v37 = vadd.f32 %v4189_v33, %v4165_v63  ;;  %v4166_v24 = vmul.f32 %v12638_v17, %v12073_v44  ;;  %4184 = vadd.xlane.f32.xlu1 %v4183_v13  ;;  %v12642_v11 = vpop.f32.mrb[25].mxu1  ;;  %v4357_v63 = vld [vmem:[%s17882_s9] sm:$0xff]  ;;  %v4317_v16 = vld [vmem:[%s17880_s8 + $0x10] sm:$0xff] }
 0x6bf   : > { %17878 = vst [vmem:[#allocation50_spill] sm:$0xff] %v12642_v11  ;;  %v4234_v20 = vadd.f32 %v4233_v28, %v4210_v26  ;;  %v4167_v18 = vmul.f32 %v12642_v11, %v12083_v48  ;;  %v4141_v50 = vpop.f32.mrb[26].mxu1  ;;  %v2624_v28 = vld [vmem:[%s17879_s5 + $0x8] sm:$0xff]  ;;  %v4359_v13 = vld [vmem:[%s17882_s9 + $0x10] sm:$0xff] }
 0x6c0   : > { %v4241_v9 = vadd.f32 %v4240_v1, %v4216_v40  ;;  %v4191_v56 = vadd.f32 %v4190_v37, %v4166_v24  ;;  %v4217_v42 = vmul.f32 %v4166_v24, %v12638_v17  ;;  %v4142_v57 = vpop.f32.mrb[27].mxu1  ;;  %v2623_v24 = vld [vmem:[%s17879_s5] sm:$0xff]  ;;  %v2652_v26 = vld [vmem:[%s17881_s6 + $0x8] sm:$0xff]  ;;  %v2533_v40 = vpop.xlane.xlu1 %2532  ;;  %s18292_s5 = sld [smem:[#allocation113_spill]] }
 0x6c1   : > { %v4218_v35 = vmul.f32 %v4167_v18, %v12642_v11  ;;  %2566 = vadd.xlane.f32.xlu0 %v12458_v31  ;;  %v4315_v31 = vld [vmem:[%s17880_s8] sm:$0xff] }
 0x6c2   : > { %v4242_v33 = vadd.f32 %v4241_v9, %v4217_v42  ;;  %2575 = vadd.xlane.f32.xlu1 %v12462_v36  ;;  %v4192_v46 = vadd.f32 %v4191_v56, %v4167_v18  ;;  %v2651_v36 = vld [vmem:[%s17881_s6] sm:$0xff]  ;;  %v12685_v18 = vmul.f32 0.001953125, %v2542_v3 }
 0x6c4   : > { %v4243_v58 = vadd.f32 %v4242_v33, %v4218_v35  ;;  %v2582_v33 = vmul.f32 %v12685_v18, %v12685_v18 }
 0x6c5   : > { %4226 = vadd.xlane.f32.xlu0 %v4225_v34  ;;  %v4316_v34 = vld [vmem:[%s17880_s8 + $0x8] sm:$0xff] }
 0x6c6   : > { %4235 = vadd.xlane.f32.xlu1 %v4234_v20  ;;  %v12683_v20 = vmul.f32 0.001953125, %v2533_v40 }
 0x6c8   : > { %v2581_v42 = vmul.f32 %v12683_v20, %v12683_v20 }
 0x6d7   : > { %2632 = vperm.xlu1 %8734, %v2624_v28  }
 0x6db   : > { %2627 = vperm.xlu0 %8733, %v2623_v24   ;;  %4320 = vperm.xlu1 %8734, %v4315_v31  }
 0x6df   : > { %4325 = vperm.xlu1 %8734, %v4316_v34  }
 0x6e3   : > { %2655 = vperm.xlu1 %8734, %v2651_v36  }
 0x6e7   : > { %2660 = vperm.xlu1 %8734, %v2652_v26  }
 0x6eb   : > { %4362 = vperm.xlu1 %8734, %v4357_v63  }
 0x6ef   : > { %4367 = vperm.xlu1 %8734, %v4358_v51  }
 0x6fa   : > { %4244 = vadd.xlane.f32.xlu0 %v4243_v58 }
 0x710   : > { %4435 = vperm.xlu0 %8733, %v4432_v7  }
 0x713   : > { %4193 = vadd.xlane.f32.xlu1 %v4192_v46 }
 0x724   : > { %4330 = vperm.xlu1 %8734, %v4317_v16  }
 0x728   : > { %4372 = vperm.xlu1 %8734, %v4359_v13  }
 0x74a   : > { %v4176_v1 = vpop.xlane.xlu0 %4175 }
 0x74b   : > { %v4185_v37 = vpop.xlane.xlu1 %4184  ;;  %v12687_v9 = vmul.f32 0.001953125, %v4176_v1 }
 0x74c   : > { %v12691_v35 = vmul.f32 0.001953125, %v4185_v37 }
 0x74d   : > { %v4252_v34 = vmul.f32 %v12687_v9, %v12687_v9 }
 0x74e   : > { %v2567_v50 = vpop.xlane.xlu0 %2566  ;;  %v4253_v51 = vmul.f32 %v12691_v35, %v12691_v35  ;;  %v4272_v38 = vsub.f32 %v12561_v52, %v12691_v35 }
 0x74f   : > { %v2579_v56 = vmul.f32 0.001953125, %v2567_v50  ;;  %v2576_v57 = vpop.xlane.xlu1 %2575 }
 0x750   : > { %v2580_v46 = vmul.f32 0.001953125, %v2576_v57 }
 0x751   : > { %v2583_v58 = vsub.f32 %v2579_v56, %v2581_v42  ;;  %v17884_v42 = vld [vmem:[#allocation55_spill] sm:$0xff] }
 0x752   : > { %v2584_v28 = vsub.f32 %v2580_v46, %v2582_v33  ;;  %v4227_v24 = vpop.xlane.xlu0 %4226  ;;  %v2596_v57 = vsub.f32 %v17884_v42, %v12685_v18  ;;  %v17885_v33 = vld [vmem:[#allocation23_spill] sm:$0xff]  ;;  %v17892_v42 = vld [vmem:[#allocation46_spill] sm:$0xff] }
 0x753   : > { %v2585_v31 = vmax.f32 %v2583_v58, 0.0  ;;  %v4249_v36 = vmul.f32 0.001953125, %v4227_v24  ;;  %v4236_v26 = vpop.xlane.xlu1 %4235  ;;  %v2598_v46 = vsub.f32 %v17885_v33, %v12685_v18  ;;  %v17886_v58 = vld [vmem:[#allocation52_spill] sm:$0xff]  ;;  %v2587_v33 = vsub.f32 %v17892_v42, %v12683_v20 }
 0x754   : > { %v2586_v63 = vmax.f32 %v2584_v28, 0.0  ;;  %v4250_v7 = vmul.f32 0.001953125, %v4236_v26  ;;  %v2595_v28 = vsub.f32 %v17886_v58, %v12685_v18  ;;  %v4270_v42 = vsub.f32 %v12541_v0, %v12691_v35 }
 0x755   : > { %v2603_v16 = vadd.f32 1e-05, %v2585_v31  ;;  %v4255_v13 = vsub.f32 %v4249_v36, %v4252_v34  ;;  %v17887_v31 = vld [vmem:[#allocation42_spill] sm:$0xff]  ;;  %v17888_v36 = vld [vmem:[#allocation35_spill] sm:$0xff]  ;;  %v4271_v0 = vsub.f32 %v12556_v2, %v12691_v35 }
 0x756   : > { %v2604_v3 = vadd.f32 1e-05, %v2586_v63  ;;  %v4256_v40 = vsub.f32 %v4250_v7, %v4253_v51  ;;  %v2597_v34 = vsub.f32 %v17887_v31, %v12685_v18  ;;  %v17889_v7 = vld [vmem:[#allocation69_spill] sm:$0xff]  ;;  %v4261_v63 = vsub.f32 %v12528_v27, %v12687_v9 }
 0x757   : > { %8735 = vrsqrt.f32 %v2603_v16  ;;  %v4258_v1 = vmax.f32 %v4255_v13, 0.0  ;;  %v12699_v37 = vpop.permute.xlu1 %2632  ;;  %v2588_v16 = vsub.f32 %v17889_v7, %v12683_v20  ;;  %v17890_v13 = vld [vmem:[#allocation33_spill] sm:$0xff]  ;;  %v17895_v7 = vld [vmem:[#allocation76_spill] sm:$0xff] }
 0x758   : > { %8737 = vrsqrt.f32 %v2604_v3  ;;  %v4259_v50 = vmax.f32 %v4256_v40, 0.0  ;;  %v17894_v31 = vld [vmem:[#allocation53_spill] sm:$0xff]  ;;  %v4269_v40 = vsub.f32 %v12536_v43, %v12691_v35 }
 0x759   : > { %v4285_v56 = vadd.f32 1e-05, %v4258_v1  ;;  %v17891_v1 = vld [vmem:[#allocation58_spill] sm:$0xff]  ;;  %v17896_v3 = vld [vmem:[#allocation49_spill] sm:$0xff] }
 0x75a   : > { %v4286_v24 = vadd.f32 1e-05, %v4259_v50  ;;  %v2590_v50 = vsub.f32 %v17891_v1, %v12683_v20  ;;  %v4262_v1 = vsub.f32 %v12532_v15, %v12687_v9  ;;  %v4263_v15 = vsub.f32 %v12546_v60, %v12687_v9  ;;  %v12763_v43 = vpop.permute.xlu0 %2627 }
 0x75b   : > { %8739 = vrsqrt.f32 %v4285_v56  ;;  %v12713_v51 = vpop.permute.xlu1 %4320  ;;  %v17893_v56 = vld [vmem:[#allocation80_spill] sm:$0xff] }
 0x75c   : > { %8741 = vrsqrt.f32 %v4286_v24  ;;  %v2589_v58 = vsub.f32 %v17893_v56, %v12683_v20  ;;  %v17897_v24 = vld [vmem:[#allocation18_spill] sm:$0xff]  ;;  %v4264_v56 = vsub.f32 %v12551_v32, %v12687_v9 }
 0x75f   : > { %v12743_v10 = vpop.permute.xlu1 %4325 }
 0x761   : > { %v12761_v22 = vpop.eup %8735 }
 0x762   : > { %v12773_v26 = vpop.eup %8737  ;;  %v2608_v52 = vmul.f32 %v12761_v22, %v2588_v16  ;;  %v2610_v48 = vmul.f32 %v12761_v22, %v2590_v50  ;;  %v2607_v44 = vmul.f32 %v12761_v22, %v2587_v33  ;;  %v2609_v21 = vmul.f32 %v12761_v22, %v2589_v58 }
 0x763   : > { %v12779_v60 = vpop.permute.xlu1 %2655  ;;  %v2616_v2 = vmul.f32 %v12773_v26, %v2596_v57  ;;  %v2618_v59 = vmul.f32 %v12773_v26, %v2598_v46  ;;  %v2615_v32 = vmul.f32 %v12773_v26, %v2595_v28  ;;  %v2617_v27 = vmul.f32 %v12773_v26, %v2597_v34 }
 0x764   : > { %v2636_v53 = vmul.f32 %v12763_v43, %v2608_v52  ;;  %v2638_v16 = vmul.f32 %v12763_v43, %v2610_v48  ;;  %v2635_v50 = vmul.f32 %v12763_v43, %v2607_v44  ;;  %v2637_v33 = vmul.f32 %v12763_v43, %v2609_v21 }
 0x765   : > { %v12789_v4 = vpop.eup %8739  ;;  %v2644_v58 = vmul.f32 %v12699_v37, %v2616_v2  ;;  %v2646_v57 = vmul.f32 %v12699_v37, %v2618_v59  ;;  %v2643_v46 = vmul.f32 %v12699_v37, %v2615_v32  ;;  %v2645_v28 = vmul.f32 %v12699_v37, %v2617_v27 }
 0x766   : > { %v12795_v61 = vpop.eup %8741  ;;  %v2664_v34 = vadd.f32 %v12779_v60, %v2636_v53  ;;  %v4292_v48 = vmul.f32 %v12789_v4, %v4262_v1  ;;  %v2666_v44 = vadd.f32 %v12779_v60, %v2638_v16  ;;  %v4294_v21 = vmul.f32 %v12789_v4, %v4264_v56 }
 0x767   : > { %v12801_v52 = vpop.permute.xlu1 %2660  ;;  %v4300_v2 = vmul.f32 %v12795_v61, %v4270_v42  ;;  %v4302_v59 = vmul.f32 %v12795_v61, %v4272_v38  ;;  %v2663_v32 = vadd.f32 %v12779_v60, %v2635_v50  ;;  %v4291_v27 = vmul.f32 %v12789_v4, %v4261_v63 }
 0x768   : > { %v2672_v47 = vadd.f32 %v12801_v52, %v2644_v58  ;;  %v4334_v53 = vmul.f32 %v12713_v51, %v4292_v48  ;;  %v2674_v1 = vadd.f32 %v12801_v52, %v2646_v57  ;;  %v4336_v16 = vmul.f32 %v12713_v51, %v4294_v21 }
 0x769   : > { %v4342_v56 = vmul.f32 %v12743_v10, %v4300_v2  ;;  %v4344_v11 = vmul.f32 %v12743_v10, %v4302_v59  ;;  %v2671_v42 = vadd.f32 %v12801_v52, %v2643_v46  ;;  %v4299_v38 = vmul.f32 %v12795_v61, %v4269_v40 }
 0x76a   : > { %v4333_v50 = vmul.f32 %v12713_v51, %v4291_v27  ;;  %v2665_v63 = vadd.f32 %v12779_v60, %v2637_v33  ;;  %v2673_v58 = vadd.f32 %v12801_v52, %v2645_v28  ;;  %v4293_v48 = vmul.f32 %v12789_v4, %v4263_v15 }
 0x76b   : > { %v12819_v17 = vpop.permute.xlu1 %4362  ;;  %v4341_v57 = vmul.f32 %v12743_v10, %v4299_v38  ;;  %v4301_v21 = vmul.f32 %v12795_v61, %v4271_v0  ;;  %v17898_v2 = vsub.f32 %v17894_v31, %v12683_v20  ;;  %v17899_v40 = vsub.f32 %v17888_v36, %v12685_v18 }
 0x76c   : > { %v4376_v28 = vadd.f32 %v12819_v17, %v4334_v53  ;;  %v4378_v15 = vadd.f32 %v12819_v17, %v4336_v16  ;;  %v4375_v59 = vadd.f32 %v12819_v17, %v4333_v50  ;;  %v4335_v27 = vmul.f32 %v12713_v51, %v4293_v48 }
 0x76d   : > { %v2612_v46 = vmul.f32 %v12761_v22, %v17898_v2  ;;  %v2620_v33 = vmul.f32 %v12773_v26, %v17899_v40  ;;  %v4343_v0 = vmul.f32 %v12743_v10, %v4301_v21  ;;  %v17900_v2 = vsub.f32 %v12592_v29, %v12687_v9 }
 0x76e   : > { %v4400_v40 = vadd.f32 %v4376_v28, %v2664_v34  ;;  %v4402_v5 = vadd.f32 %v4378_v15, %v2666_v44  ;;  %v4399_v53 = vadd.f32 %v4375_v59, %v2663_v32  ;;  %v4377_v16 = vadd.f32 %v12819_v17, %v4335_v27 }
 0x76f   : > { %v2640_v38 = vmul.f32 %v12763_v43, %v2612_v46  ;;  %v2648_v31 = vmul.f32 %v12699_v37, %v2620_v33  ;;  %v4296_v36 = vmul.f32 %v12789_v4, %v17900_v2  ;;  %v12843_v41 = vpop.permute.xlu1 %4367  ;;  %v17901_v21 = vsub.f32 %v12601_v19, %v12691_v35 }
 0x770   : > { %v4384_v33 = vadd.f32 %v12843_v41, %v4342_v56  ;;  %v4416_v34 = vmax.f32 %v4400_v40, 0.0  ;;  %v4386_v44 = vadd.f32 %v12843_v41, %v4344_v11  ;;  %v4418_v32 = vmax.f32 %v4402_v5, 0.0 }
 0x771   : > { %v2668_v50 = vadd.f32 %v12779_v60, %v2640_v38  ;;  %v2676_v48 = vadd.f32 %v12801_v52, %v2648_v31  ;;  %v4304_v46 = vmul.f32 %v12795_v61, %v17901_v21  ;;  %v4338_v29 = vmul.f32 %v12713_v51, %v4296_v36 }
 0x772   : > { %v4383_v28 = vadd.f32 %v12843_v41, %v4341_v57  ;;  %v4415_v15 = vmax.f32 %v4399_v53, 0.0  ;;  %v4385_v59 = vadd.f32 %v12843_v41, %v4343_v0  ;;  %v4401_v27 = vadd.f32 %v4377_v16, %v2665_v63 }
 0x773   : > { %v4408_v38 = vadd.f32 %v4384_v33, %v2672_v47  ;;  %v4410_v31 = vadd.f32 %v4386_v44, %v2674_v1  ;;  %v4346_v19 = vmul.f32 %v12743_v10, %v4304_v46  ;;  %v4380_v2 = vadd.f32 %v12819_v17, %v4338_v29 }
 0x774   : > { %v4407_v21 = vadd.f32 %v4383_v28, %v2671_v42  ;;  %v4409_v36 = vadd.f32 %v4385_v59, %v2673_v58  ;;  %v4417_v8 = vmax.f32 %v4401_v27, 0.0  ;;  %v17902_v56 = vsub.f32 %v17895_v7, %v12683_v20 }
 0x775   : > { %v4424_v11 = vmax.f32 %v4408_v38, 0.0  ;;  %v4426_v57 = vmax.f32 %v4410_v31, 0.0  ;;  %v4388_v40 = vadd.f32 %v12843_v41, %v4346_v19  ;;  %v4404_v0 = vadd.f32 %v4380_v2, %v2668_v50 }
 0x776   : > { %v2614_v5 = vmul.f32 %v12761_v22, %v17902_v56  ;;  %v4423_v63 = vmax.f32 %v4407_v21, 0.0  ;;  %v4425_v47 = vmax.f32 %v4409_v36, 0.0  ;;  %v17903_v1 = vsub.f32 %v12112_v62, %v12685_v18 }
 0x777   : > { %v8667_v58 = vpack.c.bf16 %v4424_v11, %v4416_v34  ;;  %v8671_v16 = vpack.c.bf16 %v4426_v57, %v4418_v32  ;;  %v4412_v46 = vadd.f32 %v4388_v40, %v2676_v48  ;;  %v4420_v7 = vmax.f32 %v4404_v0, 0.0 }
 0x778   : > { %v2622_v53 = vmul.f32 %v12773_v26, %v17903_v1  ;;  %v2642_v42 = vmul.f32 %v12763_v43, %v2614_v5  ;;  %v8669_v29 = vpack.c.bf16 %v4423_v63, %v4415_v15  ;;  %v8673_v33 = vpack.c.bf16 %v4425_v47, %v4417_v8 }
 0x779   : > { %8668 = vmatprep.subr.bf16.mxu0 %v8667_v58  ;;  %8672 = vmatprep.subr.bf16.mxu1 %v8671_v16  ;;  %v4428_v50 = vmax.f32 %v4412_v46, 0.0  ;;  %v17904_v62 = vsub.f32 %v12609_v12, %v12687_v9  ;;  %v17905_v34 = vsub.f32 %v12620_v25, %v12691_v35  ;;  %v17906_v8 = vsub.f32 %v17896_v3, %v12683_v20  ;;  %v4431_v12 = vld [vmem:[%s17907_s12] sm:$0xff]  ;;  %s18079_s12 = sld [smem:[#allocation110_spill]] }
 0x77a   : > { %v2650_v44 = vmul.f32 %v12699_v37, %v2622_v53  ;;  %v2670_v28 = vadd.f32 %v12779_v60, %v2642_v42  ;;  %8670 = vmatpush1.bf16.msra.mxu0 %v8669_v29  ;;  %8674 = vmatpush1.bf16.msra.mxu1 %v8673_v33  ;;  %v17908_v27 = vsub.f32 %v17890_v13, %v12685_v18 }
 0x77b   : > { %v4298_v59 = vmul.f32 %v12789_v4, %v17904_v62  ;;  %v4306_v48 = vmul.f32 %v12795_v61, %v17905_v34  ;;  %v2611_v32 = vmul.f32 %v12761_v22, %v17906_v8  ;;  %v17909_v38 = vsub.f32 %v12588_v54, %v12687_v9 }
 0x77c   : > { %v2678_v15 = vadd.f32 %v12801_v52, %v2650_v44  ;;  %v2619_v25 = vmul.f32 %v12773_v26, %v17908_v27  ;;  %v8675_v31 = vpack.c.bf16 %v4428_v50, %v4420_v7  ;;  %v17910_v56 = vsub.f32 %v12596_v45, %v12691_v35 }
 0x77d   : > { %v4295_v3 = vmul.f32 %v12789_v4, %v17909_v38  ;;  %v4340_v19 = vmul.f32 %v12713_v51, %v4298_v59  ;;  %v4348_v2 = vmul.f32 %v12743_v10, %v4306_v48  ;;  %v2639_v21 = vmul.f32 %v12763_v43, %v2611_v32  ;;  %8565 = vmatmul.mubr.msk.f32.vlgmr.msra.gmra.mrb[28].mxu0 %vm17859_vm0, %v4431_v12  ;;  %vm17950_vm0 = vmmov %vm17949_vm1 }
 0x77e   : > { %v2647_v36 = vmul.f32 %v12699_v37, %v2619_v25  ;;  %v4303_v13 = vmul.f32 %v12795_v61, %v17910_v56  ;;  %v17911_v54 = vsub.f32 %v17897_v24, %v12683_v20  ;;  %8676 = vmatprep.subr.bf16.mxu0 %v8675_v31  ;;  %8566 = vmatmul.mubr.msk.f32.vlgmr.msra.gmra.mrb[28].mxu1 %vm17912_vm8, %v4431_v12  ;;  %vm17951_vm8 = vmmov %vm17950_vm0 }
 0x77f   : > { %v4337_v5 = vmul.f32 %v12713_v51, %v4295_v3  ;;  %v4382_v57 = vadd.f32 %v12819_v17, %v4340_v19  ;;  %v4390_v40 = vadd.f32 %v12843_v41, %v4348_v2  ;;  %v2667_v0 = vadd.f32 %v12779_v60, %v2639_v21  ;;  %4648 = vmatprep.mubr.f32.mxu0 %v17868_v23 }
 0x780   : > { %v2613_v11 = vmul.f32 %v12761_v22, %v17911_v54  ;;  %v2675_v45 = vadd.f32 %v12801_v52, %v2647_v36  ;;  %v4345_v63 = vmul.f32 %v12743_v10, %v4303_v13  ;;  %v17913_v22 = vsub.f32 %v12098_v14, %v12685_v18  ;;  %4719 = vmatprep.mubr.f32.mxu1 %v17868_v23 }
 0x781   : > { %v4379_v47 = vadd.f32 %v12819_v17, %v4337_v5  ;;  %v4406_v24 = vadd.f32 %v4382_v57, %v2670_v28  ;;  %v4414_v1 = vadd.f32 %v4390_v40, %v2678_v15  ;;  %v17914_v42 = vsub.f32 %v12606_v55, %v12687_v9 }
 0x782   : > { %v2621_v20 = vmul.f32 %v12773_v26, %v17913_v22  ;;  %v2641_v53 = vmul.f32 %v12763_v43, %v2613_v11  ;;  %v4387_v16 = vadd.f32 %v12843_v41, %v4345_v63  ;;  %v17915_v14 = vsub.f32 %v12616_v6, %v12691_v35 }
 0x783   : > { %v4297_v58 = vmul.f32 %v12789_v4, %v17914_v42  ;;  %v4403_v46 = vadd.f32 %v4379_v47, %v2667_v0  ;;  %v4422_v26 = vmax.f32 %v4406_v24, 0.0  ;;  %v4430_v43 = vmax.f32 %v4414_v1, 0.0 }
 0x784   : > { %v2649_v7 = vmul.f32 %v12699_v37, %v2621_v20  ;;  %v4305_v18 = vmul.f32 %v12795_v61, %v17915_v14  ;;  %v4411_v9 = vadd.f32 %v4387_v16, %v2675_v45  ;;  %v2669_v33 = vadd.f32 %v12779_v60, %v2641_v53 }
 0x785   : > { %v4339_v55 = vmul.f32 %v12713_v51, %v4297_v58  ;;  %v8679_v29 = vpack.c.bf16 %v4430_v43, %v4422_v26  ;;  %v4419_v37 = vmax.f32 %v4403_v46, 0.0  ;;  %v17918_v46 = vld [vmem:[#allocation61_spill] sm:$0xff] }
 0x786   : > { %v4347_v4 = vmul.f32 %v12743_v10, %v4305_v18  ;;  %v4427_v28 = vmax.f32 %v4411_v9, 0.0  ;;  %v2677_v6 = vadd.f32 %v12801_v52, %v2649_v7 }
 0x787   : > { %v4381_v44 = vadd.f32 %v12819_v17, %v4339_v55  ;;  %8680 = vmatprep.subr.bf16.mxu1 %v8679_v29  ;;  %v4245_v60 = vpop.xlane.xlu0 %4244 }
 0x788   : > { %v4389_v61 = vadd.f32 %v12843_v41, %v4347_v4  ;;  %v8677_v50 = vpack.c.bf16 %v4427_v28, %v4419_v37  ;;  %v4251_v52 = vmul.f32 0.001953125, %v4245_v60 }
 0x789   : > { %v4405_v35 = vadd.f32 %v4381_v44, %v2669_v33 }
 0x78a   : > { %v4413_v62 = vadd.f32 %v4389_v61, %v2677_v6  ;;  %8678 = vmatpush1.bf16.msra.mxu0 %v8677_v50 }
 0x78b   : > { %v4421_v51 = vmax.f32 %v4405_v35, 0.0 }
 0x78c   : > { %v4429_v59 = vmax.f32 %v4413_v62, 0.0 }
 0x78d   : > { %8567 = vmatmul.mubr.msk.f32.vlgmr.msra.gmra.mrb[30].mxu0 %vm17916_vm6, %v4431_v12  ;;  %vm17962_vm6 = vmmov %vm17950_vm0 }
 0x78e   : > { %v8681_v34 = vpack.c.bf16 %v4429_v59, %v4421_v51 }
 0x78f   : > { %v4436_v32 = vpop.permute.xlu0 %4435 }
 0x790   : > { %8682 = vmatpush1.bf16.msra.mxu1 %v8681_v34 }
 0x793   : > { %8568 = vmatmul.mubr.msk.f32.vlgmr.msra.gmra.mrb[30].mxu1 %vm17917_vm7, %v4431_v12  ;;  %vm17969_vm7 = vmmov %vm17950_vm0 }
 0x7a0   : > { %v4194_v10 = vpop.xlane.xlu1 %4193 }
 0x7a1   : > { %v12940_v17 = vmul.f32 0.001953125, %v4194_v10 }
 0x7a3   : > { %v4254_v41 = vmul.f32 %v12940_v17, %v12940_v17  ;;  %v4277_v20 = vsub.f32 %v12566_v39, %v12940_v17  ;;  %v4278_v24 = vsub.f32 %v12569_v49, %v12940_v17  ;;  %v4279_v1 = vsub.f32 %v12578_v30, %v12940_v17 }
 0x7a4   : > { %v4280_v7 = vsub.f32 %v17918_v46, %v12940_v17  ;;  %v12955_v43 = vpop.permute.xlu1 %4330 }
 0x7a5   : > { %v4257_v48 = vsub.f32 %v4251_v52, %v4254_v41 }
 0x7a7   : > { %v4260_v8 = vmax.f32 %v4257_v48, 0.0  ;;  %v17919_v48 = vld [vmem:[#allocation4_spill] sm:$0xff] }
 0x7a8   : > { %v12963_v6 = vpop.permute.xlu1 %4372 }
 0x7a9   : > { %v4287_v15 = vadd.f32 1e-05, %v4260_v8 }
 0x7ab   : > { %8743 = vrsqrt.f32 %v4287_v15  ;;  %v17920_v15 = vld [vmem:[#allocation25_spill] sm:$0xff] }
 0x7b5   : > { %v12944_v5 = vpop.eup %8743 }
 0x7b6   : > { %v4307_v39 = vmul.f32 %v12944_v5, %v4277_v20  ;;  %v4309_v30 = vmul.f32 %v12944_v5, %v4279_v1  ;;  %v4308_v4 = vmul.f32 %v12944_v5, %v4278_v24  ;;  %v4310_v33 = vmul.f32 %v12944_v5, %v4280_v7 }
 0x7b8   : > { %v4349_v44 = vmul.f32 %v12955_v43, %v4307_v39  ;;  %v4351_v37 = vmul.f32 %v12955_v43, %v4309_v30  ;;  %v4350_v28 = vmul.f32 %v12955_v43, %v4308_v4  ;;  %v4352_v61 = vmul.f32 %v12955_v43, %v4310_v33  ;;  %v17934_v30 = vld [vmem:[#allocation34_spill] sm:$0xff] }
 0x7ba   : > { %v4391_v35 = vadd.f32 %v12963_v6, %v4349_v44  ;;  %v4393_v62 = vadd.f32 %v12963_v6, %v4351_v37  ;;  %v4392_v34 = vadd.f32 %v12963_v6, %v4350_v28  ;;  %v4394_v41 = vadd.f32 %v12963_v6, %v4352_v61 }
 0x850   : > { %v4508_v27 = vpop.f32.mrb[28].mxu0 }
 0x851   : > { %v4509_v25 = vadd.f32 %v4508_v27, %v4436_v32  ;;  %v4579_v38 = vpop.f32.mrb[28].mxu1  ;;  %v4510_v3 = vpop.f32.mrb[29].mxu0  ;;  %v4281_v27 = vsub.f32 %v17920_v15, %v12940_v17 }
 0x852   : > { %v4580_v31 = vadd.f32 %v4579_v38, %v4436_v32  ;;  %v4511_v19 = vadd.f32 %v4510_v3, %v4436_v32  ;;  %v4581_v2 = vpop.f32.mrb[29].mxu1  ;;  %v17921_v38 = vld [vmem:[#allocation6_spill] sm:$0xff] }
 0x853   : > { %v8569_v12 = vmul.f32 -1.442695, %v4509_v25  ;;  %v4582_v21 = vadd.f32 %v4581_v2, %v4436_v32  ;;  %v4311_v20 = vmul.f32 %v12944_v5, %v4281_v27 }
 0x854   : > { %v8571_v36 = vmul.f32 -1.442695, %v4580_v31  ;;  %v8570_v56 = vmul.f32 -1.442695, %v4511_v19  ;;  %v17922_v19 = vld [vmem:[#allocation37_spill] sm:$0xff] }
 0x855   : > { %8745 = vpow2.f32 %v8569_v12  ;;  %v8572_v13 = vmul.f32 -1.442695, %v4582_v21  ;;  %v4282_v2 = vsub.f32 %v17922_v19, %v12940_v17  ;;  %v17923_v12 = vld [vmem:[#allocation63_spill] sm:$0xff] }
 0x856   : > { %8747 = vpow2.f32 %v8571_v36  ;;  %v4283_v21 = vsub.f32 %v17923_v12, %v12940_v17 }
 0x857   : > { %8749 = vpow2.f32 %v8570_v56 }
 0x858   : > { %8751 = vpow2.f32 %v8572_v13  ;;  %v4313_v7 = vmul.f32 %v12944_v5, %v4283_v21 }
 0x85a   : > { %v4355_v44 = vmul.f32 %v12955_v43, %v4313_v7 }
 0x85f   : > { %v8746_v11 = vpop.eup %8745 }
 0x860   : > { %v4650_v54 = vpop.f32.mrb[30].mxu0  ;;  %v8748_v0 = vpop.eup %8747  ;;  %v4750_v45 = vadd.f32 1.0, %v8746_v11 }
 0x861   : > { %v4651_v57 = vadd.f32 %v4650_v54, %v4436_v32  ;;  %v4652_v40 = vpop.f32.mrb[31].mxu0  ;;  %v8750_v47 = vpop.eup %8749  ;;  %v4752_v22 = vadd.f32 1.0, %v8748_v0  ;;  %v17924_v54 = vld [vmem:[#allocation5_spill] sm:$0xff] }
 0x862   : > { %v4653_v63 = vadd.f32 %v4652_v40, %v4436_v32  ;;  %v8752_v53 = vpop.eup %8751  ;;  %8753 = vrcp.f32 %v4750_v45  ;;  %v4751_v42 = vadd.f32 1.0, %v8750_v47  ;;  %v17926_v47 = vld [vmem:[#allocation7_spill] sm:$0xff] }
 0x863   : > { %v8573_v58 = vmul.f32 -1.442695, %v4651_v57  ;;  %8755 = vrcp.f32 %v4752_v22  ;;  %v4753_v14 = vadd.f32 1.0, %v8752_v53  ;;  %v17925_v57 = vld [vmem:[#allocation50_spill] sm:$0xff]  ;;  %v17927_v53 = vld [vmem:[#allocation79_spill] sm:$0xff] }
 0x864   : > { %8757 = vrcp.f32 %v4751_v42  ;;  %v8574_v49 = vmul.f32 -1.442695, %v4653_v63  ;;  %v4284_v40 = vsub.f32 %v17925_v57, %v12940_v17 }
 0x865   : > { %8759 = vrcp.f32 %v4753_v14  ;;  %v17929_v14 = vld [vmem:[#allocation83_spill] sm:$0xff] }
 0x866   : > { %v4721_v16 = vpop.f32.mrb[30].mxu1  ;;  %8761 = vpow2.f32 %v8573_v58  ;;  %v4314_v4 = vmul.f32 %v12944_v5, %v4284_v40  ;;  %v17946_v40 = vld [vmem:[#allocation36_spill] sm:$0xff] }
 0x867   : > { %v4722_v18 = vadd.f32 %v4721_v16, %v4436_v32  ;;  %v4723_v26 = vpop.f32.mrb[31].mxu1 }
 0x868   : > { %v4724_v55 = vadd.f32 %v4723_v26, %v4436_v32  ;;  %v17931_v26 = vld [vmem:[#allocation73_spill] sm:$0xff]  ;;  %v4356_v61 = vmul.f32 %v12955_v43, %v4314_v4 }
 0x869   : > { %v8575_v9 = vmul.f32 -1.442695, %v4722_v18 }
 0x86a   : > { %v8576_v29 = vmul.f32 -1.442695, %v4724_v55 }
 0x86b   : > { %8763 = vpow2.f32 %v8575_v9 }
 0x86c   : > { %8765 = vpow2.f32 %v8574_v49  ;;  %v8754_v50 = vpop.eup %8753  ;;  %v4312_v49 = vmul.f32 %v12944_v5, %v4282_v2  ;;  %v17940_v2 = vld [vmem:[#allocation66_spill] sm:$0xff] }
 0x86d   : > { %8767 = vpow2.f32 %v8576_v29  ;;  %v8756_v51 = vpop.eup %8755  ;;  %v4774_v59 = vmul.f32 %v8754_v50, %v4391_v35  ;;  %v4353_v29 = vmul.f32 %v12955_v43, %v4311_v20  ;;  %v4397_v50 = vadd.f32 %v12963_v6, %v4355_v44 }
 0x86e   : > { %v8758_v10 = vpop.eup %8757  ;;  %v4776_v60 = vmul.f32 %v8756_v51, %v4393_v62  ;;  %v4354_v37 = vmul.f32 %v12955_v43, %v4312_v49  ;;  %v17937_v43 = vld [vmem:[#allocation10_spill] sm:$0xff] }
 0x86f   : > { %v8760_v52 = vpop.eup %8759  ;;  %v4782_v8 = vadd.f32 %v4774_v59, %v17919_v48  ;;  %v4775_v32 = vmul.f32 %v8758_v10, %v4392_v34  ;;  %v4395_v5 = vadd.f32 %v12963_v6, %v4353_v29 }
 0x870   : > { %v8762_v25 = vpop.eup %8761  ;;  %v4784_v3 = vadd.f32 %v4776_v60, %v17921_v38  ;;  %v4777_v31 = vmul.f32 %v8760_v52, %v4394_v41  ;;  %v4396_v59 = vadd.f32 %v12963_v6, %v4354_v37  ;;  %v4398_v60 = vadd.f32 %v12963_v6, %v4356_v61  ;;  %v17936_v52 = vld [vmem:[#allocation8_spill] sm:$0xff] }
 0x871   : > { %v4754_v56 = vadd.f32 1.0, %v8762_v25  ;;  %v4790_v13 = vmax.f32 %v4782_v8, 0.0  ;;  %v4783_v11 = vadd.f32 %v4775_v32, %v17924_v54  ;;  %v17938_v25 = vld [vmem:[#allocation9_spill] sm:$0xff]  ;;  %v17944_v54 = vld [vmem:[#allocation74_spill] sm:$0xff] }
 0x872   : > { %v4792_v63 = vmax.f32 %v4784_v3, 0.0  ;;  %v4785_v22 = vadd.f32 %v4777_v31, %v17926_v47  ;;  %v17939_v31 = vld [vmem:[#allocation11_spill] sm:$0xff] }
 0x873   : > { %8769 = vrcp.f32 %v4754_v56  ;;  %v12984_v42 = vmul.f32 %v4790_v13, %v17927_v53  ;;  %v4791_v58 = vmax.f32 %v4783_v11, 0.0  ;;  %v17942_v56 = vld [vmem:[#allocation70_spill] sm:$0xff] }
 0x874   : > { %v4793_v46 = vmax.f32 %v4785_v22, 0.0  ;;  %v12993_v39 = vmul.f32 %v4792_v63, %v17931_v26 }
 0x875   : > { %v8764_v36 = vpop.eup %8763  ;;  %17928 = vst [vmem:[#allocation85_spill] sm:$0xff] %v12984_v42  ;;  %v4806_v17 = vpack.c.bf16 %v12984_v42, %v12984_v42  ;;  %v12990_v18 = vmul.f32 %v4791_v58, %v17929_v14 }
 0x876   : > { %v8766_v0 = vpop.eup %8765  ;;  %v4756_v45 = vadd.f32 1.0, %v8764_v36  ;;  %17932 = vst [vmem:[#allocation16_spill] sm:$0xff] %v12993_v39  ;;  %v13000_v9 = vmul.f32 %v4793_v46, %v17934_v30  ;;  %v4808_v33 = vpack.c.bf16 %v12993_v39, %v12993_v39 }
 0x877   : > { %v8768_v24 = vpop.eup %8767  ;;  %v4755_v1 = vadd.f32 1.0, %v8766_v0  ;;  %17930 = vst [vmem:[#allocation12_spill] sm:$0xff] %v12990_v18  ;;  %4822 = vrot.lane.b32.xlu0 %v4806_v17, %s17933_s18  ;;  %v4807_v55 = vpack.c.bf16 %v12990_v18, %v12990_v18 }
 0x878   : > { %8771 = vrcp.f32 %v4756_v45  ;;  %v4757_v16 = vadd.f32 1.0, %v8768_v24  ;;  %17935 = vst [vmem:[#allocation40_spill] sm:$0xff] %v13000_v9  ;;  %v4809_v28 = vpack.c.bf16 %v13000_v9, %v13000_v9 }
 0x879   : > { %8773 = vrcp.f32 %v4755_v1  ;;  %4824 = vrot.lane.b32.xlu1 %v4807_v55, %s17933_s18 }
 0x87a   : > { %8775 = vrcp.f32 %v4757_v16 }
 0x87b   : > { %4826 = vrot.lane.b32.xlu0 %v4808_v33, %s17933_s18 }
 0x87d   : > { %v8770_v35 = vpop.eup %8769  ;;  %4828 = vrot.lane.b32.xlu1 %v4809_v28, %s17933_s18 }
 0x87e   : > { %v4778_v51 = vmul.f32 %v8770_v35, %v4395_v5 }
 0x880   : > { %v4786_v48 = vadd.f32 %v4778_v51, %v17936_v52 }
 0x882   : > { %v8772_v62 = vpop.eup %8771  ;;  %v4794_v27 = vmax.f32 %v4786_v48, 0.0 }
 0x883   : > { %v8774_v34 = vpop.eup %8773  ;;  %v4780_v10 = vmul.f32 %v8772_v62, %v4397_v50 }
 0x884   : > { %v8776_v41 = vpop.eup %8775  ;;  %v4779_v8 = vmul.f32 %v8774_v34, %v4396_v59  ;;  %v13023_v12 = vmul.f32 %v4794_v27, %v17940_v2 }
 0x885   : > { %v4788_v32 = vadd.f32 %v4780_v10, %v17937_v43  ;;  %v4781_v15 = vmul.f32 %v8776_v41, %v4398_v60 }
 0x886   : > { %v4787_v38 = vadd.f32 %v4779_v8, %v17938_v25  ;;  %17941 = vst [vmem:[#allocation38_spill] sm:$0xff] %v13023_v12  ;;  %v4810_v6 = vpack.c.bf16 %v13023_v12, %v13023_v12 }
 0x887   : > { %v4796_v3 = vmax.f32 %v4788_v32, 0.0  ;;  %v4789_v19 = vadd.f32 %v4781_v15, %v17939_v31 }
 0x888   : > { %v4795_v21 = vmax.f32 %v4787_v38, 0.0  ;;  %4830 = vrot.lane.b32.xlu0 %v4810_v6, %s17933_s18 }
 0x889   : > { %v4797_v36 = vmax.f32 %v4789_v19, 0.0  ;;  %v13031_v11 = vmul.f32 %v4796_v3, %v17944_v54 }
 0x88a   : > { %v13028_v13 = vmul.f32 %v4795_v21, %v17942_v56 }
 0x88b   : > { %17945 = vst [vmem:[#allocation56_spill] sm:$0xff] %v13031_v11  ;;  %v13037_v0 = vmul.f32 %v4797_v36, %v17946_v40  ;;  %v4812_v45 = vpack.c.bf16 %v13031_v11, %v13031_v11 }
 0x88c   : > { %17943 = vst [vmem:[#allocation60_spill] sm:$0xff] %v13028_v13  ;;  %v4811_v57 = vpack.c.bf16 %v13028_v13, %v13028_v13 }
 0x88d   : > { %17947 = vst [vmem:[#allocation71_spill] sm:$0xff] %v13037_v0  ;;  %4834 = vrot.lane.b32.xlu0 %v4812_v45, %s17933_s18  ;;  %v4813_v63 = vpack.c.bf16 %v13037_v0, %v13037_v0 }
 0x88e   : > { %4832 = vrot.lane.b32.xlu1 %v4811_v57, %s17933_s18 }
 0x892   : > { %4836 = vrot.lane.b32.xlu1 %v4813_v63, %s17933_s18 }
 0x8e9   : > { %v4823_v47 = vpop.permute.xlu0 %4822 }
 0x8ea   : > { %v13047_v22 = vsel %vm17948_vm15, 0, %v4823_v47  ;;  %vm17971_vm15 = vmmov %vm17950_vm0 }
 0x8eb   : > { %4938 = vrot.lane.b32.xlu0 %v13047_v22, %s17645_s11  ;;  %4886 = vrot.lane.b32.xlu1 %v13047_v22, %s17633_s10  ;;  %v4825_v20 = vpop.permute.xlu1 %4824  ;;  %v4851_v7 = vrot.slane %v13047_v22, 4 }
 0x8ec   : > { %v13073_v58 = vsel %vm17950_vm0, %v4823_v47, %v4825_v20 }
 0x8ed   : > { %v4827_v24 = vpop.permute.xlu0 %4826  ;;  %v13136_v17 = vrot.slane %v13073_v58, 4 }
 0x8ee   : > { %v13054_v1 = vsel %vm17949_vm1, %v4825_v20, %v4827_v24  ;;  %vm17974_vm1 = vmmov %vm17950_vm0 }
 0x8ef   : > { %4990 = vrot.lane.b32.xlu0 %v13047_v22, %s17393_s4  ;;  %4890 = vrot.lane.b32.xlu1 %v13054_v1, %s17633_s10  ;;  %v13075_v16 = vpop.permute.xlu1 %4828  ;;  %v4853_v29 = vrot.slane %v13054_v1, 4 }
 0x8f0   : > { %v13083_v46 = vsel %vm17951_vm8, %v4827_v24, %v13075_v16  ;;  %vm17987_vm8 = vcmask 957440  }
 0x8f1   : > { %17952 = vst [vmem:[#allocation44_spill] sm:$0xff] %v13083_v46  ;;  %v13143_v49 = vrot.slane %v13083_v46, 4 }
 0x8f3   : > { %5042 = vrot.lane.b32.xlu0 %v13047_v22, %s17395_s21  ;;  %5507 = vrot.lane.b32.xlu1 %v13054_v1, %s17403_s1 }
 0x8f7   : > { %5094 = vrot.lane.b32.xlu0 %v13047_v22, %s17398_s3  ;;  %5555 = vrot.lane.b32.xlu1 %v13054_v1, %s17405_s24 }
 0x8fa   : > { %v13165_v55 = vpop.permute.xlu0 %4830 }
 0x8fb   : > { %5146 = vrot.lane.b32.xlu0 %v13047_v22, %s17401_s23  ;;  %5603 = vrot.lane.b32.xlu1 %v13054_v1, %s17407_s27  ;;  %v13229_v48 = vsel %vm17962_vm6, %v13075_v16, %v13165_v55  ;;  %vm17988_vm6 = vmmov %vm17987_vm8 }
 0x8fc   : > { %17963 = vst [vmem:[#allocation31_spill] sm:$0xff] %v13229_v48 }
 0x8ff   : > { %5198 = vrot.lane.b32.xlu0 %v13047_v22, %s17408_s26  ;;  %5649 = vrot.lane.b32.xlu1 %v13073_v58, %s17414_s30  ;;  %v13177_v33 = vpop.permute.xlu0 %4834 }
 0x900   : > { %v13167_v4 = vpop.permute.xlu1 %4832 }
 0x901   : > { %v13298_v47 = vsel %vm17969_vm7, %v13167_v4, %v13177_v33  ;;  %v13311_v16 = vsel %vm17971_vm15, %v13165_v55, %v13167_v4  ;;  %vm17989_vm7 = vcmask 949248  }
 0x902   : > { %17970 = vst [vmem:[#allocation41_spill] sm:$0xff] %v13298_v47  ;;  %17972 = vst [vmem:[#allocation47_spill] sm:$0xff] %v13311_v16 }
 0x903   : > { %4888 = vrot.lane.b32.xlu0 %v13073_v58, %s17633_s10  ;;  %5653 = vrot.lane.b32.xlu1 %v13083_v46, %s17414_s30  ;;  %vm17990_vm15 = vmmov %vm17989_vm7 }
 0x904   : > { %v13179_v44 = vpop.permute.xlu1 %4836 }
 0x905   : > { %v13352_v39 = vsel %vm17950_vm0, %v13179_v44, 0 }
 0x906   : > { %17976 = vst [vmem:[#allocation43_spill] sm:$0xff] %v13352_v39 }
 0x907   : > { %4892 = vrot.lane.b32.xlu0 %v13083_v46, %s17633_s10  ;;  %5098 = vrot.lane.b32.xlu1 %v13054_v1, %s17398_s3 }
 0x90b   : > { %5505 = vrot.lane.b32.xlu0 %v13073_v58, %s17403_s1  ;;  %4942 = vrot.lane.b32.xlu1 %v13054_v1, %s17645_s11 }
 0x90f   : > { %5509 = vrot.lane.b32.xlu0 %v13083_v46, %s17403_s1  ;;  %4994 = vrot.lane.b32.xlu1 %v13054_v1, %s17393_s4 }
 0x913   : > { %5553 = vrot.lane.b32.xlu0 %v13073_v58, %s17405_s24  ;;  %5046 = vrot.lane.b32.xlu1 %v13054_v1, %s17395_s21 }
 0x917   : > { %5557 = vrot.lane.b32.xlu0 %v13083_v46, %s17405_s24  ;;  %5150 = vrot.lane.b32.xlu1 %v13054_v1, %s17401_s23 }
 0x91b   : > { %5601 = vrot.lane.b32.xlu0 %v13073_v58, %s17407_s27  ;;  %5202 = vrot.lane.b32.xlu1 %v13054_v1, %s17408_s26 }
 0x91f   : > { %5605 = vrot.lane.b32.xlu0 %v13083_v46, %s17407_s27  ;;  %4912 = vrot.lane.b32.xlu1 %v4851_v7, %s17428_s17 }
 0x923   : > { %5651 = vrot.lane.b32.xlu0 %v13054_v1, %s17414_s30  ;;  %4964 = vrot.lane.b32.xlu1 %v4851_v7, %s17412_s25 }
 0x927   : > { %5096 = vrot.lane.b32.xlu0 %v13073_v58, %s17398_s3  ;;  %5016 = vrot.lane.b32.xlu1 %v4851_v7, %s17413_s0 }
 0x92b   : > { %5100 = vrot.lane.b32.xlu0 %v13083_v46, %s17398_s3  ;;  %5068 = vrot.lane.b32.xlu1 %v4851_v7, %s17416_s29 }
 0x92f   : > { %4940 = vrot.lane.b32.xlu0 %v13073_v58, %s17645_s11  ;;  %5120 = vrot.lane.b32.xlu1 %v4851_v7, %s17417_s2 }
 0x933   : > { %4944 = vrot.lane.b32.xlu0 %v13083_v46, %s17645_s11  ;;  %5172 = vrot.lane.b32.xlu1 %v4851_v7, %s17420_s20 }
 0x937   : > { %4992 = vrot.lane.b32.xlu0 %v13073_v58, %s17393_s4  ;;  %5224 = vrot.lane.b32.xlu1 %v4851_v7, %s17953_s15 }
 0x93b   : > { %4996 = vrot.lane.b32.xlu0 %v13083_v46, %s17393_s4  ;;  %4862 = vrot.lane.b32.xlu1 %v13136_v17, %s17954_s19 }
 0x93f   : > { %5044 = vrot.lane.b32.xlu0 %v13073_v58, %s17395_s21  ;;  %4866 = vrot.lane.b32.xlu1 %v13143_v49, %s17954_s19 }
 0x943   : > { %5048 = vrot.lane.b32.xlu0 %v13083_v46, %s17395_s21  ;;  %5529 = vrot.lane.b32.xlu1 %v13136_v17, %s17955_s22 }
 0x947   : > { %5148 = vrot.lane.b32.xlu0 %v13073_v58, %s17401_s23  ;;  %5533 = vrot.lane.b32.xlu1 %v13143_v49, %s17955_s22 }
 0x94b   : > { %5152 = vrot.lane.b32.xlu0 %v13083_v46, %s17401_s23  ;;  %5577 = vrot.lane.b32.xlu1 %v13136_v17, %s17956_s13 }
 0x94f   : > { %5200 = vrot.lane.b32.xlu0 %v13073_v58, %s17408_s26  ;;  %5581 = vrot.lane.b32.xlu1 %v13143_v49, %s17956_s13 }
 0x953   : > { %5204 = vrot.lane.b32.xlu0 %v13083_v46, %s17408_s26  ;;  %5625 = vrot.lane.b32.xlu1 %v13136_v17, %s17957_s14 }
 0x957   : > { %4860 = vrot.lane.b32.xlu0 %v4851_v7, %s17954_s19  ;;  %5629 = vrot.lane.b32.xlu1 %v13143_v49, %s17957_s14 }
 0x95b   : > { %5072 = vrot.lane.b32.xlu1 %v4853_v29, %s17416_s29  ;;  %4864 = vrot.lane.b32.xlu0 %v4853_v29, %s17954_s19 }
 0x95d   : > { %v13183_v37 = vpop.permute.xlu1 %4886  ;;  %v13185_v28 = vpop.permute.xlu0 %4938 }
 0x95f   : > { %4914 = vrot.lane.b32.xlu1 %v13136_v17, %s17428_s17  ;;  %5531 = vrot.lane.b32.xlu0 %v4853_v29, %s17955_s22 }
 0x961   : > { %v13190_v61 = vpop.permute.xlu1 %4890  ;;  %v13192_v5 = vpop.permute.xlu0 %4990 }
 0x962   : > { %17958 = vst [vmem:[#allocation64_spill] sm:$0xff] %v13190_v61 }
 0x963   : > { %4968 = vrot.lane.b32.xlu1 %v4853_v29, %s17412_s25  ;;  %5579 = vrot.lane.b32.xlu0 %v4853_v29, %s17956_s13 }
 0x965   : > { %v13196_v35 = vpop.permute.xlu1 %5507  ;;  %v13198_v50 = vpop.permute.xlu0 %5042 }
 0x967   : > { %5020 = vrot.lane.b32.xlu1 %v4853_v29, %s17413_s0  ;;  %5627 = vrot.lane.b32.xlu0 %v4853_v29, %s17957_s14 }
 0x969   : > { %v13202_v62 = vpop.permute.xlu1 %5555  ;;  %v13204_v51 = vpop.permute.xlu0 %5094 }
 0x96a   : > { %17959 = vst [vmem:[#allocation27_spill] sm:$0xff] %v13202_v62 }
 0x96b   : > { %5124 = vrot.lane.b32.xlu1 %v4853_v29, %s17417_s2  ;;  %5070 = vrot.lane.b32.xlu0 %v13136_v17, %s17416_s29 }
 0x96d   : > { %v13209_v59 = vpop.permute.xlu1 %5603  ;;  %v13211_v34 = vpop.permute.xlu0 %5146 }
 0x96e   : > { %17960 = vst [vmem:[#allocation48_spill] sm:$0xff] %v13209_v59 }
 0x96f   : > { %5176 = vrot.lane.b32.xlu1 %v4853_v29, %s17420_s20  ;;  %5074 = vrot.lane.b32.xlu0 %v13143_v49, %s17416_s29 }
 0x971   : > { %v13216_v10 = vpop.permute.xlu1 %5649  ;;  %v13218_v60 = vpop.permute.xlu0 %5198 }
 0x973   : > { %5228 = vrot.lane.b32.xlu1 %v4853_v29, %s17953_s15  ;;  %4916 = vrot.lane.b32.xlu0 %v4853_v29, %s17428_s17 }
 0x975   : > { %v13222_v41 = vpop.permute.xlu1 %5653  ;;  %v13224_v52 = vpop.permute.xlu0 %4888 }
 0x976   : > { %17961 = vst [vmem:[#allocation51_spill] sm:$0xff] %v13222_v41 }
 0x977   : > { %4918 = vrot.lane.b32.xlu0 %v13143_v49, %s17428_s17  ;;  %4894 = vrot.lane.b32.xlu1 %v13229_v48, %s17633_s10 }
 0x979   : > { %v13235_v8 = vpop.permute.xlu1 %5098  ;;  %v13237_v43 = vpop.permute.xlu0 %4892 }
 0x97a   : > { %17964 = vst [vmem:[#allocation45_spill] sm:$0xff] %v13237_v43 }
 0x97b   : > { %4966 = vrot.lane.b32.xlu0 %v13136_v17, %s17412_s25  ;;  %5607 = vrot.lane.b32.xlu1 %v13229_v48, %s17407_s27 }
 0x97d   : > { %v13243_v32 = vpop.permute.xlu1 %4942  ;;  %v13245_v15 = vpop.permute.xlu0 %5505 }
 0x97f   : > { %4970 = vrot.lane.b32.xlu0 %v13143_v49, %s17412_s25  ;;  %5102 = vrot.lane.b32.xlu1 %v13229_v48, %s17398_s3 }
 0x981   : > { %v13251_v27 = vpop.permute.xlu1 %4994  ;;  %v13253_v25 = vpop.permute.xlu0 %5509 }
 0x982   : > { %17965 = vst [vmem:[#allocation28_spill] sm:$0xff] %v13253_v25  ;;  %v4904_v25 = vsel %vm1104_vm5, %v13183_v37, %v13224_v52 }
 0x983   : > { %5018 = vrot.lane.b32.xlu0 %v13136_v17, %s17413_s0  ;;  %4946 = vrot.lane.b32.xlu1 %v13229_v48, %s17645_s11 }
 0x985   : > { %v13259_v38 = vpop.permute.xlu1 %5046  ;;  %v13261_v3 = vpop.permute.xlu0 %5553 }
 0x987   : > { %5022 = vrot.lane.b32.xlu0 %v13143_v49, %s17413_s0  ;;  %4998 = vrot.lane.b32.xlu1 %v13229_v48, %s17393_s4 }
 0x989   : > { %v13267_v31 = vpop.permute.xlu1 %5150  ;;  %v13269_v19 = vpop.permute.xlu0 %5557 }
 0x98a   : > { %17966 = vst [vmem:[#allocation24_spill] sm:$0xff] %v13269_v19  ;;  %v4905_v19 = vsel %vm1104_vm5, %v13224_v52, %v13190_v61  ;;  %v13498_v61 = vrot.slane %v13229_v48, 4 }
 0x98b   : > { %5122 = vrot.lane.b32.xlu0 %v13136_v17, %s17417_s2  ;;  %5050 = vrot.lane.b32.xlu1 %v13229_v48, %s17395_s21 }
 0x98d   : > { %v13275_v21 = vpop.permute.xlu1 %5202  ;;  %v13277_v36 = vpop.permute.xlu0 %5601 }
 0x98f   : > { %5126 = vrot.lane.b32.xlu0 %v13143_v49, %s17417_s2  ;;  %5154 = vrot.lane.b32.xlu1 %v13229_v48, %s17401_s23 }
 0x991   : > { %v13283_v6 = vpop.permute.xlu1 %4912  ;;  %v13285_v57 = vpop.permute.xlu0 %5605 }
 0x992   : > { %17967 = vst [vmem:[#allocation62_spill] sm:$0xff] %v13285_v57 }
 0x993   : > { %5174 = vrot.lane.b32.xlu0 %v13136_v17, %s17420_s20  ;;  %5206 = vrot.lane.b32.xlu1 %v13229_v48, %s17408_s26 }
 0x995   : > { %v13291_v45 = vpop.permute.xlu1 %4964  ;;  %v13293_v63 = vpop.permute.xlu0 %5651 }
 0x996   : > { %17968 = vst [vmem:[#allocation26_spill] sm:$0xff] %v13293_v63 }
 0x997   : > { %5178 = vrot.lane.b32.xlu0 %v13143_v49, %s17420_s20  ;;  %4898 = vrot.lane.b32.xlu1 %v13298_v47, %s17633_s10 }
 0x999   : > { %v13304_v20 = vpop.permute.xlu1 %5016  ;;  %v13306_v24 = vpop.permute.xlu0 %5096 }
 0x99b   : > { %5226 = vrot.lane.b32.xlu0 %v13136_v17, %s17953_s15  ;;  %5513 = vrot.lane.b32.xlu1 %v13311_v16, %s17403_s1 }
 0x99d   : > { %v13317_v7 = vpop.permute.xlu1 %5068  ;;  %v13319_v29 = vpop.permute.xlu0 %5100 }
 0x99f   : > { %5230 = vrot.lane.b32.xlu0 %v13143_v49, %s17953_s15  ;;  %5561 = vrot.lane.b32.xlu1 %v13311_v16, %s17405_s24  ;;  %v13340_v49 = vsel %vm17974_vm1, %v13177_v33, %v13179_v44  ;;  %vm17991_vm1 = vcmask 883712  }
 0x9a0   : > { %17975 = vst [vmem:[#allocation68_spill] sm:$0xff] %v13340_v49  ;;  %vm17992_vm0 = vmmov %vm17991_vm1 }
 0x9a1   : > { %v13325_v11 = vpop.permute.xlu1 %5120  ;;  %v13327_v55 = vpop.permute.xlu0 %4940 }
 0x9a3   : > { %5511 = vrot.lane.b32.xlu0 %v13229_v48, %s17403_s1  ;;  %5657 = vrot.lane.b32.xlu1 %v13311_v16, %s17414_s30 }
 0x9a5   : > { %v13333_v17 = vpop.permute.xlu1 %5172  ;;  %v13335_v4 = vpop.permute.xlu0 %4944 }
 0x9a6   : > { %17973 = vst [vmem:[#allocation57_spill] sm:$0xff] %v13335_v4 }
 0x9a7   : > { %5559 = vrot.lane.b32.xlu0 %v13229_v48, %s17405_s24  ;;  %5517 = vrot.lane.b32.xlu1 %v13340_v49, %s17403_s1 }
 0x9a9   : > { %v13346_v12 = vpop.permute.xlu1 %5224  ;;  %v13348_v0 = vpop.permute.xlu0 %4992 }
 0x9ab   : > { %5519 = vrot.lane.b32.xlu1 %v13352_v39, %s17403_s1  ;;  %5655 = vrot.lane.b32.xlu0 %v13229_v48, %s17414_s30 }
 0x9ad   : > { %v4863_v33 = vpop.permute.xlu1 %4862  ;;  %v13358_v23 = vpop.permute.xlu0 %4996 }
 0x9ae   : > { %17977 = vst [vmem:[#allocation72_spill] sm:$0xff] %v13358_v23 }
 0x9af   : > { %5563 = vrot.lane.b32.xlu1 %v13298_v47, %s17405_s24  ;;  %4896 = vrot.lane.b32.xlu0 %v13311_v16, %s17633_s10 }
 0x9b1   : > { %v13364_v13 = vpop.permute.xlu1 %4866  ;;  %v13366_v9 = vpop.permute.xlu0 %5044 }
 0x9b3   : > { %5613 = vrot.lane.b32.xlu1 %v13340_v49, %s17407_s27  ;;  %5609 = vrot.lane.b32.xlu0 %v13311_v16, %s17407_s27 }
 0x9b5   : > { %v13372_v44 = vpop.permute.xlu1 %5529  ;;  %v13374_v42 = vpop.permute.xlu0 %5048 }
 0x9b6   : > { %17978 = vst [vmem:[#allocation77_spill] sm:$0xff] %v13374_v42 }
 0x9b7   : > { %5615 = vrot.lane.b32.xlu1 %v13352_v39, %s17407_s27  ;;  %5104 = vrot.lane.b32.xlu0 %v13311_v16, %s17398_s3 }
 0x9b9   : > { %v13380_v18 = vpop.permute.xlu1 %5533  ;;  %v13382_v40 = vpop.permute.xlu0 %5148 }
 0x9bb   : > { %5659 = vrot.lane.b32.xlu1 %v13298_v47, %s17414_s30  ;;  %5515 = vrot.lane.b32.xlu0 %v13298_v47, %s17403_s1 }
 0x9bd   : > { %v13388_v54 = vpop.permute.xlu1 %5577  ;;  %v13390_v56 = vpop.permute.xlu0 %5152 }
 0x9be   : > { %17979 = vst [vmem:[#allocation19_spill] sm:$0xff] %v13390_v56 }
 0x9bf   : > { %5663 = vrot.lane.b32.xlu1 %v13352_v39, %s17414_s30  ;;  %5565 = vrot.lane.b32.xlu0 %v13340_v49, %s17405_s24 }
 0x9c1   : > { %v13396_v2 = vpop.permute.xlu1 %5581  ;;  %v13398_v30 = vpop.permute.xlu0 %5200 }
 0x9c3   : > { %5108 = vrot.lane.b32.xlu1 %v13340_v49, %s17398_s3  ;;  %5567 = vrot.lane.b32.xlu0 %v13352_v39, %s17405_s24 }
 0x9c5   : > { %v13404_v26 = vpop.permute.xlu1 %5625  ;;  %v13406_v14 = vpop.permute.xlu0 %5204 }
 0x9c6   : > { %17980 = vst [vmem:[#allocation20_spill] sm:$0xff] %v13406_v14 }
 0x9c7   : > { %4900 = vrot.lane.b32.xlu1 %v13340_v49, %s17633_s10  ;;  %5611 = vrot.lane.b32.xlu0 %v13298_v47, %s17407_s27 }
 0x9c9   : > { %v13412_v53 = vpop.permute.xlu1 %5629  ;;  %v4861_v56 = vpop.permute.xlu0 %4860 }
 0x9ca   : > { %17981 = vst [vmem:[#allocation29_spill] sm:$0xff] %v13412_v53  ;;  %v4878_v42 = vsel %vm1077_vm2, %v4861_v56, %v4863_v33 }
 0x9cb   : > { %4948 = vrot.lane.b32.xlu1 %v13311_v16, %s17645_s11  ;;  %5661 = vrot.lane.b32.xlu0 %v13340_v49, %s17414_s30  ;;  %v13436_v56 = vsel %vm1464_vm3, %v13047_v22, %v4878_v42 }
 0x9cc   : > { %17982 = vst [vmem:[#allocation39_spill] sm:$0xff] %v13436_v56 }
 0x9cd   : > { %v13419_v23 = vpop.permute.xlu1 %5072  ;;  %v13421_v14 = vpop.permute.xlu0 %4864 }
 0x9ce   : > { %v4879_v63 = vsel %vm1077_vm2, %v4863_v33, %v13421_v14 }
 0x9cf   : > { %4952 = vrot.lane.b32.xlu1 %v13340_v49, %s17645_s11  ;;  %5106 = vrot.lane.b32.xlu0 %v13298_v47, %s17398_s3  ;;  %v13431_v41 = vsel %vm1464_vm3, %v13073_v58, %v4879_v63 }
 0x9d0   : > { %6052 = vmatprep.subr.bf16.mxu0 %v13431_v41 }
 0x9d1   : > { %v4915_v57 = vpop.permute.xlu1 %4914  ;;  %6053 = vmatpush1.bf16.msra.mxu0 %v13436_v56  ;;  %v13439_v33 = vpop.permute.xlu0 %5531 }
 0x9d2   : > { %v4930_v46 = vsel %vm1131_vm4, %v13283_v6, %v4915_v57 }
 0x9d3   : > { %5000 = vrot.lane.b32.xlu1 %v13311_v16, %s17393_s4  ;;  %5110 = vrot.lane.b32.xlu0 %v13352_v39, %s17398_s3  ;;  %v5283_v56 = vsel %vm1464_vm3, %v4904_v25, %v4930_v46  ;;  %v4956_v46 = vsel %vm17987_vm8, %v13185_v28, %v13327_v55  ;;  %vm17993_vm8 = vcmask 875520  }
 0x9d5   : > { %v13445_v4 = vpop.permute.xlu1 %4968  ;;  %v13447_v58 = vpop.permute.xlu0 %5579 }
 0x9d6   : > { %17983 = vst [vmem:[#allocation14_spill] sm:$0xff] %v13447_v58 }
 0x9d7   : > { %5004 = vrot.lane.b32.xlu1 %v13340_v49, %s17393_s4  ;;  %4902 = vrot.lane.b32.xlu0 %v13352_v39, %s17633_s10 }
 0x9d9   : > { %v13453_v42 = vpop.permute.xlu1 %5020  ;;  %v13455_v22 = vpop.permute.xlu0 %5627 }
 0x9da   : > { %17984 = vst [vmem:[#allocation75_spill] sm:$0xff] %v13455_v22 }
 0x9db   : > { %5052 = vrot.lane.b32.xlu1 %v13311_v16, %s17395_s21  ;;  %4950 = vrot.lane.b32.xlu0 %v13298_v47, %s17645_s11 }
 0x9dd   : > { %v13461_v63 = vpop.permute.xlu1 %5124  ;;  %v13463_v53 = vpop.permute.xlu0 %5070 }
 0x9df   : > { %5056 = vrot.lane.b32.xlu1 %v13340_v49, %s17395_s21  ;;  %4954 = vrot.lane.b32.xlu0 %v13352_v39, %s17645_s11 }
 0x9e1   : > { %v13469_v59 = vpop.permute.xlu1 %5176  ;;  %v13471_v43 = vpop.permute.xlu0 %5074 }
 0x9e2   : > { %17985 = vst [vmem:[#allocation59_spill] sm:$0xff] %v13471_v43 }
 0x9e3   : > { %5156 = vrot.lane.b32.xlu1 %v13311_v16, %s17401_s23  ;;  %5002 = vrot.lane.b32.xlu0 %v13298_v47, %s17393_s4 }
 0x9e5   : > { %v13479_v22 = vpop.permute.xlu1 %5228  ;;  %v13481_v62 = vpop.permute.xlu0 %4916 }
 0x9e6   : > { %v4931_v43 = vsel %vm1131_vm4, %v4915_v57, %v13481_v62 }
 0x9e7   : > { %5160 = vrot.lane.b32.xlu1 %v13340_v49, %s17401_s23  ;;  %5006 = vrot.lane.b32.xlu0 %v13352_v39, %s17393_s4  ;;  %v5287_v6 = vsel %vm1464_vm3, %v4905_v19, %v4931_v43  ;;  %v4957_v43 = vsel %vm17988_vm6, %v13327_v55, %v13243_v32  ;;  %vm17994_vm6 = vmmov %vm17993_vm8 }
 0x9e8   : > { %6054 = vmatprep.subr.bf16.mxu0 %v5287_v6 }
 0x9e9   : > { %v13500_v58 = vpop.permute.xlu1 %4894  ;;  %6055 = vmatpush1.bf16.msra.mxu0 %v5283_v56  ;;  %v13502_v57 = vpop.permute.xlu0 %4918 }
 0x9eb   : > { %5631 = vrot.lane.b32.xlu1 %v13498_v61, %s17957_s14  ;;  %5054 = vrot.lane.b32.xlu0 %v13298_v47, %s17395_s21 }
 0x9ed   : > { %v13508_v37 = vpop.permute.xlu1 %5607  ;;  %v4967_v52 = vpop.permute.xlu0 %4966 }
 0x9ee   : > { %17986 = vst [vmem:[#allocation78_spill] sm:$0xff] %v13508_v37  ;;  %v4982_v25 = vsel %vm17989_vm7, %v13291_v45, %v4967_v52  ;;  %v4983_v19 = vsel %vm17990_vm15, %v4967_v52, %v13445_v4  ;;  %v5008_v45 = vsel %vm17991_vm1, %v13192_v5, %v13348_v0  ;;  %vm17995_vm7 = vcmask 867328  }
 0x9ef   : > { %4920 = vrot.lane.b32.xlu1 %v13498_v61, %s17428_s17  ;;  %5058 = vrot.lane.b32.xlu0 %v13352_v39, %s17395_s21  ;;  %v5319_v56 = vsel %vm1464_vm3, %v4957_v43, %v4983_v19  ;;  %v5315_v28 = vsel %vm1464_vm3, %v4956_v46, %v4982_v25  ;;  %v5009_v46 = vsel %vm17992_vm0, %v13348_v0, %v13251_v27  ;;  %vm17996_vm15 = vmmov %vm17995_vm7  ;;  %vm17997_vm1 = vcmask 211968  }
 0x9f0   : > { %6056 = vmatprep.subr.bf16.mxu0 %v5319_v56  ;;  %v13549_v56 = vsel %vm1293_vm11, %v13463_v53, %v13419_v23  ;;  %v5086_v37 = vsel %vm1293_vm11, %v13317_v7, %v13463_v53  ;;  %vm17998_vm0 = vmmov %vm17997_vm1 }
 0x9f1   : > { %v13526_v6 = vpop.permute.xlu1 %5102  ;;  %6057 = vmatpush1.bf16.msra.mxu0 %v5315_v28  ;;  %v13528_v55 = vpop.permute.xlu0 %4970 }
 0x9f3   : > { %4972 = vrot.lane.b32.xlu1 %v13498_v61, %s17412_s25  ;;  %5158 = vrot.lane.b32.xlu0 %v13298_v47, %s17401_s23 }
 0x9f5   : > { %v13537_v52 = vpop.permute.xlu1 %4946  ;;  %v5019_v43 = vpop.permute.xlu0 %5018 }
 0x9f6   : > { %v5034_v25 = vsel %vm17993_vm8, %v13304_v20, %v5019_v43  ;;  %v5035_v19 = vsel %vm17994_vm6, %v5019_v43, %v13453_v42  ;;  %v5061_v20 = vsel %vm17995_vm7, %v13366_v9, %v13259_v38  ;;  %vm17999_vm8 = vcmask 220160  }
 0x9f7   : > { %5024 = vrot.lane.b32.xlu1 %v13498_v61, %s17413_s0  ;;  %5162 = vrot.lane.b32.xlu0 %v13352_v39, %s17401_s23  ;;  %v5351_v5 = vsel %vm1464_vm3, %v5009_v46, %v5035_v19  ;;  %v5347_v0 = vsel %vm1464_vm3, %v5008_v45, %v5034_v25  ;;  %v5383_v48 = vsel %vm1464_vm3, %v5061_v20, %v13549_v56  ;;  %vm18000_vm6 = vmmov %vm17999_vm8  ;;  %vm18002_vm7 = vcmask 146432  }
 0x9f8   : > { %6058 = vmatprep.subr.bf16.mxu0 %v5351_v5  ;;  %v5060_v45 = vsel %vm17996_vm15, %v13198_v50, %v13366_v9  ;;  %v13586_v9 = vsel %vm17999_vm8, %v13306_v24, %v13235_v8  ;;  %v5112_v50 = vsel %vm18000_vm6, %v13204_v51, %v13306_v24  ;;  %v13607_v51 = vrot.slane %v13311_v16, 4  ;;  %vm18003_vm15 = vmmov %vm18002_vm7 }
 0x9f9   : > { %v13560_v28 = vpop.permute.xlu1 %4998  ;;  %6059 = vmatpush1.bf16.msra.mxu0 %v5347_v0  ;;  %v13562_v43 = vpop.permute.xlu0 %5022  ;;  %v5379_v46 = vsel %vm1464_vm3, %v5060_v45, %v5086_v37  ;;  %vm18010_vm8 = vcmask 130048  }
 0x9fa   : > { %6060 = vmatprep.subr.bf16.mxu0 %v5383_v48  ;;  %18001 = vst [vmem:[#allocation84_spill] sm:$0xff] %v13607_v51  ;;  %vm18011_vm6 = vmmov %vm18010_vm8 }
 0x9fb   : > { %5128 = vrot.lane.b32.xlu1 %v13498_v61, %s17417_s2  ;;  %4868 = vrot.lane.b32.xlu0 %v13498_v61, %s17954_s19 }
 0x9fd   : > { %v13577_v25 = vpop.permute.xlu1 %5050  ;;  %6061 = vmatpush1.bf16.msra.mxu0 %v5379_v46  ;;  %v5123_v19 = vpop.permute.xlu0 %5122  ;;  %v5164_v46 = vsel %vm18002_vm7, %v13211_v34, %v13382_v40  ;;  %vm18012_vm7 = vcmask 64512  }
 0x9fe   : > { %v5138_v7 = vsel %vm17997_vm1, %v13325_v11, %v5123_v19  ;;  %v5139_v48 = vsel %vm17998_vm0, %v5123_v19, %v13461_v63  ;;  %v5165_v19 = vsel %vm18003_vm15, %v13382_v40, %v13267_v31  ;;  %vm18004_vm1 = vcmask 138240   ;;  %vm18013_vm15 = vmmov %vm18012_vm7 }
 0x9ff   : > { %5180 = vrot.lane.b32.xlu1 %v13498_v61, %s17420_s20  ;;  %5535 = vrot.lane.b32.xlu0 %v13498_v61, %s17955_s22  ;;  %v5415_v11 = vsel %vm1464_vm3, %v13586_v9, %v5139_v48  ;;  %v5411_v37 = vsel %vm1464_vm3, %v5112_v50, %v5138_v7  ;;  %vm18005_vm0 = vmmov %vm18004_vm1  ;;  %v13631_v40 = vrot.slane %v13340_v49, 4 }
 0xa00   : > { %6062 = vmatprep.subr.bf16.mxu0 %v5415_v11  ;;  %v13628_v11 = vrot.slane %v13298_v47, 4 }
 0xa01   : > { %v13598_v5 = vpop.permute.xlu1 %5154  ;;  %6063 = vmatpush1.bf16.msra.mxu0 %v5411_v37  ;;  %v13600_v0 = vpop.permute.xlu0 %5126  ;;  %18007 = vst [vmem:[#allocation81_spill] sm:$0xff] %v13631_v40 }
 0xa02   : > { %18006 = vst [vmem:[#allocation54_spill] sm:$0xff] %v13628_v11 }
 0xa03   : > { %5232 = vrot.lane.b32.xlu1 %v13498_v61, %s17953_s15  ;;  %5583 = vrot.lane.b32.xlu0 %v13498_v61, %s17956_s13 }
 0xa05   : > { %v13609_v20 = vpop.permute.xlu1 %5206  ;;  %v5175_v45 = vpop.permute.xlu0 %5174 }
 0xa06   : > { %v5190_v7 = vsel %vm18004_vm1, %v13333_v17, %v5175_v45  ;;  %v5191_v48 = vsel %vm18005_vm0, %v5175_v45, %v13469_v59  ;;  %vm18048_vm1 = vcmask 220160   ;;  %vm18053_vm0 = vcmask 400384  }
 0xa07   : > { %4870 = vrot.lane.b32.xlu1 %v13607_v51, %s17954_s19  ;;  %5076 = vrot.lane.b32.xlu0 %v13498_v61, %s17416_s29  ;;  %v5447_v50 = vsel %vm1464_vm3, %v5165_v19, %v5191_v48  ;;  %v5443_v34 = vsel %vm1464_vm3, %v5164_v46, %v5190_v7  ;;  %v13642_v61 = vrot.slane %v13352_v39, 4  ;;  %v5216_v19 = vsel %vm18010_vm8, %v13218_v60, %v13398_v30 }
 0xa08   : > { %6064 = vmatprep.subr.bf16.mxu0 %v5447_v50  ;;  %v5217_v7 = vsel %vm18011_vm6, %v13398_v30, %v13275_v21  ;;  %vm18056_vm8 = vcmask 318464   ;;  %vm18059_vm6 = vmmov %vm18053_vm0 }
 0xa09   : > { %v13633_v17 = vpop.permute.xlu1 %4898  ;;  %6065 = vmatpush1.bf16.msra.mxu0 %v5443_v34  ;;  %v13635_v37 = vpop.permute.xlu0 %5178  ;;  %18009 = vst [vmem:[#allocation55_spill] sm:$0xff] %v13642_v61 }
 0xa0a   : > { %18008 = vst [vmem:[#allocation82_spill] sm:$0xff] %v13633_v17 }
 0xa0b   : > { %4874 = vrot.lane.b32.xlu1 %v13631_v40, %s17954_s19  ;;  %4872 = vrot.lane.b32.xlu0 %v13628_v11, %s17954_s19 }
 0xa0d   : > { %v13644_v45 = vpop.permute.xlu1 %5513  ;;  %v5227_v46 = vpop.permute.xlu0 %5226 }
 0xa0e   : > { %v5242_v48 = vsel %vm18012_vm7, %v13346_v12, %v5227_v46  ;;  %v5243_v50 = vsel %vm18013_vm15, %v5227_v46, %v13479_v22  ;;  %vm18062_vm7 = vcmask 384000   ;;  %vm18063_vm15 = vmmov %vm18056_vm8 }
 0xa0f   : > { %5537 = vrot.lane.b32.xlu1 %v13607_v51, %s17955_s22  ;;  %4876 = vrot.lane.b32.xlu0 %v13642_v61, %s17954_s19  ;;  %v5479_v34 = vsel %vm1464_vm3, %v5217_v7, %v5243_v50  ;;  %v5475_v60 = vsel %vm1464_vm3, %v5216_v19, %v5242_v48 }
 0xa10   : > { %6066 = vmatprep.subr.bf16.mxu0 %v5479_v34 }
 0xa11   : > { %v13662_v17 = vpop.permute.xlu1 %5561  ;;  %6067 = vmatpush1.bf16.msra.mxu0 %v5475_v60  ;;  %v13664_v30 = vpop.permute.xlu0 %5230 }
 0xa12   : > { %18014 = vst [vmem:[#allocation23_spill] sm:$0xff] %v13662_v17  ;;  %v18064_v17 = vld [vmem:[#allocation75_spill] sm:$0xff] }
 0xa13   : > { %5585 = vrot.lane.b32.xlu1 %v13607_v51, %s17956_s13  ;;  %5633 = vrot.lane.b32.xlu0 %v13607_v51, %s17957_s14  ;;  %v5641_v16 = vsel %vm1875_vm13, %v13404_v26, %v18064_v17 }
 0xa15   : > { %v13670_v12 = vpop.permute.xlu1 %5657  ;;  %v13672_v46 = vpop.permute.xlu0 %5511 }
 0xa16   : > { %18015 = vst [vmem:[#allocation52_spill] sm:$0xff] %v13670_v12 }
 0xa17   : > { %5078 = vrot.lane.b32.xlu1 %v13607_v51, %s17416_s29  ;;  %5539 = vrot.lane.b32.xlu0 %v13628_v11, %s17955_s22 }
 0xa19   : > { %v13678_v19 = vpop.permute.xlu1 %5517  ;;  %v13680_v7 = vpop.permute.xlu0 %5559 }
 0xa1a   : > { %18016 = vst [vmem:[#allocation42_spill] sm:$0xff] %v13678_v19 }
 0xa1b   : > { %5541 = vrot.lane.b32.xlu1 %v13631_v40, %s17955_s22  ;;  %5543 = vrot.lane.b32.xlu0 %v13642_v61, %s17955_s22 }
 0xa1d   : > { %v13686_v48 = vpop.permute.xlu1 %5519  ;;  %v13688_v50 = vpop.permute.xlu0 %5655 }
 0xa1e   : > { %18017 = vst [vmem:[#allocation35_spill] sm:$0xff] %v13686_v48 }
 0xa1f   : > { %5587 = vrot.lane.b32.xlu1 %v13628_v11, %s17956_s13  ;;  %5589 = vrot.lane.b32.xlu0 %v13631_v40, %s17956_s13 }
 0xa21   : > { %v13694_v34 = vpop.permute.xlu1 %5563  ;;  %v13696_v60 = vpop.permute.xlu0 %4896 }
 0xa22   : > { %18018 = vst [vmem:[#allocation69_spill] sm:$0xff] %v13694_v34  ;;  %18019 = vst [vmem:[#allocation33_spill] sm:$0xff] %v13696_v60 }
 0xa23   : > { %5591 = vrot.lane.b32.xlu1 %v13642_v61, %s17956_s13  ;;  %5635 = vrot.lane.b32.xlu0 %v13628_v11, %s17957_s14 }
 0xa25   : > { %v13702_v19 = vpop.permute.xlu1 %5613  ;;  %v13704_v48 = vpop.permute.xlu0 %5609 }
 0xa26   : > { %18020 = vst [vmem:[#allocation58_spill] sm:$0xff] %v13702_v19  ;;  %18021 = vst [vmem:[#allocation46_spill] sm:$0xff] %v13704_v48 }
 0xa27   : > { %5637 = vrot.lane.b32.xlu1 %v13631_v40, %s17957_s14  ;;  %5082 = vrot.lane.b32.xlu0 %v13631_v40, %s17416_s29 }
 0xa29   : > { %v13710_v39 = vpop.permute.xlu1 %5615  ;;  %v13712_v34 = vpop.permute.xlu0 %5104 }
 0xa2a   : > { %18022 = vst [vmem:[#allocation80_spill] sm:$0xff] %v13710_v39 }
 0xa2b   : > { %5080 = vrot.lane.b32.xlu1 %v13628_v11, %s17416_s29  ;;  %5639 = vrot.lane.b32.xlu0 %v13642_v61, %s17957_s14 }
 0xa2d   : > { %v13718_v60 = vpop.permute.xlu1 %5659  ;;  %v13720_v19 = vpop.permute.xlu0 %5515 }
 0xa2e   : > { %18023 = vst [vmem:[#allocation53_spill] sm:$0xff] %v13718_v60  ;;  %18024 = vst [vmem:[#allocation76_spill] sm:$0xff] %v13720_v19 }
 0xa2f   : > { %4922 = vrot.lane.b32.xlu1 %v13607_v51, %s17428_s17  ;;  %5084 = vrot.lane.b32.xlu0 %v13642_v61, %s17416_s29 }
 0xa31   : > { %v13726_v49 = vpop.permute.xlu1 %5663  ;;  %v13728_v39 = vpop.permute.xlu0 %5565 }
 0xa32   : > { %18025 = vst [vmem:[#allocation49_spill] sm:$0xff] %v13726_v49  ;;  %18026 = vst [vmem:[#allocation18_spill] sm:$0xff] %v13728_v39 }
 0xa33   : > { %4926 = vrot.lane.b32.xlu1 %v13631_v40, %s17428_s17  ;;  %4924 = vrot.lane.b32.xlu0 %v13628_v11, %s17428_s17 }
 0xa35   : > { %v13734_v12 = vpop.permute.xlu1 %5108  ;;  %v13736_v60 = vpop.permute.xlu0 %5567 }
 0xa36   : > { %18027 = vst [vmem:[#allocation61_spill] sm:$0xff] %v13734_v12  ;;  %18028 = vst [vmem:[#allocation4_spill] sm:$0xff] %v13736_v60 }
 0xa37   : > { %4974 = vrot.lane.b32.xlu1 %v13607_v51, %s17412_s25  ;;  %4928 = vrot.lane.b32.xlu0 %v13642_v61, %s17428_s17 }
 0xa39   : > { %v13742_v19 = vpop.permute.xlu1 %4900  ;;  %v13744_v49 = vpop.permute.xlu0 %5611 }
 0xa3a   : > { %18029 = vst [vmem:[#allocation25_spill] sm:$0xff] %v13742_v19  ;;  %18030 = vst [vmem:[#allocation6_spill] sm:$0xff] %v13744_v49 }
 0xa3b   : > { %4978 = vrot.lane.b32.xlu1 %v13631_v40, %s17412_s25  ;;  %4976 = vrot.lane.b32.xlu0 %v13628_v11, %s17412_s25 }
 0xa3d   : > { %v13750_v39 = vpop.permute.xlu1 %4948  ;;  %v13752_v12 = vpop.permute.xlu0 %5661 }
 0xa3e   : > { %18031 = vst [vmem:[#allocation37_spill] sm:$0xff] %v13750_v39  ;;  %18032 = vst [vmem:[#allocation63_spill] sm:$0xff] %v13752_v12 }
 0xa3f   : > { %5026 = vrot.lane.b32.xlu1 %v13607_v51, %s17413_s0  ;;  %4980 = vrot.lane.b32.xlu0 %v13642_v61, %s17412_s25 }
 0xa41   : > { %v13758_v60 = vpop.permute.xlu1 %4952  ;;  %v13760_v19 = vpop.permute.xlu0 %5106 }
 0xa42   : > { %18033 = vst [vmem:[#allocation5_spill] sm:$0xff] %v13758_v60  ;;  %18034 = vst [vmem:[#allocation50_spill] sm:$0xff] %v13760_v19 }
 0xa43   : > { %5030 = vrot.lane.b32.xlu1 %v13631_v40, %s17413_s0  ;;  %5028 = vrot.lane.b32.xlu0 %v13628_v11, %s17413_s0 }
 0xa45   : > { %v13766_v49 = vpop.permute.xlu1 %5000  ;;  %v13768_v39 = vpop.permute.xlu0 %5110 }
 0xa46   : > { %18035 = vst [vmem:[#allocation7_spill] sm:$0xff] %v13766_v49  ;;  %18036 = vst [vmem:[#allocation8_spill] sm:$0xff] %v13768_v39 }
 0xa47   : > { %5130 = vrot.lane.b32.xlu1 %v13607_v51, %s17417_s2  ;;  %5032 = vrot.lane.b32.xlu0 %v13642_v61, %s17413_s0 }
 0xa49   : > { %v13774_v12 = vpop.permute.xlu1 %5004  ;;  %v13776_v60 = vpop.permute.xlu0 %4902 }
 0xa4a   : > { %18037 = vst [vmem:[#allocation10_spill] sm:$0xff] %v13774_v12  ;;  %18038 = vst [vmem:[#allocation9_spill] sm:$0xff] %v13776_v60 }
 0xa4b   : > { %5134 = vrot.lane.b32.xlu1 %v13631_v40, %s17417_s2  ;;  %5132 = vrot.lane.b32.xlu0 %v13628_v11, %s17417_s2 }
 0xa4d   : > { %v13782_v19 = vpop.permute.xlu1 %5052  ;;  %v13784_v49 = vpop.permute.xlu0 %4950 }
 0xa4e   : > { %18039 = vst [vmem:[#allocation11_spill] sm:$0xff] %v13782_v19  ;;  %18040 = vst [vmem:[#allocation86_spill] sm:$0xff] %v13784_v49 }
 0xa4f   : > { %5182 = vrot.lane.b32.xlu1 %v13607_v51, %s17420_s20  ;;  %5136 = vrot.lane.b32.xlu0 %v13642_v61, %s17417_s2  ;;  %v18061_v51 = vld [vmem:[#allocation27_spill] sm:$0xff] }
 0xa51   : > { %v13790_v39 = vpop.permute.xlu1 %5056  ;;  %v13792_v12 = vpop.permute.xlu0 %4954 }
 0xa52   : > { %18041 = vst [vmem:[#allocation87_spill] sm:$0xff] %v13790_v39  ;;  %18042 = vst [vmem:[#allocation88_spill] sm:$0xff] %v13792_v12  ;;  %v13813_v12 = vsel %vm18048_vm1, %v13235_v8, %v13319_v29 }
 0xa53   : > { %5186 = vrot.lane.b32.xlu1 %v13631_v40, %s17420_s20  ;;  %5184 = vrot.lane.b32.xlu0 %v13628_v11, %s17420_s20  ;;  %v5545_v40 = vsel %vm1767_vm14, %v13372_v44, %v13439_v33  ;;  %vm18067_vm1 = vmmov %vm18062_vm7 }
 0xa55   : > { %v13798_v60 = vpop.permute.xlu1 %5156  ;;  %v13800_v19 = vpop.permute.xlu0 %5002 }
 0xa56   : > { %18043 = vst [vmem:[#allocation89_spill] sm:$0xff] %v13798_v60  ;;  %18044 = vst [vmem:[#allocation90_spill] sm:$0xff] %v13800_v19 }
 0xa57   : > { %5913 = vrot.lane.b32.xlu1 %v13306_v24, %s18045_s16  ;;  %5188 = vrot.lane.b32.xlu0 %v13642_v61, %s17420_s20  ;;  %v4880_v61 = vsel %vm1077_vm2, %v13421_v14, %v13364_v13 }
 0xa59   : > { %v13806_v49 = vpop.permute.xlu1 %5160  ;;  %v13808_v39 = vpop.permute.xlu0 %5006 }
 0xa5a   : > { %18046 = vst [vmem:[#allocation91_spill] sm:$0xff] %v13806_v49  ;;  %18047 = vst [vmem:[#allocation92_spill] sm:$0xff] %v13808_v39  ;;  %v5679_v49 = vsel %vm1464_vm3, %v13245_v15, %v13372_v44  ;;  %v5706_v39 = vsel %vm1464_vm3, %v13261_v3, %v13388_v54  ;;  %v18055_v44 = vld [vmem:[#allocation14_spill] sm:$0xff] }
 0xa5b   : > { %5917 = vrot.lane.b32.xlu1 %v13813_v12, %s18045_s16  ;;  %5915 = vrot.lane.b32.xlu0 %v13586_v9, %s18045_s16  ;;  %v5733_v9 = vsel %vm1464_vm3, %v13277_v36, %v13404_v26  ;;  %v5593_v48 = vsel %vm18063_vm15, %v13388_v54, %v18055_v44  ;;  %v5569_v54 = vsel %vm18067_vm1, %v13261_v3, %v18061_v51  ;;  %vm18083_vm1 = vcmask 883712  }
 0xa5d   : > { %v13819_v60 = vpop.permute.xlu1 %5631  ;;  %v13821_v24 = vpop.permute.xlu0 %5054 }
 0xa5e   : > { %18049 = vst [vmem:[#allocation93_spill] sm:$0xff] %v13821_v24  ;;  %v5760_v24 = vsel %vm1464_vm3, %v13216_v10, %v13463_v53  ;;  %v5521_v53 = vsel %vm18053_vm0, %v13245_v15, %v13196_v35  ;;  %v18058_v15 = vld [vmem:[#allocation28_spill] sm:$0xff]  ;;  %vm18069_vm0 = vcmask 949248  }
 0xa5f   : > { %5841 = vrot.lane.b32.xlu1 %v5679_v49, %s18045_s16  ;;  %5859 = vrot.lane.b32.xlu0 %v5706_v39, %s18045_s16 }
 0xa61   : > { %v13831_v8 = vpop.permute.xlu1 %4920  ;;  %v13833_v19 = vpop.permute.xlu0 %5058 }
 0xa62   : > { %18050 = vst [vmem:[#allocation94_spill] sm:$0xff] %v13831_v8  ;;  %18051 = vst [vmem:[#allocation95_spill] sm:$0xff] %v13833_v19  ;;  %v5259_v19 = vsel %vm1464_vm3, %v13054_v1, %v4880_v61  ;;  %v5546_v1 = vsel %vm1767_vm14, %v13439_v33, %v13380_v18  ;;  %v5594_v61 = vsel %vm18056_vm8, %v18055_v44, %v13396_v2  ;;  %vm18074_vm8 = vcmask 957440  }
 0xa63   : > { %5877 = vrot.lane.b32.xlu1 %v5733_v9, %s18045_s16  ;;  %5895 = vrot.lane.b32.xlu0 %v5760_v24, %s18045_s16  ;;  %v5682_v9 = vsel %vm1464_vm3, %v5521_v53, %v5545_v40  ;;  %v4933_v11 = vsel %vm1131_vm4, %v13502_v57, %v13831_v8  ;;  %v18065_v8 = vld [vmem:[#allocation44_spill] sm:$0xff]  ;;  %v4932_v44 = vsel %vm1131_vm4, %v13481_v62, %v13502_v57  ;;  %v18071_v57 = vld [vmem:[#allocation29_spill] sm:$0xff]  ;;  %vm18081_vm15 = vmmov %vm18074_vm8 }
 0xa65   : > { %v13846_v39 = vpop.permute.xlu1 %4972  ;;  %v13848_v49 = vpop.permute.xlu0 %5158 }
 0xa66   : > { %18052 = vst [vmem:[#allocation96_spill] sm:$0xff] %v13848_v49  ;;  %v5522_v49 = vsel %vm18059_vm6, %v13196_v35, %v18058_v15  ;;  %vm18078_vm6 = vmmov %vm18069_vm0 }
 0xa67   : > { %5827 = vrot.lane.b32.xlu1 %v5259_v19, %s18045_s16  ;;  %5825 = vrot.lane.b32.xlu0 %v13431_v41, %s18045_s16  ;;  %v18057_v41 = vld [vmem:[#allocation39_spill] sm:$0xff]  ;;  %v5685_v35 = vsel %vm1464_vm3, %v5522_v49, %v5546_v1  ;;  %v18068_v1 = vld [vmem:[#allocation48_spill] sm:$0xff] }
 0xa68   : > { %v5617_v26 = vsel %vm1848_vm10, %v13277_v36, %v18068_v1  ;;  %v5709_v36 = vsel %vm1464_vm3, %v5569_v54, %v5593_v48  ;;  %v18076_v54 = vld [vmem:[#allocation51_spill] sm:$0xff] }
 0xa69   : > { %v13861_v14 = vpop.permute.xlu1 %5024  ;;  %v13863_v24 = vpop.permute.xlu0 %5162  ;;  %v5736_v3 = vsel %vm1464_vm3, %v5617_v26, %v5641_v16  ;;  %v18073_v16 = vld [vmem:[#allocation57_spill] sm:$0xff] }
 0xa6a   : > { %18054 = vst [vmem:[#allocation97_spill] sm:$0xff] %v13863_v24  ;;  %v18060_v24 = vld [vmem:[#allocation24_spill] sm:$0xff]  ;;  %v4959_v48 = vsel %vm18074_vm8, %v18073_v16, %v13537_v52 }
 0xa6b   : > { %5843 = vrot.lane.b32.xlu1 %v5682_v9, %s18045_s16  ;;  %5823 = vrot.lane.b32.xlu0 %v18057_v41, %s18045_s16  ;;  %v5570_v40 = vsel %vm18062_vm7, %v18061_v51, %v18060_v24  ;;  %v18070_v51 = vld [vmem:[#allocation64_spill] sm:$0xff]  ;;  %vm18080_vm7 = vcmask 875520  }
 0xa6c   : > { %v5712_v41 = vsel %vm1464_vm3, %v5570_v40, %v5594_v61 }
 0xa6d   : > { %v13881_v53 = vpop.permute.xlu1 %5128  ;;  %v13883_v33 = vpop.permute.xlu0 %4868 }
 0xa6e   : > { %v4881_v9 = vsel %vm1077_vm2, %v13364_v13, %v13883_v33  ;;  %v18066_v13 = vld [vmem:[#allocation45_spill] sm:$0xff] }
 0xa6f   : > { %5863 = vrot.lane.b32.xlu1 %v5712_v41, %s18045_s16  ;;  %5845 = vrot.lane.b32.xlu0 %v5685_v35, %s18045_s16  ;;  %v13903_v47 = vsel %vm1464_vm3, %v18065_v8, %v4881_v9  ;;  %v4907_v49 = vsel %vm1104_vm5, %v18066_v13, %v13500_v58  ;;  %v4985_v9 = vsel %vm18069_vm0, %v13528_v55, %v13846_v39  ;;  %v18072_v41 = vld [vmem:[#allocation59_spill] sm:$0xff]  ;;  %vm18084_vm0 = vcmask 719872  }
 0xa70   : > { %6095 = vmatprep.subr.bf16.mxu1 %v13903_v47  ;;  %v5295_v40 = vsel %vm1464_vm3, %v4907_v49, %v4933_v11  ;;  %v4906_v62 = vsel %vm1104_vm5, %v18070_v51, %v18066_v13  ;;  %v5088_v11 = vsel %vm1293_vm11, %v13419_v23, %v18072_v41  ;;  %v18075_v49 = vld [vmem:[#allocation62_spill] sm:$0xff]  ;;  %v4984_v23 = vsel %vm18078_vm6, %v13445_v4, %v13528_v55  ;;  %vm18085_vm8 = vmmov %vm18084_vm0 }
 0xa71   : > { %v13918_v8 = vpop.permute.xlu1 %5180  ;;  %6096 = vmatpush1.bf16.msra.mxu1 %v5259_v19  ;;  %v13920_v61 = vpop.permute.xlu0 %5535  ;;  %v5642_v19 = vsel %vm1875_vm13, %v18064_v17, %v18071_v57  ;;  %v5291_v35 = vsel %vm1464_vm3, %v4906_v62, %v4932_v44  ;;  %v5618_v13 = vsel %vm1848_vm10, %v18068_v1, %v18075_v49  ;;  %v18077_v17 = vld [vmem:[#allocation26_spill] sm:$0xff]  ;;  %v6020_v44 = vld [vmem:[%s18079_s12 + $0x8] sm:$0xff]  ;;  %v6022_v1 = vld [vmem:[%s18079_s12 + $0x18] sm:$0xff]  ;;  %v5037_v51 = vsel %vm18080_vm7, %v13562_v43, %v13861_v14 }
 0xa72   : > { %6097 = vmatprep.subr.bf16.mxu1 %v5295_v40  ;;  %v5666_v26 = vsel %vm1902_vm9, %v18077_v17, %v18076_v54  ;;  %v5739_v55 = vsel %vm1464_vm3, %v5618_v13, %v5642_v19  ;;  %v13968_v62 = vpack.c.bf16 %v6022_v1, %v6020_v44  ;;  %vm18086_vm6 = vmmov %vm18080_vm7  ;;  %vm18087_vm7 = vcmask 220160  }
 0xa73   : > { %5879 = vrot.lane.b32.xlu1 %v5736_v3, %s18045_s16  ;;  %5861 = vrot.lane.b32.xlu0 %v5709_v36, %s18045_s16  ;;  %v5327_v36 = vsel %vm1464_vm3, %v4959_v48, %v4985_v9  ;;  %v5764_v4 = vsel %vm1464_vm3, %v5666_v26, %v5088_v11  ;;  %v4958_v9 = vsel %vm18081_vm15, %v13243_v32, %v18073_v16  ;;  %v18082_v48 = vld [vmem:[#allocation72_spill] sm:$0xff]  ;;  %vm18088_vm15 = vmmov %vm18083_vm1 }
 0xa74   : > { %8578 = vmatprep.mubr.msk.bf16.mxu0 %vm18084_vm0, %v13968_v62  ;;  %8580 = vmatprep.mubr.msk.bf16.mxu1 %vm18085_vm8, %v13968_v62  ;;  %v5665_v32 = vsel %vm1902_vm9, %v13216_v10, %v18077_v17  ;;  %v5036_v19 = vsel %vm18086_vm6, %v13453_v42, %v13562_v43  ;;  %v5115_v10 = vsel %vm18087_vm7, %v13319_v29, %v13526_v6  ;;  %v18089_v43 = vld [vmem:[#allocation77_spill] sm:$0xff]  ;;  %vm18091_vm0 = vcmask 211968   ;;  %vm18092_vm8 = vmmov %vm18087_vm7 }
 0xa75   : > { %v13952_v40 = vpop.permute.xlu1 %5232  ;;  %6098 = vmatpush1.bf16.msra.mxu1 %v5291_v35  ;;  %v13954_v3 = vpop.permute.xlu0 %5583  ;;  %v5011_v35 = vsel %vm18083_vm1, %v18082_v48, %v13560_v28  ;;  %v5762_v17 = vsel %vm1464_vm3, %v5665_v32, %v13549_v56  ;;  %v5010_v42 = vsel %vm18088_vm15, %v13251_v27, %v18082_v48  ;;  %vm18090_vm1 = vcmask 867328   ;;  %vm18095_vm15 = vmmov %vm18091_vm0 }
 0xa76   : > { %6099 = vmatprep.subr.bf16.mxu1 %v5327_v36  ;;  %v5323_v36 = vsel %vm1464_vm3, %v4958_v9, %v4984_v23  ;;  %v5359_v26 = vsel %vm1464_vm3, %v5011_v35, %v5037_v51  ;;  %v5355_v44 = vsel %vm1464_vm3, %v5010_v42, %v5036_v19  ;;  %v5141_v27 = vsel %vm18091_vm0, %v13600_v0, %v13881_v53  ;;  %vm18093_vm6 = vmmov %vm18090_vm1  ;;  %v18101_v19 = vld [vmem:[#allocation78_spill] sm:$0xff] }
 0xa77   : > { %5899 = vrot.lane.b32.xlu1 %v5764_v4, %s18045_s16  ;;  %5881 = vrot.lane.b32.xlu0 %v5739_v55, %s18045_s16  ;;  %v14022_v51 = vsel %vm18092_vm8, %v13526_v6, %v13712_v34  ;;  %v5062_v4 = vsel %vm18093_vm6, %v13259_v38, %v18089_v43  ;;  %v5547_v55 = vsel %vm1767_vm14, %v13380_v18, %v13920_v61  ;;  %vm18094_vm7 = vcmask 318464  }
 0xa78   : > { %v5595_v9 = vsel %vm18094_vm7, %v13396_v2, %v13954_v3  ;;  %v5387_v6 = vsel %vm1464_vm3, %v5062_v4, %v5088_v11  ;;  %v5140_v38 = vsel %vm18095_vm15, %v13461_v63, %v13600_v0  ;;  %vm18097_vm0 = vcmask 384000  }
 0xa79   : > { %v13989_v16 = vpop.permute.xlu1 %4870  ;;  %6100 = vmatpush1.bf16.msra.mxu1 %v5323_v36  ;;  %v13991_v13 = vpop.permute.xlu0 %5076  ;;  %v5571_v2 = vsel %vm18097_vm0, %v18060_v24, %v13680_v7  ;;  %vm18098_vm8 = vcmask 138240   ;;  %v5643_v24 = vsel %vm1875_vm13, %v18071_v57, %v13819_v60  ;;  %vm18100_vm6 = vcmask 146432  }
 0xa7a   : > { %v5089_v23 = vsel %vm1293_vm11, %v18072_v41, %v13991_v13  ;;  %6101 = vmatprep.subr.bf16.mxu1 %v5359_v26  ;;  %v5063_v41 = vsel %vm18090_vm1, %v18089_v43, %v13577_v25  ;;  %vm18096_vm1 = vcmask 400384   ;;  %v5193_v11 = vsel %vm18098_vm8, %v13635_v37, %v13918_v8  ;;  %vm18102_vm7 = vmmov %vm18098_vm8 }
 0xa7b   : > { %5919 = vrot.lane.b32.xlu1 %v5115_v10, %s18045_s16  ;;  %5897 = vrot.lane.b32.xlu0 %v5762_v17, %s18045_s16  ;;  %v5391_v56 = vsel %vm1464_vm3, %v5063_v41, %v5089_v23  ;;  %v5523_v18 = vsel %vm18096_vm1, %v18058_v15, %v13672_v46  ;;  %v5715_v0 = vsel %vm1464_vm3, %v5571_v2, %v5595_v9  ;;  %v18099_v15 = vld [vmem:[#allocation19_spill] sm:$0xff]  ;;  %vm18103_vm15 = vcmask 64512   ;;  %vm18104_vm1 = vmmov %vm18100_vm6  ;;  %v18112_v2 = vld [vmem:[#allocation41_spill] sm:$0xff] }
 0xa7c   : > { %v5688_v63 = vsel %vm1464_vm3, %v5523_v18, %v5547_v55  ;;  %v5167_v36 = vsel %vm18100_vm6, %v18099_v15, %v13598_v5  ;;  %v5419_v32 = vsel %vm1464_vm3, %v13813_v12, %v5140_v38  ;;  %v5619_v26 = vsel %vm1848_vm10, %v18075_v49, %v18101_v19  ;;  %vm18107_vm8 = vmmov %vm18103_vm15  ;;  %v18109_v55 = vld [vmem:[#allocation31_spill] sm:$0xff] }
 0xa7d   : > { %v14011_v1 = vpop.permute.xlu1 %4874  ;;  %6102 = vmatpush1.bf16.msra.mxu1 %v5355_v44  ;;  %v14013_v29 = vpop.permute.xlu0 %4872  ;;  %v5667_v57 = vsel %vm1902_vm9, %v18076_v54, %v13688_v50  ;;  %v5455_v43 = vsel %vm1464_vm3, %v5167_v36, %v5193_v11  ;;  %v5245_v12 = vsel %vm18103_vm15, %v13664_v30, %v13952_v40  ;;  %v5742_v49 = vsel %vm1464_vm3, %v5619_v26, %v5643_v24  ;;  %v18105_v44 = vld [vmem:[#allocation20_spill] sm:$0xff]  ;;  %v18114_v11 = vld [vmem:[#allocation23_spill] sm:$0xff] }
 0xa7e   : > { %6103 = vmatprep.subr.bf16.mxu1 %v5391_v56  ;;  %v4882_v54 = vsel %vm1077_vm2, %v13883_v33, %v13989_v16  ;;  %vm18106_vm0 = vcmask 130048   ;;  %vm18108_vm6 = vcmask 400384   ;;  %vm18111_vm15 = vcmask 318464  }
 0xa7f   : > { %5921 = vrot.lane.b32.xlu0 %v14022_v51, %s18045_s16  ;;  %5829 = vrot.lane.b32.xlu1 %v13903_v47, %s18045_s16  ;;  %v5423_v47 = vsel %vm1464_vm3, %v5115_v10, %v5141_v27  ;;  %v5192_v10 = vsel %vm18102_vm7, %v13469_v59, %v13635_v37  ;;  %v5766_v59 = vsel %vm1464_vm3, %v5667_v57, %v5089_v23  ;;  %vm18110_vm7 = vmmov %vm18106_vm0  ;;  %v18119_v57 = vld [vmem:[#allocation52_spill] sm:$0xff] }
 0xa80   : > { %v5166_v37 = vsel %vm18104_vm1, %v13267_v31, %v18099_v15  ;;  %v5219_v23 = vsel %vm18106_vm0, %v18105_v44, %v13609_v20  ;;  %v5244_v31 = vsel %vm18107_vm8, %v13479_v22, %v13664_v30  ;;  %v5524_v33 = vsel %vm18108_vm6, %v13672_v46, %v13644_v45 }
 0xa81   : > { %v14047_v48 = vpop.permute.xlu1 %5537  ;;  %6104 = vmatpush1.bf16.msra.mxu1 %v5387_v6  ;;  %v14049_v35 = vpop.permute.xlu0 %4876  ;;  %v5451_v56 = vsel %vm1464_vm3, %v5166_v37, %v5192_v10  ;;  %v5487_v4 = vsel %vm1464_vm3, %v5219_v23, %v5245_v12  ;;  %v14114_v9 = vsel %vm1464_vm3, %v18109_v55, %v4882_v54  ;;  %v5218_v22 = vsel %vm18110_vm7, %v13275_v21, %v18105_v44  ;;  %v18118_v10 = vld [vmem:[#allocation84_spill] sm:$0xff] }
 0xa82   : > { %6105 = vmatprep.subr.bf16.mxu1 %v5423_v47  ;;  %v5548_v41 = vsel %vm1767_vm14, %v13920_v61, %v14047_v48  ;;  %v5483_v30 = vsel %vm1464_vm3, %v5218_v22, %v5244_v31  ;;  %v18113_v47 = vld [vmem:[#allocation47_spill] sm:$0xff]  ;;  %vm18115_vm1 = vcmask 384000   ;;  %vm18124_vm0 = vcmask 220160   ;;  %v18126_v22 = vld [vmem:[#allocation8_spill] sm:$0xff] }
 0xa83   : > { %5847 = vrot.lane.b32.xlu0 %v5688_v63, %s18045_s16  ;;  %5865 = vrot.lane.b32.xlu1 %v5715_v0, %s18045_s16  ;;  %v5691_v6 = vsel %vm1464_vm3, %v5524_v33, %v5548_v41  ;;  %v5572_v63 = vsel %vm18115_vm1, %v13680_v7, %v18114_v11  ;;  %v18116_v0 = vld [vmem:[#allocation46_spill] sm:$0xff]  ;;  %v18121_v41 = vld [vmem:[#allocation43_spill] sm:$0xff]  ;;  %vm18128_vm8 = vmmov %vm18124_vm0 }
 0xa84   : > { %v5620_v24 = vsel %vm1848_vm10, %v18101_v19, %v18116_v0  ;;  %v18117_v19 = vld [vmem:[#allocation54_spill] sm:$0xff]  ;;  %v18125_v33 = vld [vmem:[#allocation55_spill] sm:$0xff]  ;;  %vm18130_vm6 = vmmov %vm18124_vm0 }
 0xa85   : > { %v14076_v17 = vpop.permute.xlu1 %5585  ;;  %6106 = vmatpush1.bf16.msra.mxu1 %v5419_v32  ;;  %v14078_v42 = vpop.permute.xlu0 %5633  ;;  %vm18133_vm7 = vmmov %vm18124_vm0 }
 0xa86   : > { %6107 = vmatprep.subr.bf16.mxu1 %v5455_v43  ;;  %v5596_v18 = vsel %vm18111_vm15, %v13954_v3, %v14076_v17  ;;  %v5644_v21 = vsel %vm1875_vm13, %v13819_v60, %v14078_v42  ;;  %v5668_v43 = vsel %vm1902_vm9, %v13688_v50, %v18119_v57  ;;  %v18122_v50 = vld [vmem:[#allocation81_spill] sm:$0xff]  ;;  %vm18135_vm15 = vcmask 400384  }
 0xa87   : > { %5883 = vrot.lane.b32.xlu0 %v5742_v49, %s18045_s16  ;;  %5901 = vrot.lane.b32.xlu1 %v5766_v59, %s18045_s16  ;;  %v5718_v60 = vsel %vm1464_vm3, %v5572_v63, %v5596_v18  ;;  %v5745_v36 = vsel %vm1464_vm3, %v5620_v24, %v5644_v21  ;;  %vm18138_vm1 = vmmov %vm18135_vm15 }
 0xa89   : > { %v14107_v27 = vpop.permute.xlu1 %5078  ;;  %6108 = vmatpush1.bf16.msra.mxu1 %v5451_v56  ;;  %v14109_v61 = vpop.permute.xlu0 %5539  ;;  %v18123_v56 = vld [vmem:[#allocation50_spill] sm:$0xff] }
 0xa8a   : > { %6109 = vmatprep.subr.bf16.mxu1 %v5487_v4  ;;  %v14159_v7 = vsel %vm1293_vm11, %v13991_v13, %v14107_v27  ;;  %v18120_v13 = vld [vmem:[#allocation68_spill] sm:$0xff]  ;;  %v14192_v31 = vsel %vm18124_vm0, %v13712_v34, %v18123_v56  ;;  %v4883_v34 = vsel %vm1077_vm2, %v13989_v16, %v14013_v29  ;;  %v4885_v16 = vsel %vm1077_vm2, %v14011_v1, %v14049_v35  ;;  %vm18139_vm0 = vmmov %vm18138_vm1 }
 0xa8b   : > { %5831 = vrot.lane.b32.xlu0 %v14114_v9, %s18045_s16  ;;  %5849 = vrot.lane.b32.xlu1 %v5691_v6, %s18045_s16  ;;  %v5768_v59 = vsel %vm1464_vm3, %v5668_v43, %v14159_v7  ;;  %v5676_v6 = vsel %vm1464_vm3, %v18121_v41, %v14049_v35  ;;  %v4884_v35 = vsel %vm1077_vm2, %v14013_v29, %v14011_v1 }
 0xa8c   : > { %v14265_v1 = vsel %vm1464_vm3, %v18112_v2, %v4884_v35 }
 0xa8d   : > { %v14124_v46 = vpop.permute.xlu1 %5541  ;;  %6110 = vmatpush1.bf16.msra.mxu1 %v5483_v30  ;;  %v14126_v38 = vpop.permute.xlu0 %5543  ;;  %v18127_v30 = vld [vmem:[#allocation61_spill] sm:$0xff] }
 0xa8e   : > { %v14208_v18 = vsel %vm18128_vm8, %v18127_v30, %v18126_v22  ;;  %v14223_v24 = vsel %vm18130_vm6, %v18123_v56, %v18127_v30  ;;  %vm18141_vm8 = vcmask 318464   ;;  %vm18143_vm6 = vmmov %vm18139_vm0 }
 0xa8f   : > { %5210 = vrot.lane.b32.xlu0 %v18112_v2, %s17408_s26  ;;  %5208 = vrot.lane.b32.xlu1 %v18113_v47, %s17408_s26  ;;  %18129 = vst [vmem:[#allocation14_spill] sm:$0xff] %v14208_v18  ;;  %18131 = vst [vmem:[#allocation39_spill] sm:$0xff] %v14223_v24 }
 0xa91   : > { %v14144_v15 = vpop.permute.xlu1 %5587  ;;  %v14146_v3 = vpop.permute.xlu0 %5589 }
 0xa92   : > { %v5597_v35 = vsel %vm18141_vm8, %v14076_v17, %v14144_v15 }
 0xa93   : > { %5867 = vrot.lane.b32.xlu0 %v5718_v60, %s18045_s16  ;;  %5885 = vrot.lane.b32.xlu1 %v5745_v36, %s18045_s16  ;;  %v14227_v60 = vsel %vm1464_vm3, %v18113_v47, %v4883_v34  ;;  %v14245_v47 = vsel %vm1464_vm3, %v18120_v13, %v4885_v16  ;;  %v18140_v16 = vld [vmem:[#allocation15_spill] sm:$0xff] }
 0xa95   : > { %v14152_v32 = vpop.permute.xlu1 %5591  ;;  %v14154_v26 = vpop.permute.xlu0 %5635 }
 0xa97   : > { %5236 = vrot.lane.b32.xlu0 %v18117_v19, %s17953_s15  ;;  %5234 = vrot.lane.b32.xlu1 %v18118_v10, %s17953_s15  ;;  %v18132_v10 = vld [vmem:[#allocation67_spill] sm:$0xff] }
 0xa98   : > { %v5674_v43 = vsel %vm18133_vm7, %v18126_v22, %v18132_v10  ;;  %vm18145_vm7 = vcmask 384000  }
 0xa99   : > { %v14168_v12 = vpop.permute.xlu1 %5637  ;;  %v14170_v49 = vpop.permute.xlu0 %5082 }
 0xa9b   : > { %5903 = vrot.lane.b32.xlu0 %v5768_v59, %s18045_s16  ;;  %5212 = vrot.lane.b32.xlu1 %v18120_v13, %s17408_s26  ;;  %v5549_v59 = vsel %vm1767_vm14, %v14047_v48, %v14109_v61  ;;  %v5550_v48 = vsel %vm1767_vm14, %v14109_v61, %v14124_v46 }
 0xa9d   : > { %v14177_v37 = vpop.permute.xlu1 %5080  ;;  %v14179_v54 = vpop.permute.xlu0 %5639 }
 0xa9f   : > { %5214 = vrot.lane.b32.xlu0 %v18121_v41, %s17408_s26  ;;  %5238 = vrot.lane.b32.xlu1 %v18122_v50, %s17953_s15  ;;  %v18134_v41 = vld [vmem:[#allocation76_spill] sm:$0xff]  ;;  %s18169_s26 = sld [smem:[#allocation112_spill]] }
 0xaa0   : > { %v5525_v50 = vsel %vm18135_vm15, %v13644_v45, %v18134_v41  ;;  %v18136_v45 = vld [vmem:[#allocation35_spill] sm:$0xff]  ;;  %vm18146_vm15 = vmmov %vm18141_vm8 }
 0xaa1   : > { %v14185_v44 = vpop.permute.xlu1 %4922  ;;  %v14187_v23 = vpop.permute.xlu0 %5084  ;;  %v5694_v29 = vsel %vm1464_vm3, %v5525_v50, %v5549_v59  ;;  %v18142_v59 = vld [vmem:[#allocation13_spill] sm:$0xff] }
 0xaa2   : > { %v18144_v50 = vld [vmem:[#allocation69_spill] sm:$0xff] }
 0xaa3   : > { %5240 = vrot.lane.b32.xlu0 %v18125_v33, %s17953_s15  ;;  %5923 = vrot.lane.b32.xlu1 %v14192_v31, %s18045_s16  ;;  %v5551_v33 = vsel %vm1767_vm14, %v14124_v46, %v14126_v38  ;;  %s18415_s15 = sld [smem:[#allocation115_spill]] }
 0xaa5   : > { %v14198_v4 = vpop.permute.xlu1 %4926  ;;  %v14200_v55 = vpop.permute.xlu0 %4924 }
 0xaa7   : > { %5839 = vrot.lane.b32.xlu0 %v5676_v6, %s18045_s16  ;;  %5927 = vrot.lane.b32.xlu1 %v14208_v18, %s18045_s16  ;;  %v18137_v6 = vld [vmem:[#allocation42_spill] sm:$0xff] }
 0xaa8   : > { %v5527_v2 = vsel %vm18138_vm1, %v18137_v6, %v18136_v45  ;;  %v5526_v22 = vsel %vm18139_vm0, %v18134_v41, %v18137_v6  ;;  %v5528_v41 = vsel %vm18143_vm6, %v18136_v45, %v18142_v59  ;;  %v5598_v6 = vsel %vm18146_vm15, %v14144_v15, %v14146_v3  ;;  %vm18147_vm1 = vmmov %vm18141_vm8 }
 0xaa9   : > { %v14216_v21 = vpop.permute.xlu1 %4974  ;;  %v14218_v63 = vpop.permute.xlu0 %4928  ;;  %v5697_v34 = vsel %vm1464_vm3, %v5526_v22, %v5550_v48  ;;  %v5700_v46 = vsel %vm1464_vm3, %v5527_v2, %v5551_v33  ;;  %v5599_v45 = vsel %vm18147_vm1, %v14146_v3, %v14152_v32  ;;  %vm18149_vm0 = vmmov %vm18145_vm7  ;;  %v18150_v22 = vld [vmem:[#allocation4_spill] sm:$0xff]  ;;  %vm18174_vm15 = vcmask 719872  }
 0xaaa   : > { %vm18151_vm8 = vmmov %vm18149_vm0 }
 0xaab   : > { %5925 = vrot.lane.b32.xlu0 %v14223_v24, %s18045_s16  ;;  %5833 = vrot.lane.b32.xlu1 %v14227_v60, %s18045_s16  ;;  %vm18153_vm6 = vmmov %vm18147_vm1  ;;  %vm18175_vm1 = vcmask 949248  }
 0xaad   : > { %v14236_v36 = vpop.permute.xlu1 %4978  ;;  %v14238_v19 = vpop.permute.xlu0 %4976 }
 0xaaf   : > { %5929 = vrot.lane.b32.xlu0 %v5674_v43, %s18045_s16  ;;  %5837 = vrot.lane.b32.xlu1 %v14245_v47, %s18045_s16  ;;  %v5552_v43 = vsel %vm1767_vm14, %v14126_v38, %v18140_v16 }
 0xab0   : > { %v5703_v38 = vsel %vm1464_vm3, %v5528_v41, %v5552_v43  ;;  %v18152_v43 = vld [vmem:[#allocation32_spill] sm:$0xff]  ;;  %v5645_v41 = vsel %vm1875_vm13, %v14078_v42, %v14154_v26 }
 0xab1   : > { %v14259_v56 = vpop.permute.xlu1 %5026  ;;  %v14261_v13 = vpop.permute.xlu0 %4980 }
 0xab3   : > { %5835 = vrot.lane.b32.xlu0 %v14265_v1, %s18045_s16  ;;  %5851 = vrot.lane.b32.xlu1 %v5694_v29, %s18045_s16  ;;  %v5573_v29 = vsel %vm18145_vm7, %v18114_v11, %v18144_v50  ;;  %v18148_v11 = vld [vmem:[#allocation18_spill] sm:$0xff]  ;;  %vm18155_vm7 = vmmov %vm18149_vm0 }
 0xab4   : > { %v5721_v17 = vsel %vm1464_vm3, %v5573_v29, %v5597_v35  ;;  %v5574_v2 = vsel %vm18149_vm0, %v18144_v50, %v18148_v11  ;;  %v5600_v35 = vsel %vm18153_vm6, %v14152_v32, %v18152_v43  ;;  %v18154_v50 = vld [vmem:[#allocation21_spill] sm:$0xff]  ;;  %vm18178_vm0 = vcmask 957440  }
 0xab5   : > { %v14283_v30 = vpop.permute.xlu1 %5030  ;;  %v14285_v61 = vpop.permute.xlu0 %5028  ;;  %v5724_v3 = vsel %vm1464_vm3, %v5574_v2, %v5598_v6  ;;  %v5576_v29 = vsel %vm18155_vm7, %v18150_v22, %v18154_v50  ;;  %v5647_v2 = vsel %vm1875_vm13, %v14168_v12, %v14179_v54  ;;  %vm18180_vm6 = vcmask 875520   ;;  %vm18181_vm7 = vmmov %vm18178_vm0 }
 0xab6   : > { %v5730_v32 = vsel %vm1464_vm3, %v5576_v29, %v5600_v35  ;;  %v14372_v35 = vsel %vm1293_vm11, %v14107_v27, %v14177_v37 }
 0xab7   : > { %5853 = vrot.lane.b32.xlu0 %v5697_v34, %s18045_s16  ;;  %5855 = vrot.lane.b32.xlu1 %v5700_v46, %s18045_s16  ;;  %v5575_v34 = vsel %vm18151_vm8, %v18148_v11, %v18150_v22  ;;  %v5646_v11 = vsel %vm1875_vm13, %v14154_v26, %v14168_v12  ;;  %v18158_v22 = vld [vmem:[#allocation58_spill] sm:$0xff]  ;;  %vm18179_vm8 = vmmov %vm18175_vm1 }
 0xab8   : > { %v5727_v15 = vsel %vm1464_vm3, %v5575_v34, %v5599_v45 }
 0xab9   : > { %v14303_v48 = vpop.permute.xlu1 %5130  ;;  %v14305_v33 = vpop.permute.xlu0 %5032 }
 0xabb   : > { %5857 = vrot.lane.b32.xlu0 %v5703_v38, %s18045_s16  ;;  %5869 = vrot.lane.b32.xlu1 %v5721_v17, %s18045_s16  ;;  %v18156_v38 = vld [vmem:[#allocation6_spill] sm:$0xff] }
 0xabc   : > { %v5621_v17 = vsel %vm1848_vm10, %v18116_v0, %v18156_v38  ;;  %v18157_v0 = vld [vmem:[#allocation80_spill] sm:$0xff] }
 0xabd   : > { %v14323_v46 = vpop.permute.xlu1 %5134  ;;  %v14325_v16 = vpop.permute.xlu0 %5132  ;;  %v5748_v42 = vsel %vm1464_vm3, %v5621_v17, %v5645_v41  ;;  %v5623_v34 = vsel %vm1848_vm10, %v18158_v22, %v18157_v0  ;;  %v18160_v41 = vld [vmem:[#allocation30_spill] sm:$0xff] }
 0xabe   : > { %v5754_v12 = vsel %vm1464_vm3, %v5623_v34, %v5647_v2  ;;  %v5648_v29 = vsel %vm1875_vm13, %v14179_v54, %v18160_v41 }
 0xabf   : > { %5873 = vrot.lane.b32.xlu1 %v5727_v15, %s18045_s16  ;;  %5871 = vrot.lane.b32.xlu0 %v5724_v3, %s18045_s16  ;;  %v5622_v15 = vsel %vm1848_vm10, %v18156_v38, %v18158_v22  ;;  %v18161_v38 = vld [vmem:[#allocation22_spill] sm:$0xff]  ;;  %v14395_v22 = vsel %vm1293_vm11, %v14177_v37, %v14170_v49 }
 0xac0   : > { %v5751_v26 = vsel %vm1464_vm3, %v5622_v15, %v5646_v11  ;;  %v5624_v17 = vsel %vm1848_vm10, %v18157_v0, %v18161_v38  ;;  %v14400_v0 = vsel %vm1293_vm11, %v14170_v49, %v14187_v23  ;;  %v18165_v15 = vld [vmem:[#allocation49_spill] sm:$0xff] }
 0xac1   : > { %v14343_v6 = vpop.permute.xlu1 %5182  ;;  %v14345_v45 = vpop.permute.xlu0 %5136  ;;  %v5757_v2 = vsel %vm1464_vm3, %v5624_v17, %v5648_v29  ;;  %v18166_v29 = vld [vmem:[#allocation17_spill] sm:$0xff] }
 0xac2   : > { %v5673_v17 = vsel %vm1293_vm11, %v14187_v23, %v18166_v29  ;;  %v6338_v23 = vld [vmem:[%s18167_s7] sm:$0xff] }
 0xac3   : > { %5875 = vrot.lane.b32.xlu0 %v5730_v32, %s18045_s16  ;;  %5887 = vrot.lane.b32.xlu1 %v5748_v42, %s18045_s16  ;;  %v18162_v32 = vld [vmem:[#allocation53_spill] sm:$0xff] }
 0xac4   : > { %v5669_v42 = vsel %vm1902_vm9, %v18119_v57, %v18162_v32  ;;  %v18164_v57 = vld [vmem:[#allocation63_spill] sm:$0xff] }
 0xac5   : > { %v14363_v3 = vpop.permute.xlu1 %5186  ;;  %v14365_v43 = vpop.permute.xlu0 %5184  ;;  %v5770_v54 = vsel %vm1464_vm3, %v5669_v42, %v14372_v35  ;;  %v5670_v34 = vsel %vm1902_vm9, %v18162_v32, %v18164_v57  ;;  %v6339_v32 = vld [vmem:[%s18167_s7 + $0x8] sm:$0xff] }
 0xac6   : > { %18159 = vst [vmem:[#allocation28_spill] sm:$0xff] %v14363_v3  ;;  %v5772_v41 = vsel %vm1464_vm3, %v5670_v34, %v14395_v22  ;;  %v18168_v42 = vld [vmem:[#allocation65_spill] sm:$0xff] }
 0xac7   : > { %5889 = vrot.lane.b32.xlu0 %v5751_v26, %s18045_s16  ;;  %5891 = vrot.lane.b32.xlu1 %v5754_v12, %s18045_s16  ;;  %v5671_v26 = vsel %vm1902_vm9, %v18164_v57, %v18165_v15 }
 0xac8   : > { %v5774_v49 = vsel %vm1464_vm3, %v5671_v26, %v14400_v0  ;;  %v6366_v26 = vld [vmem:[%s18169_s26] sm:$0xff] }
 0xac9   : > { %v14385_v11 = vpop.permute.xlu1 %5913  ;;  %v14387_v27 = vpop.permute.xlu0 %5188 }
 0xaca   : > { %18163 = vst [vmem:[#allocation24_spill] sm:$0xff] %v14387_v27 }
 0xacb   : > { %5893 = vrot.lane.b32.xlu0 %v5757_v2, %s18045_s16  ;;  %5905 = vrot.lane.b32.xlu1 %v5770_v54, %s18045_s16  ;;  %v5672_v2 = vsel %vm1902_vm9, %v18165_v15, %v18168_v42  ;;  %v6367_v15 = vld [vmem:[%s18169_s26 + $0x8] sm:$0xff] }
 0xacc   : > { %v5777_v34 = vsel %vm1464_vm3, %v5672_v2, %v5673_v17  ;;  %v18170_v2 = vmov 0  }
 0xacd   : > { %v14410_v12 = vpop.permute.xlu1 %5917  ;;  %v5916_v37 = vpop.permute.xlu0 %5915 }
 0xacf   : > { %5907 = vrot.lane.b32.xlu0 %v5772_v41, %s18045_s16  ;;  %5909 = vrot.lane.b32.xlu1 %v5774_v49, %s18045_s16 }
 0xad1   : > { %v5842_v54 = vpop.permute.xlu1 %5841  ;;  %v5860_v57 = vpop.permute.xlu0 %5859 }
 0xad3   : > { %5911 = vrot.lane.b32.xlu0 %v5777_v34, %s18045_s16  ;;  %6347 = vperm.xlu1 %8734, %v6339_v32  }
 0xad5   : > { %v5878_v41 = vpop.permute.xlu1 %5877  ;;  %v5896_v49 = vpop.permute.xlu0 %5895 }
 0xad7   : > { %6342 = vperm.xlu0 %8733, %v6338_v23   ;;  %6370 = vperm.xlu1 %8734, %v6366_v26  }
 0xad9   : > { %v14438_v29 = vpop.permute.xlu1 %5827  ;;  %v5826_v17 = vpop.permute.xlu0 %5825 }
 0xada   : > { %v5932_v32 = vsel %vm2173_vm12, %v5826_v17, %v14438_v29 }
 0xadb   : > { %6375 = vperm.xlu0 %8733, %v6367_v15   ;;  %6068 = vmatprep.subr.bf16.mxu0 %v5932_v32 }
 0xadc   : > { %7079 = vrot.lane.b32.xlu1 %v18170_v2, %s17956_s13 }
 0xadd   : > { %v5844_v34 = vpop.permute.xlu1 %5843  ;;  %v5824_v10 = vpop.permute.xlu0 %5823 }
 0xade   : > { %v5931_v23 = vsel %vm2173_vm12, %v5824_v10, %v5826_v17  ;;  %v5939_v32 = vsel %vm2173_vm12, %v5842_v54, %v5844_v34 }
 0xadf   : > { %6069 = vmatpush1.bf16.msra.mxu0 %v5931_v23  ;;  %7029 = vrot.lane.b32.xlu0 %v18170_v2, %s17955_s22 }
 0xae0   : > { %7129 = vrot.lane.b32.xlu1 %v18170_v2, %s17957_s14 }
 0xae1   : > { %v14449_v26 = vpop.permute.xlu1 %5863  ;;  %v14451_v42 = vpop.permute.xlu0 %5845 }
 0xae2   : > { %v5940_v15 = vsel %vm2173_vm12, %v5844_v34, %v14451_v42 }
 0xae3   : > { %6070 = vmatprep.subr.bf16.mxu0 %v5940_v15  ;;  %7163 = vrot.lane.b32.xlu0 %v18170_v2, %s17416_s29 }
 0xae4   : > { %6071 = vmatpush1.bf16.msra.mxu0 %v5939_v32 }
 0xae5   : > { %v5880_v10 = vpop.permute.xlu1 %5879  ;;  %v5862_v17 = vpop.permute.xlu0 %5861 }
 0xae6   : > { %v5948_v23 = vsel %vm2173_vm12, %v5862_v17, %v14449_v26  ;;  %v5947_v38 = vsel %vm2173_vm12, %v5860_v57, %v5862_v17  ;;  %v5955_v2 = vsel %vm2173_vm12, %v5878_v41, %v5880_v10  ;;  %v5972_v17 = vsel %vm2173_vm12, %v5916_v37, %v14410_v12  ;;  %v6019_v41 = vld [vmem:[%s18079_s12] sm:$0xff] }
 0xae7   : > { %6072 = vmatprep.subr.bf16.mxu0 %v5948_v23 }
 0xae8   : > { %6073 = vmatpush1.bf16.msra.mxu0 %v5947_v38  ;;  %v5971_v38 = vsel %vm2173_vm12, %v14385_v11, %v5916_v37  ;;  %v4935_v37 = vsel %vm1131_vm4, %v14185_v44, %v14200_v55 }
 0xae9   : > { %v14461_v50 = vpop.permute.xlu1 %5899  ;;  %v14463_v59 = vpop.permute.xlu0 %5881 }
 0xaea   : > { %v5956_v54 = vsel %vm2173_vm12, %v5880_v10, %v14463_v59  ;;  %v6021_v10 = vld [vmem:[%s18079_s12 + $0x10] sm:$0xff] }
 0xaeb   : > { %6074 = vmatprep.subr.bf16.mxu0 %v5956_v54  ;;  %v6029_v54 = vsel %vm1464_vm3, %v5971_v38, 0  ;;  %v14487_v11 = vpack.c.bf16 %v6021_v10, %v6019_v41 }
 0xaec   : > { %6075 = vmatpush1.bf16.msra.mxu0 %v5955_v2 }
 0xaed   : > { %v14468_v34 = vpop.permute.xlu1 %5919  ;;  %v5898_v15 = vpop.permute.xlu0 %5897 }
 0xaee   : > { %v5964_v32 = vsel %vm2173_vm12, %v5898_v15, %v14461_v50  ;;  %v5963_v57 = vsel %vm2173_vm12, %v5896_v49, %v5898_v15 }
 0xaef   : > { %6076 = vmatprep.subr.bf16.mxu0 %v5964_v32  ;;  %v18171_v32 = vld [vmem:[#allocation82_spill] sm:$0xff] }
 0xaf0   : > { %6077 = vmatpush1.bf16.msra.mxu0 %v5963_v57  ;;  %v18172_v57 = vld [vmem:[#allocation33_spill] sm:$0xff] }
 0xaf1   : > { %v5830_v23 = vpop.permute.xlu1 %5829  ;;  %8577 = vmatprep.subr.msk.bf16.mxu0 %vm1464_vm3, %v5972_v17  ;;  %v14484_v49 = vpop.permute.xlu0 %5921  ;;  %v4909_v24 = vsel %vm1104_vm5, %v18172_v57, %v18171_v32  ;;  %v18173_v17 = vld [vmem:[#allocation94_spill] sm:$0xff]  ;;  %v4908_v3 = vsel %vm1104_vm5, %v13500_v58, %v18172_v57 }
 0xaf2   : > { %v4934_v38 = vsel %vm1131_vm4, %v18173_v17, %v14185_v44  ;;  %v5303_v41 = vsel %vm1464_vm3, %v4909_v24, %v4935_v37  ;;  %v18176_v44 = vld [vmem:[#allocation86_spill] sm:$0xff]  ;;  %v18177_v17 = vld [vmem:[#allocation37_spill] sm:$0xff]  ;;  %v4986_v37 = vsel %vm18179_vm8, %v13846_v39, %v14216_v21  ;;  %vm18189_vm8 = vcmask 867328  }
 0xaf3   : > { %v5299_v24 = vsel %vm1464_vm3, %v4908_v3, %v4934_v38  ;;  %v4960_v3 = vsel %vm18181_vm7, %v13537_v52, %v18177_v17  ;;  %v18182_v39 = vld [vmem:[#allocation90_spill] sm:$0xff]  ;;  %vm18191_vm7 = vmmov %vm18189_vm8 }
 0xaf4   : > { %6079 = vmatpush1.bf16.msra.mxu0 %v6029_v54 }
 0xaf5   : > { %v5866_v2 = vpop.permute.xlu1 %5865  ;;  %6138 = vmatprep.subr.bf16.mxu0 %v14227_v60  ;;  %v5848_v15 = vpop.permute.xlu0 %5847  ;;  %v4987_v60 = vsel %vm18175_vm1, %v14216_v21, %v14238_v19  ;;  %v18183_v21 = vld [vmem:[#allocation7_spill] sm:$0xff]  ;;  %vm18185_vm1 = vmmov %vm18180_vm6 }
 0xaf7   : > { %6085 = vmatmul.mubr.bf16.vlgmr.msra.gmra.mrb[32].mxu0 %v14487_v11 }
 0xaf8   : > { %6139 = vmatpush1.bf16.msra.mxu0 %v14114_v9  ;;  %8582 = vmatprep.mubr.msk.bf16.mxu0 %vm18174_vm15, %v13968_v62  ;;  %v4961_v9 = vsel %vm18178_vm0, %v18177_v17, %v18176_v44  ;;  %vm18184_vm15 = vcmask 883712  }
 0xaf9   : > { %v14507_v10 = vpop.permute.xlu1 %5901  ;;  %6140 = vmatprep.subr.bf16.mxu0 %v5303_v41  ;;  %v5884_v54 = vpop.permute.xlu0 %5883  ;;  %v5335_v27 = vsel %vm1464_vm3, %v4961_v9, %v4987_v60  ;;  %v5039_v41 = vsel %vm18180_vm6, %v14259_v56, %v14285_v61  ;;  %v5013_v38 = vsel %vm18184_vm15, %v18183_v21, %v18182_v39  ;;  %v5933_v60 = vsel %vm2173_vm12, %v14438_v29, %v5830_v23  ;;  %vm18186_vm0 = vmmov %vm18184_vm15 }
 0xafa   : > { %v5331_v9 = vsel %vm1464_vm3, %v4960_v3, %v4986_v37  ;;  %v5367_v17 = vsel %vm1464_vm3, %v5013_v38, %v5039_v41  ;;  %v5012_v29 = vsel %vm18186_vm0, %v13560_v28, %v18183_v21  ;;  %v18188_v37 = vld [vmem:[#allocation11_spill] sm:$0xff]  ;;  %vm18190_vm6 = vcmask 211968  }
 0xafb   : > { %v5143_v38 = vsel %vm18190_vm6, %v14303_v48, %v14325_v16  ;;  %vm18192_vm15 = vmmov %vm18190_vm6  ;;  %vm18196_vm0 = vcmask 146432   ;;  %vm18198_vm6 = vcmask 64512  }
 0xafc   : > { %6141 = vmatpush1.bf16.msra.mxu0 %v5299_v24 }
 0xafd   : > { %v14523_v18 = vpop.permute.xlu1 %5849  ;;  %6142 = vmatprep.subr.bf16.mxu0 %v5335_v27  ;;  %v14525_v58 = vpop.permute.xlu0 %5831  ;;  %v5038_v27 = vsel %vm18185_vm1, %v13861_v14, %v14259_v56  ;;  %v5941_v56 = vsel %vm2173_vm12, %v14451_v42, %v5848_v15  ;;  %v5064_v42 = vsel %vm18191_vm7, %v13577_v25, %v18188_v37  ;;  %v5431_v25 = vsel %vm1464_vm3, %v14192_v31, %v5143_v38  ;;  %vm18199_vm7 = vmmov %vm18196_vm0 }
 0xafe   : > { %v5934_v57 = vsel %vm2173_vm12, %v5830_v23, %v14525_v58  ;;  %v5942_v52 = vsel %vm2173_vm12, %v5848_v15, %v14523_v18  ;;  %v18187_v23 = vld [vmem:[#allocation93_spill] sm:$0xff]  ;;  %v5363_v3 = vsel %vm1464_vm3, %v5012_v29, %v5038_v27  ;;  %v5395_v21 = vsel %vm1464_vm3, %v5064_v42, %v14159_v7 }
 0xaff   : > { %6111 = vmatprep.subr.bf16.mxu1 %v5934_v57  ;;  %v5065_v14 = vsel %vm18189_vm8, %v18188_v37, %v18187_v23  ;;  %vm18193_vm1 = vcmask 138240   ;;  %v5974_v38 = vsel %vm2173_vm12, %v14468_v34, %v14484_v49 }
 0xb00   : > { %6112 = vmatpush1.bf16.msra.mxu1 %v5933_v60  ;;  %6143 = vmatpush1.bf16.msra.mxu0 %v5331_v9  ;;  %v5399_v41 = vsel %vm1464_vm3, %v5065_v14, %v14372_v35  ;;  %v5949_v35 = vsel %vm2173_vm12, %v14449_v26, %v5866_v2  ;;  %v5142_v9 = vsel %vm18192_vm15, %v13881_v53, %v14303_v48  ;;  %vm18197_vm8 = vmmov %vm18193_vm1  ;;  %vm18200_vm15 = vcmask 130048  }
 0xb01   : > { %v5209_v24 = vpop.permute.xlu1 %5208  ;;  %6113 = vmatprep.subr.bf16.mxu1 %v5942_v52  ;;  %6144 = vmatprep.subr.bf16.mxu0 %v5367_v17  ;;  %v14544_v57 = vpop.permute.xlu0 %5210  ;;  %v5195_v52 = vsel %vm18193_vm1, %v14343_v6, %v14365_v43  ;;  %v18195_v17 = vld [vmem:[#allocation89_spill] sm:$0xff]  ;;  %v5957_v48 = vsel %vm2173_vm12, %v14463_v59, %v5884_v54  ;;  %v5427_v29 = vsel %vm1464_vm3, %v14022_v51, %v5142_v9  ;;  %vm18201_vm1 = vmmov %vm18198_vm6 }
 0xb02   : > { %v5194_v31 = vsel %vm18197_vm8, %v13918_v8, %v14343_v6  ;;  %v5168_v51 = vsel %vm18199_vm7, %v13598_v5, %v18195_v17  ;;  %v5973_v59 = vsel %vm2173_vm12, %v14410_v12, %v14468_v34  ;;  %v5221_v6 = vsel %vm18200_vm15, %v5209_v24, %v14544_v57  ;;  %v18203_v9 = vld [vmem:[#allocation9_spill] sm:$0xff] }
 0xb03   : > { %v4937_v34 = vsel %vm1131_vm4, %v14198_v4, %v14218_v63  ;;  %vm18205_vm8 = vcmask 719872   ;;  %vm18209_vm7 = vcmask 957440  }
 0xb04   : > { %6114 = vmatpush1.bf16.msra.mxu1 %v5941_v56  ;;  %6145 = vmatpush1.bf16.msra.mxu0 %v5363_v3 }
 0xb05   : > { %v14560_v60 = vpop.permute.xlu1 %5885  ;;  %6146 = vmatprep.subr.bf16.mxu0 %v5399_v41  ;;  %v14562_v28 = vpop.permute.xlu0 %5867  ;;  %v5459_v41 = vsel %vm1464_vm3, %v5168_v51, %v5194_v31  ;;  %v18213_v31 = vld [vmem:[#allocation92_spill] sm:$0xff] }
 0xb06   : > { %v5950_v15 = vsel %vm2173_vm12, %v5866_v2, %v14562_v28  ;;  %v5958_v27 = vsel %vm2173_vm12, %v5884_v54, %v14560_v60  ;;  %v18194_v2 = vld [vmem:[#allocation96_spill] sm:$0xff]  ;;  %v5965_v54 = vsel %vm2173_vm12, %v14461_v50, %v14507_v10 }
 0xb07   : > { %6115 = vmatprep.subr.bf16.mxu1 %v5950_v15  ;;  %v5169_v53 = vsel %vm18196_vm0, %v18195_v17, %v18194_v2  ;;  %vm18202_vm0 = vmmov %vm18200_vm15 }
 0xb08   : > { %6116 = vmatpush1.bf16.msra.mxu1 %v5949_v35  ;;  %6147 = vmatpush1.bf16.msra.mxu0 %v5395_v21  ;;  %v5463_v37 = vsel %vm1464_vm3, %v5169_v53, %v5195_v52  ;;  %v5220_v50 = vsel %vm18202_vm0, %v13609_v20, %v5209_v24  ;;  %v4936_v20 = vsel %vm1131_vm4, %v14200_v55, %v14198_v4  ;;  %v18207_v55 = vld [vmem:[#allocation88_spill] sm:$0xff]  ;;  %vm18212_vm0 = vmmov %vm18209_vm7 }
 0xb09   : > { %v5235_v26 = vpop.permute.xlu1 %5234  ;;  %6117 = vmatprep.subr.bf16.mxu1 %v5958_v27  ;;  %6148 = vmatprep.subr.bf16.mxu0 %v5431_v25  ;;  %v14583_v7 = vpop.permute.xlu0 %5236  ;;  %v18204_v27 = vld [vmem:[#allocation25_spill] sm:$0xff] }
 0xb0a   : > { %v5247_v14 = vsel %vm18198_vm6, %v5235_v26, %v14583_v7  ;;  %v5246_v5 = vsel %vm18201_vm1, %v13952_v40, %v5235_v26  ;;  %v6035_v40 = vsel %vm1464_vm3, %v5973_v59, 0  ;;  %v4911_v25 = vsel %vm1104_vm5, %v18204_v27, %v18203_v9  ;;  %v18218_v59 = vld [vmem:[#allocation95_spill] sm:$0xff] }
 0xb0b   : > { %v5495_v12 = vsel %vm1464_vm3, %v5221_v6, %v5247_v14  ;;  %v5311_v24 = vsel %vm1464_vm3, %v4911_v25, %v4937_v34  ;;  %vm18206_vm6 = vcmask 949248   ;;  %v4910_v4 = vsel %vm1104_vm5, %v18171_v32, %v18204_v27  ;;  %v18219_v6 = vld [vmem:[#allocation87_spill] sm:$0xff]  ;;  %v18225_v34 = vld [vmem:[#allocation24_spill] sm:$0xff] }
 0xb0c   : > { %6118 = vmatpush1.bf16.msra.mxu1 %v5957_v48  ;;  %6149 = vmatpush1.bf16.msra.mxu0 %v5427_v29  ;;  %v4989_v63 = vsel %vm18206_vm6, %v14236_v36, %v14261_v13  ;;  %v5307_v17 = vsel %vm1464_vm3, %v4910_v4, %v4936_v20  ;;  %vm18210_vm15 = vmmov %vm18206_vm6  ;;  %vm18211_vm1 = vcmask 875520   ;;  %v18228_v20 = vld [vmem:[#allocation97_spill] sm:$0xff] }
 0xb0d   : > { %v14598_v56 = vpop.permute.xlu1 %5212  ;;  %6150 = vmatprep.subr.bf16.mxu0 %v5463_v37  ;;  %v14600_v3 = vpop.permute.xlu0 %5903  ;;  %v5041_v53 = vsel %vm18211_vm1, %v14283_v30, %v14305_v33  ;;  %v18214_v37 = vld [vmem:[#allocation10_spill] sm:$0xff]  ;;  %vm18216_vm6 = vmmov %vm18211_vm1  ;;  %vm18221_vm1 = vcmask 211968  }
 0xb0e   : > { %v5966_v8 = vsel %vm2173_vm12, %v14507_v10, %v14600_v3  ;;  %v5491_v10 = vsel %vm1464_vm3, %v5220_v50, %v5246_v5 }
 0xb0f   : > { %6119 = vmatprep.subr.bf16.mxu1 %v5966_v8 }
 0xb10   : > { %6120 = vmatpush1.bf16.msra.mxu1 %v5965_v54  ;;  %6151 = vmatpush1.bf16.msra.mxu0 %v5459_v41 }
 0xb11   : > { %v14623_v42 = vpop.permute.xlu1 %5238  ;;  %8579 = vmatprep.subr.msk.bf16.mxu1 %vm1464_vm3, %v5974_v38  ;;  %6152 = vmatprep.subr.bf16.mxu0 %v5495_v12  ;;  %v14626_v15 = vpop.permute.xlu0 %5214 }
 0xb14   : > { %6122 = vmatpush1.bf16.msra.mxu1 %v6035_v40  ;;  %6153 = vmatpush1.bf16.msra.mxu0 %v5491_v10  ;;  %v18224_v40 = vld [vmem:[#allocation14_spill] sm:$0xff] }
 0xb15   : > { %v14635_v35 = vpop.permute.xlu1 %5923  ;;  %6181 = vmatprep.subr.bf16.mxu1 %v14245_v47  ;;  %v5241_v21 = vpop.permute.xlu0 %5240 }
 0xb17   : > { %6128 = vmatmul.mubr.bf16.vlgmr.msra.gmra.mrb[32].mxu1 %v14487_v11 }
 0xb18   : > { %6182 = vmatpush1.bf16.msra.mxu1 %v14265_v1  ;;  %8584 = vmatprep.mubr.msk.bf16.mxu1 %vm18205_vm8, %v13968_v62  ;;  %v18208_v1 = vld [vmem:[#allocation5_spill] sm:$0xff]  ;;  %v4988_v62 = vsel %vm18210_vm15, %v14238_v19, %v14236_v36  ;;  %vm18215_vm8 = vcmask 883712   ;;  %v5040_v19 = vsel %vm18216_vm6, %v14285_v61, %v14283_v30  ;;  %vm18220_vm15 = vcmask 867328  }
 0xb19   : > { %v14652_v47 = vpop.permute.xlu1 %5927  ;;  %6183 = vmatprep.subr.bf16.mxu1 %v5311_v24  ;;  %v14654_v52 = vpop.permute.xlu0 %5839  ;;  %v4963_v26 = vsel %vm18209_vm7, %v18208_v1, %v18207_v55  ;;  %v4962_v29 = vsel %vm18212_vm0, %v18176_v44, %v18208_v1  ;;  %v5015_v14 = vsel %vm18215_vm8, %v18214_v37, %v18213_v31  ;;  %vm18217_vm7 = vmmov %vm18215_vm8  ;;  %v5067_v54 = vsel %vm18220_vm15, %v18219_v6, %v18218_v59 }
 0xb1a   : > { %v5343_v13 = vsel %vm1464_vm3, %v4963_v26, %v4989_v63  ;;  %v5339_v36 = vsel %vm1464_vm3, %v4962_v29, %v4988_v62  ;;  %v5375_v33 = vsel %vm1464_vm3, %v5015_v14, %v5041_v53  ;;  %v5014_v44 = vsel %vm18217_vm7, %v18182_v39, %v18214_v37  ;;  %vm18222_vm0 = vmmov %vm18220_vm15 }
 0xb1b   : > { %v5371_v41 = vsel %vm1464_vm3, %v5014_v44, %v5040_v19  ;;  %v5407_v30 = vsel %vm1464_vm3, %v5067_v54, %v14400_v0  ;;  %v5145_v61 = vsel %vm18221_vm1, %v14323_v46, %v14345_v45  ;;  %v5066_v39 = vsel %vm18222_vm0, %v18187_v23, %v18219_v6  ;;  %vm18223_vm8 = vmmov %vm18221_vm1  ;;  %v18226_v23 = vld [vmem:[#allocation28_spill] sm:$0xff] }
 0xb1c   : > { %6184 = vmatpush1.bf16.msra.mxu1 %v5307_v17  ;;  %v5403_v0 = vsel %vm1464_vm3, %v5066_v39, %v14395_v22  ;;  %v5144_v45 = vsel %vm18223_vm8, %v14325_v16, %v14323_v46  ;;  %v5439_v10 = vsel %vm1464_vm3, %v18224_v40, %v5145_v61  ;;  %vm18227_vm6 = vcmask 138240   ;;  %v18229_v22 = vld [vmem:[#allocation91_spill] sm:$0xff] }
 0xb1d   : > { %v5834_v48 = vpop.permute.xlu1 %5833  ;;  %6185 = vmatprep.subr.bf16.mxu1 %v5343_v13  ;;  %v14670_v32 = vpop.permute.xlu0 %5925  ;;  %v5197_v9 = vsel %vm18227_vm6, %v18226_v23, %v18225_v34  ;;  %vm18230_vm7 = vcmask 146432   ;;  %v18231_v16 = vld [vmem:[#allocation39_spill] sm:$0xff]  ;;  %vm18232_vm15 = vmmov %vm18227_vm6  ;;  %vm18233_vm1 = vcmask 64512   ;;  %vm18235_vm8 = vcmask 130048  }
 0xb1e   : > { %v5935_v50 = vsel %vm2173_vm12, %v14525_v58, %v5834_v48  ;;  %v5171_v24 = vsel %vm18230_vm7, %v18229_v22, %v18228_v20  ;;  %v5435_v63 = vsel %vm1464_vm3, %v18231_v16, %v5144_v45  ;;  %v5196_v4 = vsel %vm18232_vm15, %v14365_v43, %v18226_v23  ;;  %vm18234_vm0 = vmmov %vm18230_vm7  ;;  %v18238_v40 = vld [vmem:[#allocation79_spill] sm:$0xff] }
 0xb1f   : > { %v5471_v55 = vsel %vm1464_vm3, %v5171_v24, %v5197_v9  ;;  %v5249_v1 = vsel %vm18233_vm1, %v14623_v42, %v5241_v21  ;;  %v5223_v62 = vsel %vm18235_vm8, %v14598_v56, %v14626_v15  ;;  %vm18236_vm6 = vmmov %vm18233_vm1  ;;  %v5975_v61 = vsel %vm2173_vm12, %v14484_v49, %v14635_v35  ;;  %v18239_v34 = vld [vmem:[#allocation83_spill] sm:$0xff] }
 0xb20   : > { %6186 = vmatpush1.bf16.msra.mxu1 %v5339_v36  ;;  %v5248_v13 = vsel %vm18236_vm6, %v14583_v7, %v14623_v42  ;;  %v5503_v21 = vsel %vm1464_vm3, %v5223_v62, %v5249_v1  ;;  %vm18237_vm7 = vmmov %vm18235_vm8  ;;  %v5977_v49 = vsel %vm2173_vm12, %v14670_v32, %v14652_v47 }
 0xb21   : > { %v5838_v51 = vpop.permute.xlu1 %5837  ;;  %6187 = vmatprep.subr.bf16.mxu1 %v5375_v33  ;;  %v14683_v8 = vpop.permute.xlu0 %5929 }
 0xb22   : > { %v5938_v7 = vsel %vm2173_vm12, %v5838_v51, %v14654_v52 }
 0xb24   : > { %6188 = vmatpush1.bf16.msra.mxu1 %v5371_v41 }
 0xb25   : > { %v5852_v5 = vpop.permute.xlu1 %5851  ;;  %6189 = vmatprep.subr.bf16.mxu1 %v5407_v30  ;;  %v5836_v38 = vpop.permute.xlu0 %5835 }
 0xb26   : > { %v5936_v12 = vsel %vm2173_vm12, %v5834_v48, %v5836_v38  ;;  %v5943_v46 = vsel %vm2173_vm12, %v14523_v18, %v5852_v5  ;;  %v5170_v18 = vsel %vm18234_vm0, %v18194_v2, %v18229_v22  ;;  %v5222_v2 = vsel %vm18237_vm7, %v14544_v57, %v14598_v56 }
 0xb27   : > { %6154 = vmatprep.subr.bf16.mxu0 %v5936_v12  ;;  %v5467_v43 = vsel %vm1464_vm3, %v5170_v18, %v5196_v4  ;;  %v5499_v31 = vsel %vm1464_vm3, %v5222_v2, %v5248_v13  ;;  %v5937_v14 = vsel %vm2173_vm12, %v5836_v38, %v5838_v51  ;;  %v5976_v38 = vsel %vm2173_vm12, %v14635_v35, %v14670_v32  ;;  %v18240_v4 = vld [vmem:[#allocation73_spill] sm:$0xff] }
 0xb28   : > { %6155 = vmatpush1.bf16.msra.mxu0 %v5935_v50  ;;  %6190 = vmatpush1.bf16.msra.mxu1 %v5403_v0  ;;  %v5978_v0 = vsel %vm2173_vm12, %v14652_v47, %v14683_v8  ;;  %v6047_v35 = vsel %vm1464_vm3, %v5977_v49, 0 }
 0xb29   : > { %v5856_v27 = vpop.permute.xlu1 %5855  ;;  %6191 = vmatprep.subr.bf16.mxu1 %v5439_v10  ;;  %v5854_v25 = vpop.permute.xlu0 %5853 }
 0xb2a   : > { %v5944_v58 = vsel %vm2173_vm12, %v5852_v5, %v5854_v25  ;;  %v5945_v33 = vsel %vm2173_vm12, %v5854_v25, %v5856_v27 }
 0xb2b   : > { %6156 = vmatprep.subr.bf16.mxu0 %v5944_v58 }
 0xb2c   : > { %6157 = vmatpush1.bf16.msra.mxu0 %v5943_v46  ;;  %6192 = vmatpush1.bf16.msra.mxu1 %v5435_v63 }
 0xb2d   : > { %v5870_v26 = vpop.permute.xlu1 %5869  ;;  %6193 = vmatprep.subr.bf16.mxu1 %v5471_v55  ;;  %v5858_v17 = vpop.permute.xlu0 %5857 }
 0xb2e   : > { %v5951_v15 = vsel %vm2173_vm12, %v14562_v28, %v5870_v26  ;;  %v5946_v57 = vsel %vm2173_vm12, %v5856_v27, %v5858_v17 }
 0xb30   : > { %6194 = vmatpush1.bf16.msra.mxu1 %v5467_v43 }
 0xb31   : > { %v5874_v53 = vpop.permute.xlu1 %5873  ;;  %6195 = vmatprep.subr.bf16.mxu1 %v5503_v21  ;;  %v5872_v48 = vpop.permute.xlu0 %5871 }
 0xb32   : > { %v5952_v29 = vsel %vm2173_vm12, %v5870_v26, %v5872_v48  ;;  %v5953_v59 = vsel %vm2173_vm12, %v5872_v48, %v5874_v53  ;;  %v18241_v26 = vld [vmem:[#allocation34_spill] sm:$0xff] }
 0xb33   : > { %6158 = vmatprep.subr.bf16.mxu0 %v5952_v29 }
 0xb34   : > { %6159 = vmatpush1.bf16.msra.mxu0 %v5951_v15  ;;  %6196 = vmatpush1.bf16.msra.mxu1 %v5499_v31 }
 0xb35   : > { %v5888_v42 = vpop.permute.xlu1 %5887  ;;  %6197 = vmatprep.subr.bf16.mxu1 %v5938_v7  ;;  %v5876_v37 = vpop.permute.xlu0 %5875 }
 0xb36   : > { %v5959_v19 = vsel %vm2173_vm12, %v14560_v60, %v5888_v42  ;;  %v5954_v52 = vsel %vm2173_vm12, %v5874_v53, %v5876_v37 }
 0xb38   : > { %6198 = vmatpush1.bf16.msra.mxu1 %v5937_v14 }
 0xb39   : > { %v5892_v56 = vpop.permute.xlu1 %5891  ;;  %6199 = vmatprep.subr.bf16.mxu1 %v5946_v57  ;;  %v5890_v36 = vpop.permute.xlu0 %5889 }
 0xb3a   : > { %v5960_v28 = vsel %vm2173_vm12, %v5888_v42, %v5890_v36  ;;  %v5961_v30 = vsel %vm2173_vm12, %v5890_v36, %v5892_v56  ;;  %v18242_v36 = vld [vmem:[#allocation66_spill] sm:$0xff] }
 0xb3b   : > { %6160 = vmatprep.subr.bf16.mxu0 %v5960_v28 }
 0xb3c   : > { %6161 = vmatpush1.bf16.msra.mxu0 %v5959_v19  ;;  %6200 = vmatpush1.bf16.msra.mxu1 %v5945_v33  ;;  %v18243_v33 = vld [vmem:[#allocation70_spill] sm:$0xff] }
 0xb3d   : > { %6201 = vmatprep.subr.bf16.mxu1 %v5954_v52  ;;  %v5894_v51 = vpop.permute.xlu0 %5893  ;;  %v5906_v44 = vpop.permute.xlu1 %5905 }
 0xb3e   : > { %v5962_v6 = vsel %vm2173_vm12, %v5892_v56, %v5894_v51  ;;  %v5967_v60 = vsel %vm2173_vm12, %v14600_v3, %v5906_v44  ;;  %v6041_v3 = vsel %vm1464_vm3, %v5975_v61, 0 }
 0xb40   : > { %6202 = vmatpush1.bf16.msra.mxu1 %v5953_v59 }
 0xb41   : > { %6203 = vmatprep.subr.bf16.mxu1 %v5962_v6  ;;  %v5908_v54 = vpop.permute.xlu0 %5907  ;;  %v5910_v5 = vpop.permute.xlu1 %5909 }
 0xb42   : > { %v5968_v41 = vsel %vm2173_vm12, %v5906_v44, %v5908_v54  ;;  %v5969_v50 = vsel %vm2173_vm12, %v5908_v54, %v5910_v5 }
 0xb43   : > { %6162 = vmatprep.subr.bf16.mxu0 %v5968_v41 }
 0xb44   : > { %6163 = vmatpush1.bf16.msra.mxu0 %v5967_v60  ;;  %6204 = vmatpush1.bf16.msra.mxu1 %v5961_v30 }
 0xb45   : > { %8581 = vmatprep.subr.msk.bf16.mxu0 %vm1464_vm3, %v5976_v38  ;;  %v5912_v39 = vpop.permute.xlu0 %5911 }
 0xb46   : > { %v5970_v12 = vsel %vm2173_vm12, %v5910_v5, %v5912_v39 }
 0xb47   : > { %6205 = vmatprep.subr.bf16.mxu1 %v5970_v12 }
 0xb48   : > { %6165 = vmatpush1.bf16.msra.mxu0 %v6041_v3  ;;  %6206 = vmatpush1.bf16.msra.mxu1 %v5969_v50  ;;  %v18244_v50 = vld [vmem:[#allocation74_spill] sm:$0xff] }
 0xb49   : > { %8583 = vmatprep.subr.msk.bf16.mxu1 %vm1464_vm3, %v5978_v0  ;;  %v18245_v0 = vld [vmem:[#allocation36_spill] sm:$0xff]  ;;  %vm18250_vm3 = vcmask 908288  }
 0xb4a   : > { %vm18251_vm15 = vmmov %vm18250_vm3 }
 0xb4b   : > { %6171 = vmatmul.mubr.bf16.vlgmr.msra.gmra.mrb[36].mxu0 %v14487_v11  ;;  %vm18252_vm1 = vmmov %vm18250_vm3 }
 0xb4c   : > { %6208 = vmatpush1.bf16.msra.mxu1 %v6047_v35  ;;  %vm8585_vm0 = vmneg %vm18252_vm1 }
 0xb4d   : > { %vm18253_vm8 = vmmov %vm18252_vm1 }
 0xb4e   : > { %vm18254_vm6 = vmmov %vm18252_vm1 }
 0xb4f   : > { %6214 = vmatmul.mubr.bf16.vlgmr.msra.gmra.mrb[36].mxu1 %v14487_v11  ;;  %vm18255_vm7 = vmmov %vm18252_vm1 }
 0xbca   : > { %v14780_v45 = vpop.f32.mrb[32].mxu0 }
 0xbcb   : > { %v6224_v32 = vmul.f32 %v14780_v45, %v18238_v40  ;;  %v14784_v10 = vpop.f32.mrb[33].mxu0 }
 0xbcc   : > { %v6225_v47 = vmul.f32 %v14784_v10, %v18239_v34  ;;  %v14788_v8 = vpop.f32.mrb[34].mxu0 }
 0xbcd   : > { %v6258_v23 = vmul.f32 %v6224_v32, %v14780_v45  ;;  %v6232_v9 = vmul.f32 %v14788_v8, %v18238_v40  ;;  %v14793_v27 = vpop.f32.mrb[35].mxu0 }
 0xbce   : > { %v6240_v11 = vadd.f32 %v6225_v47, %v6224_v32  ;;  %v6259_v25 = vmul.f32 %v6225_v47, %v14784_v10  ;;  %v6233_v58 = vmul.f32 %v14793_v27, %v18239_v34 }
 0xbcf   : > { %v6266_v20 = vmul.f32 %v6232_v9, %v14788_v8 }
 0xbd0   : > { %v6274_v22 = vadd.f32 %v6259_v25, %v6258_v23  ;;  %v6249_v24 = vadd.f32 %v6233_v58, %v6232_v9  ;;  %v6267_v46 = vmul.f32 %v6233_v58, %v14793_v27 }
 0xbd2   : > { %v6283_v16 = vadd.f32 %v6267_v46, %v6266_v20 }
 0xbea   : > { %v14800_v63 = vpop.f32.mrb[32].mxu1 }
 0xbeb   : > { %v6226_v55 = vmul.f32 %v14800_v63, %v18240_v4  ;;  %v14804_v1 = vpop.f32.mrb[33].mxu1 }
 0xbec   : > { %v6227_v17 = vmul.f32 %v14804_v1, %v18241_v26  ;;  %v14808_v18 = vpop.f32.mrb[34].mxu1 }
 0xbed   : > { %v6241_v62 = vadd.f32 %v6240_v11, %v6226_v55  ;;  %v6260_v43 = vmul.f32 %v6226_v55, %v14800_v63  ;;  %v6234_v13 = vmul.f32 %v14808_v18, %v18240_v4  ;;  %v14813_v21 = vpop.f32.mrb[35].mxu1 }
 0xbee   : > { %v6261_v53 = vmul.f32 %v6227_v17, %v14804_v1  ;;  %v6235_v48 = vmul.f32 %v14813_v21, %v18241_v26 }
 0xbef   : > { %v6275_v2 = vadd.f32 %v6274_v22, %v6260_v43  ;;  %v6242_v29 = vadd.f32 %v6241_v62, %v6227_v17  ;;  %v6250_v15 = vadd.f32 %v6249_v24, %v6234_v13  ;;  %v6268_v31 = vmul.f32 %v6234_v13, %v14808_v18 }
 0xbf0   : > { %v6269_v7 = vmul.f32 %v6235_v48, %v14813_v21 }
 0xbf1   : > { %v6276_v42 = vadd.f32 %v6275_v2, %v6261_v53  ;;  %v6284_v37 = vadd.f32 %v6283_v16, %v6268_v31  ;;  %v6251_v14 = vadd.f32 %v6250_v15, %v6235_v48  ;;  %v14862_v15 = vpop.permute.xlu0 %6342 }
 0xbf3   : > { %v6285_v57 = vadd.f32 %v6284_v37, %v6269_v7 }
 0xbf5   : > { %v14866_v7 = vpop.permute.xlu0 %6375 }
 0xbf9   : > { %v14870_v37 = vpop.permute.xlu0 %7029 }
 0xbfa   : > { %18247 = vst [vmem:[#allocation75_spill] sm:$0xff] %v14870_v37 }
 0xc1e   : > { %v14820_v56 = vpop.f32.mrb[36].mxu0 }
 0xc1f   : > { %v6228_v28 = vmul.f32 %v14820_v56, %v18242_v36  ;;  %v14824_v19 = vpop.f32.mrb[37].mxu0 }
 0xc20   : > { %v6229_v52 = vmul.f32 %v14824_v19, %v18243_v33  ;;  %v14828_v51 = vpop.f32.mrb[38].mxu0 }
 0xc21   : > { %v6243_v44 = vadd.f32 %v6242_v29, %v6228_v28  ;;  %v6262_v59 = vmul.f32 %v6228_v28, %v14820_v56  ;;  %v6236_v6 = vmul.f32 %v14828_v51, %v18242_v36  ;;  %v14833_v54 = vpop.f32.mrb[39].mxu0  ;;  %v14860_v29 = vpop.permute.xlu1 %6347 }
 0xc22   : > { %v6263_v41 = vmul.f32 %v6229_v52, %v14824_v19  ;;  %v6237_v60 = vmul.f32 %v14833_v54, %v18243_v33  ;;  %v14838_v30 = vpop.f32.mrb[36].mxu1 }
 0xc23   : > { %v6277_v61 = vadd.f32 %v6276_v42, %v6262_v59  ;;  %v6244_v5 = vadd.f32 %v6243_v44, %v6229_v52  ;;  %v6252_v38 = vadd.f32 %v6251_v14, %v6236_v6  ;;  %v6270_v39 = vmul.f32 %v6236_v6, %v14828_v51  ;;  %v14841_v12 = vpop.f32.mrb[37].mxu1 }
 0xc24   : > { %v6271_v3 = vmul.f32 %v6237_v60, %v14833_v54  ;;  %v6230_v49 = vmul.f32 %v14838_v30, %v18244_v50  ;;  %v6231_v35 = vmul.f32 %v14841_v12, %v18245_v0  ;;  %v14848_v32 = vpop.f32.mrb[38].mxu1 }
 0xc25   : > { %v6278_v47 = vadd.f32 %v6277_v61, %v6263_v41  ;;  %v6286_v23 = vadd.f32 %v6285_v57, %v6270_v39  ;;  %v6253_v9 = vadd.f32 %v6252_v38, %v6237_v60  ;;  %v6238_v11 = vmul.f32 %v14848_v32, %v18244_v50  ;;  %v14852_v25 = vpop.f32.mrb[39].mxu1  ;;  %v14864_v31 = vpop.permute.xlu1 %6370 }
 0xc26   : > { %v6245_v58 = vadd.f32 %v6244_v5, %v6230_v49  ;;  %v6264_v20 = vmul.f32 %v6230_v49, %v14838_v30  ;;  %v6265_v22 = vmul.f32 %v6231_v35, %v14841_v12  ;;  %v6239_v24 = vmul.f32 %v14852_v25, %v18245_v0  ;;  %v14874_v57 = vpop.permute.xlu0 %7163 }
 0xc27   : > { %v6287_v46 = vadd.f32 %v6286_v23, %v6271_v3  ;;  %v6254_v16 = vadd.f32 %v6253_v9, %v6238_v11  ;;  %v6272_v55 = vmul.f32 %v6238_v11, %v14848_v32  ;;  %18249 = vst [vmem:[#allocation45_spill] sm:$0xff] %v14874_v57 }
 0xc28   : > { %v6279_v17 = vadd.f32 %v6278_v47, %v6264_v20  ;;  %v6273_v62 = vmul.f32 %v6239_v24, %v14852_v25  ;;  %v6246_v43 = vadd.f32 %v6245_v58, %v6231_v35 }
 0xc29   : > { %v6288_v13 = vadd.f32 %v6287_v46, %v6272_v55  ;;  %v6255_v53 = vadd.f32 %v6254_v16, %v6239_v24  ;;  %v14868_v42 = vpop.permute.xlu1 %7079 }
 0xc2a   : > { %6247 = vadd.xlane.f32.xlu1 %v6246_v43  ;;  %v6280_v48 = vadd.f32 %v6279_v17, %v6265_v22  ;;  %18246 = vst [vmem:[#allocation27_spill] sm:$0xff] %v14868_v42 }
 0xc2b   : > { %6256 = vadd.xlane.f32.xlu0 %v6255_v53  ;;  %v6289_v2 = vadd.f32 %v6288_v13, %v6273_v62 }
 0xc2d   : > { %v14872_v14 = vpop.permute.xlu1 %7129 }
 0xc2e   : > { %6290 = vadd.xlane.f32.xlu1 %v6289_v2  ;;  %18248 = vst [vmem:[#allocation44_spill] sm:$0xff] %v14872_v14 }
 0xc2f   : > { %6281 = vadd.xlane.f32.xlu0 %v6280_v48 }
 0xcb7   : > { %v6248_v28 = vpop.xlane.xlu1 %6247 }
 0xcb8   : > { %v6257_v52 = vpop.xlane.xlu0 %6256  ;;  %v14876_v44 = vmul.f32 0.001953125, %v6248_v28 }
 0xcb9   : > { %v14878_v59 = vmul.f32 0.001953125, %v6257_v52 }
 0xcba   : > { %v6296_v5 = vmul.f32 %v14876_v44, %v14876_v44  ;;  %v6303_v9 = vsub.f32 %v14784_v10, %v14876_v44  ;;  %v6302_v58 = vsub.f32 %v14780_v45, %v14876_v44  ;;  %v6305_v20 = vsub.f32 %v14804_v1, %v14876_v44 }
 0xcbb   : > { %v6291_v6 = vpop.xlane.xlu1 %6290  ;;  %v6297_v41 = vmul.f32 %v14878_v59, %v14878_v59  ;;  %v6311_v11 = vsub.f32 %v14793_v27, %v14878_v59  ;;  %v6310_v22 = vsub.f32 %v14788_v8, %v14878_v59  ;;  %v6313_v24 = vsub.f32 %v14813_v21, %v14878_v59 }
 0xcbc   : > { %v6295_v60 = vmul.f32 0.001953125, %v6291_v6  ;;  %v6282_v61 = vpop.xlane.xlu0 %6281  ;;  %v6304_v46 = vsub.f32 %v14800_v63, %v14876_v44  ;;  %v6312_v10 = vsub.f32 %v14808_v18, %v14878_v59  ;;  %v6307_v27 = vsub.f32 %v14824_v19, %v14876_v44 }
 0xcbd   : > { %v6294_v38 = vmul.f32 0.001953125, %v6282_v61  ;;  %v6315_v45 = vsub.f32 %v14833_v54, %v14878_v59  ;;  %v6306_v1 = vsub.f32 %v14820_v56, %v14876_v44  ;;  %v6314_v8 = vsub.f32 %v14828_v51, %v14878_v59 }
 0xcbe   : > { %v6299_v39 = vsub.f32 %v6295_v60, %v6297_v41  ;;  %v6309_v63 = vsub.f32 %v14841_v12, %v14876_v44  ;;  %v6317_v18 = vsub.f32 %v14852_v25, %v14878_v59  ;;  %v6308_v21 = vsub.f32 %v14838_v30, %v14876_v44 }
 0xcbf   : > { %v6298_v3 = vsub.f32 %v6294_v38, %v6296_v5  ;;  %v6316_v19 = vsub.f32 %v14848_v32, %v14878_v59 }
 0xcc0   : > { %v6301_v49 = vmax.f32 %v6299_v39, 0.0 }
 0xcc1   : > { %v6300_v35 = vmax.f32 %v6298_v3, 0.0 }
 0xcc2   : > { %v6319_v47 = vadd.f32 1e-05, %v6301_v49 }
 0xcc3   : > { %v6318_v23 = vadd.f32 1e-05, %v6300_v35 }
 0xcc4   : > { %8777 = vrsqrt.f32 %v6319_v47 }
 0xcc5   : > { %8779 = vrsqrt.f32 %v6318_v23 }
 0xcce   : > { %v14908_v16 = vpop.eup %8777 }
 0xccf   : > { %v8780_v54 = vpop.eup %8779  ;;  %v6331_v56 = vmul.f32 %v14908_v16, %v6311_v11  ;;  %v6330_v55 = vmul.f32 %v14908_v16, %v6310_v22  ;;  %v6333_v51 = vmul.f32 %v14908_v16, %v6313_v24  ;;  %v6332_v17 = vmul.f32 %v14908_v16, %v6312_v10 }
 0xcd0   : > { %v6323_v62 = vmul.f32 %v8780_v54, %v6303_v9  ;;  %v6322_v12 = vmul.f32 %v8780_v54, %v6302_v58  ;;  %v6325_v43 = vmul.f32 %v8780_v54, %v6305_v20  ;;  %v6324_v13 = vmul.f32 %v8780_v54, %v6304_v46 }
 0xcd1   : > { %v6359_v25 = vmul.f32 %v14860_v29, %v6331_v56  ;;  %v6358_v30 = vmul.f32 %v14860_v29, %v6330_v55  ;;  %v6361_v53 = vmul.f32 %v14860_v29, %v6333_v51  ;;  %v6360_v48 = vmul.f32 %v14860_v29, %v6332_v17 }
 0xcd2   : > { %v6351_v2 = vmul.f32 %v14862_v15, %v6323_v62  ;;  %v6350_v28 = vmul.f32 %v14862_v15, %v6322_v12  ;;  %v6353_v52 = vmul.f32 %v14862_v15, %v6325_v43  ;;  %v6352_v44 = vmul.f32 %v14862_v15, %v6324_v13 }
 0xcd3   : > { %v6387_v6 = vadd.f32 %v14866_v7, %v6359_v25  ;;  %v6386_v41 = vadd.f32 %v14866_v7, %v6358_v30  ;;  %v6389_v60 = vadd.f32 %v14866_v7, %v6361_v53  ;;  %v6388_v61 = vadd.f32 %v14866_v7, %v6360_v48 }
 0xcd4   : > { %v6379_v5 = vadd.f32 %v14864_v31, %v6351_v2  ;;  %v6378_v38 = vadd.f32 %v14864_v31, %v6350_v28  ;;  %v6381_v39 = vadd.f32 %v14864_v31, %v6353_v52  ;;  %v6380_v3 = vadd.f32 %v14864_v31, %v6352_v44 }
 0xcd5   : > { %v6403_v49 = vmax.f32 %v6387_v6, 0.0  ;;  %v6402_v35 = vmax.f32 %v6386_v41, 0.0  ;;  %v6405_v47 = vmax.f32 %v6389_v60, 0.0  ;;  %v6404_v23 = vmax.f32 %v6388_v61, 0.0 }
 0xcd6   : > { %v6395_v9 = vmax.f32 %v6379_v5, 0.0  ;;  %v6394_v11 = vmax.f32 %v6378_v38, 0.0  ;;  %v6397_v58 = vmax.f32 %v6381_v39, 0.0  ;;  %v6396_v20 = vmax.f32 %v6380_v3, 0.0 }
 0xcd7   : > { %v6419_v22 = vmul.f32 %v6403_v49, %v18239_v34  ;;  %v6418_v24 = vmul.f32 %v6402_v35, %v18238_v40  ;;  %v6421_v46 = vmul.f32 %v6405_v47, %v18241_v26  ;;  %v6420_v10 = vmul.f32 %v6404_v23, %v18240_v4 }
 0xcd8   : > { %v6411_v56 = vmul.f32 %v6395_v9, %v18239_v34  ;;  %v6410_v55 = vmul.f32 %v6394_v11, %v18238_v40  ;;  %v6413_v51 = vmul.f32 %v6397_v58, %v18241_v26  ;;  %v6412_v17 = vmul.f32 %v6396_v20, %v18240_v4 }
 0xcd9   : > { %v6327_v62 = vmul.f32 %v8780_v54, %v6307_v27  ;;  %v6335_v12 = vmul.f32 %v14908_v16, %v6315_v45  ;;  %v6326_v43 = vmul.f32 %v8780_v54, %v6306_v1  ;;  %v6334_v13 = vmul.f32 %v14908_v16, %v6314_v8 }
 0xcda   : > { %v6427_v25 = vpack.c.bf16 %v6419_v22, %v6411_v56  ;;  %v6426_v30 = vpack.c.bf16 %v6418_v24, %v6410_v55  ;;  %v6429_v53 = vpack.c.bf16 %v6421_v46, %v6413_v51  ;;  %v6428_v48 = vpack.c.bf16 %v6420_v10, %v6412_v17 }
 0xcdb   : > { %v6355_v2 = vmul.f32 %v14862_v15, %v6327_v62  ;;  %v6363_v28 = vmul.f32 %v14860_v29, %v6335_v12  ;;  %v6354_v52 = vmul.f32 %v14862_v15, %v6326_v43  ;;  %v6362_v44 = vmul.f32 %v14860_v29, %v6334_v13 }
 0xcdc   : > { %6444 = vrot.lane.b32.xlu0 %v6427_v25, %s17933_s18  ;;  %6442 = vrot.lane.b32.xlu1 %v6426_v30, %s17933_s18  ;;  %v6329_v27 = vmul.f32 %v8780_v54, %v6309_v63  ;;  %v6337_v45 = vmul.f32 %v14908_v16, %v6317_v18  ;;  %v6328_v1 = vmul.f32 %v8780_v54, %v6308_v21 }
 0xcdd   : > { %v6383_v8 = vadd.f32 %v14864_v31, %v6355_v2  ;;  %v6391_v6 = vadd.f32 %v14866_v7, %v6363_v28  ;;  %v6382_v41 = vadd.f32 %v14864_v31, %v6354_v52  ;;  %v6390_v60 = vadd.f32 %v14866_v7, %v6362_v44 }
 0xcde   : > { %v6357_v61 = vmul.f32 %v14862_v15, %v6329_v27  ;;  %v6365_v5 = vmul.f32 %v14860_v29, %v6337_v45  ;;  %v6336_v63 = vmul.f32 %v14908_v16, %v6316_v19  ;;  %v6356_v18 = vmul.f32 %v14862_v15, %v6328_v1 }
 0xcdf   : > { %v6399_v21 = vmax.f32 %v6383_v8, 0.0  ;;  %v6407_v54 = vmax.f32 %v6391_v6, 0.0  ;;  %v6398_v38 = vmax.f32 %v6382_v41, 0.0  ;;  %v6406_v39 = vmax.f32 %v6390_v60, 0.0 }
 0xce0   : > { %6448 = vrot.lane.b32.xlu0 %v6429_v53, %s17933_s18  ;;  %6446 = vrot.lane.b32.xlu1 %v6428_v48, %s17933_s18  ;;  %v6385_v3 = vadd.f32 %v14864_v31, %v6357_v61  ;;  %v6393_v49 = vadd.f32 %v14866_v7, %v6365_v5  ;;  %v6364_v35 = vmul.f32 %v14860_v29, %v6336_v63 }
 0xce1   : > { %v6415_v32 = vmul.f32 %v6399_v21, %v18243_v33  ;;  %v6423_v59 = vmul.f32 %v6407_v54, %v18243_v33  ;;  %v6414_v15 = vmul.f32 %v6398_v38, %v18242_v36  ;;  %v6422_v16 = vmul.f32 %v6406_v39, %v18242_v36 }
 0xce2   : > { %v6401_v19 = vmax.f32 %v6385_v3, 0.0  ;;  %v6409_v47 = vmax.f32 %v6393_v49, 0.0  ;;  %v6384_v23 = vadd.f32 %v14864_v31, %v6356_v18  ;;  %v6392_v9 = vadd.f32 %v14866_v7, %v6364_v35 }
 0xce3   : > { %v6431_v11 = vpack.c.bf16 %v6423_v59, %v6415_v32  ;;  %v6430_v58 = vpack.c.bf16 %v6422_v16, %v6414_v15 }
 0xce4   : > { %v6417_v20 = vmul.f32 %v6401_v19, %v18245_v0  ;;  %v6425_v29 = vmul.f32 %v6409_v47, %v18245_v0  ;;  %v6400_v22 = vmax.f32 %v6384_v23, 0.0  ;;  %v6408_v24 = vmax.f32 %v6392_v9, 0.0 }
 0xce5   : > { %6452 = vrot.lane.b32.xlu0 %v6431_v11, %s17933_s18  ;;  %6450 = vrot.lane.b32.xlu1 %v6430_v58, %s17933_s18 }
 0xce6   : > { %v6433_v46 = vpack.c.bf16 %v6425_v29, %v6417_v20  ;;  %v6416_v10 = vmul.f32 %v6400_v22, %v18244_v50  ;;  %v6424_v56 = vmul.f32 %v6408_v24, %v18244_v50 }
 0xce8   : > { %v6432_v31 = vpack.c.bf16 %v6424_v56, %v6416_v10 }
 0xce9   : > { %6456 = vrot.lane.b32.xlu0 %v6433_v46, %s17933_s18 }
 0xcea   : > { %6454 = vrot.lane.b32.xlu1 %v6432_v31, %s17933_s18 }
 0xd4e   : > { %v6445_v7 = vpop.permute.xlu0 %6444  ;;  %v6443_v55 = vpop.permute.xlu1 %6442 }
 0xd4f   : > { %v14986_v51 = vsel %vm18250_vm3, %v6443_v55, %v6445_v7  ;;  %v14989_v17 = vsel %vm18251_vm15, 0, %v6443_v55  ;;  %vm18257_vm3 = vmmov %vm18252_vm1 }
 0xd50   : > { %6479 = vrot.lane.b32.xlu1 %v14989_v17, %s17954_s19  ;;  %6481 = vrot.lane.b32.xlu0 %v14986_v51, %s17954_s19  ;;  %vm18258_vm15 = vmmov %vm18252_vm1 }
 0xd51   : > { %7557 = vmatprep.subr.bf16.mxu0 %v14986_v51 }
 0xd52   : > { %8586 = vmatpush1.bf16.msk.msra.mxu0 %vm8585_vm0, %v6443_v55  ;;  %v6449_v62 = vpop.permute.xlu0 %6448  ;;  %v6447_v12 = vpop.permute.xlu1 %6446  ;;  %vm18259_vm0 = vmmov %vm18252_vm1 }
 0xd53   : > { %v14998_v43 = vsel %vm18253_vm8, %v6445_v7, %v6447_v12  ;;  %v15001_v13 = vsel %vm18254_vm6, %v6447_v12, %v6449_v62  ;;  %vm18273_vm8 = vcmask 957440  }
 0xd54   : > { %6485 = vrot.lane.b32.xlu0 %v15001_v13, %s17954_s19  ;;  %7643 = vmatprep.subr.bf16.mxu1 %v15001_v13  ;;  %vm18274_vm6 = vmmov %vm18273_vm8 }
 0xd55   : > { %6483 = vrot.lane.b32.xlu1 %v14998_v43, %s17954_s19  ;;  %7644 = vmatpush1.bf16.msra.mxu1 %v14998_v43 }
 0xd57   : > { %v6453_v25 = vpop.permute.xlu0 %6452  ;;  %v6451_v30 = vpop.permute.xlu1 %6450 }
 0xd58   : > { %v15010_v53 = vsel %vm18255_vm7, %v6449_v62, %v6451_v30  ;;  %v15013_v48 = vsel %vm18257_vm3, %v6451_v30, %v6453_v25  ;;  %vm18276_vm7 = vmmov %vm18274_vm6 }
 0xd59   : > { %18256 = vst [vmem:[#allocation48_spill] sm:$0xff] %v15010_v53  ;;  %6489 = vrot.lane.b32.xlu0 %v15013_v48, %s17954_s19  ;;  %6487 = vrot.lane.b32.xlu1 %v15010_v53, %s17954_s19  ;;  %vm18277_vm3 = vmmov %vm18274_vm6 }
 0xd5b   : > { %v6457_v2 = vpop.permute.xlu0 %6456 }
 0xd5c   : > { %v6455_v28 = vpop.permute.xlu1 %6454  ;;  %v15030_v27 = vsel %vm18259_vm0, %v6457_v2, 0 }
 0xd5d   : > { %v15020_v52 = vsel %vm18258_vm15, %v6453_v25, %v6455_v28  ;;  %v15023_v44 = vsel %vm18252_vm1, %v6455_v28, %v6457_v2  ;;  %vm18278_vm15 = vcmask 949248  }
 0xd5e   : > { %6493 = vrot.lane.b32.xlu0 %v15023_v44, %s17954_s19  ;;  %6491 = vrot.lane.b32.xlu1 %v15020_v52, %s17954_s19  ;;  %vm18279_vm1 = vmmov %vm18278_vm15 }
 0xd5f   : > { %vm18281_vm0 = vmmov %vm18279_vm1 }
 0xd62   : > { %6513 = vrot.lane.b32.xlu0 %v14989_v17, %s17633_s10  ;;  %6495 = vrot.lane.b32.xlu1 %v15030_v27, %s17954_s19  ;;  %s18518_s19 = sld [smem:[#allocation116_spill]] }
 0xd66   : > { %6517 = vrot.lane.b32.xlu0 %v14998_v43, %s17633_s10  ;;  %6515 = vrot.lane.b32.xlu1 %v14986_v51, %s17633_s10 }
 0xd6a   : > { %6521 = vrot.lane.b32.xlu0 %v15010_v53, %s17633_s10  ;;  %6519 = vrot.lane.b32.xlu1 %v15001_v13, %s17633_s10 }
 0xd6e   : > { %6525 = vrot.lane.b32.xlu0 %v15020_v52, %s17633_s10  ;;  %6523 = vrot.lane.b32.xlu1 %v15013_v48, %s17633_s10 }
 0xd72   : > { %6529 = vrot.lane.b32.xlu0 %v15030_v27, %s17633_s10  ;;  %6527 = vrot.lane.b32.xlu1 %v15023_v44, %s17633_s10  ;;  %s18290_s10 = smov 8  }
 0xd76   : > { %6549 = vrot.lane.b32.xlu0 %v14986_v51, %s17428_s17  ;;  %6547 = vrot.lane.b32.xlu1 %v14989_v17, %s17428_s17 }
 0xd7a   : > { %6553 = vrot.lane.b32.xlu0 %v15001_v13, %s17428_s17  ;;  %6551 = vrot.lane.b32.xlu1 %v14998_v43, %s17428_s17 }
 0xd7e   : > { %6557 = vrot.lane.b32.xlu0 %v15013_v48, %s17428_s17  ;;  %6555 = vrot.lane.b32.xlu1 %v15010_v53, %s17428_s17 }
 0xd82   : > { %6561 = vrot.lane.b32.xlu0 %v15023_v44, %s17428_s17  ;;  %6559 = vrot.lane.b32.xlu1 %v15020_v52, %s17428_s17 }
 0xd86   : > { %6581 = vrot.lane.b32.xlu0 %v14989_v17, %s17645_s11  ;;  %6563 = vrot.lane.b32.xlu1 %v15030_v27, %s17428_s17  ;;  %s18285_s17 = smov 16  }
 0xd8a   : > { %6585 = vrot.lane.b32.xlu0 %v14998_v43, %s17645_s11  ;;  %6583 = vrot.lane.b32.xlu1 %v14986_v51, %s17645_s11 }
 0xd8e   : > { %6989 = vrot.lane.b32.xlu0 %v14986_v51, %s17403_s1  ;;  %6587 = vrot.lane.b32.xlu1 %v15001_v13, %s17645_s11 }
 0xd92   : > { %6993 = vrot.lane.b32.xlu0 %v15001_v13, %s17403_s1  ;;  %6991 = vrot.lane.b32.xlu1 %v14998_v43, %s17403_s1 }
 0xd96   : > { %6997 = vrot.lane.b32.xlu0 %v15013_v48, %s17403_s1  ;;  %6995 = vrot.lane.b32.xlu1 %v15010_v53, %s17403_s1 }
 0xd9a   : > { %7015 = vrot.lane.b32.xlu0 %v14998_v43, %s17955_s22  ;;  %7013 = vrot.lane.b32.xlu1 %v14986_v51, %s17955_s22 }
 0xd9e   : > { %6589 = vrot.lane.b32.xlu0 %v15010_v53, %s17645_s11  ;;  %7017 = vrot.lane.b32.xlu1 %v15001_v13, %s17955_s22 }
 0xda2   : > { %6619 = vrot.lane.b32.xlu0 %v14998_v43, %s17412_s25  ;;  %6617 = vrot.lane.b32.xlu1 %v14986_v51, %s17412_s25 }
 0xda6   : > { %7019 = vrot.lane.b32.xlu0 %v15010_v53, %s17955_s22  ;;  %6615 = vrot.lane.b32.xlu1 %v14989_v17, %s17412_s25 }
 0xdaa   : > { %7039 = vrot.lane.b32.xlu0 %v14986_v51, %s17405_s24  ;;  %7021 = vrot.lane.b32.xlu1 %v15013_v48, %s17955_s22 }
 0xdae   : > { %7043 = vrot.lane.b32.xlu0 %v15001_v13, %s17405_s24  ;;  %7041 = vrot.lane.b32.xlu1 %v14998_v43, %s17405_s24 }
 0xdb2   : > { %6623 = vrot.lane.b32.xlu0 %v15010_v53, %s17412_s25  ;;  %6621 = vrot.lane.b32.xlu1 %v15001_v13, %s17412_s25 }
 0xdb6   : > { %6653 = vrot.lane.b32.xlu0 %v14998_v43, %s17393_s4  ;;  %6651 = vrot.lane.b32.xlu1 %v14986_v51, %s17393_s4 }
 0xdba   : > { %7045 = vrot.lane.b32.xlu0 %v15010_v53, %s17405_s24  ;;  %6649 = vrot.lane.b32.xlu1 %v14989_v17, %s17393_s4 }
 0xdbe   : > { %7063 = vrot.lane.b32.xlu0 %v14986_v51, %s17956_s13  ;;  %7047 = vrot.lane.b32.xlu1 %v15013_v48, %s17405_s24 }
 0xdc2   : > { %7067 = vrot.lane.b32.xlu0 %v15001_v13, %s17956_s13  ;;  %7065 = vrot.lane.b32.xlu1 %v14998_v43, %s17956_s13  ;;  %v6482_v45 = vpop.permute.xlu0 %6481  ;;  %v6480_v1 = vpop.permute.xlu1 %6479 }
 0xdc3   : > { %v15141_v60 = vsel %vm1077_vm2, %v6480_v1, %v6482_v45 }
 0xdc6   : > { %6657 = vrot.lane.b32.xlu0 %v15010_v53, %s17393_s4  ;;  %6655 = vrot.lane.b32.xlu1 %v15001_v13, %s17393_s4  ;;  %v6486_v8 = vpop.permute.xlu0 %6485 }
 0xdc7   : > { %v6484_v6 = vpop.permute.xlu1 %6483 }
 0xdc8   : > { %v15137_v41 = vsel %vm1077_vm2, %v6482_v45, %v6484_v6  ;;  %v15162_v18 = vsel %vm1077_vm2, %v6484_v6, %v6486_v8 }
 0xdc9   : > { %7559 = vmatprep.subr.bf16.mxu0 %v15137_v41 }
 0xdca   : > { %6687 = vrot.lane.b32.xlu0 %v14998_v43, %s17413_s0  ;;  %6685 = vrot.lane.b32.xlu1 %v14986_v51, %s17413_s0 }
 0xdcb   : > { %7560 = vmatpush1.bf16.msra.mxu0 %v15141_v60  ;;  %v15148_v61 = vpop.permute.xlu0 %6489  ;;  %v15150_v5 = vpop.permute.xlu1 %6487 }
 0xdcc   : > { %v15154_v63 = vsel %vm1077_vm2, %v6486_v8, %v15150_v5 }
 0xdcd   : > { %7645 = vmatprep.subr.bf16.mxu1 %v15154_v63 }
 0xdce   : > { %7069 = vrot.lane.b32.xlu0 %v15010_v53, %s17956_s13  ;;  %6683 = vrot.lane.b32.xlu1 %v14989_v17, %s17413_s0 }
 0xdcf   : > { %7646 = vmatpush1.bf16.msra.mxu1 %v15162_v18 }
 0xdd0   : > { %v15165_v21 = vpop.permute.xlu0 %6493  ;;  %v15167_v54 = vpop.permute.xlu1 %6491 }
 0xdd1   : > { %18260 = vst [vmem:[#allocation64_spill] sm:$0xff] %v15165_v21  ;;  %18261 = vst [vmem:[#allocation29_spill] sm:$0xff] %v15167_v54 }
 0xdd2   : > { %7089 = vrot.lane.b32.xlu0 %v14986_v51, %s17407_s27  ;;  %7071 = vrot.lane.b32.xlu1 %v15013_v48, %s17956_s13 }
 0xdd4   : > { %v6514_v38 = vpop.permute.xlu0 %6513  ;;  %v15173_v39 = vpop.permute.xlu1 %6495 }
 0xdd5   : > { %18262 = vst [vmem:[#allocation59_spill] sm:$0xff] %v15173_v39 }
 0xdd6   : > { %7093 = vrot.lane.b32.xlu0 %v15001_v13, %s17407_s27  ;;  %7091 = vrot.lane.b32.xlu1 %v14998_v43, %s17407_s27 }
 0xdd8   : > { %v6518_v3 = vpop.permute.xlu0 %6517  ;;  %v6516_v49 = vpop.permute.xlu1 %6515 }
 0xdd9   : > { %v6532_v35 = vsel %vm1104_vm5, %v6516_v49, %v6518_v3  ;;  %v6531_v32 = vsel %vm1104_vm5, %v6514_v38, %v6516_v49 }
 0xdda   : > { %6691 = vrot.lane.b32.xlu0 %v15010_v53, %s17413_s0  ;;  %6689 = vrot.lane.b32.xlu1 %v15001_v13, %s17413_s0 }
 0xddb   : > { %7561 = vmatprep.subr.bf16.mxu0 %v6532_v35 }
 0xddc   : > { %7562 = vmatpush1.bf16.msra.mxu0 %v6531_v32  ;;  %v15185_v59 = vpop.permute.xlu0 %6521  ;;  %v6520_v15 = vpop.permute.xlu1 %6519 }
 0xddd   : > { %18263 = vst [vmem:[#allocation57_spill] sm:$0xff] %v15185_v59  ;;  %v6534_v16 = vsel %vm1104_vm5, %v6520_v15, %v15185_v59  ;;  %v6533_v19 = vsel %vm1104_vm5, %v6518_v3, %v6520_v15 }
 0xdde   : > { %6721 = vrot.lane.b32.xlu0 %v14998_v43, %s17395_s21  ;;  %6719 = vrot.lane.b32.xlu1 %v14986_v51, %s17395_s21 }
 0xddf   : > { %7647 = vmatprep.subr.bf16.mxu1 %v6534_v16 }
 0xde0   : > { %7648 = vmatpush1.bf16.msra.mxu1 %v6533_v19  ;;  %v15194_v47 = vpop.permute.xlu0 %6525  ;;  %v15196_v23 = vpop.permute.xlu1 %6523 }
 0xde1   : > { %18264 = vst [vmem:[#allocation62_spill] sm:$0xff] %v15194_v47  ;;  %18265 = vst [vmem:[#allocation51_spill] sm:$0xff] %v15196_v23 }
 0xde2   : > { %7095 = vrot.lane.b32.xlu0 %v15010_v53, %s17407_s27  ;;  %6717 = vrot.lane.b32.xlu1 %v14989_v17, %s17395_s21 }
 0xde4   : > { %v15202_v9 = vpop.permute.xlu0 %6529  ;;  %v15204_v11 = vpop.permute.xlu1 %6527 }
 0xde5   : > { %18266 = vst [vmem:[#allocation26_spill] sm:$0xff] %v15202_v9  ;;  %18267 = vst [vmem:[#allocation72_spill] sm:$0xff] %v15204_v11 }
 0xde6   : > { %7113 = vrot.lane.b32.xlu0 %v14986_v51, %s17957_s14  ;;  %7097 = vrot.lane.b32.xlu1 %v15013_v48, %s17407_s27 }
 0xde8   : > { %v6550_v58 = vpop.permute.xlu0 %6549  ;;  %v6548_v20 = vpop.permute.xlu1 %6547 }
 0xde9   : > { %v6565_v46 = vsel %vm1131_vm4, %v6548_v20, %v6550_v58 }
 0xdea   : > { %7117 = vrot.lane.b32.xlu0 %v15001_v13, %s17957_s14  ;;  %7115 = vrot.lane.b32.xlu1 %v14998_v43, %s17957_s14 }
 0xdec   : > { %v6554_v29 = vpop.permute.xlu0 %6553  ;;  %v6552_v22 = vpop.permute.xlu1 %6551 }
 0xded   : > { %v6566_v24 = vsel %vm1131_vm4, %v6550_v58, %v6552_v22  ;;  %v6567_v7 = vsel %vm1131_vm4, %v6552_v22, %v6554_v29 }
 0xdee   : > { %6725 = vrot.lane.b32.xlu0 %v15010_v53, %s17395_s21  ;;  %6723 = vrot.lane.b32.xlu1 %v15001_v13, %s17395_s21 }
 0xdef   : > { %7563 = vmatprep.subr.bf16.mxu0 %v6566_v24 }
 0xdf0   : > { %7564 = vmatpush1.bf16.msra.mxu0 %v6565_v46  ;;  %v15220_v10 = vpop.permute.xlu0 %6557  ;;  %v15222_v56 = vpop.permute.xlu1 %6555 }
 0xdf1   : > { %18268 = vst [vmem:[#allocation77_spill] sm:$0xff] %v15220_v10  ;;  %18269 = vst [vmem:[#allocation19_spill] sm:$0xff] %v15222_v56  ;;  %v6568_v31 = vsel %vm1131_vm4, %v6554_v29, %v15222_v56 }
 0xdf2   : > { %6755 = vrot.lane.b32.xlu0 %v14998_v43, %s17416_s29  ;;  %6753 = vrot.lane.b32.xlu1 %v14986_v51, %s17416_s29 }
 0xdf3   : > { %7649 = vmatprep.subr.bf16.mxu1 %v6568_v31 }
 0xdf4   : > { %7650 = vmatpush1.bf16.msra.mxu1 %v6567_v7  ;;  %v15231_v55 = vpop.permute.xlu0 %6561  ;;  %v15233_v62 = vpop.permute.xlu1 %6559 }
 0xdf5   : > { %18270 = vst [vmem:[#allocation78_spill] sm:$0xff] %v15231_v55  ;;  %18271 = vst [vmem:[#allocation20_spill] sm:$0xff] %v15233_v62 }
 0xdf6   : > { %7119 = vrot.lane.b32.xlu0 %v15010_v53, %s17957_s14  ;;  %6751 = vrot.lane.b32.xlu1 %v14989_v17, %s17416_s29 }
 0xdf8   : > { %v6582_v12 = vpop.permute.xlu0 %6581  ;;  %v15239_v25 = vpop.permute.xlu1 %6563 }
 0xdf9   : > { %18272 = vst [vmem:[#allocation31_spill] sm:$0xff] %v15239_v25 }
 0xdfa   : > { %7139 = vrot.lane.b32.xlu0 %v14986_v51, %s17414_s30  ;;  %7121 = vrot.lane.b32.xlu1 %v15013_v48, %s17957_s14 }
 0xdfc   : > { %v6586_v30 = vpop.permute.xlu0 %6585  ;;  %v6584_v2 = vpop.permute.xlu1 %6583 }
 0xdfd   : > { %v6600_v28 = vsel %vm18273_vm8, %v6584_v2, %v6586_v30  ;;  %v6599_v45 = vsel %vm18274_vm6, %v6582_v12, %v6584_v2  ;;  %vm18282_vm8 = vmmov %vm18281_vm0  ;;  %vm18283_vm6 = vcmask 883712  }
 0xdfe   : > { %7143 = vrot.lane.b32.xlu0 %v15001_v13, %s17414_s30  ;;  %7141 = vrot.lane.b32.xlu1 %v14998_v43, %s17414_s30 }
 0xdff   : > { %7565 = vmatprep.subr.bf16.mxu0 %v6600_v28 }
 0xe00   : > { %7566 = vmatpush1.bf16.msra.mxu0 %v6599_v45  ;;  %v15251_v1 = vpop.permute.xlu0 %6989  ;;  %v6588_v8 = vpop.permute.xlu1 %6587 }
 0xe01   : > { %v6601_v58 = vsel %vm18277_vm3, %v6586_v30, %v6588_v8  ;;  %vm18287_vm3 = vmmov %vm18283_vm6 }
 0xe02   : > { %6759 = vrot.lane.b32.xlu0 %v15010_v53, %s17416_s29  ;;  %6757 = vrot.lane.b32.xlu1 %v15001_v13, %s17416_s29 }
 0xe04   : > { %v15257_v6 = vpop.permute.xlu0 %6993  ;;  %v15259_v38 = vpop.permute.xlu1 %6991 }
 0xe06   : > { %6789 = vrot.lane.b32.xlu0 %v14998_v43, %s17398_s3  ;;  %6787 = vrot.lane.b32.xlu1 %v14986_v51, %s17398_s3 }
 0xe08   : > { %v15265_v3 = vpop.permute.xlu0 %6997  ;;  %v15267_v49 = vpop.permute.xlu1 %6995 }
 0xe0a   : > { %7145 = vrot.lane.b32.xlu0 %v15010_v53, %s17414_s30  ;;  %6785 = vrot.lane.b32.xlu1 %v14989_v17, %s17398_s3 }
 0xe0c   : > { %v15273_v35 = vpop.permute.xlu0 %7015  ;;  %v15275_v32 = vpop.permute.xlu1 %7013 }
 0xe0e   : > { %6791 = vrot.lane.b32.xlu0 %v15001_v13, %s17398_s3  ;;  %7147 = vrot.lane.b32.xlu1 %v15013_v48, %s17414_s30 }
 0xe10   : > { %v15281_v15 = vpop.permute.xlu0 %6589  ;;  %v15283_v16 = vpop.permute.xlu1 %7017 }
 0xe11   : > { %18275 = vst [vmem:[#allocation41_spill] sm:$0xff] %v15281_v15  ;;  %v6602_v19 = vsel %vm18276_vm7, %v6588_v8, %v15281_v15  ;;  %vm18284_vm7 = vmmov %vm18283_vm6 }
 0xe12   : > { %6821 = vrot.lane.b32.xlu0 %v14986_v51, %s17417_s2  ;;  %6793 = vrot.lane.b32.xlu1 %v15010_v53, %s17398_s3 }
 0xe13   : > { %7651 = vmatprep.subr.bf16.mxu1 %v6602_v19 }
 0xe14   : > { %7652 = vmatpush1.bf16.msra.mxu1 %v6601_v58  ;;  %v6620_v20 = vpop.permute.xlu0 %6619  ;;  %v6618_v29 = vpop.permute.xlu1 %6617 }
 0xe15   : > { %v6634_v22 = vsel %vm18278_vm15, %v6618_v29, %v6620_v20  ;;  %vm18288_vm15 = vmmov %vm18287_vm3 }
 0xe16   : > { %6761 = vrot.lane.b32.xlu0 %v15013_v48, %s17416_s29  ;;  %6823 = vrot.lane.b32.xlu1 %v14998_v43, %s17417_s2 }
 0xe17   : > { %7567 = vmatprep.subr.bf16.mxu0 %v6634_v22 }
 0xe18   : > { %v15297_v24 = vpop.permute.xlu0 %7019  ;;  %v6616_v46 = vpop.permute.xlu1 %6615 }
 0xe19   : > { %v6633_v31 = vsel %vm18279_vm1, %v6616_v46, %v6618_v29  ;;  %vm18289_vm1 = vcmask 875520  }
 0xe1a   : > { %6825 = vrot.lane.b32.xlu0 %v15001_v13, %s17417_s2  ;;  %6819 = vrot.lane.b32.xlu1 %v14989_v17, %s17417_s2 }
 0xe1b   : > { %7568 = vmatpush1.bf16.msra.mxu0 %v6633_v31 }
 0xe1c   : > { %v15304_v7 = vpop.permute.xlu0 %7039  ;;  %v15306_v12 = vpop.permute.xlu1 %7021 }
 0xe1e   : > { %6855 = vrot.lane.b32.xlu0 %v14986_v51, %s17401_s23  ;;  %6827 = vrot.lane.b32.xlu1 %v15010_v53, %s17417_s2 }
 0xe20   : > { %v15312_v30 = vpop.permute.xlu0 %7043  ;;  %v15314_v2 = vpop.permute.xlu1 %7041 }
 0xe22   : > { %6795 = vrot.lane.b32.xlu0 %v15013_v48, %s17398_s3  ;;  %6857 = vrot.lane.b32.xlu1 %v14998_v43, %s17401_s23 }
 0xe24   : > { %v15320_v28 = vpop.permute.xlu0 %6623  ;;  %v6622_v45 = vpop.permute.xlu1 %6621 }
 0xe25   : > { %18280 = vst [vmem:[#allocation47_spill] sm:$0xff] %v15320_v28  ;;  %v6636_v8 = vsel %vm18281_vm0, %v6622_v45, %v15320_v28  ;;  %v6635_v19 = vsel %vm18282_vm8, %v6620_v20, %v6622_v45  ;;  %vm18291_vm0 = vmmov %vm18289_vm1 }
 0xe26   : > { %6859 = vrot.lane.b32.xlu0 %v15001_v13, %s17401_s23  ;;  %6853 = vrot.lane.b32.xlu1 %v14989_v17, %s17401_s23  ;;  %vm18295_vm8 = vmmov %vm18291_vm0 }
 0xe27   : > { %7653 = vmatprep.subr.bf16.mxu1 %v6636_v8 }
 0xe28   : > { %7654 = vmatpush1.bf16.msra.mxu1 %v6635_v19  ;;  %v6654_v58 = vpop.permute.xlu0 %6653  ;;  %v6652_v29 = vpop.permute.xlu1 %6651 }
 0xe29   : > { %v6668_v22 = vsel %vm18283_vm6, %v6652_v29, %v6654_v58  ;;  %vm18296_vm6 = vmmov %vm18291_vm0 }
 0xe2a   : > { %6889 = vrot.lane.b32.xlu0 %v14986_v51, %s17420_s20  ;;  %6861 = vrot.lane.b32.xlu1 %v15010_v53, %s17401_s23 }
 0xe2b   : > { %7569 = vmatprep.subr.bf16.mxu0 %v6668_v22 }
 0xe2c   : > { %v15334_v20 = vpop.permute.xlu0 %7045  ;;  %v6650_v46 = vpop.permute.xlu1 %6649 }
 0xe2d   : > { %v6667_v31 = vsel %vm18284_vm7, %v6650_v46, %v6652_v29  ;;  %vm18297_vm7 = vcmask 867328  }
 0xe2e   : > { %6887 = vrot.lane.b32.xlu0 %v14989_v17, %s17420_s20  ;;  %6891 = vrot.lane.b32.xlu1 %v14998_v43, %s17420_s20 }
 0xe2f   : > { %7570 = vmatpush1.bf16.msra.mxu0 %v6667_v31 }
 0xe30   : > { %v15341_v45 = vpop.permute.xlu0 %7063  ;;  %v15343_v8 = vpop.permute.xlu1 %7047 }
 0xe32   : > { %6895 = vrot.lane.b32.xlu0 %v15010_v53, %s17420_s20  ;;  %6893 = vrot.lane.b32.xlu1 %v15001_v13, %s17420_s20 }
 0xe34   : > { %v15349_v19 = vpop.permute.xlu0 %7067  ;;  %v15351_v29 = vpop.permute.xlu1 %7065 }
 0xe36   : > { %6925 = vrot.lane.b32.xlu0 %v14998_v43, %s18285_s17  ;;  %6923 = vrot.lane.b32.xlu1 %v14986_v51, %s18285_s17 }
 0xe38   : > { %v15357_v22 = vpop.permute.xlu0 %6657  ;;  %v6656_v46 = vpop.permute.xlu1 %6655 }
 0xe39   : > { %18286 = vst [vmem:[#allocation23_spill] sm:$0xff] %v15357_v22  ;;  %v6670_v31 = vsel %vm18287_vm3, %v6656_v46, %v15357_v22  ;;  %v6669_v0 = vsel %vm18288_vm15, %v6654_v58, %v6656_v46  ;;  %vm18298_vm3 = vmmov %vm18297_vm7 }
 0xe3a   : > { %6927 = vrot.lane.b32.xlu0 %v15001_v13, %s18285_s17  ;;  %6921 = vrot.lane.b32.xlu1 %v14989_v17, %s18285_s17  ;;  %vm18300_vm15 = vmmov %vm18298_vm3 }
 0xe3b   : > { %7655 = vmatprep.subr.bf16.mxu1 %v6670_v31  ;;  %v7546_v31 = vld [vmem:[%s18292_s5 + $0x28] sm:$0xff] }
 0xe3c   : > { %7656 = vmatpush1.bf16.msra.mxu1 %v6669_v0  ;;  %v6688_v50 = vpop.permute.xlu0 %6687  ;;  %v6686_v33 = vpop.permute.xlu1 %6685  ;;  %v7542_v0 = vld [vmem:[%s18292_s5 + $0x8] sm:$0xff] }
 0xe3d   : > { %v6702_v36 = vsel %vm18289_vm1, %v6686_v33, %v6688_v50  ;;  %vm18301_vm1 = vmmov %vm18298_vm3 }
 0xe3e   : > { %6957 = vrot.lane.b32.xlu0 %v14986_v51, %s18290_s10  ;;  %6929 = vrot.lane.b32.xlu1 %v15010_v53, %s18285_s17 }
 0xe3f   : > { %7571 = vmatprep.subr.bf16.mxu0 %v6702_v36  ;;  %v15384_v36 = vpack.c.bf16 %v7546_v31, %v7542_v0 }
 0xe40   : > { %v15371_v58 = vpop.permute.xlu0 %7069  ;;  %v6684_v46 = vpop.permute.xlu1 %6683 }
 0xe41   : > { %v6701_v26 = vsel %vm18291_vm0, %v6684_v46, %v6686_v33  ;;  %18293 = vst [vmem:[#allocation46_spill] sm:$0xff] %v15384_v36  ;;  %7589 = vmatprep.mubr.bf16.mxu0 %v15384_v36  ;;  %7675 = vmatprep.mubr.bf16.mxu1 %v15384_v36  ;;  %vm18302_vm0 = vcmask 220160  }
 0xe42   : > { %6955 = vrot.lane.b32.xlu0 %v14989_v17, %s18290_s10  ;;  %6959 = vrot.lane.b32.xlu1 %v14998_v43, %s18290_s10 }
 0xe43   : > { %7572 = vmatpush1.bf16.msra.mxu0 %v6701_v26 }
 0xe44   : > { %v15386_v4 = vpop.permute.xlu0 %7089  ;;  %v15388_v33 = vpop.permute.xlu1 %7071 }
 0xe46   : > { %6963 = vrot.lane.b32.xlu0 %v15010_v53, %s18290_s10  ;;  %6961 = vrot.lane.b32.xlu1 %v15001_v13, %s18290_s10 }
 0xe48   : > { %v15396_v46 = vpop.permute.xlu0 %7093  ;;  %v15398_v34 = vpop.permute.xlu1 %7091 }
 0xe4a   : > { %7171 = vrot.lane.b32.xlu0 %v14998_v43, %s18045_s16  ;;  %7169 = vrot.lane.b32.xlu1 %v14986_v51, %s18045_s16 }
 0xe4c   : > { %v15404_v26 = vpop.permute.xlu0 %6691  ;;  %v6690_v0 = vpop.permute.xlu1 %6689 }
 0xe4d   : > { %18294 = vst [vmem:[#allocation54_spill] sm:$0xff] %v15404_v26  ;;  %v6704_v31 = vsel %vm18295_vm8, %v6690_v0, %v15404_v26  ;;  %v6703_v40 = vsel %vm18296_vm6, %v6688_v50, %v6690_v0  ;;  %vm18304_vm8 = vmmov %vm18302_vm0 }
 0xe4e   : > { %7173 = vrot.lane.b32.xlu0 %v15001_v13, %s18045_s16  ;;  %7167 = vrot.lane.b32.xlu1 %v14989_v17, %s18045_s16  ;;  %vm18306_vm6 = vmmov %vm18302_vm0 }
 0xe4f   : > { %7657 = vmatprep.subr.bf16.mxu1 %v6704_v31 }
 0xe50   : > { %7658 = vmatpush1.bf16.msra.mxu1 %v6703_v40  ;;  %v6722_v43 = vpop.permute.xlu0 %6721  ;;  %v6720_v22 = vpop.permute.xlu1 %6719 }
 0xe51   : > { %v6736_v51 = vsel %vm18297_vm7, %v6720_v22, %v6722_v43  ;;  %vm18308_vm7 = vmmov %vm18302_vm0 }
 0xe52   : > { %6999 = vrot.lane.b32.xlu0 %v15020_v52, %s17403_s1  ;;  %7175 = vrot.lane.b32.xlu1 %v15010_v53, %s18045_s16 }
 0xe53   : > { %7573 = vmatprep.subr.bf16.mxu0 %v6736_v51 }
 0xe54   : > { %v15418_v50 = vpop.permute.xlu0 %7095  ;;  %v6718_v0 = vpop.permute.xlu1 %6717 }
 0xe55   : > { %v6735_v13 = vsel %vm18298_vm3, %v6718_v0, %v6720_v22  ;;  %vm18309_vm3 = vcmask 211968  }
 0xe56   : > { %6591 = vrot.lane.b32.xlu0 %v15013_v48, %s17645_s11  ;;  %7001 = vrot.lane.b32.xlu1 %v15023_v44, %s17403_s1 }
 0xe57   : > { %7574 = vmatpush1.bf16.msra.mxu0 %v6735_v13 }
 0xe58   : > { %v15425_v40 = vpop.permute.xlu0 %7113  ;;  %v15427_v17 = vpop.permute.xlu1 %7097 }
 0xe5a   : > { %7003 = vrot.lane.b32.xlu0 %v15030_v27, %s17403_s1  ;;  %6593 = vrot.lane.b32.xlu1 %v15020_v52, %s17645_s11 }
 0xe5c   : > { %v15433_v31 = vpop.permute.xlu0 %7117  ;;  %v15435_v22 = vpop.permute.xlu1 %7115 }
 0xe5e   : > { %7025 = vrot.lane.b32.xlu0 %v15023_v44, %s17955_s22  ;;  %7023 = vrot.lane.b32.xlu1 %v15020_v52, %s17955_s22 }
 0xe60   : > { %v15441_v51 = vpop.permute.xlu0 %6725  ;;  %v6724_v0 = vpop.permute.xlu1 %6723 }
 0xe61   : > { %18299 = vst [vmem:[#allocation84_spill] sm:$0xff] %v15441_v51  ;;  %v6738_v13 = vsel %vm18300_vm15, %v6724_v0, %v15441_v51  ;;  %v6737_v26 = vsel %vm18301_vm1, %v6722_v43, %v6724_v0  ;;  %vm18310_vm15 = vmmov %vm18309_vm3 }
 0xe62   : > { %6597 = vrot.lane.b32.xlu0 %v15030_v27, %s17645_s11  ;;  %6595 = vrot.lane.b32.xlu1 %v15023_v44, %s17645_s11  ;;  %vm18312_vm1 = vmmov %vm18309_vm3 }
 0xe63   : > { %7659 = vmatprep.subr.bf16.mxu1 %v6738_v13 }
 0xe64   : > { %7660 = vmatpush1.bf16.msra.mxu1 %v6737_v26  ;;  %v6756_v28 = vpop.permute.xlu0 %6755  ;;  %v15450_v15 = vpop.permute.xlu1 %6753 }
 0xe65   : > { %v15454_v55 = vsel %vm1293_vm11, %v15450_v15, %v6756_v28 }
 0xe66   : > { %6627 = vrot.lane.b32.xlu0 %v15020_v52, %s17412_s25  ;;  %6625 = vrot.lane.b32.xlu1 %v15013_v48, %s17412_s25 }
 0xe67   : > { %7575 = vmatprep.subr.bf16.mxu0 %v15454_v55 }
 0xe68   : > { %v15461_v43 = vpop.permute.xlu0 %7119  ;;  %v6752_v0 = vpop.permute.xlu1 %6751 }
 0xe69   : > { %v6769_v26 = vsel %vm1293_vm11, %v6752_v0, %v15450_v15 }
 0xe6a   : > { %7051 = vrot.lane.b32.xlu0 %v15023_v44, %s17405_s24  ;;  %7027 = vrot.lane.b32.xlu1 %v15030_v27, %s17955_s22 }
 0xe6b   : > { %7576 = vmatpush1.bf16.msra.mxu0 %v6769_v26 }
 0xe6c   : > { %v15469_v13 = vpop.permute.xlu0 %7139  ;;  %v15471_v51 = vpop.permute.xlu1 %7121 }
 0xe6e   : > { %6631 = vrot.lane.b32.xlu0 %v15030_v27, %s17412_s25  ;;  %7049 = vrot.lane.b32.xlu1 %v15020_v52, %s17405_s24 }
 0xe70   : > { %v15477_v25 = vpop.permute.xlu0 %7143  ;;  %v15479_v0 = vpop.permute.xlu1 %7141 }
 0xe72   : > { %6661 = vrot.lane.b32.xlu0 %v15020_v52, %s17393_s4  ;;  %6629 = vrot.lane.b32.xlu1 %v15023_v44, %s17412_s25 }
 0xe74   : > { %v15485_v26 = vpop.permute.xlu0 %6759  ;;  %v6758_v56 = vpop.permute.xlu1 %6757 }
 0xe75   : > { %v15489_v11 = vsel %vm1293_vm11, %v6758_v56, %v15485_v26  ;;  %v15492_v9 = vsel %vm1293_vm11, %v6756_v28, %v6758_v56 }
 0xe76   : > { %7073 = vrot.lane.b32.xlu0 %v15020_v52, %s17956_s13  ;;  %6659 = vrot.lane.b32.xlu1 %v15013_v48, %s17393_s4 }
 0xe77   : > { %7661 = vmatprep.subr.bf16.mxu1 %v15489_v11 }
 0xe78   : > { %7662 = vmatpush1.bf16.msra.mxu1 %v15492_v9  ;;  %v6790_v10 = vpop.permute.xlu0 %6789  ;;  %v15500_v62 = vpop.permute.xlu1 %6787 }
 0xe79   : > { %v15504_v59 = vsel %vm18302_vm0, %v15500_v62, %v6790_v10  ;;  %vm18313_vm0 = vmmov %vm18312_vm1 }
 0xe7a   : > { %18303 = vst [vmem:[#allocation52_spill] sm:$0xff] %v15504_v59  ;;  %6663 = vrot.lane.b32.xlu0 %v15023_v44, %s17393_s4  ;;  %7053 = vrot.lane.b32.xlu1 %v15030_v27, %s17405_s24 }
 0xe7b   : > { %7577 = vmatprep.subr.bf16.mxu0 %v15504_v59 }
 0xe7c   : > { %v15511_v56 = vpop.permute.xlu0 %7145  ;;  %v6786_v28 = vpop.permute.xlu1 %6785 }
 0xe7d   : > { %v6803_v23 = vsel %vm18304_vm8, %v6786_v28, %v15500_v62  ;;  %vm18315_vm8 = vcmask 146432  }
 0xe7e   : > { %6693 = vrot.lane.b32.xlu0 %v15013_v48, %s17413_s0  ;;  %7075 = vrot.lane.b32.xlu1 %v15023_v44, %s17956_s13 }
 0xe7f   : > { %7578 = vmatpush1.bf16.msra.mxu0 %v6803_v23 }
 0xe80   : > { %v6792_v47 = vpop.permute.xlu0 %6791  ;;  %v15519_v36 = vpop.permute.xlu1 %7147 }
 0xe81   : > { %v15537_v23 = vsel %vm18308_vm7, %v6790_v10, %v6792_v47 }
 0xe82   : > { %7077 = vrot.lane.b32.xlu0 %v15030_v27, %s17956_s13  ;;  %6665 = vrot.lane.b32.xlu1 %v15030_v27, %s17393_s4 }
 0xe84   : > { %v6822_v53 = vpop.permute.xlu0 %6821  ;;  %v15525_v57 = vpop.permute.xlu1 %6793 }
 0xe85   : > { %18305 = vst [vmem:[#allocation68_spill] sm:$0xff] %v15525_v57  ;;  %v15529_v28 = vsel %vm18306_vm6, %v6792_v47, %v15525_v57  ;;  %vm18316_vm6 = vmmov %vm18315_vm8 }
 0xe86   : > { %18307 = vst [vmem:[#allocation43_spill] sm:$0xff] %v15529_v28  ;;  %7099 = vrot.lane.b32.xlu0 %v15020_v52, %s17407_s27  ;;  %6695 = vrot.lane.b32.xlu1 %v15020_v52, %s17413_s0  ;;  %vm18318_vm7 = vmmov %vm18316_vm6 }
 0xe87   : > { %7663 = vmatprep.subr.bf16.mxu1 %v15529_v28 }
 0xe88   : > { %7664 = vmatpush1.bf16.msra.mxu1 %v15537_v23  ;;  %v15540_v14 = vpop.permute.xlu0 %6761  ;;  %v6824_v42 = vpop.permute.xlu1 %6823 }
 0xe89   : > { %v6838_v37 = vsel %vm18309_vm3, %v6822_v53, %v6824_v42  ;;  %vm18319_vm3 = vmmov %vm18316_vm6 }
 0xe8a   : > { %6697 = vrot.lane.b32.xlu0 %v15023_v44, %s17413_s0  ;;  %7101 = vrot.lane.b32.xlu1 %v15023_v44, %s17407_s27 }
 0xe8b   : > { %7579 = vmatprep.subr.bf16.mxu0 %v6838_v37 }
 0xe8c   : > { %v6826_v21 = vpop.permute.xlu0 %6825  ;;  %v6820_v39 = vpop.permute.xlu1 %6819 }
 0xe8d   : > { %v6837_v54 = vsel %vm18310_vm15, %v6820_v39, %v6822_v53  ;;  %v6839_v37 = vsel %vm18313_vm0, %v6824_v42, %v6826_v21  ;;  %vm18320_vm15 = vcmask 138240  }
 0xe8e   : > { %6727 = vrot.lane.b32.xlu0 %v15013_v48, %s17395_s21  ;;  %6699 = vrot.lane.b32.xlu1 %v15030_v27, %s17413_s0 }
 0xe8f   : > { %7580 = vmatpush1.bf16.msra.mxu0 %v6837_v54 }
 0xe90   : > { %v6856_v47 = vpop.permute.xlu0 %6855  ;;  %v15552_v10 = vpop.permute.xlu1 %6827 }
 0xe91   : > { %18311 = vst [vmem:[#allocation81_spill] sm:$0xff] %v15552_v10  ;;  %v6840_v28 = vsel %vm18312_vm1, %v6826_v21, %v15552_v10  ;;  %vm18321_vm1 = vmmov %vm18320_vm15 }
 0xe92   : > { %7103 = vrot.lane.b32.xlu0 %v15030_v27, %s17407_s27  ;;  %6729 = vrot.lane.b32.xlu1 %v15020_v52, %s17395_s21  ;;  %vm18323_vm0 = vmmov %vm18321_vm1  ;;  %s18414_s27 = sld [smem:[#allocation114_spill]] }
 0xe93   : > { %7665 = vmatprep.subr.bf16.mxu1 %v6840_v28 }
 0xe94   : > { %7666 = vmatpush1.bf16.msra.mxu1 %v6839_v37  ;;  %v15561_v53 = vpop.permute.xlu0 %6795  ;;  %v6858_v39 = vpop.permute.xlu1 %6857 }
 0xe95   : > { %18314 = vst [vmem:[#allocation50_spill] sm:$0xff] %v15561_v53  ;;  %v6872_v54 = vsel %vm18315_vm8, %v6856_v47, %v6858_v39  ;;  %vm18324_vm8 = vmmov %vm18323_vm0 }
 0xe96   : > { %7125 = vrot.lane.b32.xlu0 %v15023_v44, %s17957_s14  ;;  %7123 = vrot.lane.b32.xlu1 %v15020_v52, %s17957_s14 }
 0xe97   : > { %7581 = vmatprep.subr.bf16.mxu0 %v6872_v54 }
 0xe98   : > { %v6860_v10 = vpop.permute.xlu0 %6859  ;;  %v6854_v57 = vpop.permute.xlu1 %6853 }
 0xe99   : > { %v6871_v59 = vsel %vm18316_vm6, %v6854_v57, %v6856_v47  ;;  %v6873_v57 = vsel %vm18319_vm3, %v6858_v39, %v6860_v10  ;;  %vm18325_vm6 = vcmask 130048  }
 0xe9a   : > { %6733 = vrot.lane.b32.xlu0 %v15030_v27, %s17395_s21  ;;  %6731 = vrot.lane.b32.xlu1 %v15023_v44, %s17395_s21  ;;  %vm18328_vm3 = vmmov %vm18325_vm6  ;;  %s18538_s21 = sld [smem:[#allocation117_spill]] }
 0xe9b   : > { %7582 = vmatpush1.bf16.msra.mxu0 %v6871_v59 }
 0xe9c   : > { %v6890_v42 = vpop.permute.xlu0 %6889  ;;  %v15573_v21 = vpop.permute.xlu1 %6861 }
 0xe9d   : > { %18317 = vst [vmem:[#allocation55_spill] sm:$0xff] %v15573_v21  ;;  %v6874_v28 = vsel %vm18318_vm7, %v6860_v10, %v15573_v21  ;;  %vm18326_vm7 = vmmov %vm18325_vm6 }
 0xe9e   : > { %7127 = vrot.lane.b32.xlu0 %v15030_v27, %s17957_s14  ;;  %6763 = vrot.lane.b32.xlu1 %v15020_v52, %s17416_s29 }
 0xe9f   : > { %7667 = vmatprep.subr.bf16.mxu1 %v6874_v28 }
 0xea0   : > { %7668 = vmatpush1.bf16.msra.mxu1 %v6873_v57  ;;  %v6888_v47 = vpop.permute.xlu0 %6887  ;;  %v6892_v37 = vpop.permute.xlu1 %6891 }
 0xea1   : > { %v6905_v59 = vsel %vm18320_vm15, %v6888_v47, %v6890_v42  ;;  %v6906_v54 = vsel %vm18321_vm1, %v6890_v42, %v6892_v37  ;;  %vm18329_vm15 = vmmov %vm18328_vm3  ;;  %vm18330_vm1 = vcmask 64512  }
 0xea2   : > { %7149 = vrot.lane.b32.xlu0 %v15020_v52, %s17414_s30  ;;  %7151 = vrot.lane.b32.xlu1 %v15023_v44, %s17414_s30 }
 0xea3   : > { %7583 = vmatprep.subr.bf16.mxu0 %v6906_v54 }
 0xea4   : > { %7584 = vmatpush1.bf16.msra.mxu0 %v6905_v59  ;;  %v15588_v21 = vpop.permute.xlu0 %6895  ;;  %v6894_v28 = vpop.permute.xlu1 %6893 }
 0xea5   : > { %18322 = vst [vmem:[#allocation8_spill] sm:$0xff] %v15588_v21  ;;  %v6908_v10 = vsel %vm18323_vm0, %v6894_v28, %v15588_v21  ;;  %v6907_v39 = vsel %vm18324_vm8, %v6892_v37, %v6894_v28  ;;  %vm18331_vm0 = vmmov %vm18330_vm1 }
 0xea6   : > { %6765 = vrot.lane.b32.xlu0 %v15023_v44, %s17416_s29  ;;  %6767 = vrot.lane.b32.xlu1 %v15030_v27, %s17416_s29  ;;  %vm18334_vm8 = vmmov %vm18331_vm0 }
 0xea7   : > { %7669 = vmatprep.subr.bf16.mxu1 %v6908_v10 }
 0xea8   : > { %7670 = vmatpush1.bf16.msra.mxu1 %v6907_v39  ;;  %v6926_v42 = vpop.permute.xlu0 %6925  ;;  %v6924_v57 = vpop.permute.xlu1 %6923 }
 0xea9   : > { %v6940_v47 = vsel %vm18325_vm6, %v6924_v57, %v6926_v42  ;;  %vm18335_vm6 = vmmov %vm18331_vm0 }
 0xeaa   : > { %6797 = vrot.lane.b32.xlu0 %v15020_v52, %s17398_s3  ;;  %7153 = vrot.lane.b32.xlu1 %v15030_v27, %s17414_s30 }
 0xeab   : > { %7585 = vmatprep.subr.bf16.mxu0 %v6940_v47 }
 0xeac   : > { %v6928_v37 = vpop.permute.xlu0 %6927  ;;  %v6922_v59 = vpop.permute.xlu1 %6921 }
 0xead   : > { %v6939_v54 = vsel %vm18326_vm7, %v6922_v59, %v6924_v57  ;;  %v6941_v57 = vsel %vm18329_vm15, %v6926_v42, %v6928_v37  ;;  %vm18343_vm7 = vcmask 400384  }
 0xeae   : > { %6799 = vrot.lane.b32.xlu0 %v15023_v44, %s17398_s3  ;;  %6801 = vrot.lane.b32.xlu1 %v15030_v27, %s17398_s3  ;;  %s18540_s3 = sld [smem:[#allocation118_spill]] }
 0xeaf   : > { %7586 = vmatpush1.bf16.msra.mxu0 %v6939_v54  ;;  %v7541_v54 = vld [vmem:[%s18292_s5] sm:$0xff] }
 0xeb0   : > { %v6958_v28 = vpop.permute.xlu0 %6957  ;;  %v15607_v10 = vpop.permute.xlu1 %6929 }
 0xeb1   : > { %18327 = vst [vmem:[#allocation61_spill] sm:$0xff] %v15607_v10  ;;  %v6942_v39 = vsel %vm18328_vm3, %v6928_v37, %v15607_v10  ;;  %v7545_v10 = vld [vmem:[%s18292_s5 + $0x20] sm:$0xff]  ;;  %vm18344_vm3 = vmmov %vm18343_vm7 }
 0xeb2   : > { %6829 = vrot.lane.b32.xlu0 %v15013_v48, %s17417_s2  ;;  %6831 = vrot.lane.b32.xlu1 %v15020_v52, %s17417_s2  ;;  %v15628_v42 = vpack.c.bf16 %v7545_v10, %v7541_v54  ;;  %vm18347_vm15 = vmmov %vm18344_vm3 }
 0xeb3   : > { %7671 = vmatprep.subr.bf16.mxu1 %v6942_v39 }
 0xeb4   : > { %7672 = vmatpush1.bf16.msra.mxu1 %v6941_v57  ;;  %v6956_v47 = vpop.permute.xlu0 %6955  ;;  %v6960_v59 = vpop.permute.xlu1 %6959  ;;  %18332 = vst [vmem:[#allocation76_spill] sm:$0xff] %v15628_v42 }
 0xeb5   : > { %v6973_v21 = vsel %vm18330_vm1, %v6956_v47, %v6958_v28  ;;  %v6974_v53 = vsel %vm18331_vm0, %v6958_v28, %v6960_v59  ;;  %vm18348_vm1 = vmmov %vm18344_vm3  ;;  %vm18352_vm0 = vcmask 384000  }
 0xeb6   : > { %6835 = vrot.lane.b32.xlu0 %v15030_v27, %s17417_s2  ;;  %6833 = vrot.lane.b32.xlu1 %v15023_v44, %s17417_s2 }
 0xeb7   : > { %7587 = vmatprep.subr.bf16.mxu0 %v6974_v53 }
 0xeb8   : > { %7588 = vmatpush1.bf16.msra.mxu0 %v6973_v21  ;;  %v15630_v37 = vpop.permute.xlu0 %6963  ;;  %v6962_v39 = vpop.permute.xlu1 %6961 }
 0xeb9   : > { %18333 = vst [vmem:[#allocation35_spill] sm:$0xff] %v15630_v37  ;;  %v6976_v57 = vsel %vm18334_vm8, %v6962_v39, %v15630_v37  ;;  %v6975_v47 = vsel %vm18335_vm6, %v6960_v59, %v6962_v39  ;;  %vm18353_vm8 = vmmov %vm18352_vm0 }
 0xeba   : > { %6865 = vrot.lane.b32.xlu0 %v15020_v52, %s17401_s23  ;;  %6863 = vrot.lane.b32.xlu1 %v15013_v48, %s17401_s23  ;;  %vm18355_vm6 = vmmov %vm18352_vm0 }
 0xebb   : > { %7673 = vmatprep.subr.bf16.mxu1 %v6976_v57  ;;  %7590 = vmatmul.mubr.bf16.vlgmr.msra.gmra.mrb[40].mxu0 %v15628_v42 }
 0xebc   : > { %7674 = vmatpush1.bf16.msra.mxu1 %v6975_v47  ;;  %v7172_v53 = vpop.permute.xlu0 %7171  ;;  %v7170_v21 = vpop.permute.xlu1 %7169 }
 0xebd   : > { %v7366_v28 = vsel %vm2173_vm12, %v7170_v21, %v7172_v53 }
 0xebe   : > { %6869 = vrot.lane.b32.xlu0 %v15030_v27, %s17401_s23  ;;  %6867 = vrot.lane.b32.xlu1 %v15023_v44, %s17401_s23  ;;  %s18539_s23 = sld [smem:[#allocation3_spill]] }
 0xebf   : > { %7600 = vmatprep.subr.bf16.mxu0 %v7366_v28  ;;  %7676 = vmatmul.mubr.bf16.vlgmr.msra.gmra.mrb[40].mxu1 %v15628_v42 }
 0xec0   : > { %v7174_v10 = vpop.permute.xlu0 %7173  ;;  %v7168_v59 = vpop.permute.xlu1 %7167 }
 0xec1   : > { %v7365_v54 = vsel %vm2173_vm12, %v7168_v59, %v7170_v21  ;;  %v7367_v21 = vsel %vm2173_vm12, %v7172_v53, %v7174_v10 }
 0xec2   : > { %6899 = vrot.lane.b32.xlu0 %v15020_v52, %s17420_s20  ;;  %6897 = vrot.lane.b32.xlu1 %v15013_v48, %s17420_s20 }
 0xec3   : > { %7601 = vmatpush1.bf16.msra.mxu0 %v7365_v54 }
 0xec4   : > { %v15651_v39 = vpop.permute.xlu0 %6999  ;;  %v15653_v57 = vpop.permute.xlu1 %7175  ;;  %s8602_s25 = sshll.u32 %s18539_s23, 7 }
 0xec5   : > { %18336 = vst [vmem:[#allocation42_spill] sm:$0xff] %v15653_v57  ;;  %v7368_v47 = vsel %vm2173_vm12, %v7174_v10, %v15653_v57  ;;  %s16824_s4 = scalar_lea.vmem %s18540_s3, %s8602_s25 }
 0xec6   : > { %7221 = vrot.lane.b32.xlu0 %v15275_v32, %s18045_s16  ;;  %7203 = vrot.lane.b32.xlu1 %v15251_v1, %s18045_s16 }
 0xec7   : > { %7686 = vmatprep.subr.bf16.mxu1 %v7368_v47 }
 0xec8   : > { %7687 = vmatpush1.bf16.msra.mxu1 %v7367_v21  ;;  %v15662_v28 = vpop.permute.xlu0 %6591  ;;  %v15664_v59 = vpop.permute.xlu1 %7001 }
 0xec9   : > { %18337 = vst [vmem:[#allocation15_spill] sm:$0xff] %v15662_v28 }
 0xeca   : > { %7257 = vrot.lane.b32.xlu0 %v15341_v45, %s18045_s16  ;;  %7239 = vrot.lane.b32.xlu1 %v15304_v7, %s18045_s16 }
 0xecc   : > { %v15670_v54 = vpop.permute.xlu0 %7003  ;;  %v15672_v42 = vpop.permute.xlu1 %6593 }
 0xece   : > { %7293 = vrot.lane.b32.xlu0 %v15425_v40, %s18045_s16  ;;  %7275 = vrot.lane.b32.xlu1 %v15386_v4, %s18045_s16 }
 0xed0   : > { %v15678_v53 = vpop.permute.xlu0 %7025  ;;  %v15680_v10 = vpop.permute.xlu1 %7023 }
 0xed2   : > { %7329 = vrot.lane.b32.xlu0 %v15450_v15, %s18045_s16  ;;  %7311 = vrot.lane.b32.xlu1 %v15469_v13, %s18045_s16 }
 0xed4   : > { %v15686_v47 = vpop.permute.xlu0 %6597  ;;  %v15688_v21 = vpop.permute.xlu1 %6595 }
 0xed5   : > { %18338 = vst [vmem:[#allocation69_spill] sm:$0xff] %v15686_v47  ;;  %18339 = vst [vmem:[#allocation18_spill] sm:$0xff] %v15688_v21  ;;  %v7005_v21 = vsel %vm18344_vm3, %v15251_v1, %v15259_v38  ;;  %vm18358_vm3 = vcmask 318464  }
 0xed6   : > { %7187 = vrot.lane.b32.xlu0 %v15137_v41, %s18045_s16  ;;  %7347 = vrot.lane.b32.xlu1 %v15500_v62, %s18045_s16  ;;  %v15709_v41 = vsel %vm1077_vm2, %v15150_v5, %v15148_v61 }
 0xed8   : > { %v15694_v57 = vpop.permute.xlu0 %6627  ;;  %v15696_v37 = vpop.permute.xlu1 %6625 }
 0xed9   : > { %18340 = vst [vmem:[#allocation4_spill] sm:$0xff] %v15694_v57  ;;  %18341 = vst [vmem:[#allocation32_spill] sm:$0xff] %v15696_v37 }
 0xeda   : > { %7185 = vrot.lane.b32.xlu0 %v15141_v60, %s18045_s16  ;;  %7189 = vrot.lane.b32.xlu1 %v15162_v18, %s18045_s16  ;;  %v7006_v18 = vsel %vm18343_vm7, %v15259_v38, %v15257_v6  ;;  %vm18356_vm7 = vmmov %vm18352_vm0 }
 0xedc   : > { %v15702_v15 = vpop.permute.xlu0 %7051  ;;  %v15704_v47 = vpop.permute.xlu1 %7027 }
 0xede   : > { %7193 = vrot.lane.b32.xlu0 %v15709_v41, %s18045_s16  ;;  %7191 = vrot.lane.b32.xlu1 %v15154_v63, %s18045_s16  ;;  %v7007_v63 = vsel %vm18347_vm15, %v15257_v6, %v15267_v49  ;;  %v7032_v6 = vsel %vm1767_vm14, %v15273_v35, %v15283_v16  ;;  %vm18359_vm15 = vmmov %vm18358_vm3 }
 0xee0   : > { %v15715_v62 = vpop.permute.xlu0 %6631  ;;  %v15717_v60 = vpop.permute.xlu1 %7049 }
 0xee1   : > { %18342 = vst [vmem:[#allocation6_spill] sm:$0xff] %v15715_v62  ;;  %v7008_v62 = vsel %vm18348_vm1, %v15267_v49, %v15265_v3  ;;  %vm18361_vm1 = vmmov %vm18358_vm3 }
 0xee2   : > { %7207 = vrot.lane.b32.xlu0 %v7006_v18, %s18045_s16  ;;  %7205 = vrot.lane.b32.xlu1 %v7005_v21, %s18045_s16  ;;  %v7031_v21 = vsel %vm1767_vm14, %v15275_v32, %v15273_v35  ;;  %v7033_v32 = vsel %vm1767_vm14, %v15283_v16, %v15297_v24 }
 0xee4   : > { %v15727_v5 = vpop.permute.xlu0 %6661  ;;  %v15729_v37 = vpop.permute.xlu1 %6629 }
 0xee5   : > { %18345 = vst [vmem:[#allocation80_spill] sm:$0xff] %v15727_v5  ;;  %18346 = vst [vmem:[#allocation58_spill] sm:$0xff] %v15729_v37 }
 0xee6   : > { %7209 = vrot.lane.b32.xlu0 %v7007_v63, %s18045_s16  ;;  %7211 = vrot.lane.b32.xlu1 %v7008_v62, %s18045_s16  ;;  %v7034_v62 = vsel %vm1767_vm14, %v15297_v24, %v15306_v12 }
 0xee8   : > { %v15739_v1 = vpop.permute.xlu0 %7073  ;;  %v15741_v38 = vpop.permute.xlu1 %6659 }
 0xee9   : > { %18349 = vst [vmem:[#allocation30_spill] sm:$0xff] %v15741_v38 }
 0xeea   : > { %7223 = vrot.lane.b32.xlu0 %v7031_v21, %s18045_s16  ;;  %7225 = vrot.lane.b32.xlu1 %v7032_v6, %s18045_s16  ;;  %v7056_v21 = vsel %vm18352_vm0, %v15314_v2, %v15312_v30  ;;  %v7055_v6 = vsel %vm18353_vm8, %v15304_v7, %v15314_v2  ;;  %vm18362_vm0 = vmmov %vm18361_vm1  ;;  %vm18375_vm8 = vcmask 220160  }
 0xeec   : > { %v15751_v49 = vpop.permute.xlu0 %6663  ;;  %v15753_v18 = vpop.permute.xlu1 %7053 }
 0xeed   : > { %18350 = vst [vmem:[#allocation53_spill] sm:$0xff] %v15751_v49  ;;  %v18388_v49 = vld [vmem:[#allocation64_spill] sm:$0xff] }
 0xeee   : > { %7229 = vrot.lane.b32.xlu0 %v7034_v62, %s18045_s16  ;;  %7227 = vrot.lane.b32.xlu1 %v7033_v32, %s18045_s16  ;;  %v7057_v62 = vsel %vm18355_vm6, %v15312_v30, %v15334_v20  ;;  %v7058_v32 = vsel %vm18356_vm7, %v15334_v20, %v15343_v8  ;;  %v7082_v30 = vsel %vm18359_vm15, %v15351_v29, %v15349_v19  ;;  %vm18389_vm6 = vcmask 400384  }
 0xeef   : > { %vm18390_vm7 = vmmov %vm18389_vm6  ;;  %vm18395_vm15 = vcmask 384000  }
 0xef0   : > { %v15763_v35 = vpop.permute.xlu0 %6693  ;;  %v15765_v63 = vpop.permute.xlu1 %7075  ;;  %v7009_v38 = vsel %vm18390_vm7, %v15265_v3, %v15651_v39 }
 0xef1   : > { %18351 = vst [vmem:[#allocation63_spill] sm:$0xff] %v15763_v35 }
 0xef2   : > { %7243 = vrot.lane.b32.xlu0 %v7056_v21, %s18045_s16  ;;  %7241 = vrot.lane.b32.xlu1 %v7055_v6, %s18045_s16  ;;  %v7081_v21 = vsel %vm18358_vm3, %v15341_v45, %v15351_v29  ;;  %v7083_v45 = vsel %vm18362_vm0, %v15349_v19, %v15371_v58 }
 0xef4   : > { %v15775_v16 = vpop.permute.xlu0 %7077  ;;  %v15777_v24 = vpop.permute.xlu1 %6665 }
 0xef5   : > { %18354 = vst [vmem:[#allocation49_spill] sm:$0xff] %v15777_v24 }
 0xef6   : > { %7245 = vrot.lane.b32.xlu0 %v7057_v62, %s18045_s16  ;;  %7247 = vrot.lane.b32.xlu1 %v7058_v32, %s18045_s16  ;;  %v7084_v62 = vsel %vm18361_vm1, %v15371_v58, %v15388_v33  ;;  %vm18396_vm1 = vmmov %vm18395_vm15 }
 0xef7   : > { %vm18398_vm0 = vmmov %vm18396_vm1 }
 0xef8   : > { %v15787_v7 = vpop.permute.xlu0 %7099  ;;  %v15789_v2 = vpop.permute.xlu1 %6695 }
 0xef9   : > { %18357 = vst [vmem:[#allocation17_spill] sm:$0xff] %v15789_v2 }
 0xefa   : > { %7259 = vrot.lane.b32.xlu0 %v7081_v21, %s18045_s16  ;;  %7261 = vrot.lane.b32.xlu1 %v7082_v30, %s18045_s16  ;;  %v7106_v21 = vsel %vm1848_vm10, %v15398_v34, %v15396_v46  ;;  %v7105_v30 = vsel %vm1848_vm10, %v15386_v4, %v15398_v34 }
 0xefc   : > { %v15799_v20 = vpop.permute.xlu0 %6697  ;;  %v15801_v6 = vpop.permute.xlu1 %7101 }
 0xefd   : > { %18360 = vst [vmem:[#allocation82_spill] sm:$0xff] %v15799_v20  ;;  %v18386_v20 = vld [vmem:[#allocation29_spill] sm:$0xff] }
 0xefe   : > { %7265 = vrot.lane.b32.xlu0 %v7084_v62, %s18045_s16  ;;  %7263 = vrot.lane.b32.xlu1 %v7083_v45, %s18045_s16  ;;  %v7107_v62 = vsel %vm1848_vm10, %v15396_v46, %v15418_v50  ;;  %v7108_v45 = vsel %vm1848_vm10, %v15418_v50, %v15427_v17  ;;  %v7132_v46 = vsel %vm1875_vm13, %v15435_v22, %v15433_v31 }
 0xeff   : > { %v16009_v24 = vsel %vm1077_vm2, %v18386_v20, %v18388_v49 }
 0xf00   : > { %v15811_v29 = vpop.permute.xlu0 %6727  ;;  %v15813_v32 = vpop.permute.xlu1 %6699 }
 0xf01   : > { %18363 = vst [vmem:[#allocation33_spill] sm:$0xff] %v15811_v29  ;;  %18364 = vst [vmem:[#allocation94_spill] sm:$0xff] %v15813_v32  ;;  %v15998_v32 = vsel %vm1077_vm2, %v15148_v61, %v18386_v20  ;;  %v18387_v29 = vld [vmem:[#allocation59_spill] sm:$0xff]  ;;  %v7010_v20 = vsel %vm18389_vm6, %v15651_v39, %v15664_v59 }
 0xf02   : > { %7279 = vrot.lane.b32.xlu0 %v7106_v21, %s18045_s16  ;;  %7277 = vrot.lane.b32.xlu1 %v7105_v30, %s18045_s16  ;;  %v7131_v21 = vsel %vm1875_vm13, %v15425_v40, %v15435_v22  ;;  %v7133_v40 = vsel %vm1875_vm13, %v15433_v31, %v15461_v43  ;;  %v16014_v35 = vsel %vm1077_vm2, %v18388_v49, %v18387_v29  ;;  %vm18392_vm2 = vmmov %vm18389_vm6  ;;  %vm18400_vm6 = vcmask 318464  }
 0xf03   : > { %vm18393_vm3 = vmmov %vm18392_vm2 }
 0xf04   : > { %v15823_v19 = vpop.permute.xlu0 %7103  ;;  %v15825_v58 = vpop.permute.xlu1 %6729  ;;  %v7011_v28 = vsel %vm18393_vm3, %v15664_v59, %v15670_v54  ;;  %v7035_v59 = vsel %vm1767_vm14, %v15306_v12, %v15680_v10  ;;  %v7037_v12 = vsel %vm1767_vm14, %v15678_v53, %v15704_v47  ;;  %vm18401_vm7 = vmmov %vm18400_vm6 }
 0xf05   : > { %18365 = vst [vmem:[#allocation86_spill] sm:$0xff] %v15825_v58 }
 0xf06   : > { %7281 = vrot.lane.b32.xlu0 %v7107_v62, %s18045_s16  ;;  %7283 = vrot.lane.b32.xlu1 %v7108_v45, %s18045_s16  ;;  %v7134_v62 = vsel %vm1875_vm13, %v15461_v43, %v15471_v51 }
 0xf08   : > { %v15835_v34 = vpop.permute.xlu0 %7125  ;;  %v15837_v4 = vpop.permute.xlu1 %7123 }
 0xf0a   : > { %7295 = vrot.lane.b32.xlu0 %v7131_v21, %s18045_s16  ;;  %7297 = vrot.lane.b32.xlu1 %v7132_v46, %s18045_s16  ;;  %v7156_v21 = vsel %vm1902_vm9, %v15479_v0, %v15477_v25  ;;  %v7155_v46 = vsel %vm1902_vm9, %v15469_v13, %v15479_v0 }
 0xf0c   : > { %v15847_v50 = vpop.permute.xlu0 %6733  ;;  %v15849_v30 = vpop.permute.xlu1 %6731 }
 0xf0d   : > { %18366 = vst [vmem:[#allocation37_spill] sm:$0xff] %v15847_v50  ;;  %18367 = vst [vmem:[#allocation90_spill] sm:$0xff] %v15849_v30  ;;  %v18374_v30 = vld [vmem:[#allocation68_spill] sm:$0xff] }
 0xf0e   : > { %7301 = vrot.lane.b32.xlu0 %v7134_v62, %s18045_s16  ;;  %7299 = vrot.lane.b32.xlu1 %v7133_v40, %s18045_s16  ;;  %v7157_v62 = vsel %vm1902_vm9, %v15477_v25, %v15511_v56  ;;  %v7158_v40 = vsel %vm1902_vm9, %v15511_v56, %v15519_v36  ;;  %v7548_v25 = vld [vmem:[%s18292_s5 + $0x38] sm:$0xff] }
 0xf10   : > { %v15859_v22 = vpop.permute.xlu0 %7127  ;;  %v15861_v45 = vpop.permute.xlu1 %6763 }
 0xf12   : > { %7315 = vrot.lane.b32.xlu0 %v7156_v21, %s18045_s16  ;;  %7313 = vrot.lane.b32.xlu1 %v7155_v46, %s18045_s16  ;;  %v7544_v21 = vld [vmem:[%s18292_s5 + $0x18] sm:$0xff] }
 0xf13   : > { %v15897_v56 = vpack.c.bf16 %v7548_v25, %v7544_v21  ;;  %v18370_v21 = vld [vmem:[#allocation52_spill] sm:$0xff] }
 0xf14   : > { %v15871_v31 = vpop.permute.xlu0 %7149  ;;  %v15873_v43 = vpop.permute.xlu1 %7151 }
 0xf15   : > { %18368 = vst [vmem:[#allocation7_spill] sm:$0xff] %v15897_v56  ;;  %8587 = vmatprep.mubr.msk.bf16.mxu0 %vm1767_vm14, %v15897_v56  ;;  %8588 = vmatprep.mubr.msk.bf16.mxu1 %vm1767_vm14, %v15897_v56  ;;  %v18373_v56 = vld [vmem:[#allocation50_spill] sm:$0xff] }
 0xf16   : > { %7317 = vrot.lane.b32.xlu0 %v7157_v62, %s18045_s16  ;;  %7319 = vrot.lane.b32.xlu1 %v7158_v40, %s18045_s16  ;;  %v15910_v40 = vsel %vm1293_vm11, %v15485_v26, %v15540_v14 }
 0xf17   : > { %18369 = vst [vmem:[#allocation93_spill] sm:$0xff] %v15910_v40 }
 0xf18   : > { %v15883_v13 = vpop.permute.xlu0 %6765  ;;  %v15885_v0 = vpop.permute.xlu1 %6767 }
 0xf1a   : > { %7331 = vrot.lane.b32.xlu0 %v15454_v55, %s18045_s16  ;;  %7333 = vrot.lane.b32.xlu1 %v15492_v9, %s18045_s16 }
 0xf1c   : > { %v15899_v46 = vpop.permute.xlu0 %6797  ;;  %v15901_v62 = vpop.permute.xlu1 %7153 }
 0xf1e   : > { %7337 = vrot.lane.b32.xlu0 %v15910_v40, %s18045_s16  ;;  %7335 = vrot.lane.b32.xlu1 %v15489_v11, %s18045_s16  ;;  %v15931_v40 = vsel %vm18375_vm8, %v18374_v30, %v18373_v56  ;;  %v18377_v11 = vld [vmem:[#allocation43_spill] sm:$0xff]  ;;  %vm18399_vm8 = vmmov %vm18398_vm0 }
 0xf1f   : > { %18376 = vst [vmem:[#allocation89_spill] sm:$0xff] %v15931_v40 }
 0xf20   : > { %v15916_v9 = vpop.permute.xlu0 %6799  ;;  %v15918_v55 = vpop.permute.xlu1 %6801 }
 0xf22   : > { %7351 = vrot.lane.b32.xlu0 %v15537_v23, %s18045_s16  ;;  %7349 = vrot.lane.b32.xlu1 %v18370_v21, %s18045_s16 }
 0xf24   : > { %v15924_v25 = vpop.permute.xlu0 %6829  ;;  %v15926_v26 = vpop.permute.xlu1 %6831 }
 0xf25   : > { %18371 = vst [vmem:[#allocation11_spill] sm:$0xff] %v15924_v25  ;;  %18372 = vst [vmem:[#allocation96_spill] sm:$0xff] %v15926_v26 }
 0xf26   : > { %7353 = vrot.lane.b32.xlu0 %v18377_v11, %s18045_s16  ;;  %7355 = vrot.lane.b32.xlu1 %v15931_v40, %s18045_s16 }
 0xf28   : > { %v15937_v50 = vpop.permute.xlu0 %6835  ;;  %v15939_v23 = vpop.permute.xlu1 %6833 }
 0xf29   : > { %18378 = vst [vmem:[#allocation9_spill] sm:$0xff] %v15937_v50  ;;  %18379 = vst [vmem:[#allocation25_spill] sm:$0xff] %v15939_v23 }
 0xf2a   : > { %6903 = vrot.lane.b32.xlu0 %v15030_v27, %s17420_s20  ;;  %6901 = vrot.lane.b32.xlu1 %v15023_v44, %s17420_s20 }
 0xf2c   : > { %v15945_v21 = vpop.permute.xlu0 %6865  ;;  %v15947_v30 = vpop.permute.xlu1 %6863 }
 0xf2d   : > { %18380 = vst [vmem:[#allocation88_spill] sm:$0xff] %v15945_v21  ;;  %18381 = vst [vmem:[#allocation5_spill] sm:$0xff] %v15947_v30 }
 0xf2e   : > { %6933 = vrot.lane.b32.xlu0 %v15020_v52, %s18285_s17  ;;  %6931 = vrot.lane.b32.xlu1 %v15013_v48, %s18285_s17 }
 0xf30   : > { %v15953_v11 = vpop.permute.xlu0 %6869  ;;  %v15955_v50 = vpop.permute.xlu1 %6867 }
 0xf31   : > { %18382 = vst [vmem:[#allocation92_spill] sm:$0xff] %v15953_v11  ;;  %18383 = vst [vmem:[#allocation10_spill] sm:$0xff] %v15955_v50 }
 0xf32   : > { %6937 = vrot.lane.b32.xlu0 %v15030_v27, %s18285_s17  ;;  %6935 = vrot.lane.b32.xlu1 %v15023_v44, %s18285_s17 }
 0xf34   : > { %v15961_v23 = vpop.permute.xlu0 %6899  ;;  %v15963_v21 = vpop.permute.xlu1 %6897 }
 0xf35   : > { %18384 = vst [vmem:[#allocation95_spill] sm:$0xff] %v15961_v23  ;;  %18385 = vst [vmem:[#allocation87_spill] sm:$0xff] %v15963_v21 }
 0xf36   : > { %6967 = vrot.lane.b32.xlu0 %v15020_v52, %s18290_s10  ;;  %6965 = vrot.lane.b32.xlu1 %v15013_v48, %s18290_s10 }
 0xf38   : > { %v15969_v30 = vpop.permute.xlu0 %7221  ;;  %v7204_v11 = vpop.permute.xlu1 %7203 }
 0xf3a   : > { %6971 = vrot.lane.b32.xlu0 %v15030_v27, %s18290_s10  ;;  %6969 = vrot.lane.b32.xlu1 %v15023_v44, %s18290_s10 }
 0xf3c   : > { %v15975_v50 = vpop.permute.xlu0 %7257  ;;  %v15977_v23 = vpop.permute.xlu1 %7239 }
 0xf3e   : > { %7179 = vrot.lane.b32.xlu0 %v15020_v52, %s18045_s16  ;;  %7177 = vrot.lane.b32.xlu1 %v15013_v48, %s18045_s16 }
 0xf40   : > { %v15983_v21 = vpop.permute.xlu0 %7293  ;;  %v15985_v25 = vpop.permute.xlu1 %7275 }
 0xf42   : > { %7183 = vrot.lane.b32.xlu0 %v15030_v27, %s18045_s16  ;;  %7181 = vrot.lane.b32.xlu1 %v15023_v44, %s18045_s16 }
 0xf44   : > { %v15991_v26 = vpop.permute.xlu0 %7329  ;;  %v15993_v40 = vpop.permute.xlu1 %7311 }
 0xf46   : > { %7201 = vrot.lane.b32.xlu0 %v18387_v29, %s18045_s16  ;;  %7195 = vrot.lane.b32.xlu1 %v15998_v32, %s18045_s16 }
 0xf48   : > { %v7188_v58 = vpop.permute.xlu0 %7187  ;;  %v16004_v27 = vpop.permute.xlu1 %7347 }
 0xf4a   : > { %7197 = vrot.lane.b32.xlu0 %v16009_v24, %s18045_s16  ;;  %7199 = vrot.lane.b32.xlu1 %v16014_v35, %s18045_s16 }
 0xf4c   : > { %v7186_v61 = vpop.permute.xlu0 %7185  ;;  %v7190_v2 = vpop.permute.xlu1 %7189 }
 0xf4d   : > { %v7373_v37 = vsel %vm2173_vm12, %v7186_v61, %v7188_v58  ;;  %v7374_v49 = vsel %vm2173_vm12, %v7188_v58, %v7190_v2  ;;  %v18391_v61 = vld [vmem:[#allocation13_spill] sm:$0xff]  ;;  %v7036_v58 = vsel %vm1767_vm14, %v15680_v10, %v15678_v53  ;;  %v7059_v53 = vsel %vm18396_vm1, %v15343_v8, %v15717_v60 }
 0xf4e   : > { %7215 = vrot.lane.b32.xlu0 %v7010_v20, %s18045_s16  ;;  %7213 = vrot.lane.b32.xlu1 %v7009_v38, %s18045_s16  ;;  %v7012_v57 = vsel %vm18392_vm2, %v15670_v54, %v18391_v61  ;;  %v18394_v20 = vld [vmem:[#allocation75_spill] sm:$0xff]  ;;  %v7061_v8 = vsel %vm18399_vm8, %v15702_v15, %v15753_v18  ;;  %vm18403_vm2 = vmmov %vm18400_vm6 }
 0xf4f   : > { %7602 = vmatprep.subr.bf16.mxu0 %v7374_v49  ;;  %v7038_v49 = vsel %vm1767_vm14, %v15704_v47, %v18394_v20  ;;  %vm18404_vm3 = vmmov %vm18403_vm2 }
 0xf50   : > { %7603 = vmatpush1.bf16.msra.mxu0 %v7373_v37  ;;  %v16030_v29 = vpop.permute.xlu0 %7193  ;;  %v7192_v5 = vpop.permute.xlu1 %7191 }
 0xf51   : > { %v7376_v3 = vsel %vm2173_vm12, %v7192_v5, %v16030_v29  ;;  %v7375_v39 = vsel %vm2173_vm12, %v7190_v2, %v7192_v5 }
 0xf52   : > { %7219 = vrot.lane.b32.xlu0 %v7012_v57, %s18045_s16  ;;  %7217 = vrot.lane.b32.xlu1 %v7011_v28, %s18045_s16 }
 0xf53   : > { %7688 = vmatprep.subr.bf16.mxu1 %v7376_v3 }
 0xf54   : > { %7689 = vmatpush1.bf16.msra.mxu1 %v7375_v39  ;;  %v7208_v37 = vpop.permute.xlu0 %7207  ;;  %v7206_v38 = vpop.permute.xlu1 %7205  ;;  %v7060_v39 = vsel %vm18395_vm15, %v15717_v60, %v15702_v15  ;;  %v7085_v15 = vsel %vm18401_vm7, %v15388_v33, %v15739_v1  ;;  %v7087_v33 = vsel %vm18404_vm3, %v15765_v63, %v15775_v16  ;;  %vm18427_vm15 = vcmask 957440  }
 0xf55   : > { %v7382_v54 = vsel %vm2173_vm12, %v7206_v38, %v7208_v37  ;;  %v7381_v5 = vsel %vm2173_vm12, %v7204_v11, %v7206_v38  ;;  %vm18431_vm1 = vmmov %vm18427_vm15 }
 0xf56   : > { %7233 = vrot.lane.b32.xlu0 %v7036_v58, %s18045_s16  ;;  %7231 = vrot.lane.b32.xlu1 %v7035_v59, %s18045_s16  ;;  %v18397_v58 = vld [vmem:[#allocation21_spill] sm:$0xff] }
 0xf57   : > { %7604 = vmatprep.subr.bf16.mxu0 %v7382_v54  ;;  %v7062_v59 = vsel %vm18398_vm0, %v15753_v18, %v18397_v58  ;;  %vm18437_vm0 = vmmov %vm18431_vm1 }
 0xf58   : > { %7605 = vmatpush1.bf16.msra.mxu0 %v7381_v5  ;;  %v7210_v57 = vpop.permute.xlu0 %7209  ;;  %v16053_v28 = vpop.permute.xlu1 %7211 }
 0xf59   : > { %v7383_v2 = vsel %vm2173_vm12, %v7208_v37, %v7210_v57  ;;  %v7384_v10 = vsel %vm2173_vm12, %v7210_v57, %v16053_v28 }
 0xf5a   : > { %7237 = vrot.lane.b32.xlu0 %v7038_v49, %s18045_s16  ;;  %7235 = vrot.lane.b32.xlu1 %v7037_v12, %s18045_s16  ;;  %v18402_v12 = vld [vmem:[#allocation27_spill] sm:$0xff] }
 0xf5b   : > { %7690 = vmatprep.subr.bf16.mxu1 %v7384_v10  ;;  %v7088_v10 = vsel %vm18403_vm2, %v15775_v16, %v18402_v12 }
 0xf5c   : > { %7691 = vmatpush1.bf16.msra.mxu1 %v7383_v2  ;;  %v7224_v11 = vpop.permute.xlu0 %7223  ;;  %v7226_v61 = vpop.permute.xlu1 %7225  ;;  %v7086_v2 = vsel %vm18400_vm6, %v15739_v1, %v15765_v63  ;;  %v7109_v63 = vsel %vm1848_vm10, %v15427_v17, %v15787_v7  ;;  %v7111_v17 = vsel %vm1848_vm10, %v15801_v6, %v15823_v19  ;;  %vm18443_vm6 = vcmask 883712  }
 0xf5d   : > { %v7389_v3 = vsel %vm2173_vm12, %v15969_v30, %v7224_v11  ;;  %v7390_v47 = vsel %vm2173_vm12, %v7224_v11, %v7226_v61  ;;  %vm18448_vm2 = vmmov %vm18443_vm6 }
 0xf5e   : > { %7251 = vrot.lane.b32.xlu0 %v7060_v39, %s18045_s16  ;;  %7249 = vrot.lane.b32.xlu1 %v7059_v53, %s18045_s16  ;;  %v7110_v39 = vsel %vm1848_vm10, %v15787_v7, %v15801_v6  ;;  %v7135_v6 = vsel %vm1875_vm13, %v15471_v51, %v15837_v4  ;;  %v7137_v51 = vsel %vm1875_vm13, %v15835_v34, %v15859_v22 }
 0xf5f   : > { %7606 = vmatprep.subr.bf16.mxu0 %v7390_v47 }
 0xf60   : > { %7607 = vmatpush1.bf16.msra.mxu0 %v7389_v3  ;;  %v16077_v37 = vpop.permute.xlu0 %7229  ;;  %v7228_v38 = vpop.permute.xlu1 %7227 }
 0xf61   : > { %v7391_v30 = vsel %vm2173_vm12, %v7226_v61, %v7228_v38  ;;  %v7392_v60 = vsel %vm2173_vm12, %v7228_v38, %v16077_v37  ;;  %v18405_v38 = vld [vmem:[#allocation22_spill] sm:$0xff] }
 0xf62   : > { %7255 = vrot.lane.b32.xlu0 %v7062_v59, %s18045_s16  ;;  %7253 = vrot.lane.b32.xlu1 %v7061_v8, %s18045_s16 }
 0xf63   : > { %7692 = vmatprep.subr.bf16.mxu1 %v7392_v60  ;;  %v7136_v60 = vsel %vm1875_vm13, %v15837_v4, %v15835_v34  ;;  %v7159_v34 = vsel %vm1902_vm9, %v15519_v36, %v15871_v31  ;;  %v7161_v36 = vsel %vm1902_vm9, %v15873_v43, %v15901_v62 }
 0xf64   : > { %7693 = vmatpush1.bf16.msra.mxu1 %v7391_v30  ;;  %v7244_v54 = vpop.permute.xlu0 %7243  ;;  %v7242_v5 = vpop.permute.xlu1 %7241  ;;  %v7112_v30 = vsel %vm1848_vm10, %v15823_v19, %v18405_v38 }
 0xf65   : > { %v7397_v57 = vsel %vm2173_vm12, %v15977_v23, %v7242_v5  ;;  %v7398_v18 = vsel %vm2173_vm12, %v7242_v5, %v7244_v54 }
 0xf66   : > { %7269 = vrot.lane.b32.xlu0 %v7086_v2, %s18045_s16  ;;  %7267 = vrot.lane.b32.xlu1 %v7085_v15, %s18045_s16 }
 0xf67   : > { %7608 = vmatprep.subr.bf16.mxu0 %v7398_v18 }
 0xf68   : > { %7609 = vmatpush1.bf16.msra.mxu0 %v7397_v57  ;;  %v7246_v20 = vpop.permute.xlu0 %7245  ;;  %v16101_v49 = vpop.permute.xlu1 %7247  ;;  %v18406_v57 = vld [vmem:[#allocation44_spill] sm:$0xff] }
 0xf69   : > { %v7399_v23 = vsel %vm2173_vm12, %v7244_v54, %v7246_v20  ;;  %v7400_v1 = vsel %vm2173_vm12, %v7246_v20, %v16101_v49  ;;  %v7138_v2 = vsel %vm1875_vm13, %v15859_v22, %v18406_v57 }
 0xf6a   : > { %7273 = vrot.lane.b32.xlu0 %v7088_v10, %s18045_s16  ;;  %7271 = vrot.lane.b32.xlu1 %v7087_v33, %s18045_s16  ;;  %v18407_v33 = vld [vmem:[#allocation65_spill] sm:$0xff] }
 0xf6b   : > { %7694 = vmatprep.subr.bf16.mxu1 %v7400_v1  ;;  %v7162_v1 = vsel %vm1902_vm9, %v15901_v62, %v18407_v33  ;;  %v18418_v33 = vld [vmem:[#allocation62_spill] sm:$0xff] }
 0xf6c   : > { %7695 = vmatpush1.bf16.msra.mxu1 %v7399_v23  ;;  %v7260_v11 = vpop.permute.xlu0 %7259  ;;  %v7262_v61 = vpop.permute.xlu1 %7261  ;;  %v7160_v23 = vsel %vm1902_vm9, %v15871_v31, %v15873_v43  ;;  %v16196_v43 = vsel %vm1293_vm11, %v15540_v14, %v15861_v45  ;;  %vm18409_vm9 = vcmask 220160  }
 0xf6d   : > { %v7405_v3 = vsel %vm2173_vm12, %v15975_v50, %v7260_v11  ;;  %v7406_v16 = vsel %vm2173_vm12, %v7260_v11, %v7262_v61  ;;  %vm18410_vm10 = vmmov %vm18409_vm9 }
 0xf6e   : > { %7287 = vrot.lane.b32.xlu0 %v7110_v39, %s18045_s16  ;;  %7285 = vrot.lane.b32.xlu1 %v7109_v63, %s18045_s16  ;;  %v16191_v39 = vsel %vm1293_vm11, %v15861_v45, %v15883_v13  ;;  %v16212_v45 = vsel %vm1293_vm11, %v15883_v13, %v15885_v0  ;;  %v16224_v13 = vsel %vm18409_vm9, %v15899_v46, %v15916_v9  ;;  %vm18413_vm13 = vmmov %vm18409_vm9 }
 0xf6f   : > { %7610 = vmatprep.subr.bf16.mxu0 %v7406_v16 }
 0xf70   : > { %7611 = vmatpush1.bf16.msra.mxu0 %v7405_v3  ;;  %v16125_v53 = vpop.permute.xlu0 %7265  ;;  %v7264_v47 = vpop.permute.xlu1 %7263 }
 0xf71   : > { %v7407_v50 = vsel %vm2173_vm12, %v7262_v61, %v7264_v47  ;;  %v7408_v7 = vsel %vm2173_vm12, %v7264_v47, %v16125_v53  ;;  %v18408_v47 = vld [vmem:[#allocation45_spill] sm:$0xff] }
 0xf72   : > { %7291 = vrot.lane.b32.xlu0 %v7112_v30, %s18045_s16  ;;  %7289 = vrot.lane.b32.xlu1 %v7111_v17, %s18045_s16  ;;  %v7165_v14 = vsel %vm1293_vm11, %v15885_v0, %v18408_v47  ;;  %v16229_v0 = vsel %vm18410_vm10, %v18373_v56, %v15899_v46  ;;  %vm18412_vm11 = vmmov %vm18409_vm9  ;;  %v16245_v46 = vsel %vm18413_vm13, %v15916_v9, %v15918_v55  ;;  %vm18452_vm9 = vcmask 875520  }
 0xf73   : > { %7696 = vmatprep.subr.bf16.mxu1 %v7408_v7  ;;  %vm18455_vm10 = vmmov %vm18448_vm2 }
 0xf74   : > { %7697 = vmatpush1.bf16.msra.mxu1 %v7407_v50  ;;  %v7280_v58 = vpop.permute.xlu0 %7279  ;;  %v7278_v59 = vpop.permute.xlu1 %7277  ;;  %vm18458_vm13 = vmmov %vm18448_vm2 }
 0xf75   : > { %v7413_v8 = vsel %vm2173_vm12, %v15985_v25, %v7278_v59  ;;  %v7414_v19 = vsel %vm2173_vm12, %v7278_v59, %v7280_v58 }
 0xf76   : > { %7305 = vrot.lane.b32.xlu0 %v7136_v60, %s18045_s16  ;;  %7303 = vrot.lane.b32.xlu1 %v7135_v6, %s18045_s16  ;;  %v8015_v6 = vld [vmem:[%s18414_s27] sm:$0xff] }
 0xf77   : > { %7612 = vmatprep.subr.bf16.mxu0 %v7414_v19  ;;  %v8016_v19 = vld [vmem:[%s18414_s27 + $0x8] sm:$0xff] }
 0xf78   : > { %7613 = vmatpush1.bf16.msra.mxu0 %v7413_v8  ;;  %v7282_v54 = vpop.permute.xlu0 %7281  ;;  %v16149_v5 = vpop.permute.xlu1 %7283  ;;  %v18411_v8 = vld [vmem:[#allocation67_spill] sm:$0xff] }
 0xf79   : > { %v7415_v25 = vsel %vm2173_vm12, %v7280_v58, %v7282_v54  ;;  %v7416_v4 = vsel %vm2173_vm12, %v7282_v54, %v16149_v5  ;;  %v7166_v56 = vsel %vm18412_vm11, %v15918_v55, %v18411_v8  ;;  %v7543_v54 = vld [vmem:[%s18292_s5 + $0x10] sm:$0xff]  ;;  %vm18457_vm11 = vmmov %vm18452_vm9 }
 0xf7a   : > { %7309 = vrot.lane.b32.xlu0 %v7138_v2, %s18045_s16  ;;  %7307 = vrot.lane.b32.xlu1 %v7137_v51, %s18045_s16  ;;  %v8044_v51 = vld [vmem:[%s18415_s15 + $0x8] sm:$0xff] }
 0xf7b   : > { %7698 = vmatprep.subr.bf16.mxu1 %v7416_v4  ;;  %v8043_v4 = vld [vmem:[%s18415_s15] sm:$0xff] }
 0xf7c   : > { %7699 = vmatpush1.bf16.msra.mxu1 %v7415_v25  ;;  %v7296_v15 = vpop.permute.xlu0 %7295  ;;  %v7298_v18 = vpop.permute.xlu1 %7297  ;;  %v7547_v25 = vld [vmem:[%s18292_s5 + $0x30] sm:$0xff] }
 0xf7d   : > { %v7421_v20 = vsel %vm2173_vm12, %v15983_v21, %v7296_v15  ;;  %v7422_v22 = vsel %vm2173_vm12, %v7296_v15, %v7298_v18  ;;  %v16273_v15 = vpack.c.bf16 %v7547_v25, %v7543_v54  ;;  %v18436_v54 = vld [vmem:[#allocation18_spill] sm:$0xff] }
 0xf7e   : > { %7323 = vrot.lane.b32.xlu0 %v7160_v23, %s18045_s16  ;;  %7321 = vrot.lane.b32.xlu1 %v7159_v34, %s18045_s16  ;;  %v18416_v34 = vld [vmem:[#allocation48_spill] sm:$0xff] }
 0xf7f   : > { %7614 = vmatprep.subr.bf16.mxu0 %v7422_v22 }
 0xf80   : > { %7615 = vmatpush1.bf16.msra.mxu0 %v7421_v20  ;;  %v16173_v12 = vpop.permute.xlu0 %7301  ;;  %v7300_v10 = vpop.permute.xlu1 %7299 }
 0xf81   : > { %v7423_v21 = vsel %vm2173_vm12, %v7298_v18, %v7300_v10  ;;  %v7424_v31 = vsel %vm2173_vm12, %v7300_v10, %v16173_v12 }
 0xf82   : > { %7327 = vrot.lane.b32.xlu0 %v7162_v1, %s18045_s16  ;;  %7325 = vrot.lane.b32.xlu1 %v7161_v36, %s18045_s16  ;;  %v18419_v1 = vld [vmem:[#allocation51_spill] sm:$0xff] }
 0xf83   : > { %7700 = vmatprep.subr.bf16.mxu1 %v7424_v31  ;;  %v6536_v36 = vsel %vm1104_vm5, %v18419_v1, %v18418_v33 }
 0xf84   : > { %7701 = vmatpush1.bf16.msra.mxu1 %v7423_v21  ;;  %v7316_v11 = vpop.permute.xlu0 %7315  ;;  %v7314_v61 = vpop.permute.xlu1 %7313 }
 0xf85   : > { %v7429_v3 = vsel %vm2173_vm12, %v15993_v40, %v7314_v61  ;;  %v7430_v62 = vsel %vm2173_vm12, %v7314_v61, %v7316_v11 }
 0xf86   : > { %7341 = vrot.lane.b32.xlu0 %v16191_v39, %s18045_s16  ;;  %7339 = vrot.lane.b32.xlu1 %v16196_v43, %s18045_s16 }
 0xf87   : > { %7616 = vmatprep.subr.bf16.mxu0 %v7430_v62  ;;  %v18424_v62 = vld [vmem:[#allocation72_spill] sm:$0xff] }
 0xf88   : > { %7617 = vmatpush1.bf16.msra.mxu0 %v7429_v3  ;;  %v7318_v40 = vpop.permute.xlu0 %7317  ;;  %v16203_v63 = vpop.permute.xlu1 %7319  ;;  %v18423_v3 = vld [vmem:[#allocation26_spill] sm:$0xff] }
 0xf89   : > { %v7431_v16 = vsel %vm2173_vm12, %v7316_v11, %v7318_v40  ;;  %v7432_v50 = vsel %vm2173_vm12, %v7318_v40, %v16203_v63  ;;  %v18422_v11 = vld [vmem:[#allocation77_spill] sm:$0xff]  ;;  %v6538_v40 = vsel %vm1104_vm5, %v18424_v62, %v18423_v3 }
 0xf8a   : > { %7345 = vrot.lane.b32.xlu0 %v7165_v14, %s18045_s16  ;;  %7343 = vrot.lane.b32.xlu1 %v16212_v45, %s18045_s16 }
 0xf8b   : > { %7702 = vmatprep.subr.bf16.mxu1 %v7432_v50  ;;  %v18426_v50 = vld [vmem:[#allocation15_spill] sm:$0xff] }
 0xf8c   : > { %7703 = vmatpush1.bf16.msra.mxu1 %v7431_v16  ;;  %v7332_v38 = vpop.permute.xlu0 %7331  ;;  %v7334_v30 = vpop.permute.xlu1 %7333  ;;  %v18425_v16 = vld [vmem:[#allocation19_spill] sm:$0xff] }
 0xf8d   : > { %v7437_v17 = vsel %vm2173_vm12, %v15991_v26, %v7332_v38  ;;  %v7438_v7 = vsel %vm2173_vm12, %v7332_v38, %v7334_v30  ;;  %v6569_v47 = vsel %vm1131_vm4, %v18425_v16, %v18422_v11  ;;  %v6604_v38 = vsel %vm18427_vm15, %v18426_v50, %v15672_v42 }
 0xf8e   : > { %7359 = vrot.lane.b32.xlu0 %v16224_v13, %s18045_s16  ;;  %7357 = vrot.lane.b32.xlu1 %v16229_v0, %s18045_s16  ;;  %vm18461_vm15 = vcmask 867328  }
 0xf8f   : > { %7618 = vmatprep.subr.bf16.mxu0 %v7438_v7 }
 0xf90   : > { %7619 = vmatpush1.bf16.msra.mxu0 %v7437_v17  ;;  %v16236_v26 = vpop.permute.xlu0 %7337  ;;  %v7336_v58 = vpop.permute.xlu1 %7335  ;;  %v18429_v17 = vld [vmem:[#allocation78_spill] sm:$0xff] }
 0xf91   : > { %v7439_v59 = vsel %vm2173_vm12, %v7334_v30, %v7336_v58  ;;  %v7440_v60 = vsel %vm2173_vm12, %v7336_v58, %v16236_v26  ;;  %v18428_v30 = vld [vmem:[#allocation31_spill] sm:$0xff] }
 0xf92   : > { %7363 = vrot.lane.b32.xlu0 %v7166_v56, %s18045_s16  ;;  %7361 = vrot.lane.b32.xlu1 %v16245_v46, %s18045_s16  ;;  %v6572_v7 = vsel %vm1131_vm4, %v18429_v17, %v18428_v30 }
 0xf93   : > { %7704 = vmatprep.subr.bf16.mxu1 %v7440_v60 }
 0xf94   : > { %7705 = vmatpush1.bf16.msra.mxu1 %v7439_v59  ;;  %v7352_v9 = vpop.permute.xlu0 %7351  ;;  %v7350_v55 = vpop.permute.xlu1 %7349  ;;  %v18430_v59 = vld [vmem:[#allocation41_spill] sm:$0xff] }
 0xf95   : > { %v7445_v57 = vsel %vm2173_vm12, %v16004_v27, %v7350_v55  ;;  %v7446_v2 = vsel %vm2173_vm12, %v7350_v55, %v7352_v9  ;;  %v6603_v8 = vsel %vm18431_vm1, %v18430_v59, %v18426_v50  ;;  %v18435_v55 = vld [vmem:[#allocation69_spill] sm:$0xff]  ;;  %vm18464_vm1 = vmmov %vm18452_vm9 }
 0xf96   : > { %8019 = vperm.xlu0 %8733, %v8015_v6   ;;  %8024 = vperm.xlu1 %8734, %v8016_v19   ;;  %v18432_v6 = vld [vmem:[#allocation4_spill] sm:$0xff]  ;;  %v6606_v25 = vsel %vm18437_vm0, %v18436_v54, %v18435_v55 }
 0xf97   : > { %7620 = vmatprep.subr.bf16.mxu0 %v7446_v2  ;;  %v18433_v19 = vld [vmem:[#allocation32_spill] sm:$0xff]  ;;  %v18438_v2 = vld [vmem:[#allocation47_spill] sm:$0xff] }
 0xf98   : > { %7621 = vmatpush1.bf16.msra.mxu0 %v7445_v57  ;;  %v7354_v18 = vpop.permute.xlu0 %7353  ;;  %v16275_v20 = vpop.permute.xlu1 %7355 }
 0xf99   : > { %v7447_v27 = vsel %vm2173_vm12, %v7352_v9, %v7354_v18  ;;  %7729 = vmatprep.subr.bf16.mxu0 %v15013_v48  ;;  %v7448_v23 = vsel %vm2173_vm12, %v7354_v18, %v16275_v20  ;;  %v18417_v48 = vld [vmem:[#allocation46_spill] sm:$0xff] }
 0xf9a   : > { %8052 = vperm.xlu0 %8733, %v8044_v51   ;;  %8047 = vperm.xlu1 %8734, %v8043_v4  }
 0xf9b   : > { %7633 = vmatmul.mubr.bf16.vlgmr.msra.gmra.mrb[40].mxu0 %v16273_v15  ;;  %7706 = vmatprep.subr.bf16.mxu1 %v7448_v23  ;;  %v18442_v23 = vld [vmem:[#allocation30_spill] sm:$0xff] }
 0xf9c   : > { %7707 = vmatpush1.bf16.msra.mxu1 %v7447_v27  ;;  %7730 = vmatpush1.bf16.msra.mxu0 %v18416_v34  ;;  %v16283_v22 = vpop.permute.xlu0 %6903  ;;  %v16285_v10 = vpop.permute.xlu1 %6901  ;;  %v18441_v27 = vld [vmem:[#allocation80_spill] sm:$0xff] }
 0xf9d   : > { %7731 = vmatprep.subr.bf16.mxu0 %v15998_v32  ;;  %7815 = vmatprep.subr.bf16.mxu1 %v15023_v44  ;;  %v18420_v44 = vld [vmem:[#allocation57_spill] sm:$0xff]  ;;  %v6672_v34 = vsel %vm18443_vm6, %v18442_v23, %v18441_v27  ;;  %vm18476_vm6 = vcmask 211968  }
 0xf9e   : > { %7761 = vmatprep.mubr.bf16.mxu0 %v18417_v48  ;;  %v6535_v32 = vsel %vm1104_vm5, %v18420_v44, %v18419_v1  ;;  %v18447_v44 = vld [vmem:[#allocation23_spill] sm:$0xff] }
 0xf9f   : > { %7719 = vmatmul.mubr.bf16.vlgmr.msra.gmra.mrb[40].mxu1 %v16273_v15 }
 0xfa0   : > { %7732 = vmatpush1.bf16.msra.mxu0 %v15709_v41  ;;  %7816 = vmatpush1.bf16.msra.mxu1 %v15020_v52  ;;  %v16293_v21 = vpop.permute.xlu0 %6933  ;;  %v16298_v31 = vpop.permute.xlu1 %6931  ;;  %v18421_v41 = vld [vmem:[#allocation20_spill] sm:$0xff] }
 0xfa1   : > { %7733 = vmatprep.subr.bf16.mxu0 %v6536_v36  ;;  %7817 = vmatprep.subr.bf16.mxu1 %v16014_v35  ;;  %v6570_v61 = vsel %vm1131_vm4, %v18422_v11, %v18421_v41  ;;  %v6571_v56 = vsel %vm1131_vm4, %v18421_v41, %v18429_v17  ;;  %vm18440_vm4 = vmmov %vm18437_vm0  ;;  %v18450_v11 = vld [vmem:[#allocation17_spill] sm:$0xff]  ;;  %v18459_v17 = vld [vmem:[#allocation86_spill] sm:$0xff] }
 0xfa2   : > { %7847 = vmatprep.mubr.bf16.mxu1 %v18417_v48  ;;  %v6605_v4 = vsel %vm18440_vm4, %v15672_v42, %v18436_v54  ;;  %v18444_v48 = vld [vmem:[#allocation6_spill] sm:$0xff]  ;;  %v6671_v42 = vsel %vm18448_vm2, %v18447_v44, %v18442_v23  ;;  %vm18467_vm0 = vmmov %vm18464_vm1  ;;  %v18474_v44 = vld [vmem:[#allocation96_spill] sm:$0xff]  ;;  %vm18481_vm2 = vcmask 146432  }
 0xfa4   : > { %7734 = vmatpush1.bf16.msra.mxu0 %v6535_v32  ;;  %7818 = vmatpush1.bf16.msra.mxu1 %v16009_v24  ;;  %v16306_v52 = vpop.permute.xlu0 %6937  ;;  %v16314_v35 = vpop.permute.xlu1 %6935  ;;  %v6537_v24 = vsel %vm1104_vm5, %v18418_v33, %v18424_v62  ;;  %vm18434_vm5 = vcmask 949248   ;;  %v18445_v33 = vld [vmem:[#allocation58_spill] sm:$0xff]  ;;  %v18453_v62 = vld [vmem:[#allocation49_spill] sm:$0xff] }
 0xfa5   : > { %7735 = vmatprep.subr.bf16.mxu0 %v6570_v61  ;;  %7819 = vmatprep.subr.bf16.mxu1 %v6538_v40  ;;  %v6638_v9 = vsel %vm18434_vm5, %v18433_v19, %v18432_v6  ;;  %vm18439_vm8 = vmmov %vm18434_vm5  ;;  %v18451_v61 = vld [vmem:[#allocation63_spill] sm:$0xff]  ;;  %v18454_v40 = vld [vmem:[#allocation53_spill] sm:$0xff] }
 0xfa6   : > { %v6637_v51 = vsel %vm18439_vm8, %v18438_v2, %v18433_v19  ;;  %vm18446_vm7 = vmmov %vm18434_vm5  ;;  %v6706_v3 = vsel %vm18452_vm9, %v18451_v61, %v18450_v11  ;;  %v6674_v16 = vsel %vm18455_vm10, %v18454_v40, %v18453_v62  ;;  %v18468_v2 = vld [vmem:[#allocation37_spill] sm:$0xff] }
 0xfa7   : > { %v6640_v1 = vsel %vm18446_vm7, %v18445_v33, %v18444_v48  ;;  %vm18449_vm3 = vmmov %vm18434_vm5 }
 0xfa8   : > { %7736 = vmatpush1.bf16.msra.mxu0 %v6569_v47  ;;  %7820 = vmatpush1.bf16.msra.mxu1 %v6537_v24  ;;  %v16322_v14 = vpop.permute.xlu0 %6967  ;;  %v16330_v58 = vpop.permute.xlu1 %6965  ;;  %v6639_v32 = vsel %vm18449_vm3, %v18432_v6, %v18445_v33  ;;  %v18456_v24 = vld [vmem:[#allocation54_spill] sm:$0xff]  ;;  %vm18466_vm5 = vmmov %vm18461_vm15 }
 0xfa9   : > { %7737 = vmatprep.subr.bf16.mxu0 %v6604_v38  ;;  %7821 = vmatprep.subr.bf16.mxu1 %v6572_v7  ;;  %v6705_v50 = vsel %vm18457_vm11, %v18456_v24, %v18451_v61  ;;  %v6673_v38 = vsel %vm18458_vm13, %v18441_v27, %v18454_v40  ;;  %v18460_v7 = vld [vmem:[#allocation33_spill] sm:$0xff]  ;;  %vm18470_vm8 = vmmov %vm18466_vm5  ;;  %vm18490_vm11 = vcmask 138240  }
 0xfaa   : > { %v6740_v59 = vsel %vm18461_vm15, %v18460_v7, %v18459_v17  ;;  %vm18471_vm4 = vmmov %vm18466_vm5  ;;  %v18477_v61 = vld [vmem:[#allocation81_spill] sm:$0xff] }
 0xfab   : > { %vm18478_vm7 = vmmov %vm18476_vm6  ;;  %v18482_v40 = vld [vmem:[#allocation9_spill] sm:$0xff] }
 0xfac   : > { %7738 = vmatpush1.bf16.msra.mxu0 %v6603_v8  ;;  %7822 = vmatpush1.bf16.msra.mxu1 %v6571_v56  ;;  %v16338_v60 = vpop.permute.xlu0 %6971  ;;  %v16346_v57 = vpop.permute.xlu1 %6969  ;;  %v18462_v8 = vld [vmem:[#allocation94_spill] sm:$0xff]  ;;  %vm18484_vm3 = vmmov %vm18476_vm6 }
 0xfad   : > { %7739 = vmatprep.subr.bf16.mxu0 %v6638_v9  ;;  %7823 = vmatprep.subr.bf16.mxu1 %v6606_v25  ;;  %v18463_v56 = vld [vmem:[#allocation82_spill] sm:$0xff]  ;;  %v18465_v9 = vld [vmem:[#allocation84_spill] sm:$0xff]  ;;  %vm18486_vm9 = vmmov %vm18481_vm2 }
 0xfae   : > { %v6708_v6 = vsel %vm18464_vm1, %v18463_v56, %v18462_v8  ;;  %v6739_v55 = vsel %vm18466_vm5, %v18465_v9, %v18460_v7  ;;  %v6707_v54 = vsel %vm18467_vm0, %v18450_v11, %v18463_v56  ;;  %vm18487_vm10 = vmmov %vm18484_vm3  ;;  %v18488_v7 = vld [vmem:[#allocation95_spill] sm:$0xff]  ;;  %v18491_v56 = vld [vmem:[#allocation92_spill] sm:$0xff]  ;;  %vm18497_vm5 = vcmask 130048  }
 0xfaf   : > { %vm18493_vm13 = vmmov %vm18481_vm2 }
 0xfb0   : > { %7740 = vmatpush1.bf16.msra.mxu0 %v6637_v51  ;;  %7824 = vmatpush1.bf16.msra.mxu1 %v6605_v4  ;;  %v16354_v18 = vpop.permute.xlu0 %7179  ;;  %v16362_v36 = vpop.permute.xlu1 %7177  ;;  %v18469_v51 = vld [vmem:[#allocation90_spill] sm:$0xff]  ;;  %vm18495_vm15 = vmmov %vm18490_vm11 }
 0xfb1   : > { %7741 = vmatprep.subr.bf16.mxu0 %v6672_v34  ;;  %7825 = vmatprep.subr.bf16.mxu1 %v6640_v1  ;;  %v6742_v4 = vsel %vm18470_vm8, %v18469_v51, %v18468_v2  ;;  %v6741_v23 = vsel %vm18471_vm4, %v18459_v17, %v18469_v51  ;;  %v18472_v34 = vld [vmem:[#allocation93_spill] sm:$0xff]  ;;  %vm18496_vm1 = vmmov %vm18481_vm2 }
 0xfb2   : > { %v18473_v1 = vld [vmem:[#allocation89_spill] sm:$0xff]  ;;  %vm18498_vm0 = vmmov %vm18490_vm11 }
 0xfb3   : > { %vm18499_vm8 = vmmov %vm18498_vm0 }
 0xfb4   : > { %7742 = vmatpush1.bf16.msra.mxu0 %v6671_v42  ;;  %7826 = vmatpush1.bf16.msra.mxu1 %v6639_v32  ;;  %v16370_v41 = vpop.permute.xlu0 %7183  ;;  %v16378_v47 = vpop.permute.xlu1 %7181  ;;  %v18475_v42 = vld [vmem:[#allocation11_spill] sm:$0xff]  ;;  %vm18501_vm4 = vmmov %vm18497_vm5 }
 0xfb5   : > { %7743 = vmatprep.subr.bf16.mxu0 %v6706_v3  ;;  %7827 = vmatprep.subr.bf16.mxu1 %v6674_v16  ;;  %v6842_v32 = vsel %vm18476_vm6, %v18475_v42, %v18474_v44  ;;  %v18480_v3 = vld [vmem:[#allocation5_spill] sm:$0xff]  ;;  %vm18502_vm6 = vcmask 64512  }
 0xfb6   : > { %v18483_v16 = vld [vmem:[#allocation25_spill] sm:$0xff] }
 0xfb7   : > { %v6844_v24 = vsel %vm18484_vm3, %v18483_v16, %v18482_v40  ;;  %vm18506_vm3 = vmmov %vm18502_vm6 }
 0xfb8   : > { %7744 = vmatpush1.bf16.msra.mxu0 %v6705_v50  ;;  %7828 = vmatpush1.bf16.msra.mxu1 %v6673_v38  ;;  %v16386_v30 = vpop.permute.xlu0 %7201  ;;  %v16394_v19 = vpop.permute.xlu1 %7195 }
 0xfb9   : > { %7745 = vmatprep.subr.bf16.mxu0 %v6740_v59  ;;  %7829 = vmatprep.subr.bf16.mxu1 %v6708_v6  ;;  %v18489_v59 = vld [vmem:[#allocation87_spill] sm:$0xff]  ;;  %v18492_v6 = vld [vmem:[#allocation10_spill] sm:$0xff] }
 0xfba   : > { %v6910_v8 = vsel %vm18490_vm11, %v18489_v59, %v18488_v7  ;;  %v6878_v9 = vsel %vm18493_vm13, %v18492_v6, %v18491_v56  ;;  %vm18523_vm11 = vmmov %vm18506_vm3 }
 0xfbb   : > { %vm18525_vm13 = vmmov %vm18506_vm3 }
 0xfbc   : > { %7746 = vmatpush1.bf16.msra.mxu0 %v6739_v55  ;;  %7830 = vmatpush1.bf16.msra.mxu1 %v6707_v54  ;;  %v16402_v25 = vpop.permute.xlu0 %7197  ;;  %v16407_v27 = vpop.permute.xlu1 %7199  ;;  %v18494_v54 = vld [vmem:[#allocation8_spill] sm:$0xff] }
 0xfbd   : > { %7747 = vmatprep.subr.bf16.mxu0 %v16196_v43  ;;  %7831 = vmatprep.subr.bf16.mxu1 %v6742_v4  ;;  %v6909_v2 = vsel %vm18495_vm15, %v18494_v54, %v18489_v59  ;;  %v7380_v59 = vsel %vm2173_vm12, %v16407_v27, %v16386_v30  ;;  %vm18526_vm15 = vmmov %vm18506_vm3 }
 0xfc0   : > { %7748 = vmatpush1.bf16.msra.mxu0 %v18472_v34  ;;  %7832 = vmatpush1.bf16.msra.mxu1 %v6741_v23  ;;  %v16414_v48 = vpop.permute.xlu0 %7215  ;;  %v16416_v33 = vpop.permute.xlu1 %7213  ;;  %v6944_v23 = vsel %vm18497_vm5, %v16298_v31, %v16293_v21  ;;  %v6912_v34 = vsel %vm18498_vm0, %v16285_v10, %v16283_v22  ;;  %v6978_v22 = vsel %vm18502_vm6, %v16330_v58, %v16322_v14 }
 0xfc1   : > { %7749 = vmatprep.subr.bf16.mxu0 %v16229_v0  ;;  %7833 = vmatprep.subr.bf16.mxu1 %v16212_v45  ;;  %v6841_v0 = vsel %vm18478_vm7, %v18477_v61, %v18475_v42  ;;  %v18500_v42 = vld [vmem:[#allocation61_spill] sm:$0xff]  ;;  %vm18503_vm7 = vmmov %vm18501_vm4 }
 0xfc4   : > { %7750 = vmatpush1.bf16.msra.mxu0 %v18473_v1  ;;  %7834 = vmatpush1.bf16.msra.mxu1 %v16191_v39  ;;  %v16422_v43 = vpop.permute.xlu0 %7219  ;;  %v16427_v11 = vpop.permute.xlu1 %7217  ;;  %v18479_v39 = vld [vmem:[#allocation88_spill] sm:$0xff] }
 0xfc5   : > { %7751 = vmatprep.subr.bf16.mxu0 %v6842_v32  ;;  %7835 = vmatprep.subr.bf16.mxu1 %v16245_v46  ;;  %v6876_v62 = vsel %vm18481_vm2, %v18480_v3, %v18479_v39  ;;  %v18485_v46 = vld [vmem:[#allocation55_spill] sm:$0xff]  ;;  %v6877_v51 = vsel %vm18496_vm1, %v18479_v39, %v18492_v6  ;;  %v6943_v32 = vsel %vm18501_vm4, %v18500_v42, %v16298_v31  ;;  %vm18504_vm2 = vmmov %vm18501_vm4 }
 0xfc6   : > { %v6875_v38 = vsel %vm18486_vm9, %v18485_v46, %v18480_v3  ;;  %v18505_v31 = vld [vmem:[#allocation35_spill] sm:$0xff]  ;;  %vm18507_vm9 = vmmov %vm18506_vm3 }
 0xfc7   : > { %v6977_v3 = vsel %vm18506_vm3, %v18505_v31, %v16330_v58  ;;  %v6980_v40 = vsel %vm18507_vm9, %v16346_v57, %v16338_v60  ;;  %v7378_v60 = vsel %vm2173_vm12, %v16394_v19, %v16402_v25  ;;  %vm18527_vm1 = vmmov %vm18506_vm3 }
 0xfc8   : > { %7752 = vmatpush1.bf16.msra.mxu0 %v6841_v0  ;;  %7836 = vmatpush1.bf16.msra.mxu1 %v16224_v13  ;;  %v16434_v45 = vpop.permute.xlu0 %7233  ;;  %v16442_v50 = vpop.permute.xlu1 %7231  ;;  %v6843_v13 = vsel %vm18487_vm10, %v18474_v44, %v18483_v16  ;;  %v6911_v44 = vsel %vm18499_vm8, %v18488_v7, %v16285_v10  ;;  %v6946_v0 = vsel %vm18503_vm7, %v16314_v35, %v16306_v52  ;;  %vm18508_vm10 = vmmov %vm18506_vm3 }
 0xfc9   : > { %7753 = vmatprep.subr.bf16.mxu0 %v6876_v62  ;;  %7837 = vmatprep.subr.bf16.mxu1 %v6844_v24  ;;  %v6945_v10 = vsel %vm18504_vm2, %v16293_v21, %v16314_v35  ;;  %v7370_v52 = vsel %vm2173_vm12, %v16362_v36, %v16354_v18  ;;  %v6979_v21 = vsel %vm18508_vm10, %v16322_v14, %v16346_v57  ;;  %v18509_v35 = vld [vmem:[#allocation42_spill] sm:$0xff]  ;;  %v18510_v24 = vld [vmem:[#allocation76_spill] sm:$0xff]  ;;  %v18511_v14 = vld [vmem:[#allocation7_spill] sm:$0xff] }
 0xfca   : > { %v7369_v58 = vsel %vm2173_vm12, %v18509_v35, %v16362_v36  ;;  %v7371_v57 = vsel %vm2173_vm12, %v16354_v18, %v16378_v47  ;;  %v7377_v36 = vsel %vm2173_vm12, %v16030_v29, %v16394_v19  ;;  %v7379_v29 = vsel %vm2173_vm12, %v16402_v25, %v16407_v27  ;;  %vm18528_vm5 = vmmov %vm18527_vm1 }
 0xfcb   : > { %v7385_v18 = vsel %vm2173_vm12, %v16053_v28, %v16416_v33  ;;  %v7394_v30 = vsel %vm2173_vm12, %v16442_v50, %v16434_v45  ;;  %v7388_v19 = vsel %vm2173_vm12, %v16427_v11, %v16422_v43  ;;  %v7387_v25 = vsel %vm2173_vm12, %v16414_v48, %v16427_v11  ;;  %vm18529_vm0 = vmmov %vm18527_vm1 }
 0xfcc   : > { %7754 = vmatpush1.bf16.msra.mxu0 %v6875_v38  ;;  %7838 = vmatpush1.bf16.msra.mxu1 %v6843_v13  ;;  %v16450_v17 = vpop.permute.xlu0 %7237  ;;  %v16458_v55 = vpop.permute.xlu1 %7235  ;;  %v7372_v38 = vsel %vm2173_vm12, %v16378_v47, %v16370_v41  ;;  %v7386_v41 = vsel %vm2173_vm12, %v16416_v33, %v16414_v48  ;;  %v7393_v28 = vsel %vm2173_vm12, %v16077_v37, %v16442_v50 }
 0xfcd   : > { %7755 = vmatprep.subr.bf16.mxu0 %v6910_v8  ;;  %7839 = vmatprep.subr.bf16.mxu1 %v6878_v9  ;;  %v7396_v43 = vsel %vm2173_vm12, %v16458_v55, %v16450_v17  ;;  %v7395_v48 = vsel %vm2173_vm12, %v16434_v45, %v16458_v55 }
 0xfd0   : > { %7756 = vmatpush1.bf16.msra.mxu0 %v6909_v2  ;;  %7840 = vmatpush1.bf16.msra.mxu1 %v6877_v51  ;;  %v16466_v4 = vpop.permute.xlu0 %7251  ;;  %v16474_v1 = vpop.permute.xlu1 %7249 }
 0xfd1   : > { %7757 = vmatprep.subr.bf16.mxu0 %v6944_v23  ;;  %7841 = vmatprep.subr.bf16.mxu1 %v6912_v34  ;;  %v7402_v33 = vsel %vm2173_vm12, %v16474_v1, %v16466_v4  ;;  %v7401_v37 = vsel %vm2173_vm12, %v16101_v49, %v16474_v1 }
 0xfd4   : > { %7758 = vmatpush1.bf16.msra.mxu0 %v6943_v32  ;;  %7842 = vmatpush1.bf16.msra.mxu1 %v6911_v44  ;;  %v16482_v61 = vpop.permute.xlu0 %7255  ;;  %v16490_v39 = vpop.permute.xlu1 %7253 }
 0xfd5   : > { %7759 = vmatprep.subr.bf16.mxu0 %v6978_v22  ;;  %7843 = vmatprep.subr.bf16.mxu1 %v6946_v0  ;;  %v7404_v17 = vsel %vm2173_vm12, %v16490_v39, %v16482_v61  ;;  %v7403_v45 = vsel %vm2173_vm12, %v16466_v4, %v16490_v39 }
 0xfd8   : > { %7760 = vmatpush1.bf16.msra.mxu0 %v6977_v3  ;;  %7844 = vmatpush1.bf16.msra.mxu1 %v6945_v10  ;;  %v16498_v62 = vpop.permute.xlu0 %7269  ;;  %v7268_v16 = vpop.permute.xlu1 %7267 }
 0xfd9   : > { %7772 = vmatprep.subr.bf16.mxu0 %v7370_v52  ;;  %7845 = vmatprep.subr.bf16.mxu1 %v6980_v40  ;;  %v7410_v50 = vsel %vm2173_vm12, %v7268_v16, %v16498_v62  ;;  %v7409_v49 = vsel %vm2173_vm12, %v16125_v53, %v7268_v16 }
 0xfdb   : > { %7762 = vmatmul.mubr.bf16.vlgmr.msra.gmra.mrb[44].mxu0 %v18510_v24 }
 0xfdc   : > { %7773 = vmatpush1.bf16.msra.mxu0 %v7369_v58  ;;  %7846 = vmatpush1.bf16.msra.mxu1 %v6979_v21  ;;  %v7274_v46 = vpop.permute.xlu0 %7273  ;;  %v7272_v13 = vpop.permute.xlu1 %7271 }
 0xfdd   : > { %7774 = vmatprep.subr.bf16.mxu0 %v7378_v60  ;;  %7858 = vmatprep.subr.bf16.mxu1 %v7372_v38  ;;  %v7412_v2 = vsel %vm2173_vm12, %v7272_v13, %v7274_v46  ;;  %v7411_v23 = vsel %vm2173_vm12, %v16498_v62, %v7272_v13 }
 0xfde   : > { %8589 = vmatprep.mubr.msk.bf16.mxu0 %vm1767_vm14, %v18511_v14 }
 0xfdf   : > { %7848 = vmatmul.mubr.bf16.vlgmr.msra.gmra.mrb[44].mxu1 %v18510_v24 }
 0xfe0   : > { %7775 = vmatpush1.bf16.msra.mxu0 %v7377_v36  ;;  %7859 = vmatpush1.bf16.msra.mxu1 %v7371_v57  ;;  %v7288_v7 = vpop.permute.xlu0 %7287  ;;  %v7286_v8 = vpop.permute.xlu1 %7285  ;;  %v18515_v57 = vld [vmem:[#allocation60_spill] sm:$0xff]  ;;  %v18516_v36 = vmov 0.0  }
 0xfe1   : > { %7776 = vmatprep.subr.bf16.mxu0 %v7386_v41  ;;  %7860 = vmatprep.subr.bf16.mxu1 %v7380_v59  ;;  %v7418_v54 = vsel %vm2173_vm12, %v7286_v8, %v7288_v7  ;;  %v7417_v34 = vsel %vm2173_vm12, %v16149_v5, %v7286_v8  ;;  %v8071_v41 = vld [vmem:[%s18518_s19] sm:$0xff]  ;;  %v18519_v59 = vld [vmem:[#allocation71_spill] sm:$0xff]  ;;  %v18521_v8 = vld [vmem:[#allocation38_spill] sm:$0xff] }
 0xfe2   : > { %8590 = vmatprep.mubr.msk.bf16.mxu1 %vm1767_vm14, %v18511_v14  ;;  %v18514_v14 = vld [vmem:[#allocation40_spill] sm:$0xff]  ;;  %vm18520_vm14 = vmmov %vm18506_vm3 }
 0xfe4   : > { %7777 = vmatpush1.bf16.msra.mxu0 %v7385_v18  ;;  %7861 = vmatpush1.bf16.msra.mxu1 %v7379_v29  ;;  %v7292_v47 = vpop.permute.xlu0 %7291  ;;  %v7290_v56 = vpop.permute.xlu1 %7289  ;;  %v18524_v29 = vld [vmem:[#allocation56_spill] sm:$0xff] }
 0xfe5   : > { %7778 = vmatprep.subr.bf16.mxu0 %v7394_v30  ;;  %7862 = vmatprep.subr.bf16.mxu1 %v7388_v19  ;;  %v7420_v1 = vsel %vm2173_vm12, %v7290_v56, %v7292_v47  ;;  %v7419_v42 = vsel %vm2173_vm12, %v7288_v7, %v7290_v56  ;;  %v18517_v7 = vld [vmem:[#allocation16_spill] sm:$0xff]  ;;  %v18530_v47 = vld [vmem:[#allocation79_spill] sm:$0xff] }
 0xfe6   : > { %v18531_v56 = vld [vmem:[#allocation83_spill] sm:$0xff] }
 0xfe8   : > { %7779 = vmatpush1.bf16.msra.mxu0 %v7393_v28  ;;  %7863 = vmatpush1.bf16.msra.mxu1 %v7387_v25  ;;  %v7306_v27 = vpop.permute.xlu0 %7305  ;;  %v7304_v6 = vpop.permute.xlu1 %7303 }
 0xfe9   : > { %7780 = vmatprep.subr.bf16.mxu0 %v7402_v33  ;;  %7864 = vmatprep.subr.bf16.mxu1 %v7396_v43  ;;  %v7426_v53 = vsel %vm2173_vm12, %v7304_v6, %v7306_v27  ;;  %v7425_v32 = vsel %vm2173_vm12, %v16173_v12, %v7304_v6 }
 0xfec   : > { %7781 = vmatpush1.bf16.msra.mxu0 %v7401_v37  ;;  %7865 = vmatpush1.bf16.msra.mxu1 %v7395_v48  ;;  %v7310_v11 = vpop.permute.xlu0 %7309  ;;  %v7308_v9 = vpop.permute.xlu1 %7307 }
 0xfed   : > { %7782 = vmatprep.subr.bf16.mxu0 %v7410_v50  ;;  %7866 = vmatprep.subr.bf16.mxu1 %v7404_v17  ;;  %v7428_v22 = vsel %vm2173_vm12, %v7308_v9, %v7310_v11  ;;  %v7427_v39 = vsel %vm2173_vm12, %v7306_v27, %v7308_v9  ;;  %v18532_v17 = vld [vmem:[#allocation73_spill] sm:$0xff] }
 0xff0   : > { %7783 = vmatpush1.bf16.msra.mxu0 %v7409_v49  ;;  %7867 = vmatpush1.bf16.msra.mxu1 %v7403_v45  ;;  %v7324_v55 = vpop.permute.xlu0 %7323  ;;  %v7322_v51 = vpop.permute.xlu1 %7321 }
 0xff1   : > { %7784 = vmatprep.subr.bf16.mxu0 %v7418_v54  ;;  %7868 = vmatprep.subr.bf16.mxu1 %v7412_v2  ;;  %v7434_v5 = vsel %vm2173_vm12, %v7322_v51, %v7324_v55  ;;  %v7433_v10 = vsel %vm2173_vm12, %v16203_v63, %v7322_v51  ;;  %v18533_v2 = vld [vmem:[#allocation34_spill] sm:$0xff] }
 0xff4   : > { %7785 = vmatpush1.bf16.msra.mxu0 %v7417_v34  ;;  %7869 = vmatpush1.bf16.msra.mxu1 %v7411_v23  ;;  %v7328_v4 = vpop.permute.xlu0 %7327  ;;  %v7326_v44 = vpop.permute.xlu1 %7325 }
 0xff5   : > { %7786 = vmatprep.subr.bf16.mxu0 %v7426_v53  ;;  %7870 = vmatprep.subr.bf16.mxu1 %v7420_v1  ;;  %v7436_v3 = vsel %vm2173_vm12, %v7326_v44, %v7328_v4  ;;  %v7435_v52 = vsel %vm2173_vm12, %v7324_v55, %v7326_v44 }
 0xff8   : > { %7787 = vmatpush1.bf16.msra.mxu0 %v7425_v32  ;;  %7871 = vmatpush1.bf16.msra.mxu1 %v7419_v42  ;;  %v7342_v61 = vpop.permute.xlu0 %7341  ;;  %v7340_v0 = vpop.permute.xlu1 %7339 }
 0xff9   : > { %7788 = vmatprep.subr.bf16.mxu0 %v7434_v5  ;;  %7872 = vmatprep.subr.bf16.mxu1 %v7428_v22  ;;  %v7442_v12 = vsel %vm2173_vm12, %v7340_v0, %v7342_v61  ;;  %v7441_v40 = vsel %vm2173_vm12, %v16236_v26, %v7340_v0  ;;  %v18512_v26 = vld [vmem:[#allocation12_spill] sm:$0xff] }
 0xffc   : > { %7789 = vmatpush1.bf16.msra.mxu0 %v7433_v10  ;;  %7873 = vmatpush1.bf16.msra.mxu1 %v7427_v39  ;;  %v7346_v31 = vpop.permute.xlu0 %7345  ;;  %v7344_v62 = vpop.permute.xlu1 %7343 }
 0xffd   : > { %7790 = vmatprep.subr.bf16.mxu0 %v7442_v12  ;;  %7874 = vmatprep.subr.bf16.mxu1 %v7436_v3  ;;  %v7444_v63 = vsel %vm2173_vm12, %v7344_v62, %v7346_v31  ;;  %v7443_v24 = vsel %vm2173_vm12, %v7342_v61, %v7344_v62 }
0x1000   : > { %7791 = vmatpush1.bf16.msra.mxu0 %v7441_v40  ;;  %7875 = vmatpush1.bf16.msra.mxu1 %v7435_v52  ;;  %v7360_v16 = vpop.permute.xlu0 %7359  ;;  %v7358_v21 = vpop.permute.xlu1 %7357  ;;  %v18534_v52 = vld [vmem:[#allocation66_spill] sm:$0xff] }
0x1001   : > { %7876 = vmatprep.subr.bf16.mxu1 %v7444_v63  ;;  %v7449_v35 = vsel %vm2173_vm12, %v16275_v20, %v7358_v21  ;;  %v7450_v58 = vsel %vm2173_vm12, %v7358_v21, %v7360_v16  ;;  %v18513_v20 = vld [vmem:[#allocation85_spill] sm:$0xff]  ;;  %v18535_v63 = vld [vmem:[#allocation70_spill] sm:$0xff] }
0x1002   : > { %7792 = vmatprep.subr.bf16.mxu0 %v7450_v58 }
0x1004   : > { %7793 = vmatpush1.bf16.msra.mxu0 %v7449_v35  ;;  %7877 = vmatpush1.bf16.msra.mxu1 %v7443_v24  ;;  %v7364_v46 = vpop.permute.xlu0 %7363  ;;  %v7362_v60 = vpop.permute.xlu1 %7361 }
0x1005   : > { %8092 = vmatprep.subr.mxu0 %v18512_v26  ;;  %v7451_v38 = vsel %vm2173_vm12, %v7360_v16, %v7362_v60  ;;  %v7452_v13 = vsel %vm2173_vm12, %v7362_v60, %v7364_v46  ;;  %vm18522_vm12 = vmmov %vm18506_vm3 }
0x1006   : > { %7878 = vmatprep.subr.bf16.mxu1 %v7452_v13 }
0x1007   : > { %7805 = vmatmul.mubr.bf16.vlgmr.msra.gmra.mrb[44].mxu0 %v16273_v15 }
0x1008   : > { %7879 = vmatpush1.bf16.msra.mxu1 %v7451_v38  ;;  %8093 = vmatpush1.msra.mxu0 %v18513_v20 }
0x1009   : > { %8169 = vmatprep.subr.mxu1 %v18514_v14  ;;  %8246 = vmatprep.subr.mxu0 %v18515_v57 }
0x100a   : > { %8156 = vmatprep.mubr.f32.mxu0 %v18516_v36 }
0x100b   : > { %7891 = vmatmul.mubr.bf16.vlgmr.msra.gmra.mrb[44].mxu1 %v16273_v15  ;;  %v8072_v15 = vld [vmem:[%s18518_s19 + $0x8] sm:$0xff] }
0x100c   : > { %8170 = vmatpush1.msra.mxu1 %v18517_v7  ;;  %8233 = vmatprep.mubr.f32.mxu1 %v18516_v36 }
0x100d   : > { %8323 = vmatprep.subr.mxu1 %v18519_v59  ;;  %v18536_v59 = vld [vmem:[#allocation74_spill] sm:$0xff] }
0x100f   : > { %8591 = vmatmul.mubr.msk.f32.vlgmr.msra.gmra.mrb[48].mxu0 %vm18520_vm14, %v8071_v41 }
0x1010   : > { %8247 = vmatpush1.msra.mxu0 %v18521_v8  ;;  %8162 = vmatprep.mubr.f32.mxu0 %v18516_v36 }
0x1013   : > { %8593 = vmatmul.mubr.msk.f32.vlgmr.msra.gmra.mrb[48].mxu1 %vm18522_vm12, %v8071_v41  ;;  %8592 = vmatmul.mubr.msk.f32.gmra.mrb[50].mxu0 %vm18523_vm11, %v8072_v15 }
0x1014   : > { %8324 = vmatpush1.msra.mxu1 %v18524_v29  ;;  %8239 = vmatprep.mubr.f32.mxu1 %v18516_v36 }
0x1015   : > { %8310 = vmatprep.mubr.f32.mxu0 %v18516_v36 }
0x1017   : > { %8594 = vmatmul.mubr.msk.f32.gmra.mrb[50].mxu1 %vm18525_vm13, %v8072_v15  ;;  %8595 = vmatmul.mubr.msk.f32.vlgmr.msra.gmra.mrb[52].mxu0 %vm18526_vm15, %v8071_v41 }
0x1018   : > { %8387 = vmatprep.mubr.f32.mxu1 %v18516_v36  ;;  %8316 = vmatprep.mubr.f32.mxu0 %v18516_v36 }
0x101b   : > { %8597 = vmatmul.mubr.msk.f32.vlgmr.msra.gmra.mrb[52].mxu1 %vm18527_vm1, %v8071_v41  ;;  %8596 = vmatmul.mubr.msk.f32.gmra.mrb[54].mxu0 %vm18528_vm5, %v8072_v15 }
0x101c   : > { %8393 = vmatprep.mubr.f32.mxu1 %v18516_v36 }
0x101f   : > { %8598 = vmatmul.mubr.msk.f32.gmra.mrb[54].mxu1 %vm18529_vm0, %v8072_v15  ;;  %v18537_v15 = vld [vmem:[#allocation36_spill] sm:$0xff] }
0x106e   : > { %v16636_v18 = vpop.f32.mrb[40].mxu0 }
0x106f   : > { %v7901_v30 = vmul.f32 %v16636_v18, %v18530_v47  ;;  %v16640_v19 = vpop.f32.mrb[41].mxu0 }
0x1070   : > { %v7902_v25 = vmul.f32 %v16640_v19, %v18531_v56  ;;  %v16644_v28 = vpop.f32.mrb[42].mxu0 }
0x1071   : > { %v7935_v27 = vmul.f32 %v7901_v30, %v16636_v18  ;;  %v7909_v33 = vmul.f32 %v16644_v28, %v18530_v47  ;;  %v16649_v43 = vpop.f32.mrb[43].mxu0 }
0x1072   : > { %v7917_v6 = vadd.f32 %v7902_v25, %v7901_v30  ;;  %v7936_v48 = vmul.f32 %v7902_v25, %v16640_v19  ;;  %v7910_v37 = vmul.f32 %v16649_v43, %v18531_v56  ;;  %v16654_v11 = vpop.f32.mrb[40].mxu1 }
0x1073   : > { %v7943_v50 = vmul.f32 %v7909_v33, %v16644_v28  ;;  %v7903_v9 = vmul.f32 %v16654_v11, %v18532_v17  ;;  %v16659_v45 = vpop.f32.mrb[41].mxu1 }
0x1074   : > { %v7951_v49 = vadd.f32 %v7936_v48, %v7935_v27  ;;  %v7926_v55 = vadd.f32 %v7910_v37, %v7909_v33  ;;  %v7944_v54 = vmul.f32 %v7910_v37, %v16649_v43  ;;  %v7904_v51 = vmul.f32 %v16659_v45, %v18533_v2  ;;  %v16664_v23 = vpop.f32.mrb[42].mxu1 }
0x1075   : > { %v7918_v34 = vadd.f32 %v7917_v6, %v7903_v9  ;;  %v7937_v4 = vmul.f32 %v7903_v9, %v16654_v11  ;;  %v7911_v53 = vmul.f32 %v16664_v23, %v18532_v17  ;;  %v16669_v1 = vpop.f32.mrb[43].mxu1 }
0x1076   : > { %v7960_v44 = vadd.f32 %v7944_v54, %v7943_v50  ;;  %v7938_v42 = vmul.f32 %v7904_v51, %v16659_v45  ;;  %v7912_v32 = vmul.f32 %v16669_v1, %v18533_v2 }
0x1077   : > { %v7952_v61 = vadd.f32 %v7951_v49, %v7937_v4  ;;  %v7919_v5 = vadd.f32 %v7918_v34, %v7904_v51  ;;  %v7927_v22 = vadd.f32 %v7926_v55, %v7911_v53  ;;  %v7945_v0 = vmul.f32 %v7911_v53, %v16664_v23 }
0x1078   : > { %v7946_v39 = vmul.f32 %v7912_v32, %v16669_v1 }
0x1079   : > { %v7953_v10 = vadd.f32 %v7952_v61, %v7938_v42  ;;  %v7961_v31 = vadd.f32 %v7960_v44, %v7945_v0  ;;  %v7928_v12 = vadd.f32 %v7927_v22, %v7912_v32 }
0x107b   : > { %v7962_v3 = vadd.f32 %v7961_v31, %v7946_v39  ;;  %v8074_v31 = vld [vmem:[%s18538_s21 + $0x8] sm:$0xff] }
0x10da   : > { %v16676_v62 = vpop.f32.mrb[44].mxu0 }
0x10db   : > { %v7905_v40 = vmul.f32 %v16676_v62, %v18534_v52  ;;  %v16680_v16 = vpop.f32.mrb[45].mxu0 }
0x10dc   : > { %v7906_v21 = vmul.f32 %v16680_v16, %v18535_v63  ;;  %v16684_v35 = vpop.f32.mrb[46].mxu0 }
0x10dd   : > { %v7920_v58 = vadd.f32 %v7919_v5, %v7905_v40  ;;  %v7939_v24 = vmul.f32 %v7905_v40, %v16676_v62  ;;  %v7913_v46 = vmul.f32 %v16684_v35, %v18534_v52  ;;  %v16689_v60 = vpop.f32.mrb[47].mxu0 }
0x10de   : > { %v7940_v26 = vmul.f32 %v7906_v21, %v16680_v16  ;;  %v7914_v38 = vmul.f32 %v16689_v60, %v18535_v63  ;;  %v16694_v13 = vpop.f32.mrb[44].mxu1 }
0x10df   : > { %v7954_v20 = vadd.f32 %v7953_v10, %v7939_v24  ;;  %v7921_v14 = vadd.f32 %v7920_v58, %v7906_v21  ;;  %v7929_v57 = vadd.f32 %v7928_v12, %v7913_v46  ;;  %v7947_v36 = vmul.f32 %v7913_v46, %v16684_v35  ;;  %v16697_v7 = vpop.f32.mrb[45].mxu1  ;;  %v8073_v10 = vld [vmem:[%s18538_s21] sm:$0xff] }
0x10e0   : > { %v7948_v41 = vmul.f32 %v7914_v38, %v16689_v60  ;;  %v7907_v8 = vmul.f32 %v16694_v13, %v18536_v59  ;;  %v7908_v29 = vmul.f32 %v16697_v7, %v18537_v15  ;;  %v16704_v30 = vpop.f32.mrb[46].mxu1 }
0x10e1   : > { %v7955_v25 = vadd.f32 %v7954_v20, %v7940_v26  ;;  %v7963_v27 = vadd.f32 %v7962_v3, %v7947_v36  ;;  %v7930_v33 = vadd.f32 %v7929_v57, %v7914_v38  ;;  %v7915_v6 = vmul.f32 %v16704_v30, %v18536_v59  ;;  %v16708_v48 = vpop.f32.mrb[47].mxu1  ;;  %v16722_v36 = vpop.permute.xlu1 %8024 }
0x10e2   : > { %v7922_v37 = vadd.f32 %v7921_v14, %v7907_v8  ;;  %v7941_v50 = vmul.f32 %v7907_v8, %v16694_v13  ;;  %v7942_v9 = vmul.f32 %v7908_v29, %v16697_v7  ;;  %v7916_v49 = vmul.f32 %v16708_v48, %v18537_v15  ;;  %v8158_v5 = vpop.f32.mrb[48].mxu0 }
0x10e3   : > { %v7964_v55 = vadd.f32 %v7963_v27, %v7948_v41  ;;  %v7931_v54 = vadd.f32 %v7930_v33, %v7915_v6  ;;  %v7949_v51 = vmul.f32 %v7915_v6, %v16704_v30  ;;  %v8160_v0 = vpop.f32.mrb[49].mxu0  ;;  %v16724_v41 = vpop.permute.xlu0 %8019 }
0x10e4   : > { %v7956_v34 = vadd.f32 %v7955_v25, %v7941_v50  ;;  %v7950_v4 = vmul.f32 %v7916_v49, %v16708_v48  ;;  %v7923_v53 = vadd.f32 %v7922_v37, %v7908_v29 }
0x10e5   : > { %v7965_v44 = vadd.f32 %v7964_v55, %v7949_v51  ;;  %v7932_v42 = vadd.f32 %v7931_v54, %v7916_v49  ;;  %v16726_v8 = vpop.permute.xlu1 %8047 }
0x10e6   : > { %7924 = vadd.xlane.f32.xlu1 %v7923_v53  ;;  %v7957_v32 = vadd.f32 %v7956_v34, %v7942_v9  ;;  %v8235_v22 = vpop.f32.mrb[48].mxu1  ;;  %v8164_v12 = vpop.f32.mrb[50].mxu0 }
0x10e7   : > { %7933 = vadd.xlane.f32.xlu0 %v7932_v42  ;;  %v7966_v61 = vadd.f32 %v7965_v44, %v7950_v4  ;;  %v8237_v39 = vpop.f32.mrb[49].mxu1  ;;  %v8166_v40 = vpop.f32.mrb[51].mxu0 }
0x10e8   : > { %v16728_v29 = vpop.permute.xlu0 %8052 }
0x10ea   : > { %7967 = vadd.xlane.f32.xlu1 %v7966_v61  ;;  %v8241_v3 = vpop.f32.mrb[50].mxu1  ;;  %v8312_v58 = vpop.f32.mrb[52].mxu0 }
0x10eb   : > { %7958 = vadd.xlane.f32.xlu0 %v7957_v32  ;;  %v8243_v21 = vpop.f32.mrb[51].mxu1  ;;  %v8314_v46 = vpop.f32.mrb[53].mxu0 }
0x10ee   : > { %v8389_v24 = vpop.f32.mrb[52].mxu1  ;;  %v8318_v38 = vpop.f32.mrb[54].mxu0 }
0x10ef   : > { %v8391_v26 = vpop.f32.mrb[53].mxu1  ;;  %v8320_v14 = vpop.f32.mrb[55].mxu0 }
0x10f2   : > { %v8395_v20 = vpop.f32.mrb[54].mxu1 }
0x10f3   : > { %v8397_v57 = vpop.f32.mrb[55].mxu1 }
0x10fb   : > { %8077 = vperm.xlu1 %8734, %v8073_v10  }
0x1101   : > { %8082 = vperm.xlu0 %8733, %v8074_v31  }
0x1173   : > { %v7925_v25 = vpop.xlane.xlu1 %7924 }
0x1174   : > { %v7934_v27 = vpop.xlane.xlu0 %7933  ;;  %v16730_v33 = vmul.f32 0.001953125, %v7925_v25 }
0x1175   : > { %v16732_v6 = vmul.f32 0.001953125, %v7934_v27 }
0x1176   : > { %v7973_v54 = vmul.f32 %v16730_v33, %v16730_v33  ;;  %v7979_v32 = vsub.f32 %v16636_v18, %v16730_v33  ;;  %v7980_v61 = vsub.f32 %v16640_v19, %v16730_v33  ;;  %v7981_v10 = vsub.f32 %v16654_v11, %v16730_v33 }
0x1177   : > { %v7974_v37 = vmul.f32 %v16732_v6, %v16732_v6  ;;  %v7968_v50 = vpop.xlane.xlu1 %7967  ;;  %v7982_v31 = vsub.f32 %v16659_v45, %v16730_v33  ;;  %v7983_v25 = vsub.f32 %v16676_v62, %v16730_v33  ;;  %v7984_v27 = vsub.f32 %v16680_v16, %v16730_v33 }
0x1178   : > { %v7972_v9 = vmul.f32 0.001953125, %v7968_v50  ;;  %v7959_v49 = vpop.xlane.xlu0 %7958  ;;  %v7986_v18 = vsub.f32 %v16697_v7, %v16730_v33  ;;  %v7987_v19 = vsub.f32 %v16644_v28, %v16732_v6  ;;  %v7988_v11 = vsub.f32 %v16649_v43, %v16732_v6 }
0x1179   : > { %v7971_v55 = vmul.f32 0.001953125, %v7959_v49  ;;  %v7989_v45 = vsub.f32 %v16664_v23, %v16732_v6  ;;  %v7990_v62 = vsub.f32 %v16669_v1, %v16732_v6  ;;  %v7991_v16 = vsub.f32 %v16684_v35, %v16732_v6 }
0x117a   : > { %v7976_v51 = vsub.f32 %v7972_v9, %v7974_v37  ;;  %v7985_v37 = vsub.f32 %v16694_v13, %v16730_v33 }
0x117b   : > { %v7975_v34 = vsub.f32 %v7971_v55, %v7973_v54  ;;  %v8078_v50 = vpop.permute.xlu1 %8077 }
0x117c   : > { %v7978_v4 = vmax.f32 %v7976_v51, 0.0  ;;  %v8159_v43 = vadd.f32 %v8158_v5, %v8078_v50  ;;  %v8161_v9 = vadd.f32 %v8160_v0, %v8078_v50  ;;  %v8236_v49 = vadd.f32 %v8235_v22, %v8078_v50 }
0x117d   : > { %v7977_v53 = vmax.f32 %v7975_v34, 0.0  ;;  %v8238_v23 = vadd.f32 %v8237_v39, %v8078_v50  ;;  %v8313_v55 = vadd.f32 %v8312_v58, %v8078_v50  ;;  %v8315_v54 = vadd.f32 %v8314_v46, %v8078_v50 }
0x117e   : > { %v7996_v44 = vadd.f32 1e-05, %v7978_v4  ;;  %v8390_v1 = vadd.f32 %v8389_v24, %v8078_v50  ;;  %v8392_v51 = vadd.f32 %v8391_v26, %v8078_v50 }
0x117f   : > { %v7995_v42 = vadd.f32 1e-05, %v7977_v53 }
0x1180   : > { %8781 = vrsqrt.f32 %v7996_v44  ;;  %v8083_v33 = vpop.permute.xlu0 %8082 }
0x1181   : > { %8783 = vrsqrt.f32 %v7995_v42  ;;  %v16770_v34 = vadd.f32 %v8164_v12, %v8083_v33  ;;  %v16772_v4 = vadd.f32 %v8166_v40, %v8083_v33  ;;  %v16774_v53 = vadd.f32 %v8241_v3, %v8083_v33 }
0x1182   : > { %v16776_v44 = vadd.f32 %v8243_v21, %v8083_v33  ;;  %v16780_v28 = vadd.f32 %v8318_v38, %v8083_v33  ;;  %v16782_v5 = vadd.f32 %v8320_v14, %v8083_v33  ;;  %v16784_v22 = vadd.f32 %v8395_v20, %v8083_v33 }
0x1183   : > { %v16786_v0 = vadd.f32 %v8397_v57, %v8083_v33 }
0x118a   : > { %v16778_v42 = vpop.eup %8781 }
0x118b   : > { %v8784_v39 = vpop.eup %8783  ;;  %v16789_v12 = vmul.f32 %v16778_v42, %v7987_v19  ;;  %v16792_v40 = vmul.f32 %v16778_v42, %v7988_v11  ;;  %v16795_v3 = vmul.f32 %v16778_v42, %v7989_v45  ;;  %v16798_v21 = vmul.f32 %v16778_v42, %v7990_v62 }
0x118c   : > { %v7999_v58 = vmul.f32 %v8784_v39, %v7979_v32  ;;  %v8000_v24 = vmul.f32 %v8784_v39, %v7980_v61  ;;  %v8001_v46 = vmul.f32 %v8784_v39, %v7981_v10  ;;  %v8002_v26 = vmul.f32 %v8784_v39, %v7982_v31 }
0x118d   : > { %v8003_v38 = vmul.f32 %v8784_v39, %v7983_v25  ;;  %v8004_v20 = vmul.f32 %v8784_v39, %v7984_v27  ;;  %v8005_v14 = vmul.f32 %v8784_v39, %v7985_v37  ;;  %v8006_v57 = vmul.f32 %v8784_v39, %v7986_v18 }
0x118e   : > { %v8027_v50 = vmul.f32 %v16724_v41, %v7999_v58  ;;  %v8028_v19 = vmul.f32 %v16724_v41, %v8000_v24  ;;  %v8029_v11 = vmul.f32 %v16724_v41, %v8001_v46  ;;  %v8030_v45 = vmul.f32 %v16724_v41, %v8002_v26 }
0x118f   : > { %v8031_v33 = vmul.f32 %v16724_v41, %v8003_v38  ;;  %v8032_v62 = vmul.f32 %v16724_v41, %v8004_v20  ;;  %v8033_v32 = vmul.f32 %v16724_v41, %v8005_v14  ;;  %v8034_v61 = vmul.f32 %v16724_v41, %v8006_v57 }
0x1190   : > { %v8055_v10 = vadd.f32 %v16726_v8, %v8027_v50  ;;  %v8056_v31 = vadd.f32 %v16726_v8, %v8028_v19  ;;  %v8057_v25 = vadd.f32 %v16726_v8, %v8029_v11  ;;  %v8058_v27 = vadd.f32 %v16726_v8, %v8030_v45 }
0x1191   : > { %v8059_v37 = vadd.f32 %v16726_v8, %v8031_v33  ;;  %v8060_v18 = vadd.f32 %v16726_v8, %v8032_v62  ;;  %v8061_v39 = vadd.f32 %v16726_v8, %v8033_v32  ;;  %v8062_v58 = vadd.f32 %v16726_v8, %v8034_v61 }
0x1192   : > { %v8400_v24 = vadd.f32 %v8159_v43, %v8055_v10  ;;  %v8401_v46 = vadd.f32 %v8161_v9, %v8056_v31  ;;  %v8402_v41 = vadd.f32 %v8236_v49, %v8057_v25  ;;  %v8403_v26 = vadd.f32 %v8238_v23, %v8058_v27 }
0x1193   : > { %v8404_v38 = vadd.f32 %v8313_v55, %v8059_v37  ;;  %v8405_v20 = vadd.f32 %v8315_v54, %v8060_v18  ;;  %v8406_v14 = vadd.f32 %v8390_v1, %v8061_v39  ;;  %v8407_v57 = vadd.f32 %v8392_v51, %v8062_v58 }
0x1194   : > { %v8416_v50 = vmax.f32 %v8400_v24, 0.0  ;;  %v8417_v19 = vmax.f32 %v8401_v46, 0.0  ;;  %v8418_v11 = vmax.f32 %v8402_v41, 0.0  ;;  %v8419_v45 = vmax.f32 %v8403_v26, 0.0 }
0x1195   : > { %v8420_v33 = vmax.f32 %v8404_v38, 0.0  ;;  %v8421_v7 = vmax.f32 %v8405_v20, 0.0  ;;  %v8422_v62 = vmax.f32 %v8406_v14, 0.0  ;;  %v8423_v13 = vmax.f32 %v8407_v57, 0.0 }
0x1196   : > { %v8432_v32 = vmul.f32 %v8416_v50, %v18530_v47  ;;  %v8433_v8 = vmul.f32 %v8417_v19, %v18531_v56  ;;  %v8434_v43 = vmul.f32 %v8418_v11, %v18532_v17  ;;  %v8435_v9 = vmul.f32 %v8419_v45, %v18533_v2 }
0x1197   : > { %v8436_v49 = vmul.f32 %v8420_v33, %v18534_v52  ;;  %v8437_v23 = vmul.f32 %v8421_v7, %v18535_v63  ;;  %v8438_v55 = vmul.f32 %v8422_v62, %v18536_v59  ;;  %v8439_v54 = vmul.f32 %v8423_v13, %v18537_v15 }
0x1198   : > { %8448 = vst [vmem:[%s16824_s4] sm:$0xff] %v8432_v32  ;;  %8449 = vst [vmem:[%s16824_s4 + $0x8] sm:$0xff] %v8433_v8  ;;  %v8011_v1 = vmul.f32 %v16778_v42, %v7991_v16  ;;  %v18541_v51 = vsub.f32 %v16689_v60, %v16732_v6  ;;  %v18542_v7 = vsub.f32 %v16704_v30, %v16732_v6 }
0x1199   : > { %8450 = vst [vmem:[%s16824_s4 + $0x10] sm:$0xff] %v8434_v43  ;;  %8451 = vst [vmem:[%s16824_s4 + $0x18] sm:$0xff] %v8435_v9  ;;  %v18543_v13 = vsub.f32 %v16708_v48, %v16732_v6  ;;  %v8035_v35 = vmul.f32 %v16722_v36, %v16789_v12  ;;  %v8036_v60 = vmul.f32 %v16722_v36, %v16792_v40 }
0x119a   : > { %v8012_v61 = vmul.f32 %v16778_v42, %v18541_v51  ;;  %v8013_v10 = vmul.f32 %v16778_v42, %v18542_v7  ;;  %8452 = vst [vmem:[%s16824_s4 + $0x20] sm:$0xff] %v8436_v49  ;;  %8453 = vst [vmem:[%s16824_s4 + $0x28] sm:$0xff] %v8437_v23  ;;  %v8037_v30 = vmul.f32 %v16722_v36, %v16795_v3 }
0x119b   : > { %v8014_v31 = vmul.f32 %v16778_v42, %v18543_v13  ;;  %8454 = vst [vmem:[%s16824_s4 + $0x30] sm:$0xff] %v8438_v55  ;;  %8455 = vst [vmem:[%s16824_s4 + $0x38] sm:$0xff] %v8439_v54  ;;  %v8038_v16 = vmul.f32 %v16722_v36, %v16798_v21  ;;  %v8039_v48 = vmul.f32 %v16722_v36, %v8011_v1 }
0x119c   : > { %v8040_v6 = vmul.f32 %v16722_v36, %v8012_v61  ;;  %v8041_v42 = vmul.f32 %v16722_v36, %v8013_v10  ;;  %v8063_v27 = vadd.f32 %v16728_v29, %v8035_v35  ;;  %v8064_v12 = vadd.f32 %v16728_v29, %v8036_v60 }
0x119d   : > { %v8042_v25 = vmul.f32 %v16722_v36, %v8014_v31  ;;  %v8065_v40 = vadd.f32 %v16728_v29, %v8037_v30  ;;  %v8066_v37 = vadd.f32 %v16728_v29, %v8038_v16  ;;  %v8067_v3 = vadd.f32 %v16728_v29, %v8039_v48 }
0x119e   : > { %v8068_v21 = vadd.f32 %v16728_v29, %v8040_v6  ;;  %v8069_v18 = vadd.f32 %v16728_v29, %v8041_v42  ;;  %v8408_v58 = vadd.f32 %v16770_v34, %v8063_v27  ;;  %v8409_v36 = vadd.f32 %v16772_v4, %v8064_v12 }
0x119f   : > { %v8070_v39 = vadd.f32 %v16728_v29, %v8042_v25  ;;  %v8410_v24 = vadd.f32 %v16774_v53, %v8065_v40  ;;  %v8411_v46 = vadd.f32 %v16776_v44, %v8066_v37  ;;  %v8412_v41 = vadd.f32 %v16780_v28, %v8067_v3 }
0x11a0   : > { %v8413_v26 = vadd.f32 %v16782_v5, %v8068_v21  ;;  %v8414_v38 = vadd.f32 %v16784_v22, %v8069_v18  ;;  %v8424_v14 = vmax.f32 %v8408_v58, 0.0  ;;  %v8425_v57 = vmax.f32 %v8409_v36, 0.0 }
0x11a1   : > { %v8415_v20 = vadd.f32 %v16786_v0, %v8070_v39  ;;  %v8426_v29 = vmax.f32 %v8410_v24, 0.0  ;;  %v8427_v34 = vmax.f32 %v8411_v46, 0.0  ;;  %v8428_v4 = vmax.f32 %v8412_v41, 0.0 }
0x11a2   : > { %v8429_v53 = vmax.f32 %v8413_v26, 0.0  ;;  %v8430_v44 = vmax.f32 %v8414_v38, 0.0  ;;  %v8440_v5 = vmul.f32 %v8424_v14, %v18530_v47  ;;  %v8441_v22 = vmul.f32 %v8425_v57, %v18531_v56 }
0x11a3   : > { %v8431_v28 = vmax.f32 %v8415_v20, 0.0  ;;  %v8442_v0 = vmul.f32 %v8426_v29, %v18532_v17  ;;  %v8443_v50 = vmul.f32 %v8427_v34, %v18533_v2  ;;  %v8444_v19 = vmul.f32 %v8428_v4, %v18534_v52 }
0x11a4   : > { %v8445_v11 = vmul.f32 %v8429_v53, %v18535_v63  ;;  %v8446_v45 = vmul.f32 %v8430_v44, %v18536_v59  ;;  %8456 = vst [vmem:[%s16824_s4 + $0x40] sm:$0xff] %v8440_v5  ;;  %8457 = vst [vmem:[%s16824_s4 + $0x48] sm:$0xff] %v8441_v22 }
0x11a5   : > { %v8447_v33 = vmul.f32 %v8431_v28, %v18537_v15  ;;  %8458 = vst [vmem:[%s16824_s4 + $0x50] sm:$0xff] %v8442_v0  ;;  %8459 = vst [vmem:[%s16824_s4 + $0x58] sm:$0xff] %v8443_v50 }
0x11a6   : > { %8460 = vst [vmem:[%s16824_s4 + $0x60] sm:$0xff] %v8444_v19  ;;  %8461 = vst [vmem:[%s16824_s4 + $0x68] sm:$0xff] %v8445_v11 }
0x11a7   : > { %8462 = vst [vmem:[%s16824_s4 + $0x70] sm:$0xff] %v8446_v45  ;;  %8463 = vst [vmem:[%s16824_s4 + $0x78] sm:$0xff] %v8447_v33 }
0x11a8 PF: > { %s18544_s29 = sld [smem:[#allocation2_spill]] }
0x11ae   : > { %s30_s1 = sadd.s32 1, %s18544_s29  }
0x11af   : > { %p27_p4 = scmp.ge.s32.totalorder %s30_s1, 6  }
0x11b1   :  { %29 = sbr.rel (!%p27_p4) target bundleno = 22 (0x16), region = 133 }

</bundles_post_ra>
